<compile_context>
chip_gen: v7x
topology: tpu7x:2x2x1
jax: 0.10.0
libtpu: 0.0.40
codegen_flags: <defaults>
</compile_context>

<pallas_src>
import functools
import math

import jax
import jax.numpy as jnp
from jax.experimental import pallas as pl
from jax.experimental.pallas import tpu as pltpu


# Row order of the packed (9, D) bias/LayerNorm parameter array.
_VEC_ORDER = ("bq", "bk", "bv", "bo", "ln1_g", "ln1_b", "b2", "ln2_g", "ln2_b")


def _encoder_layer_kernel(num_heads, eps, cache_kv,
                          x_ref,
                          wq_ref, wk_ref, wv_ref, wo_ref,
                          w1_ref, b1_ref, w2_ref,
                          vecs_ref,
                          out_ref, attn_ref,
                          *scratch):
    """Fused MHA + residual + LN1 + conv1(1x1)+relu + conv2(1x1) + residual + LN2.

    Grid = (batch, query_tile).  x_ref holds the full (1, L, D) sequence for the
    current batch element; out/attn refs hold the current query tile's slice.
    If cache_kv, K^T/V^T are projected once per batch element (first query tile)
    into lane-dense (H, dh, L) VMEM scratch; otherwise they are recomputed per tile
    (lets the query axis be a "parallel" grid dim).
    """
    qi = pl.program_id(1)
    L = x_ref.shape[1]
    D = x_ref.shape[2]
    tq = out_ref.shape[1]
    H = num_heads
    dh = D // H
    scale = 1.0 / math.sqrt(dh)
    bf16 = jnp.bfloat16

    # Packed bias / LayerNorm vectors, see _VEC_ORDER.
    bq, bk, bv, bo = vecs_ref[0], vecs_ref[1], vecs_ref[2], vecs_ref[3]
    g1, bt1 = vecs_ref[4], vecs_ref[5]
    b2 = vecs_ref[6]
    g2, bt2 = vecs_ref[7], vecs_ref[8]

    def project_kv():
        # K/V projection for the whole sequence of this batch element.
        xb = x_ref[0].astype(bf16)                                           # (L, D)
        k = jnp.dot(xb, wk_ref[...], preferred_element_type=jnp.float32) + bk
        v = jnp.dot(xb, wv_ref[...], preferred_element_type=jnp.float32) + bv
        # Cast to bf16 BEFORE the transpose (half the relayout bytes); the head
        # split is then a free major-dim reshape.  Result layout (H, dh, L) is
        # lane-dense (L multiple of 128).
        kT = k.astype(bf16).T.reshape(H, dh, L)
        vT = v.astype(bf16).T.reshape(H, dh, L)
        return kT, vT

    if cache_kv:
        k_sc, v_sc = scratch

        @pl.when(qi == 0)
        def _():
            kT0, vT0 = project_kv()
            k_sc[...] = kT0
            v_sc[...] = vT0

        kT = k_sc[...]                                                        # (H, dh, L)
        vT = v_sc[...]
    else:
        kT, vT = project_kv()

    # --- Q projection for this query tile (softmax scale folded into q) ---
    start = pl.multiple_of(qi * tq, tq)
    x_tile = x_ref[0, pl.ds(start, tq), :]                                    # (tq, D) f32
    q = jnp.dot(x_tile.astype(bf16), wq_ref[...],
                preferred_element_type=jnp.float32) + bq                      # (tq, D) f32
    qh = (q * scale).astype(bf16).reshape(tq, H, dh).transpose(1, 0, 2)       # (H, tq, dh)

    # --- head-batched attention: bf16 MXU operands, f32 softmax statistics ---
    s = jnp.einsum('hqd,hdk->hqk', qh, kT,
                   preferred_element_type=jnp.float32)                        # (H, tq, L)
    s = s - jnp.max(s, axis=-1, keepdims=True)
    p = jnp.exp(s)
    p = p * pl.reciprocal(jnp.sum(p, axis=-1, keepdims=True), approx=True)
    attn_ref[0] = p.astype(attn_ref.dtype)                                    # bf16 output

    o = jnp.einsum('hqk,hdk->hqd', p.astype(bf16), vT,
                   preferred_element_type=jnp.float32)                        # (H, tq, dh)
    o = o.astype(bf16).transpose(1, 0, 2).reshape(tq, D)                      # merge heads
    new_x = jnp.dot(o, wo_ref[...], preferred_element_type=jnp.float32) + bo  # (tq, D)

    # --- x + dropout(new_x) (dropout = identity) ; LayerNorm1 in f32 ---
    xr = x_tile + new_x
    mu = jnp.mean(xr, axis=-1, keepdims=True)
    var = jnp.mean(jnp.square(xr - mu), axis=-1, keepdims=True)
    x1 = (xr - mu) * jax.lax.rsqrt(var + eps) * g1 + bt1

    # --- conv1 (1x1) -> relu -> conv2 (1x1): bf16 MXU, f32 accumulation ---
    y = jnp.dot(x1.astype(bf16), w1_ref[...],
                preferred_element_type=jnp.float32) + b1_ref[0]
    y = jnp.maximum(y, 0.0)
    y = jnp.dot(y.astype(bf16), w2_ref[...],
                preferred_element_type=jnp.float32) + b2

    # --- LayerNorm2(x1 + y) ---
    z = x1 + y
    mu2 = jnp.mean(z, axis=-1, keepdims=True)
    var2 = jnp.mean(jnp.square(z - mu2), axis=-1, keepdims=True)
    out_ref[0] = ((z - mu2) * jax.lax.rsqrt(var2 + eps) * g2 + bt2).astype(out_ref.dtype)


def _vmem_capacity_bytes():
    try:
        return int(pltpu.get_tpu_info().vmem_capacity_bytes)
    except Exception:
        return 64 << 20  # conservative (v7x per-TensorCore)


def _default_block_q(L):
    # v6e: 128 MiB VMEM + fastest MXU -> a 256-row query tile amortizes per-step
    # overhead.  Keep 128 on v5e (f32 VPU path) and v7x (64 MiB VMEM).
    try:
        kind = jax.devices()[0].device_kind.lower()
    except Exception:
        kind = ""
    if "v6" in kind and L % 256 == 0 and _vmem_capacity_bytes() >= (100 << 20):
        return 256
    return 128


def _const_spec(shape):
    """BlockSpec for a grid-invariant operand: single-buffered (no point in
    double-buffering a block whose index never changes)."""
    idx = lambda b, qi: (0,) * len(shape)
    try:
        return pl.BlockSpec(shape, idx, pipeline_mode=pl.Buffered(1))
    except TypeError:  # older jax without pipeline_mode: fall back to default buffering
        return pl.BlockSpec(shape, idx)


def prepare_params(params, compute_dtype=jnp.bfloat16):
    """One-time preparation: cast weights to bf16 and pack the small bias/LN vectors.

    Call once and reuse; avoids re-running the f32->bf16 converts on every forward.
    """
    f32 = jnp.float32
    vecs = jnp.concatenate([params[k].reshape(1, -1).astype(f32) for k in _VEC_ORDER],
                           axis=0)                                           # (9, D)
    return {
        "wq": params["wq"].astype(compute_dtype),
        "wk": params["wk"].astype(compute_dtype),
        "wv": params["wv"].astype(compute_dtype),
        "wo": params["wo"].astype(compute_dtype),
        "w1": params["w1"].astype(compute_dtype),
        "w2": params["w2"].astype(compute_dtype),
        "b1": params["b1"].reshape(1, -1).astype(f32),
        "vecs": vecs,
    }


def log_sparse_encoder_layer(x, prep, num_heads, *, block_q=None,
                             attn_dtype=jnp.bfloat16, eps=1e-5):
    """Fused forward.  `prep` comes from prepare_params().  Returns (out, attn)."""
    B, L, D = x.shape
    H = num_heads
    assert D % H == 0, "d_model must be divisible by num_heads"
    dh = D // H
    d_ff = prep["w1"].shape[1]

    if block_q is None:
        block_q = _default_block_q(L)
    tq = block_q if (L % block_q == 0) else L
    nq = L // tq

    # K/V caching only pays off when there are multiple query tiles per batch
    # element; with B == 1 recompute per tile so both grid axes can be "parallel"
    # (lets v7x use both TensorCores for long-sequence, small-batch inference).
    cache_kv = (B > 1) and (nq > 1)

    # --- VMEM budget (per grid step, resident) and explicit limit ---
    attn_bytes = jnp.dtype(attn_dtype).itemsize
    est = (
        2 * L * D * 4                          # x block, double-buffered f32
        + (4 * D * D + 2 * D * d_ff) * 2       # bf16 weights, single-buffered
        + (9 * D + d_ff) * 4                   # packed bias / LN vectors
        + (2 * D * L * 2 if cache_kv else 0)   # K^T / V^T bf16 scratch
        + 2 * tq * D * 4                       # out block, double-buffered
        + 2 * H * tq * L * attn_bytes          # attn block, double-buffered
        + H * tq * L * 8                       # f32 score / prob temporaries
        + tq * d_ff * 4                        # FFN intermediate
    )
    vmem_limit = min(int(0.9 * _vmem_capacity_bytes()),
                     max(32 << 20, int(1.5 * est)))

    x_spec = pl.BlockSpec((1, L, D), lambda b, qi: (b, 0, 0))      # resident per batch
    out_spec = pl.BlockSpec((1, tq, D), lambda b, qi: (b, qi, 0))
    attn_spec = pl.BlockSpec((1, H, tq, L), lambda b, qi: (b, 0, qi, 0))

    in_specs = [
        x_spec,
        _const_spec((D, D)), _const_spec((D, D)), _const_spec((D, D)), _const_spec((D, D)),
        _const_spec((D, d_ff)), _const_spec((1, d_ff)), _const_spec((d_ff, D)),
        _const_spec((9, D)),
    ]

    scratch_shapes = ([pltpu.VMEM((H, dh, L), jnp.bfloat16)] * 2) if cache_kv else []

    out, attn = pl.pallas_call(
        functools.partial(_encoder_layer_kernel, H, eps, cache_kv),
        grid=(B, nq),
        in_specs=in_specs,
        out_specs=(out_spec, attn_spec),
        out_shape=(jax.ShapeDtypeStruct((B, L, D), x.dtype),
                   jax.ShapeDtypeStruct((B, H, L, L), attn_dtype)),
        scratch_shapes=scratch_shapes,
        compiler_params=pltpu.CompilerParams(
            dimension_semantics=("parallel", "arbitrary" if cache_kv else "parallel"),
            vmem_limit_bytes=vmem_limit),
    )(x, prep["wq"], prep["wk"], prep["wv"], prep["wo"],
      prep["w1"], prep["b1"], prep["w2"], prep["vecs"])
    return out, attn


def init_params(key, d_model, d_ff):
    ks = jax.random.split(key, 10)
    s = 0.02
    f32 = jnp.float32
    return {
        # attention projections (applied as x @ W + b)
        "wq": jax.random.normal(ks[0], (d_model, d_model), f32) * s,
        "wk": jax.random.normal(ks[1], (d_model, d_model), f32) * s,
        "wv": jax.random.normal(ks[2], (d_model, d_model), f32) * s,
        "wo": jax.random.normal(ks[3], (d_model, d_model), f32) * s,
        "bq": jnp.zeros((1, d_model), f32),
        "bk": jnp.zeros((1, d_model), f32),
        "bv": jnp.zeros((1, d_model), f32),
        "bo": jnp.zeros((1, d_model), f32),
        # conv1 (1x1): PyTorch weight (d_ff, d_model, 1) -> stored as (d_model, d_ff)
        "w1": jax.random.normal(ks[4], (d_model, d_ff), f32) * s,
        "b1": jax.random.normal(ks[5], (1, d_ff), f32) * s,
        # conv2 (1x1): PyTorch weight (d_model, d_ff, 1) -> stored as (d_ff, d_model)
        "w2": jax.random.normal(ks[6], (d_ff, d_model), f32) * s,
        "b2": jax.random.normal(ks[7], (1, d_model), f32) * s,
        # LayerNorms
        "ln1_g": jnp.ones((1, d_model), f32),
        "ln1_b": jnp.zeros((1, d_model), f32),
        "ln2_g": jnp.ones((1, d_model), f32),
        "ln2_b": jnp.zeros((1, d_model), f32),
    }


def _layer_norm(z, g, b, eps=1e-5):
    mu = jnp.mean(z, axis=-1, keepdims=True)
    var = jnp.mean(jnp.square(z - mu), axis=-1, keepdims=True)
    return (z - mu) * jax.lax.rsqrt(var + eps) * g + b


def reference_forward(x, params, num_heads):
    """Pure-JAX f32 reference for correctness checking."""
    B, L, D = x.shape
    H = num_heads
    dh = D // H
    q = x @ params["wq"] + params["bq"]
    k = x @ params["wk"] + params["bk"]
    v = x @ params["wv"] + params["bv"]
    qh = q.reshape(B, L, H, dh).transpose(0, 2, 1, 3)
    kh = k.reshape(B, L, H, dh).transpose(0, 2, 1, 3)
    vh = v.reshape(B, L, H, dh).transpose(0, 2, 1, 3)
    s = jnp.einsum("bhqd,bhkd->bhqk", qh, kh) / math.sqrt(dh)
    p = jax.nn.softmax(s, axis=-1)
    o = jnp.einsum("bhqk,bhkd->bhqd", p, vh).transpose(0, 2, 1, 3).reshape(B, L, D)
    new_x = o @ params["wo"] + params["bo"]
    x1 = _layer_norm(x + new_x, params["ln1_g"], params["ln1_b"])
    y = jnp.maximum(x1 @ params["w1"] + params["b1"], 0.0)
    y = y @ params["w2"] + params["b2"]
    return _layer_norm(x1 + y, params["ln2_g"], params["ln2_b"]), p


if __name__ == "__main__":
    # Small but lane-aligned shapes (multiples of 128 on L and D).
    B, L, D, H = 2, 256, 128, 4
    d_ff = 4 * D

    key = jax.random.PRNGKey(0)
    kx, kp = jax.random.split(key)
    x = jax.random.normal(kx, (B, L, D), jnp.float32)
    params = init_params(kp, D, d_ff)
    prep = prepare_params(params)          # one-time bf16 cast + bias packing

    ref_out, ref_attn = reference_forward(x, params, H)

    # Path 1: B > 1 with multiple query tiles -> per-batch K/V caching,
    # dimension_semantics = ("parallel", "arbitrary").
    out, attn = log_sparse_encoder_layer(x, prep, num_heads=H, block_q=128)
    out = jax.block_until_ready(out)
    attn = jax.block_until_ready(attn)
    assert out.shape == (B, L, D) and attn.shape == (B, H, L, L)
    attn_f32 = attn.astype(jnp.float32)
    assert bool(jnp.all(jnp.isfinite(out))) and bool(jnp.all(jnp.isfinite(attn_f32)))
    assert float(jnp.max(jnp.abs(out - ref_out))) < 5e-2, "output mismatch vs reference"
    assert float(jnp.max(jnp.abs(attn_f32 - ref_attn))) < 2e-2, "attn mismatch vs reference"

    # Path 2: B == 1 -> K/V recomputed per tile, both grid axes "parallel"
    # (v7x dual-TensorCore path), auto block_q.
    out1, attn1 = log_sparse_encoder_layer(x[:1], prep, num_heads=H)
    out1 = jax.block_until_ready(out1)
    attn1 = jax.block_until_ready(attn1)
    assert out1.shape == (1, L, D) and attn1.shape == (1, H, L, L)
    assert float(jnp.max(jnp.abs(out1 - ref_out[:1]))) < 5e-2, "B=1 output mismatch"
    assert float(jnp.max(jnp.abs(attn1.astype(jnp.float32) - ref_attn[:1]))) < 2e-2, \
        "B=1 attn mismatch"

    print("KERNEL_OK")
</pallas_src>

<mosaic_0001>
module attributes {stable_mosaic.version = 11 : i64} {
  func.func @_encoder_layer_kernel(%arg0: i32, %arg1: i32, %arg2: memref<1x256x128xf32, #tpu.memory_space<vmem>>, %arg3: memref<128x128xbf16, #tpu.memory_space<vmem>>, %arg4: memref<128x128xbf16, #tpu.memory_space<vmem>>, %arg5: memref<128x128xbf16, #tpu.memory_space<vmem>>, %arg6: memref<128x128xbf16, #tpu.memory_space<vmem>>, %arg7: memref<128x512xbf16, #tpu.memory_space<vmem>>, %arg8: memref<1x512xf32, #tpu.memory_space<vmem>>, %arg9: memref<512x128xbf16, #tpu.memory_space<vmem>>, %arg10: memref<9x128xf32, #tpu.memory_space<vmem>>, %arg11: memref<1x128x128xf32, #tpu.memory_space<vmem>>, %arg12: memref<1x4x128x256xbf16, #tpu.memory_space<vmem>>, %arg13: memref<4x32x256xbf16, #tpu.memory_space<vmem>>, %arg14: memref<4x32x256xbf16, #tpu.memory_space<vmem>>) attributes {dimension_semantics = [#tpu.dimension_semantics<parallel>, #tpu.dimension_semantics<arbitrary>], iteration_bounds = array<i64: 2, 2>, scalar_prefetch = 0 : i64, scratch_operands = 2 : i64, tpu.core_type = #tpu.core_type<tc>, window_params = [{transform_indices = @transform_0, window_bounds = array<i64: 1, 256, 128>}, {pipeline_mode = #tpu.pipeline_mode<synchronous>, transform_indices = @transform_1, window_bounds = array<i64: 128, 128>}, {pipeline_mode = #tpu.pipeline_mode<synchronous>, transform_indices = @transform_2, window_bounds = array<i64: 128, 128>}, {pipeline_mode = #tpu.pipeline_mode<synchronous>, transform_indices = @transform_3, window_bounds = array<i64: 128, 128>}, {pipeline_mode = #tpu.pipeline_mode<synchronous>, transform_indices = @transform_4, window_bounds = array<i64: 128, 128>}, {pipeline_mode = #tpu.pipeline_mode<synchronous>, transform_indices = @transform_5, window_bounds = array<i64: 128, 512>}, {pipeline_mode = #tpu.pipeline_mode<synchronous>, transform_indices = @transform_6, window_bounds = array<i64: 1, 512>}, {pipeline_mode = #tpu.pipeline_mode<synchronous>, transform_indices = @transform_7, window_bounds = array<i64: 512, 128>}, {pipeline_mode = #tpu.pipeline_mode<synchronous>, transform_indices = @transform_8, window_bounds = array<i64: 9, 128>}, {transform_indices = @transform_9, window_bounds = array<i64: 1, 128, 128>}, {transform_indices = @transform_10, window_bounds = array<i64: 1, 4, 128, 256>}]} {
    %c0 = arith.constant 0 : index
    %c0_0 = arith.constant 0 : index
    %0 = vector.load %arg10[%c0, %c0_0] : memref<9x128xf32, #tpu.memory_space<vmem>>, vector<1x128xf32>
    %1 = vector.shape_cast %0 : vector<1x128xf32> to vector<128xf32>
    %c1 = arith.constant 1 : index
    %c0_1 = arith.constant 0 : index
    %2 = vector.load %arg10[%c1, %c0_1] : memref<9x128xf32, #tpu.memory_space<vmem>>, vector<1x128xf32>
    %3 = vector.shape_cast %2 : vector<1x128xf32> to vector<128xf32>
    %c2 = arith.constant 2 : index
    %c0_2 = arith.constant 0 : index
    %4 = vector.load %arg10[%c2, %c0_2] : memref<9x128xf32, #tpu.memory_space<vmem>>, vector<1x128xf32>
    %5 = vector.shape_cast %4 : vector<1x128xf32> to vector<128xf32>
    %c3 = arith.constant 3 : index
    %c0_3 = arith.constant 0 : index
    %6 = vector.load %arg10[%c3, %c0_3] : memref<9x128xf32, #tpu.memory_space<vmem>>, vector<1x128xf32>
    %7 = vector.shape_cast %6 : vector<1x128xf32> to vector<128xf32>
    %c4 = arith.constant 4 : index
    %c0_4 = arith.constant 0 : index
    %8 = vector.load %arg10[%c4, %c0_4] : memref<9x128xf32, #tpu.memory_space<vmem>>, vector<1x128xf32>
    %9 = vector.shape_cast %8 : vector<1x128xf32> to vector<128xf32>
    %c5 = arith.constant 5 : index
    %c0_5 = arith.constant 0 : index
    %10 = vector.load %arg10[%c5, %c0_5] : memref<9x128xf32, #tpu.memory_space<vmem>>, vector<1x128xf32>
    %11 = vector.shape_cast %10 : vector<1x128xf32> to vector<128xf32>
    %c6 = arith.constant 6 : index
    %c0_6 = arith.constant 0 : index
    %12 = vector.load %arg10[%c6, %c0_6] : memref<9x128xf32, #tpu.memory_space<vmem>>, vector<1x128xf32>
    %13 = vector.shape_cast %12 : vector<1x128xf32> to vector<128xf32>
    %c7 = arith.constant 7 : index
    %c0_7 = arith.constant 0 : index
    %14 = vector.load %arg10[%c7, %c0_7] : memref<9x128xf32, #tpu.memory_space<vmem>>, vector<1x128xf32>
    %15 = vector.shape_cast %14 : vector<1x128xf32> to vector<128xf32>
    %c8 = arith.constant 8 : index
    %c0_8 = arith.constant 0 : index
    %16 = vector.load %arg10[%c8, %c0_8] : memref<9x128xf32, #tpu.memory_space<vmem>>, vector<1x128xf32>
    %17 = vector.shape_cast %16 : vector<1x128xf32> to vector<128xf32>
    %c0_i32 = arith.constant 0 : i32
    %18 = arith.cmpi eq, %arg1, %c0_i32 : i32
    %19 = arith.extui %18 : i1 to i32
    %c0_i32_9 = arith.constant 0 : i32
    %20 = arith.cmpi ne, %19, %c0_i32_9 : i32
    scf.if %20 {
      %c0_54 = arith.constant 0 : index
      %c0_55 = arith.constant 0 : index
      %c0_56 = arith.constant 0 : index
      %133 = vector.load %arg2[%c0_54, %c0_55, %c0_56] : memref<1x256x128xf32, #tpu.memory_space<vmem>>, vector<1x256x128xf32>
      %134 = vector.shape_cast %133 : vector<1x256x128xf32> to vector<256x128xf32>
      %135 = arith.truncf %134 : vector<256x128xf32> to vector<256x128xbf16>
      %c0_57 = arith.constant 0 : index
      %c0_58 = arith.constant 0 : index
      %136 = vector.load %arg4[%c0_57, %c0_58] : memref<128x128xbf16, #tpu.memory_space<vmem>>, vector<128x128xbf16>
      %cst_59 = arith.constant dense<0.000000e+00> : vector<256x128xf32>
      %137 = tpu.matmul %135, %136, %cst_59 {dimension_numbers = #tpu.dot_dimension_numbers<[1], [0], [0], [1], [0, 0, 1, 1], [], []>} : vector<256x128xbf16>, vector<128x128xbf16>, vector<256x128xf32> -> vector<256x128xf32>
      %138 = vector.shape_cast %3 : vector<128xf32> to vector<1x128xf32>
      %139 = vector.broadcast %138 : vector<1x128xf32> to vector<256x128xf32>
      %140 = arith.addf %137, %139 : vector<256x128xf32>
      %c0_60 = arith.constant 0 : index
      %c0_61 = arith.constant 0 : index
      %141 = vector.load %arg5[%c0_60, %c0_61] : memref<128x128xbf16, #tpu.memory_space<vmem>>, vector<128x128xbf16>
      %cst_62 = arith.constant dense<0.000000e+00> : vector<256x128xf32>
      %142 = tpu.matmul %135, %141, %cst_62 {dimension_numbers = #tpu.dot_dimension_numbers<[1], [0], [0], [1], [0, 0, 1, 1], [], []>} : vector<256x128xbf16>, vector<128x128xbf16>, vector<256x128xf32> -> vector<256x128xf32>
      %143 = vector.shape_cast %5 : vector<128xf32> to vector<1x128xf32>
      %144 = vector.broadcast %143 : vector<1x128xf32> to vector<256x128xf32>
      %145 = arith.addf %142, %144 : vector<256x128xf32>
      %146 = arith.truncf %140 : vector<256x128xf32> to vector<256x128xbf16>
      %147 = tpu.transpose %146, [1, 0] : vector<256x128xbf16> -> vector<128x256xbf16>
      %148 = vector.shape_cast %147 : vector<128x256xbf16> to vector<4x32x256xbf16>
      %149 = arith.truncf %145 : vector<256x128xf32> to vector<256x128xbf16>
      %150 = tpu.transpose %149, [1, 0] : vector<256x128xbf16> -> vector<128x256xbf16>
      %151 = vector.shape_cast %150 : vector<128x256xbf16> to vector<4x32x256xbf16>
      %c0_63 = arith.constant 0 : index
      %c0_64 = arith.constant 0 : index
      %c0_65 = arith.constant 0 : index
      %152 = vector.load %arg13[%c0_63, %c0_64, %c0_65] : memref<4x32x256xbf16, #tpu.memory_space<vmem>>, vector<4x32x256xbf16>
      tpu.vector_store %arg13[%c0_63, %c0_64, %c0_65], %148 {strides = array<i32>} : memref<4x32x256xbf16, #tpu.memory_space<vmem>>, vector<4x32x256xbf16>,
      %c0_66 = arith.constant 0 : index
      %c0_67 = arith.constant 0 : index
      %c0_68 = arith.constant 0 : index
      %153 = vector.load %arg14[%c0_66, %c0_67, %c0_68] : memref<4x32x256xbf16, #tpu.memory_space<vmem>>, vector<4x32x256xbf16>
      tpu.vector_store %arg14[%c0_66, %c0_67, %c0_68], %151 {strides = array<i32>} : memref<4x32x256xbf16, #tpu.memory_space<vmem>>, vector<4x32x256xbf16>,
    } else {
    }
    %c0_10 = arith.constant 0 : index
    %c0_11 = arith.constant 0 : index
    %c0_12 = arith.constant 0 : index
    %21 = vector.load %arg13[%c0_10, %c0_11, %c0_12] : memref<4x32x256xbf16, #tpu.memory_space<vmem>>, vector<4x32x256xbf16>
    %c0_13 = arith.constant 0 : index
    %c0_14 = arith.constant 0 : index
    %c0_15 = arith.constant 0 : index
    %22 = vector.load %arg14[%c0_13, %c0_14, %c0_15] : memref<4x32x256xbf16, #tpu.memory_space<vmem>>, vector<4x32x256xbf16>
    %c128_i32 = arith.constant 128 : i32
    %23 = arith.muli %arg1, %c128_i32 : i32
    %24 = tpu.assume_multiple %23, 128 : i32
    %c0_16 = arith.constant 0 : index
    %25 = arith.index_cast %24 : i32 to index
    %c0_17 = arith.constant 0 : index
    %26 = vector.load %arg2[%c0_16, %25, %c0_17] : memref<1x256x128xf32, #tpu.memory_space<vmem>>, vector<1x128x128xf32>
    %27 = vector.shape_cast %26 : vector<1x128x128xf32> to vector<128x128xf32>
    %28 = arith.truncf %27 : vector<128x128xf32> to vector<128x128xbf16>
    %c0_18 = arith.constant 0 : index
    %c0_19 = arith.constant 0 : index
    %29 = vector.load %arg3[%c0_18, %c0_19] : memref<128x128xbf16, #tpu.memory_space<vmem>>, vector<128x128xbf16>
    %cst = arith.constant dense<0.000000e+00> : vector<128x128xf32>
    %30 = tpu.matmul %28, %29, %cst {dimension_numbers = #tpu.dot_dimension_numbers<[1], [0], [0], [1], [0, 0, 1, 1], [], []>} : vector<128x128xbf16>, vector<128x128xbf16>, vector<128x128xf32> -> vector<128x128xf32>
    %31 = vector.shape_cast %1 : vector<128xf32> to vector<1x128xf32>
    %32 = vector.broadcast %31 : vector<1x128xf32> to vector<128x128xf32>
    %33 = arith.addf %30, %32 : vector<128x128xf32>
    %cst_20 = arith.constant 0.176776692 : f32
    %34 = vector.broadcast %cst_20 : f32 to vector<128x128xf32>
    %35 = arith.mulf %33, %34 : vector<128x128xf32>
    %36 = arith.truncf %35 : vector<128x128xf32> to vector<128x128xbf16>
    %37 = vector.shape_cast %36 : vector<128x128xbf16> to vector<128x4x32xbf16>
    %38 = tpu.transpose %37, [1, 0, 2] : vector<128x4x32xbf16> -> vector<4x128x32xbf16>
    "tpu.trace_start"() <{level = 10 : i32, message = "hqd,hdk->hqk"}> : () -> ()
    %cst_21 = arith.constant dense<0.000000e+00> : vector<4x128x256xf32>
    %39 = tpu.matmul %38, %21, %cst_21 {dimension_numbers = #tpu.dot_dimension_numbers<[2], [1], [1], [2], [0, 0, 0, 1, 1, 2], [0], [0]>} : vector<4x128x32xbf16>, vector<4x32x256xbf16>, vector<4x128x256xf32> -> vector<4x128x256xf32>
    "tpu.trace_stop"() : () -> ()
    %cst_22 = arith.constant dense<0xFF800000> : vector<4x128xf32>
    %40 = vector.multi_reduction <maximumf>, %39, %cst_22 [2] : vector<4x128x256xf32> to vector<4x128xf32>
    %41 = vector.shape_cast %40 : vector<4x128xf32> to vector<4x128x1xf32>
    %42 = vector.broadcast %41 : vector<4x128x1xf32> to vector<4x128x256xf32>
    %43 = arith.subf %39, %42 : vector<4x128x256xf32>
    %44 = math.exp %43 : vector<4x128x256xf32>
    %cst_23 = arith.constant dense<0.000000e+00> : vector<4x128xf32>
    %45 = vector.multi_reduction <add>, %44, %cst_23 [2] : vector<4x128x256xf32> to vector<4x128xf32>
    %46 = vector.shape_cast %45 : vector<4x128xf32> to vector<4x128x1xf32>
    %47 = tpu.reciprocal %46 {approx = true} : vector<4x128x1xf32> -> vector<4x128x1xf32>
    %48 = vector.broadcast %47 : vector<4x128x1xf32> to vector<4x128x256xf32>
    %49 = arith.mulf %44, %48 : vector<4x128x256xf32>
    %50 = arith.truncf %49 : vector<4x128x256xf32> to vector<4x128x256xbf16>
    %c0_24 = arith.constant 0 : index
    %c0_25 = arith.constant 0 : index
    %c0_26 = arith.constant 0 : index
    %c0_27 = arith.constant 0 : index
    %51 = vector.load %arg12[%c0_24, %c0_25, %c0_26, %c0_27] : memref<1x4x128x256xbf16, #tpu.memory_space<vmem>>, vector<1x4x128x256xbf16>
    %52 = vector.shape_cast %51 : vector<1x4x128x256xbf16> to vector<4x128x256xbf16>
    %53 = vector.shape_cast %50 : vector<4x128x256xbf16> to vector<1x4x128x256xbf16>
    tpu.vector_store %arg12[%c0_24, %c0_25, %c0_26, %c0_27], %53 {strides = array<i32>} : memref<1x4x128x256xbf16, #tpu.memory_space<vmem>>, vector<1x4x128x256xbf16>,
    %54 = arith.truncf %49 : vector<4x128x256xf32> to vector<4x128x256xbf16>
    "tpu.trace_start"() <{level = 10 : i32, message = "hqk,hdk->hqd"}> : () -> ()
    %cst_28 = arith.constant dense<0.000000e+00> : vector<4x128x32xf32>
    %55 = tpu.matmul %54, %22, %cst_28 {dimension_numbers = #tpu.dot_dimension_numbers<[2], [2], [1], [1], [0, 0, 0, 1, 1, 1], [0], [0]>} : vector<4x128x256xbf16>, vector<4x32x256xbf16>, vector<4x128x32xf32> -> vector<4x128x32xf32>
    "tpu.trace_stop"() : () -> ()
    %56 = arith.truncf %55 : vector<4x128x32xf32> to vector<4x128x32xbf16>
    %57 = tpu.transpose %56, [1, 0, 2] : vector<4x128x32xbf16> -> vector<128x4x32xbf16>
    %58 = vector.shape_cast %57 : vector<128x4x32xbf16> to vector<128x128xbf16>
    %c0_29 = arith.constant 0 : index
    %c0_30 = arith.constant 0 : index
    %59 = vector.load %arg6[%c0_29, %c0_30] : memref<128x128xbf16, #tpu.memory_space<vmem>>, vector<128x128xbf16>
    %cst_31 = arith.constant dense<0.000000e+00> : vector<128x128xf32>
    %60 = tpu.matmul %58, %59, %cst_31 {dimension_numbers = #tpu.dot_dimension_numbers<[1], [0], [0], [1], [0, 0, 1, 1], [], []>} : vector<128x128xbf16>, vector<128x128xbf16>, vector<128x128xf32> -> vector<128x128xf32>
    %61 = vector.shape_cast %7 : vector<128xf32> to vector<1x128xf32>
    %62 = vector.broadcast %61 : vector<1x128xf32> to vector<128x128xf32>
    %63 = arith.addf %60, %62 : vector<128x128xf32>
    %64 = arith.addf %27, %63 : vector<128x128xf32>
    %cst_32 = arith.constant dense<0.000000e+00> : vector<128xf32>
    %65 = vector.multi_reduction <add>, %64, %cst_32 [1] : vector<128x128xf32> to vector<128xf32>
    %66 = vector.shape_cast %65 : vector<128xf32> to vector<128x1xf32>
    %cst_33 = arith.constant 1.280000e+02 : f32
    %67 = vector.broadcast %cst_33 : f32 to vector<128x1xf32>
    %68 = arith.divf %66, %67 : vector<128x1xf32>
    %69 = vector.broadcast %68 : vector<128x1xf32> to vector<128x128xf32>
    %70 = arith.subf %64, %69 : vector<128x128xf32>
    %71 = arith.mulf %70, %70 : vector<128x128xf32>
    %cst_34 = arith.constant dense<0.000000e+00> : vector<128xf32>
    %72 = vector.multi_reduction <add>, %71, %cst_34 [1] : vector<128x128xf32> to vector<128xf32>
    %73 = vector.shape_cast %72 : vector<128xf32> to vector<128x1xf32>
    %cst_35 = arith.constant 1.280000e+02 : f32
    %74 = vector.broadcast %cst_35 : f32 to vector<128x1xf32>
    %75 = arith.divf %73, %74 : vector<128x1xf32>
    %76 = vector.broadcast %68 : vector<128x1xf32> to vector<128x128xf32>
    %77 = arith.subf %64, %76 : vector<128x128xf32>
    %cst_36 = arith.constant 9.99999974E-6 : f32
    %78 = vector.broadcast %cst_36 : f32 to vector<128x1xf32>
    %79 = arith.addf %75, %78 : vector<128x1xf32>
    %80 = math.rsqrt %79 : vector<128x1xf32>
    %81 = vector.broadcast %80 : vector<128x1xf32> to vector<128x128xf32>
    %82 = arith.mulf %77, %81 : vector<128x128xf32>
    %83 = vector.shape_cast %9 : vector<128xf32> to vector<1x128xf32>
    %84 = vector.broadcast %83 : vector<1x128xf32> to vector<128x128xf32>
    %85 = arith.mulf %82, %84 : vector<128x128xf32>
    %86 = vector.shape_cast %11 : vector<128xf32> to vector<1x128xf32>
    %87 = vector.broadcast %86 : vector<1x128xf32> to vector<128x128xf32>
    %88 = arith.addf %85, %87 : vector<128x128xf32>
    %89 = arith.truncf %88 : vector<128x128xf32> to vector<128x128xbf16>
    %c0_37 = arith.constant 0 : index
    %c0_38 = arith.constant 0 : index
    %90 = vector.load %arg7[%c0_37, %c0_38] : memref<128x512xbf16, #tpu.memory_space<vmem>>, vector<128x512xbf16>
    %cst_39 = arith.constant dense<0.000000e+00> : vector<128x512xf32>
    %91 = tpu.matmul %89, %90, %cst_39 {dimension_numbers = #tpu.dot_dimension_numbers<[1], [0], [0], [1], [0, 0, 1, 1], [], []>} : vector<128x128xbf16>, vector<128x512xbf16>, vector<128x512xf32> -> vector<128x512xf32>
    %c0_40 = arith.constant 0 : index
    %c0_41 = arith.constant 0 : index
    %92 = vector.load %arg8[%c0_40, %c0_41] : memref<1x512xf32, #tpu.memory_space<vmem>>, vector<1x512xf32>
    %93 = vector.shape_cast %92 : vector<1x512xf32> to vector<512xf32>
    %94 = vector.shape_cast %93 : vector<512xf32> to vector<1x512xf32>
    %95 = vector.broadcast %94 : vector<1x512xf32> to vector<128x512xf32>
    %96 = arith.addf %91, %95 : vector<128x512xf32>
    %cst_42 = arith.constant 0.000000e+00 : f32
    %97 = vector.broadcast %cst_42 : f32 to vector<128x512xf32>
    %98 = arith.maximumf %96, %97 : vector<128x512xf32>
    %99 = arith.truncf %98 : vector<128x512xf32> to vector<128x512xbf16>
    %c0_43 = arith.constant 0 : index
    %c0_44 = arith.constant 0 : index
    %100 = vector.load %arg9[%c0_43, %c0_44] : memref<512x128xbf16, #tpu.memory_space<vmem>>, vector<512x128xbf16>
    %cst_45 = arith.constant dense<0.000000e+00> : vector<128x128xf32>
    %101 = tpu.matmul %99, %100, %cst_45 {dimension_numbers = #tpu.dot_dimension_numbers<[1], [0], [0], [1], [0, 0, 1, 1], [], []>} : vector<128x512xbf16>, vector<512x128xbf16>, vector<128x128xf32> -> vector<128x128xf32>
    %102 = vector.shape_cast %13 : vector<128xf32> to vector<1x128xf32>
    %103 = vector.broadcast %102 : vector<1x128xf32> to vector<128x128xf32>
    %104 = arith.addf %101, %103 : vector<128x128xf32>
    %105 = arith.addf %88, %104 : vector<128x128xf32>
    %cst_46 = arith.constant dense<0.000000e+00> : vector<128xf32>
    %106 = vector.multi_reduction <add>, %105, %cst_46 [1] : vector<128x128xf32> to vector<128xf32>
    %107 = vector.shape_cast %106 : vector<128xf32> to vector<128x1xf32>
    %cst_47 = arith.constant 1.280000e+02 : f32
    %108 = vector.broadcast %cst_47 : f32 to vector<128x1xf32>
    %109 = arith.divf %107, %108 : vector<128x1xf32>
    %110 = vector.broadcast %109 : vector<128x1xf32> to vector<128x128xf32>
    %111 = arith.subf %105, %110 : vector<128x128xf32>
    %112 = arith.mulf %111, %111 : vector<128x128xf32>
    %cst_48 = arith.constant dense<0.000000e+00> : vector<128xf32>
    %113 = vector.multi_reduction <add>, %112, %cst_48 [1] : vector<128x128xf32> to vector<128xf32>
    %114 = vector.shape_cast %113 : vector<128xf32> to vector<128x1xf32>
    %cst_49 = arith.constant 1.280000e+02 : f32
    %115 = vector.broadcast %cst_49 : f32 to vector<128x1xf32>
    %116 = arith.divf %114, %115 : vector<128x1xf32>
    %117 = vector.broadcast %109 : vector<128x1xf32> to vector<128x128xf32>
    %118 = arith.subf %105, %117 : vector<128x128xf32>
    %cst_50 = arith.constant 9.99999974E-6 : f32
    %119 = vector.broadcast %cst_50 : f32 to vector<128x1xf32>
    %120 = arith.addf %116, %119 : vector<128x1xf32>
    %121 = math.rsqrt %120 : vector<128x1xf32>
    %122 = vector.broadcast %121 : vector<128x1xf32> to vector<128x128xf32>
    %123 = arith.mulf %118, %122 : vector<128x128xf32>
    %124 = vector.shape_cast %15 : vector<128xf32> to vector<1x128xf32>
    %125 = vector.broadcast %124 : vector<1x128xf32> to vector<128x128xf32>
    %126 = arith.mulf %123, %125 : vector<128x128xf32>
    %127 = vector.shape_cast %17 : vector<128xf32> to vector<1x128xf32>
    %128 = vector.broadcast %127 : vector<1x128xf32> to vector<128x128xf32>
    %129 = arith.addf %126, %128 : vector<128x128xf32>
    %c0_51 = arith.constant 0 : index
    %c0_52 = arith.constant 0 : index
    %c0_53 = arith.constant 0 : index
    %130 = vector.load %arg11[%c0_51, %c0_52, %c0_53] : memref<1x128x128xf32, #tpu.memory_space<vmem>>, vector<1x128x128xf32>
    %131 = vector.shape_cast %130 : vector<1x128x128xf32> to vector<128x128xf32>
    %132 = vector.shape_cast %129 : vector<128x128xf32> to vector<1x128x128xf32>
    tpu.vector_store %arg11[%c0_51, %c0_52, %c0_53], %132 {strides = array<i32>} : memref<1x128x128xf32, #tpu.memory_space<vmem>>, vector<1x128x128xf32>,
    return
  }
  func.func @transform_0(%arg0: i32, %arg1: i32) -> (i32, i32, i32) {
    %c0_i32 = arith.constant 0 : i32
    %c0_i32_0 = arith.constant 0 : i32
    %c0_i32_1 = arith.constant 0 : i32
    return %arg0, %c0_i32, %c0_i32_0 : i32, i32, i32
  }
  func.func @transform_1(%arg0: i32, %arg1: i32) -> (i32, i32) {
    %c0_i32 = arith.constant 0 : i32
    %c0_i32_0 = arith.constant 0 : i32
    %c0_i32_1 = arith.constant 0 : i32
    return %c0_i32, %c0_i32_0 : i32, i32
  }
  func.func @transform_2(%arg0: i32, %arg1: i32) -> (i32, i32) {
    %c0_i32 = arith.constant 0 : i32
    %c0_i32_0 = arith.constant 0 : i32
    %c0_i32_1 = arith.constant 0 : i32
    return %c0_i32, %c0_i32_0 : i32, i32
  }
  func.func @transform_3(%arg0: i32, %arg1: i32) -> (i32, i32) {
    %c0_i32 = arith.constant 0 : i32
    %c0_i32_0 = arith.constant 0 : i32
    %c0_i32_1 = arith.constant 0 : i32
    return %c0_i32, %c0_i32_0 : i32, i32
  }
  func.func @transform_4(%arg0: i32, %arg1: i32) -> (i32, i32) {
    %c0_i32 = arith.constant 0 : i32
    %c0_i32_0 = arith.constant 0 : i32
    %c0_i32_1 = arith.constant 0 : i32
    return %c0_i32, %c0_i32_0 : i32, i32
  }
  func.func @transform_5(%arg0: i32, %arg1: i32) -> (i32, i32) {
    %c0_i32 = arith.constant 0 : i32
    %c0_i32_0 = arith.constant 0 : i32
    %c0_i32_1 = arith.constant 0 : i32
    return %c0_i32, %c0_i32_0 : i32, i32
  }
  func.func @transform_6(%arg0: i32, %arg1: i32) -> (i32, i32) {
    %c0_i32 = arith.constant 0 : i32
    %c0_i32_0 = arith.constant 0 : i32
    %c0_i32_1 = arith.constant 0 : i32
    return %c0_i32, %c0_i32_0 : i32, i32
  }
  func.func @transform_7(%arg0: i32, %arg1: i32) -> (i32, i32) {
    %c0_i32 = arith.constant 0 : i32
    %c0_i32_0 = arith.constant 0 : i32
    %c0_i32_1 = arith.constant 0 : i32
    return %c0_i32, %c0_i32_0 : i32, i32
  }
  func.func @transform_8(%arg0: i32, %arg1: i32) -> (i32, i32) {
    %c0_i32 = arith.constant 0 : i32
    %c0_i32_0 = arith.constant 0 : i32
    %c0_i32_1 = arith.constant 0 : i32
    return %c0_i32, %c0_i32_0 : i32, i32
  }
  func.func @transform_9(%arg0: i32, %arg1: i32) -> (i32, i32, i32) {
    %c0_i32 = arith.constant 0 : i32
    %c0_i32_0 = arith.constant 0 : i32
    return %arg0, %arg1, %c0_i32 : i32, i32, i32
  }
  func.func @transform_10(%arg0: i32, %arg1: i32) -> (i32, i32, i32, i32) {
    %c0_i32 = arith.constant 0 : i32
    %c0_i32_0 = arith.constant 0 : i32
    %c0_i32_1 = arith.constant 0 : i32
    return %arg0, %c0_i32, %arg1, %c0_i32_0 : i32, i32, i32, i32
  }
}

</mosaic_0001>

<bundles_post_ra>
// kernel: tpu_custom_call.1
= control target key start
LH: loop header
LB: loop body
LE: loop exit
PB: predicated region body
PF: predicated region fallthrough
CT: control target
= control target key end

     0   :  { %s16159_s0 = inlined_call_operand.hbm [shape: f32[2,256,128], index: 0, kind: input, shape index: {}]   ;;  %s16160_s1 = inlined_call_operand.hbm [shape: bf16[128,128], index: 1, kind: input, shape index: {}]   ;;  %s16161_s2 = inlined_call_operand.hbm [shape: bf16[128,128], index: 2, kind: input, shape index: {}]   ;;  %s16162_s3 = inlined_call_operand.hbm [shape: bf16[128,128], index: 3, kind: input, shape index: {}]   ;;  %s16163_s4 = inlined_call_operand.hbm [shape: bf16[128,128], index: 4, kind: input, shape index: {}]   ;;  %s16164_s5 = inlined_call_operand.hbm [shape: bf16[128,512], index: 5, kind: input, shape index: {}]   ;;  %s16165_s6 = inlined_call_operand.vmem [shape: f32[1,512], index: 6, kind: input, shape index: {}]   ;;  %s16166_s7 = inlined_call_operand.hbm [shape: bf16[512,128], index: 7, kind: input, shape index: {}]   ;;  %s16167_s8 = inlined_call_operand.vmem [shape: f32[9,128], index: 8, kind: input, shape index: {}]   ;;  %s16168_s9 = inlined_call_operand.hbm [shape: f32[2,256,128], index: 9, kind: output, shape index: {0}]   ;;  %s16169_s10 = inlined_call_operand.hbm [shape: bf16[2,4,256,256], index: 10, kind: output, shape index: {1}]  }
   0x1   :  { %16370 = sst [smem:[#allocation122_spill]] %s16159_s0 }
   0x2   :  { %16371 = sst [smem:[#allocation123_spill]] %s16160_s1 }
   0x3   :  { %16372 = sst [smem:[#allocation124_spill]] %s16161_s2 }
   0x4   :  { %16373 = sst [smem:[#allocation125_spill]] %s16162_s3 }
   0x5   :  { %16374 = sst [smem:[#allocation126_spill]] %s16163_s4 }
   0x6   :  { %16375 = sst [smem:[#allocation127_spill]] %s16164_s5 }
   0x7   :  { %16376 = sst [smem:[#allocation128_spill]] %s16165_s6 }
   0x8   :  { %16377 = sst [smem:[#allocation129_spill]] %s16166_s7 }
   0x9   :  { %16378 = sst [smem:[#allocation130_spill]] %s16167_s8 }
   0xa   :  { %16379 = sst [smem:[#allocation131_spill]] %s16168_s9 }
   0xb   :  { %16380 = sst [smem:[#allocation132_spill]] %s16169_s10 }
   0xc   :  { %16 = vsyncpa [#allocation5], 0 }
   0xd   :  { %18 = vsyncpa [#allocation5 + $0x1], 0 }
   0xe   :  { %19 = vsyncpa [#allocation8], 0 }
   0xf   :  { %20 = vsyncpa [#allocation11], 0 }
  0x10   :  { %21 = vsyncpa [#allocation14], 0 }
  0x11   :  { %22 = vsyncpa [#allocation6], 0 }
  0x12   :  { %24 = vsyncpa [#allocation6 + $0x1], 0 }
  0x13   :  { %25 = vsyncpa [#allocation18], 0 }
  0x14   :  { %27 = vsyncpa [#allocation18 + $0x1], 0  ;;  %s11928_s13 = smov 0   ;;  %s11930_s14 = smov 0  }
  0x15   :  { %s11932_s15 = smov 0   ;;  %s11934_s16 = smov 0  }
  0x16   :  { %s11936_s17 = smov 0   ;;  %s11938_s18 = smov 0  }
  0x17   :  { %s11940_s19 = smov 0   ;;  %s11942_s20 = smov 0  }
  0x18   :  { %s11944_s21 = smov 0   ;;  %s11946_s22 = smov 0  }
  0x19   :  { %s11948_s23 = smov 0  }
  0x1a LB: > { %16381 = sst [smem:[#allocation27_spill]] %s11802_s13  ;;  %s9996_s24 = sadd.s32 4294967295, %s11842_s23   ;;  %s11842_s23 = sphi %s11948_s23, %s33_s23   ;;  %s11838_s22 = sphi %s11946_s22, %s16842_s22   ;;  %s11834_s21 = sphi %s11944_s21, %s16841_s21   ;;  %s11830_s20 = sphi %s11942_s20, %s16840_s20   ;;  %s11826_s19 = sphi %s11940_s19, %s16839_s19   ;;  %s11822_s18 = sphi %s11938_s18, %s16838_s18   ;;  %s11818_s17 = sphi %s11936_s17, %s16837_s17   ;;  %s11814_s16 = sphi %s11934_s16, %s16836_s16   ;;  %s11810_s15 = sphi %s11932_s15, %s16835_s15   ;;  %s11806_s14 = sphi %s11930_s14, %s16834_s14   ;;  %s11802_s13 = sphi %s11928_s13, %s16833_s13  }
  0x1b   : > { %16382 = sst [smem:[#allocation28_spill]] %s11826_s19  ;;  %p9998_p0 = scmp.ge.s32.totalorder %s11842_s23, 1 }
  0x1c   : > { %16383 = sst [smem:[#allocation29_spill]] %s11830_s20  ;;  %p11985_p1 = scmp.eq.s32.totalorder %s9996_s24, 0 }
  0x1d   : > { %p11989_p2 = scmp.eq.s32.totalorder %s9996_s24, 3  ;;  %p300_p3 = scmp.lt.s32.totalorder %s11842_s23, 5 }
  0x1e   : > { %s16384_s25 = scalar_select %p11985_p1, 1, 0 }
  0x1f   : > { %s16385_s26 = scalar_select %p11989_p2, 1, 0 }
  0x20   : > { %p11994_p4 = pnand %p9998_p0, %p300_p3  ;;  %s11844_s28 = smov [#allocation7]  }
  0x21   : > { %16386 = sst [smem:[#allocation30_spill]] %s16385_s26  ;;  %s312_s29 = sshll.u32 %s11844_s28, 4  ;;  %s11998_s29 = int_to_ptr.vmem [resolvable:$true] %s312_s29 }
  0x22   : > { %s16387_s27 = scalar_select %p11994_p4, 1, 0 }
  0x23   : > { %p10771_p5 = pneg %p11994_p4  ;;  %s11845_s11 = smov [#allocation10]  }
  0x24   : > { %16388 = sst [smem:[#allocation31_spill]] %s16387_s27  ;;  %s338_s12 = sshll.u32 %s11845_s11, 4  ;;  %s12008_s12 = int_to_ptr.vmem [resolvable:$true] %s338_s12 }
  0x25   : > { %p12004_p6 = pnand %p10771_p5, %p11985_p1  ;;  %s11846_s24 = smov [#allocation13]  }
  0x26   : > { %s364_s10 = sshll.u32 %s11846_s24, 4  ;;  %s16390_s1 = sld [smem:[#allocation123_spill]]  ;;  %s12010_s10 = int_to_ptr.vmem [resolvable:$true] %s364_s10 }
  0x27   : > { %p12020_p8 = pneg %p12004_p6 }
  0x2c   : > { %s11506_s20 = scalar_lea.hbm %s16390_s1, 1024 }
  0x2d   : > { %p11507_p7 = scmp.ne.s32.totalorder %s16390_s1, %s11506_s20  ;;  %p11513_p11 = scmp.lt.u32.totalorder %s11506_s20, %s16390_s1 }
  0x2f   : > { %p11509_p9 = pnand %p12020_p8, %p11507_p7 }
  0x31   : > { %p11510_p10 = pneg %p11509_p9 }
  0x33   : > { %p11515_p12 = pnand %p11513_p11, %p11510_p10 }
  0x35   : > { %11518 = shalt.err (!%p11515_p12)
}
  0x36   : > { %s11519_s6 = scalar_lea.vmem %s11998_s29, 1024  ;;  %p11527_p5 = scmp.lt.s32.totalorder %s11998_s29, %s11998_s29 }
  0x37   : > { %p11520_p13 = scmp.ne.s32.totalorder %s11998_s29, %s11519_s6  ;;  %p11528_p4 = scmp.lt.s32.totalorder %s11519_s6, %s11519_s6 }
  0x39   : > { %p11522_p0 = pnand %p11520_p13, %p12020_p8  ;;  %p11529_p7 = por %p11528_p4, %p11527_p5 }
  0x3b   : > { %p11523_p3 = pneg %p11522_p0 }
  0x3d   : > { %p11530_p9 = pnand %p11529_p7, %p11523_p3 }
  0x3f   : > { %11533 = shalt.err (!%p11530_p9)
}
  0x40   : > { %s16178_s9 = smov 64   ;;  %s16180_s19 = smov 4  }
  0x41   : > { %10774 = dma.hbm_to_vmem [thread:$0]  (!%p12004_p6), %s16390_s1, 1024, %s11998_s29, [#allocation8], %s16178_s9, %s16178_s9, %s16180_s19  }
  0x42   : > { %s16392_s3 = sld [smem:[#allocation125_spill]] }
  0x48   : > { %s11534_s6 = scalar_lea.hbm %s16392_s3, 1024 }
  0x49   : > { %p11535_p4 = scmp.ne.s32.totalorder %s16392_s3, %s11534_s6  ;;  %p11541_p12 = scmp.lt.u32.totalorder %s11534_s6, %s16392_s3 }
  0x4b   : > { %p11537_p10 = pnand %p11535_p4, %p12020_p8 }
  0x4d   : > { %p11538_p11 = pneg %p11537_p10 }
  0x4f   : > { %p11543_p13 = pnand %p11541_p12, %p11538_p11 }
  0x51   : > { %11546 = shalt.err (!%p11543_p13)
}
  0x52   : > { %s11547_s29 = scalar_lea.vmem %s12008_s12, 1024  ;;  %p11555_p7 = scmp.lt.s32.totalorder %s12008_s12, %s12008_s12 }
  0x53   : > { %p11548_p0 = scmp.ne.s32.totalorder %s12008_s12, %s11547_s29  ;;  %p11556_p9 = scmp.lt.s32.totalorder %s11547_s29, %s11547_s29 }
  0x55   : > { %p11550_p3 = pnand %p11548_p0, %p12020_p8  ;;  %p11557_p4 = por %p11556_p9, %p11555_p7 }
  0x57   : > { %p11551_p5 = pneg %p11550_p3 }
  0x59   : > { %p11558_p10 = pnand %p11557_p4, %p11551_p5 }
  0x5b   : > { %11561 = shalt.err (!%p11558_p10)
}
  0x5c   : > { %10780 = dma.hbm_to_vmem [thread:$0]  (!%p12004_p6), %s16392_s3, 1024, %s12008_s12, [#allocation11], %s16178_s9, %s16178_s9, %s16180_s19  }
  0x5d   : > { %s16393_s5 = sld [smem:[#allocation127_spill]] }
  0x63   : > { %s11562_s20 = scalar_lea.hbm %s16393_s5, 4096 }
  0x64   : > { %p11563_p11 = scmp.ne.s32.totalorder %s16393_s5, %s11562_s20  ;;  %p11569_p0 = scmp.lt.u32.totalorder %s11562_s20, %s16393_s5 }
  0x66   : > { %p11565_p12 = pnand %p11563_p11, %p12020_p8 }
  0x68   : > { %p11566_p13 = pneg %p11565_p12 }
  0x6a   : > { %p11571_p3 = pnand %p11569_p0, %p11566_p13 }
  0x6c   : > { %11574 = shalt.err (!%p11571_p3)
}
  0x6d   : > { %s11575_s12 = scalar_lea.vmem %s12010_s10, 4096  ;;  %p11583_p4 = scmp.lt.s32.totalorder %s12010_s10, %s12010_s10 }
  0x6e   : > { %p11576_p5 = scmp.ne.s32.totalorder %s12010_s10, %s11575_s12  ;;  %p11584_p10 = scmp.lt.s32.totalorder %s11575_s12, %s11575_s12 }
  0x70   : > { %p11578_p7 = pnand %p11576_p5, %p12020_p8  ;;  %p11585_p11 = por %p11584_p10, %p11583_p4 }
  0x72   : > { %p11579_p9 = pneg %p11578_p7 }
  0x74   : > { %p11586_p12 = pnand %p11585_p11, %p11579_p9 }
  0x76   : > { %11589 = shalt.err (!%p11586_p12)
}
  0x77   : > { %s11849_s29 = smov 256   ;;  %s11850_s0 = smov 16  }
  0x78   : > { %10786 = dma.hbm_to_vmem [thread:$0]  (!%p12004_p6), %s16393_s5, 4096, %s12010_s10, [#allocation14], %s11849_s29, %s11849_s29, %s11850_s0  }
  0x79   : > { %s11851_s27 = smov [#allocation9]   ;;  %s11852_s28 = smov [#allocation12]  }
  0x7a   : > { %s325_s20 = sshll.u32 %s11851_s27, 4  ;;  %s351_s11 = sshll.u32 %s11852_s28, 4  ;;  %s326_s20 = int_to_ptr.vmem [resolvable:$true] %s325_s20  ;;  %s12093_s11 = int_to_ptr.vmem [resolvable:$true] %s351_s11 }
  0x7b   : > { %s16394_s2 = sld [smem:[#allocation124_spill]] }
  0x81   : > { %s11590_s12 = scalar_lea.hbm %s16394_s2, 1024 }
  0x82   : > { %p11591_p13 = scmp.ne.s32.totalorder %s16394_s2, %s11590_s12  ;;  %p11597_p5 = scmp.lt.u32.totalorder %s11590_s12, %s16394_s2 }
  0x84   : > { %p11593_p0 = pnand %p11591_p13, %p12020_p8 }
  0x86   : > { %p11594_p3 = pneg %p11593_p0 }
  0x88   : > { %p11599_p7 = pnand %p11597_p5, %p11594_p3 }
  0x8a   : > { %11602 = shalt.err (!%p11599_p7)
}
  0x8b   : > { %s11603_s29 = scalar_lea.vmem %s326_s20, 1024  ;;  %p11611_p11 = scmp.lt.s32.totalorder %s326_s20, %s326_s20 }
  0x8c   : > { %p11604_p9 = scmp.ne.s32.totalorder %s326_s20, %s11603_s29  ;;  %p11612_p12 = scmp.lt.s32.totalorder %s11603_s29, %s11603_s29 }
  0x8e   : > { %p11606_p4 = pnand %p11604_p9, %p12020_p8  ;;  %p11613_p2 = por %p11612_p12, %p11611_p11 }
  0x90   : > { %p11607_p10 = pneg %p11606_p4 }
  0x92   : > { %p11614_p1 = pnand %p11613_p2, %p11607_p10 }
  0x94   : > { %11617 = shalt.err (!%p11614_p1)
}
  0x95   : > { %s16395_s9 = smov 4   ;;  %s16396_s19 = smov 64  }
  0x96   : > { %10777 = dma.hbm_to_vmem [thread:$0]  (!%p12004_p6), %s16394_s2, 1024, %s326_s20, [#allocation8], %s16396_s19, %s16396_s19, %s16395_s9  }
  0x97   : > { %s16397_s4 = sld [smem:[#allocation126_spill]] }
  0x9d   : > { %s11618_s24 = scalar_lea.hbm %s16397_s4, 1024 }
  0x9e   : > { %p11619_p13 = scmp.ne.s32.totalorder %s16397_s4, %s11618_s24  ;;  %p11625_p0 = scmp.lt.u32.totalorder %s11618_s24, %s16397_s4 }
  0xa0   : > { %p11621_p1 = pnand %p11619_p13, %p12020_p8 }
  0xa2   : > { %p11622_p2 = pneg %p11621_p1 }
  0xa4   : > { %p11627_p3 = pnand %p11625_p0, %p11622_p2 }
  0xa6   : > { %11630 = shalt.err (!%p11627_p3)
}
  0xa7   : > { %s11631_s20 = scalar_lea.vmem %s12093_s11, 1024  ;;  %p11639_p4 = scmp.lt.s32.totalorder %s12093_s11, %s12093_s11 }
  0xa8   : > { %p11632_p5 = scmp.ne.s32.totalorder %s12093_s11, %s11631_s20  ;;  %p11640_p10 = scmp.lt.s32.totalorder %s11631_s20, %s11631_s20 }
  0xaa   : > { %p11634_p7 = pnand %p11632_p5, %p12020_p8  ;;  %p11641_p11 = por %p11640_p10, %p11639_p4 }
  0xac   : > { %p11635_p9 = pneg %p11634_p7 }
  0xae   : > { %p11642_p12 = pnand %p11641_p11, %p11635_p9 }
  0xb0   : > { %11645 = shalt.err (!%p11642_p12)
}
  0xb1   : > { %10783 = dma.hbm_to_vmem [thread:$0]  (!%p12004_p6), %s16397_s4, 1024, %s12093_s11, [#allocation11], %s16396_s19, %s16396_s19, %s16395_s9  }
  0xb2   : > { %s11853_s26 = smov [#allocation15]   ;;  %s16398_s7 = sld [smem:[#allocation129_spill]] }
  0xb3   : > { %s380_s27 = sshll.u32 %s11853_s26, 4  ;;  %s381_s27 = int_to_ptr.vmem [resolvable:$true] %s380_s27 }
  0xb8   : > { %s11646_s6 = scalar_lea.hbm %s16398_s7, 4096 }
  0xb9   : > { %p11647_p13 = scmp.ne.s32.totalorder %s16398_s7, %s11646_s6  ;;  %p11653_p0 = scmp.lt.u32.totalorder %s11646_s6, %s16398_s7 }
  0xbb   : > { %p11649_p1 = pnand %p11647_p13, %p12020_p8 }
  0xbd   : > { %p11650_p2 = pneg %p11649_p1 }
  0xbf   : > { %p11655_p3 = pnand %p11653_p0, %p11650_p2 }
  0xc1   : > { %11658 = shalt.err (!%p11655_p3)
}
  0xc2   : > { %s11659_s11 = scalar_lea.vmem %s381_s27, 4096  ;;  %p11667_p4 = scmp.lt.s32.totalorder %s381_s27, %s381_s27 }
  0xc3   : > { %p11660_p5 = scmp.ne.s32.totalorder %s381_s27, %s11659_s11  ;;  %p11668_p10 = scmp.lt.s32.totalorder %s11659_s11, %s11659_s11 }
  0xc5   : > { %p11662_p7 = pnand %p11660_p5, %p12020_p8  ;;  %p11669_p11 = por %p11668_p10, %p11667_p4 }
  0xc7   : > { %p11663_p9 = pneg %p11662_p7 }
  0xc9   : > { %p11670_p12 = pnand %p11669_p11, %p11663_p9 }
  0xcb   : > { %11673 = shalt.err (!%p11670_p12)
}
  0xcc   : > { %10789 = dma.hbm_to_vmem [thread:$0]  (!%p12004_p6), %s16398_s7, 4096, %s381_s27, [#allocation14], %s16396_s19, %s16396_s19, %s16395_s9  }
  0xcd   : > { %s9997_s8 = sadd.s32 4294967294, %s11842_s23   ;;  %s42_s30 = sadd.s32 1, %s11834_s21 }
  0xce   : > { %s16399_s26 = sld [smem:[#allocation27_spill]]  ;;  %s45_s28 = sadd.s32 1, %s11838_s22 }
  0xcf   : > { %p43_p8 = scmp.ge.s32.totalorder %s42_s30, 2  ;;  %s52_s24 = sadd.s32 1, %s11822_s18 }
  0xd0   : > { %p59_p13 = scmp.ne.s32.totalorder %s11822_s18, %s11818_s17  ;;  %p60_p1 = scmp.eq.s32.totalorder %s11842_s23, 0 }
  0xd1   : > { %s16844_s30 = smov (%p43_p8, %s42_s30), 0  ;;  %s16400_s6 = sld [smem:[#allocation30_spill]] }
  0xd2   : > { %s16846_s28 = smov (!%p43_p8, %s45_s28), %s11838_s22  ;;  %p12173_p2 = por %p60_p1, %p59_p13 }
  0xd3   : > { %p65_p6 = scmp.ne.s32.totalorder %s11818_s17, %s11814_s16  ;;  %p47_p0 = scmp.ge.s32.totalorder %s16846_s28, 2 }
  0xd4   : > { %s244_s19 = ssub.s32 %s11834_s21, %s16844_s30  ;;  %p16402_p3 = scmp.ne.s32.totalorder %s16384_s25, 0 }
  0xd5   : > { %s248_s12 = sadd.s32 1, %s11810_s15  ;;  %s16848_s28 = smov (%p47_p0, %s16846_s28), 0 }
  0xd6   : > { %p12183_p5 = por %p16402_p3, %p65_p6  ;;  %p258_p7 = scmp.ne.s32.totalorder %s11810_s15, %s11806_s14 }
  0xd7   : > { %p264_p9 = scmp.ne.s32.totalorder %s11806_s14, %s16399_s26  ;;  %s49_s13 = ssub.s32 %s11838_s22, %s16848_s28 }
  0xd8   : > { %p265_p4 = scmp.eq.s32.totalorder %s9997_s8, 3  ;;  %p50_p10 = scmp.eq.s32.totalorder %s49_s13, 0 }
  0xd9   : > { %s245_s16 = sor.u32 %s244_s19, %s49_s13  ;;  %p16404_p12 = scmp.ne.s32.totalorder %s16400_s6, 0 }
  0xda   : > { %p246_p11 = scmp.eq.s32.totalorder %s245_s16, 0  ;;  %p12208_p13 = por %p265_p4, %p264_p9 }
  0xdb   : > { %p12198_p8 = por %p16404_p12, %p258_p7  ;;  %p10807_p1 = scmp.lt.s32.totalorder %s11842_s23, 4 }
  0xdc   : > { %s12203_s20 = scalar_select %p50_p10, %s11822_s18, %s52_s24  }
  0xdd   : > { %s16405_s10 = scalar_select %p12198_p8, 1, 0 }
  0xde   : > { %s12206_s11 = scalar_select %p246_p11, %s11810_s15, %s248_s12  }
  0xdf   : > { %s16406_s29 = scalar_select %p12208_p13, 1, 0 }
  0xe0   : > { %s397_s0 = sand.u32 1, %s11822_s18   ;;  %s10297_s26 = sshll.u32 %s11838_s22, 12 }
  0xe1   : > { %s10006_s8 = sshll.u32 %s397_s0, 8  ;;  %s16407_s13 = sld [smem:[#allocation122_spill]] }
  0xe2   : > { %s401_s24 = scalar_lea.vmem [#allocation4], %s10006_s8  ;;  %p12222_p6 = pnand %p10807_p1, %p12173_p2 }
  0xe3   : > { %s408_s12 = sshll.u32 %s401_s24, 4  ;;  %s12228_s3 = scalar_lea.sflag [#allocation5], %s397_s0  ;;  %s12226_s12 = int_to_ptr.vmem [resolvable:$true] %s408_s12 }
  0xe4   : > { %p11676_p3 = pneg %p12222_p6 }
  0xe7   : > { %s16408_s2 = smov %s16407_s13  ;;  %s12218_s6 = scalar_lea.hbm %s16407_s13, %s10297_s26 }
  0xe8   : > { %s11674_s1 = scalar_lea.hbm %s12218_s6, 4096  ;;  %s11679_s8 = scalar_lea.hbm %s16408_s2, 8192 }
  0xe9   : > { %p11675_p0 = scmp.ne.s32.totalorder %s12218_s6, %s11674_s1  ;;  %p11680_p2 = scmp.lt.u32.totalorder %s12218_s6, %s16408_s2 }
  0xea   : > { %p11681_p4 = scmp.lt.u32.totalorder %s11679_s8, %s11674_s1  ;;  %p11683_p11 = scmp.lt.u32.totalorder %s11674_s1, %s12218_s6 }
  0xeb   : > { %p11677_p7 = pnand %p11676_p3, %p11675_p0 }
  0xec   : > { %p11682_p10 = por %p11681_p4, %p11680_p2 }
  0xed   : > { %p11678_p9 = pneg %p11677_p7 }
  0xee   : > { %p11684_p12 = por %p11683_p11, %p11682_p10 }
  0xf0   : > { %p11685_p1 = pnand %p11684_p12, %p11678_p9 }
  0xf2   : > { %11688 = shalt.err (!%p11685_p1)
}
  0xf3   : > { %s11689_s0 = scalar_lea.vmem %s12226_s12, 4096  ;;  %s11854_s24 = smov [#allocation4]  }
  0xf4   : > { %p11690_p0 = scmp.ne.s32.totalorder %s12226_s12, %s11689_s0  ;;  %s11694_s26 = sshll.u32 %s11854_s24, 4  ;;  %s11695_s26 = int_to_ptr.vmem [resolvable:$false] %s11694_s26 }
  0xf5   : > { %s11696_s9 = scalar_lea.vmem %s11695_s26, 8192  ;;  %p11697_p8 = scmp.lt.s32.totalorder %s12226_s12, %s11695_s26 }
  0xf6   : > { %p11692_p7 = pnand %p11690_p0, %p11676_p3  ;;  %p11698_p2 = scmp.lt.s32.totalorder %s11696_s9, %s11689_s0 }
  0xf8   : > { %p11693_p13 = pneg %p11692_p7  ;;  %p11699_p4 = por %p11698_p2, %p11697_p8 }
  0xfa   : > { %p11700_p10 = pnand %p11699_p4, %p11693_p13 }
  0xfc   : > { %11703 = shalt.err (!%p11700_p10)
}
  0xfd   : > { %s11855_s1 = smov 128   ;;  %s11856_s8 = smov 8  }
  0xfe   : > { %10793 = dma.hbm_to_vmem [thread:$0]  (!%p12222_p6), %s12218_s6, 4096, %s12226_s12, %s12228_s3, %s11855_s1, %s11855_s1, %s11856_s8  }
  0xff   : > { %s16410_s19 = sld [smem:[#allocation31_spill]] }
 0x105   : > { %p16411_p3 = scmp.ne.s32.totalorder %s16410_s19, 0 }
 0x107   : > { %420 = sbr.rel (%p16411_p3) target bundleno = 3610 (0xe1a), region = 56 }
 0x10e   : > { %s422_s13 = sand.u32 1, %s11818_s17  }
 0x10f   : > { %s10010_s24 = sshll.u32 %s422_s13, 8  ;;  %s423_s26 = scalar_lea.sflag [#allocation5], %s422_s13 }
 0x110   : > { %s12259_s0 = scalar_lea.vmem [#allocation4], %s10010_s24 }
 0x111   : > { %11777 = dma.done.wait (%p12183_p5), %s423_s26, 4096  }
 0x112   : > { %11779 = vsyncadd (%p12183_p5), %s423_s26, 4294963200  ;;  %p16412_p8 = scmp.ne.s32.totalorder %s16384_s25, 0 }
 0x114   : > { %11781 = dma.done.wait (%p16412_p8), [#allocation8], 2048  }
 0x115   : > { %11783 = vsyncadd (%p16412_p8), [#allocation8], 4294965248 }
 0x116   : > { %11785 = dma.done.wait (%p16412_p8), [#allocation11], 2048  }
 0x117   : > { %11787 = vsyncadd (%p16412_p8), [#allocation11], 4294965248 }
 0x118   : > { %11789 = dma.done.wait (%p16412_p8), [#allocation14], 8192  }
 0x119   : > { %11791 = vsyncadd (%p16412_p8), [#allocation14], 4294959104  ;;  %s12278_s3 = sand.u32 1, %s11806_s14   ;;  %s16413_s9 = sld [smem:[#allocation130_spill]] }
 0x11a   : > { %s10017_s27 = sshll.u32 %s12278_s3, 7  ;;  %s10018_s6 = sshll.u32 %s12278_s3, 9 }
 0x11b   : > { %s12327_s2 = scalar_lea.vmem [#allocation16], %s10017_s27  ;;  %s12329_s26 = scalar_lea.vmem [#allocation17], %s10018_s6 }
 0x11c   : > { %s16420_s12 = sld [smem:[#allocation28_spill]] }
 0x11f   : > { %v12285_v0 = vld [vmem:[%s16413_s9] ss:$0 sm:$0xff]  ;;  %v12290_v1 = vld [vmem:[%s16413_s9 + $0x1] ss:$0 sm:$0xff]  ;;  %v12295_v2 = vld [vmem:[%s16413_s9 + $0x2] ss:$0 sm:$0xff] }
 0x120   : > { %v12300_v3 = vld [vmem:[%s16413_s9 + $0x3] ss:$0 sm:$0xff]  ;;  %v12305_v4 = vld [vmem:[%s16413_s9 + $0x4] ss:$0 sm:$0xff]  ;;  %v12310_v5 = vld [vmem:[%s16413_s9 + $0x5] ss:$0 sm:$0xff] }
 0x121   : > { %16414 = vst [vmem:[#allocation32_spill] sm:$0xff] %v12300_v3  ;;  %16415 = vst [vmem:[#allocation33_spill] sm:$0xff] %v12305_v4  ;;  %v12315_v6 = vld [vmem:[%s16413_s9 + $0x6] ss:$0 sm:$0xff]  ;;  %v12320_v7 = vld [vmem:[%s16413_s9 + $0x7] ss:$0 sm:$0xff] }
 0x122   : > { %16416 = vst [vmem:[#allocation34_spill] sm:$0xff] %v12310_v5  ;;  %16417 = vst [vmem:[#allocation35_spill] sm:$0xff] %v12315_v6  ;;  %v12325_v8 = vld [vmem:[%s16413_s9 + $0x8] ss:$0 sm:$0xff]  ;;  %p10019_p5 = scmp.ne.s32.totalorder %s16420_s12, 0 }
 0x123   : > { %16418 = vst [vmem:[#allocation36_spill] sm:$0xff] %v12320_v7  ;;  %16419 = vst [vmem:[#allocation37_spill] sm:$0xff] %v12325_v8  ;;  %v10930_v9 = vld [vmem:[#allocation9] sm:$0xff] (!%p10019_p5)   ;;  %v10931_v10 = vld [vmem:[#allocation9 + $0x8] sm:$0xff] (!%p10019_p5)  }
 0x124   : > { %507 = sbr.rel (%p10019_p5) target bundleno = 739 (0x2e3), region = 88  ;;  %10571 = vmatprep.subr.bf16.mxu0 (!%p10019_p5), %v10930_v9  ;;  %v10932_v11 = vld [vmem:[#allocation9 + $0x10] sm:$0xff] (!%p10019_p5)   ;;  %v10933_v12 = vld [vmem:[#allocation9 + $0x18] sm:$0xff] (!%p10019_p5)   ;;  %v10938_v13 = vld [vmem:[#allocation10] sm:$0xff] (!%p10019_p5)  }
 0x125   : > { %10572 = vmatpush3.bf16.msra.mxu0 (!%p10019_p5), %v10930_v9  ;;  %v508_v14 = vld [vmem:[%s12259_s0] sm:$0xff] (!%p10019_p5)  ;;  %v509_v15 = vld [vmem:[%s12259_s0 + $0x8] sm:$0xff] (!%p10019_p5)  ;;  %10619 = vmatprep.subr.bf16.mxu1 (!%p10019_p5), %v10938_v13  ;;  %v10940_v19 = vld [vmem:[#allocation10 + $0x10] sm:$0xff] (!%p10019_p5)  }
 0x126   : > { %10573 = vmatprep.subr.bf16.mxu0 (!%p10019_p5), %v10931_v10  ;;  %v540_v16 = vpack.c.bf16 (!%p10019_p5), %v509_v15, %v508_v14  ;;  %10620 = vmatpush3.bf16.msra.mxu1 (!%p10019_p5), %v10938_v13  ;;  %v10939_v17 = vld [vmem:[#allocation10 + $0x8] sm:$0xff] (!%p10019_p5)   ;;  %v10934_v18 = vld [vmem:[#allocation9 + $0x20] sm:$0xff] (!%p10019_p5)   ;;  %v10941_v21 = vld [vmem:[#allocation10 + $0x18] sm:$0xff] (!%p10019_p5)  }
 0x127   : > { %10621 = vmatprep.subr.bf16.mxu1 (!%p10019_p5), %v10939_v17  ;;  %v10935_v20 = vld [vmem:[#allocation9 + $0x28] sm:$0xff] (!%p10019_p5)   ;;  %v10936_v22 = vld [vmem:[#allocation9 + $0x30] sm:$0xff] (!%p10019_p5)   ;;  %v10942_v23 = vld [vmem:[#allocation10 + $0x20] sm:$0xff] (!%p10019_p5)  }
 0x128   : > { %10587 = vmatprep.mubr.bf16.mxu0 (!%p10019_p5), %v540_v16  ;;  %10635 = vmatprep.mubr.bf16.mxu1 (!%p10019_p5), %v540_v16  ;;  %v10937_v24 = vld [vmem:[#allocation9 + $0x38] sm:$0xff] (!%p10019_p5)   ;;  %v10943_v25 = vld [vmem:[#allocation10 + $0x28] sm:$0xff] (!%p10019_p5)   ;;  %v510_v26 = vld [vmem:[%s12259_s0 + $0x10] sm:$0xff] (!%p10019_p5) }
 0x129   : > { %10574 = vmatpush3.bf16.msra.mxu0 (!%p10019_p5), %v10931_v10  ;;  %v511_v27 = vld [vmem:[%s12259_s0 + $0x18] sm:$0xff] (!%p10019_p5)  ;;  %v512_v28 = vld [vmem:[%s12259_s0 + $0x20] sm:$0xff] (!%p10019_p5)  ;;  %v513_v29 = vld [vmem:[%s12259_s0 + $0x28] sm:$0xff] (!%p10019_p5) }
 0x12a   : > { %10575 = vmatprep.subr.bf16.mxu0 (!%p10019_p5), %v10932_v11  ;;  %10622 = vmatpush3.bf16.msra.mxu1 (!%p10019_p5), %v10939_v17  ;;  %v10944_v30 = vld [vmem:[#allocation10 + $0x30] sm:$0xff] (!%p10019_p5)   ;;  %v541_v31 = vpack.c.bf16 (!%p10019_p5), %v511_v27, %v510_v26  ;;  %v542_v32 = vpack.c.bf16 (!%p10019_p5), %v513_v29, %v512_v28  ;;  %v10945_v33 = vld [vmem:[#allocation10 + $0x38] sm:$0xff] (!%p10019_p5)   ;;  %v516_v36 = vld [vmem:[%s12259_s0 + $0x40] sm:$0xff] (!%p10019_p5) }
 0x12b   : > { %10623 = vmatprep.subr.bf16.mxu1 %v10940_v19  ;;  %v514_v34 = vld [vmem:[%s12259_s0 + $0x30] sm:$0xff]  ;;  %v515_v35 = vld [vmem:[%s12259_s0 + $0x38] sm:$0xff]  ;;  %v517_v37 = vld [vmem:[%s12259_s0 + $0x48] sm:$0xff] }
 0x12c   : > { %v543_v38 = vpack.c.bf16 %v515_v35, %v514_v34  ;;  %v544_v39 = vpack.c.bf16 %v517_v37, %v516_v36  ;;  %v518_v40 = vld [vmem:[%s12259_s0 + $0x50] sm:$0xff]  ;;  %v519_v41 = vld [vmem:[%s12259_s0 + $0x58] sm:$0xff]  ;;  %v520_v42 = vld [vmem:[%s12259_s0 + $0x60] sm:$0xff] }
 0x12d   : > { %10576 = vmatpush3.bf16.msra.mxu0 %v10932_v11  ;;  %v521_v43 = vld [vmem:[%s12259_s0 + $0x68] sm:$0xff]  ;;  %v545_v44 = vpack.c.bf16 %v519_v41, %v518_v40  ;;  %v522_v46 = vld [vmem:[%s12259_s0 + $0x70] sm:$0xff]  ;;  %v523_v47 = vld [vmem:[%s12259_s0 + $0x78] sm:$0xff] }
 0x12e   : > { %10577 = vmatprep.subr.bf16.mxu0 %v10933_v12  ;;  %10624 = vmatpush3.bf16.msra.mxu1 %v10940_v19  ;;  %v546_v45 = vpack.c.bf16 %v521_v43, %v520_v42  ;;  %v524_v48 = vld [vmem:[%s12259_s0 + $0x80] sm:$0xff]  ;;  %v525_v49 = vld [vmem:[%s12259_s0 + $0x88] sm:$0xff]  ;;  %v547_v50 = vpack.c.bf16 %v523_v47, %v522_v46  ;;  %v526_v52 = vld [vmem:[%s12259_s0 + $0x90] sm:$0xff] }
 0x12f   : > { %10625 = vmatprep.subr.bf16.mxu1 %v10941_v21  ;;  %v548_v51 = vpack.c.bf16 %v525_v49, %v524_v48  ;;  %v527_v53 = vld [vmem:[%s12259_s0 + $0x98] sm:$0xff]  ;;  %v528_v54 = vld [vmem:[%s12259_s0 + $0xa0] sm:$0xff]  ;;  %v529_v55 = vld [vmem:[%s12259_s0 + $0xa8] sm:$0xff] }
 0x130   : > { %v549_v56 = vpack.c.bf16 %v527_v53, %v526_v52  ;;  %v550_v57 = vpack.c.bf16 %v529_v55, %v528_v54  ;;  %v530_v58 = vld [vmem:[%s12259_s0 + $0xb0] sm:$0xff]  ;;  %v531_v59 = vld [vmem:[%s12259_s0 + $0xb8] sm:$0xff]  ;;  %v532_v60 = vld [vmem:[%s12259_s0 + $0xc0] sm:$0xff] }
 0x131   : > { %10578 = vmatpush3.bf16.msra.mxu0 %v10933_v12  ;;  %v533_v61 = vld [vmem:[%s12259_s0 + $0xc8] sm:$0xff]  ;;  %v551_v62 = vpack.c.bf16 %v531_v59, %v530_v58  ;;  %v534_v9 = vld [vmem:[%s12259_s0 + $0xd0] sm:$0xff]  ;;  %v535_v10 = vld [vmem:[%s12259_s0 + $0xd8] sm:$0xff] }
 0x132   : > { %10579 = vmatprep.subr.bf16.mxu0 %v10934_v18  ;;  %10626 = vmatpush3.bf16.msra.mxu1 %v10941_v21  ;;  %v552_v63 = vpack.c.bf16 %v533_v61, %v532_v60  ;;  %v536_v11 = vld [vmem:[%s12259_s0 + $0xe0] sm:$0xff]  ;;  %v537_v12 = vld [vmem:[%s12259_s0 + $0xe8] sm:$0xff]  ;;  %v553_v13 = vpack.c.bf16 %v535_v10, %v534_v9  ;;  %v538_v15 = vld [vmem:[%s12259_s0 + $0xf0] sm:$0xff] }
 0x133   : > { %10627 = vmatprep.subr.bf16.mxu1 %v10942_v23  ;;  %v554_v14 = vpack.c.bf16 %v537_v12, %v536_v11  ;;  %v539_v16 = vld [vmem:[%s12259_s0 + $0xf8] sm:$0xff] }
 0x134   : > { %v555_v17 = vpack.c.bf16 %v539_v16, %v538_v15 }
 0x135   : > { %10580 = vmatpush3.bf16.msra.mxu0 %v10934_v18 }
 0x136   : > { %10581 = vmatprep.subr.bf16.mxu0 %v10935_v20  ;;  %10628 = vmatpush3.bf16.msra.mxu1 %v10942_v23 }
 0x137   : > { %10629 = vmatprep.subr.bf16.mxu1 %v10943_v25 }
 0x139   : > { %10582 = vmatpush3.bf16.msra.mxu0 %v10935_v20 }
 0x13a   : > { %10583 = vmatprep.subr.bf16.mxu0 %v10936_v22  ;;  %10630 = vmatpush3.bf16.msra.mxu1 %v10943_v25 }
 0x13b   : > { %10631 = vmatprep.subr.bf16.mxu1 %v10944_v30 }
 0x13d   : > { %10584 = vmatpush3.bf16.msra.mxu0 %v10936_v22 }
 0x13e   : > { %10585 = vmatprep.subr.bf16.mxu0 %v10937_v24  ;;  %10632 = vmatpush3.bf16.msra.mxu1 %v10944_v30 }
 0x13f   : > { %10633 = vmatprep.subr.bf16.mxu1 %v10945_v33 }
 0x141   : > { %10586 = vmatpush3.bf16.msra.mxu0 %v10937_v24 }
 0x142   : > { %10634 = vmatpush3.bf16.msra.mxu1 %v10945_v33 }
 0x144   : > { %10588 = vmatmul.mubr.bf16.vlgmr.msra.gmra.mrb[0].mxu0 %v541_v31 }
 0x145   : > { %10591 = vmatprep.mubr.bf16.mxu0 %v542_v32  ;;  %10636 = vmatmul.mubr.bf16.vlgmr.msra.gmra.mrb[0].mxu1 %v541_v31 }
 0x146   : > { %10639 = vmatprep.mubr.bf16.mxu1 %v542_v32 }
 0x14c   : > { %10592 = vmatmul.mubr.bf16.gmra.mrb[4].mxu0 %v543_v38 }
 0x14d   : > { %10595 = vmatprep.mubr.bf16.mxu0 %v544_v39  ;;  %10640 = vmatmul.mubr.bf16.gmra.mrb[4].mxu1 %v543_v38 }
 0x14e   : > { %10643 = vmatprep.mubr.bf16.mxu1 %v544_v39 }
 0x154   : > { %10596 = vmatmul.mubr.bf16.gmra.mrb[8].mxu0 %v545_v44 }
 0x155   : > { %10599 = vmatprep.mubr.bf16.mxu0 %v546_v45  ;;  %10644 = vmatmul.mubr.bf16.gmra.mrb[8].mxu1 %v545_v44 }
 0x156   : > { %10647 = vmatprep.mubr.bf16.mxu1 %v546_v45 }
 0x15c   : > { %10600 = vmatmul.mubr.bf16.gmra.mrb[12].mxu0 %v547_v50 }
 0x15d   : > { %10603 = vmatprep.mubr.bf16.mxu0 %v548_v51  ;;  %10648 = vmatmul.mubr.bf16.gmra.mrb[12].mxu1 %v547_v50 }
 0x15e   : > { %10651 = vmatprep.mubr.bf16.mxu1 %v548_v51 }
 0x164   : > { %10604 = vmatmul.mubr.bf16.gmra.mrb[16].mxu0 %v549_v56 }
 0x165   : > { %10607 = vmatprep.mubr.bf16.mxu0 %v550_v57  ;;  %10652 = vmatmul.mubr.bf16.gmra.mrb[16].mxu1 %v549_v56 }
 0x166   : > { %10655 = vmatprep.mubr.bf16.mxu1 %v550_v57 }
 0x16c   : > { %10608 = vmatmul.mubr.bf16.gmra.mrb[20].mxu0 %v551_v62 }
 0x16d   : > { %10611 = vmatprep.mubr.bf16.mxu0 %v552_v63  ;;  %10656 = vmatmul.mubr.bf16.gmra.mrb[20].mxu1 %v551_v62 }
 0x16e   : > { %10659 = vmatprep.mubr.bf16.mxu1 %v552_v63 }
 0x174   : > { %10612 = vmatmul.mubr.bf16.gmra.mrb[24].mxu0 %v553_v13 }
 0x175   : > { %10615 = vmatprep.mubr.bf16.mxu0 %v554_v14  ;;  %10660 = vmatmul.mubr.bf16.gmra.mrb[24].mxu1 %v553_v13 }
 0x176   : > { %10663 = vmatprep.mubr.bf16.mxu1 %v554_v14 }
 0x17c   : > { %10616 = vmatmul.mubr.bf16.gmra.mrb[28].mxu0 %v555_v17 }
 0x17d   : > { %10664 = vmatmul.mubr.bf16.gmra.mrb[28].mxu1 %v555_v17 }
 0x217   : > { %v10589_v18 = vpop.f32.mrb[0].mxu0 }
 0x218   : > { %v658_v19 = vpop.f32.mrb[1].mxu0  ;;  %v667_v21 = vadd.f32 %v10589_v18, %v12290_v1  ;;  %v10637_v29 = vpop.f32.mrb[0].mxu1 }
 0x219   : > { %v10590_v20 = vpop.f32.mrb[2].mxu0  ;;  %v659_v24 = vadd.f32 %v12290_v1, %v658_v19  ;;  %v12369_v31 = vadd.f32 %v10637_v29, %v12295_v2  ;;  %v887_v32 = vpop.f32.mrb[1].mxu1 }
 0x21a   : > { %v670_v22 = vadd.f32 %v10590_v20, %v12290_v1  ;;  %v661_v23 = vpop.f32.mrb[3].mxu0  ;;  %v12372_v34 = vadd.f32 %v12295_v2, %v887_v32  ;;  %v10638_v35 = vpop.f32.mrb[2].mxu1 }
 0x21b   : > { %v662_v25 = vadd.f32 %v12290_v1, %v661_v23  ;;  %v12377_v39 = vadd.f32 %v10638_v35, %v12295_v2  ;;  %v890_v40 = vpop.f32.mrb[3].mxu1 }
 0x21c   : > { %v1015_v26 = vpack.c.bf16 %v670_v22, %v667_v21  ;;  %v12382_v43 = vadd.f32 %v12295_v2, %v890_v40 }
 0x21d   : > { %v1014_v27 = vpack.c.bf16 %v662_v25, %v659_v24  ;;  %v1063_v45 = vpack.c.bf16 %v12377_v39, %v12369_v31 }
 0x21e   : > { %v1062_v47 = vpack.c.bf16 %v12382_v43, %v12372_v34 }
 0x21f   : > { %v10593_v28 = vpop.f32.mrb[4].mxu0  ;;  %1030 = vxpose.xlu0.c.b16.start [1/8] %v1014_v27, 128 }
 0x220   : > { %v674_v30 = vpop.f32.mrb[5].mxu0  ;;  %v683_v36 = vadd.f32 %v10593_v28, %v12290_v1  ;;  %v10641_v49 = vpop.f32.mrb[4].mxu1 }
 0x221   : > { %v10594_v33 = vpop.f32.mrb[6].mxu0  ;;  %v675_v41 = vadd.f32 %v12290_v1, %v674_v30  ;;  %v12389_v51 = vadd.f32 %v10641_v49, %v12295_v2  ;;  %v903_v52 = vpop.f32.mrb[5].mxu1 }
 0x222   : > { %v686_v37 = vadd.f32 %v10594_v33, %v12290_v1  ;;  %v677_v38 = vpop.f32.mrb[7].mxu0  ;;  %v12392_v54 = vadd.f32 %v12295_v2, %v903_v52  ;;  %v10642_v55 = vpop.f32.mrb[6].mxu1 }
 0x223   : > { %v678_v42 = vadd.f32 %v12290_v1, %v677_v38  ;;  %1031 = vxpose.xlu0.c.b16.cont [2/8] %v1015_v26, 128  ;;  %v12397_v59 = vadd.f32 %v10642_v55, %v12295_v2  ;;  %v906_v60 = vpop.f32.mrb[7].mxu1 }
 0x224   : > { %v1017_v44 = vpack.c.bf16 %v686_v37, %v683_v36  ;;  %v12402_v63 = vadd.f32 %v12295_v2, %v906_v60 }
 0x225   : > { %v1016_v46 = vpack.c.bf16 %v678_v42, %v675_v41  ;;  %v1065_v10 = vpack.c.bf16 %v12397_v59, %v12389_v51 }
 0x226   : > { %v1064_v12 = vpack.c.bf16 %v12402_v63, %v12392_v54 }
 0x227   : > { %v10597_v48 = vpop.f32.mrb[8].mxu0  ;;  %1032 = vxpose.xlu0.c.b16.cont [3/8] %v1016_v46, 128 }
 0x228   : > { %v690_v50 = vpop.f32.mrb[9].mxu0  ;;  %v699_v56 = vadd.f32 %v10597_v48, %v12290_v1  ;;  %v10645_v14 = vpop.f32.mrb[8].mxu1 }
 0x229   : > { %v10598_v53 = vpop.f32.mrb[10].mxu0  ;;  %v691_v61 = vadd.f32 %v12290_v1, %v690_v50  ;;  %v12409_v16 = vadd.f32 %v10645_v14, %v12295_v2  ;;  %v919_v17 = vpop.f32.mrb[9].mxu1 }
 0x22a   : > { %v702_v57 = vadd.f32 %v10598_v53, %v12290_v1  ;;  %v693_v58 = vpop.f32.mrb[11].mxu0  ;;  %v12412_v19 = vadd.f32 %v12295_v2, %v919_v17  ;;  %v10646_v20 = vpop.f32.mrb[10].mxu1 }
 0x22b   : > { %v694_v62 = vadd.f32 %v12290_v1, %v693_v58  ;;  %1033 = vxpose.xlu0.c.b16.cont [4/8] %v1017_v44, 128  ;;  %v12417_v24 = vadd.f32 %v10646_v20, %v12295_v2  ;;  %v922_v25 = vpop.f32.mrb[11].mxu1 }
 0x22c   : > { %v1019_v9 = vpack.c.bf16 %v702_v57, %v699_v56  ;;  %v12422_v28 = vadd.f32 %v12295_v2, %v922_v25 }
 0x22d   : > { %v1018_v11 = vpack.c.bf16 %v694_v62, %v691_v61  ;;  %v1067_v30 = vpack.c.bf16 %v12417_v24, %v12409_v16 }
 0x22e   : > { %v1066_v33 = vpack.c.bf16 %v12422_v28, %v12412_v19 }
 0x22f   : > { %v10601_v13 = vpop.f32.mrb[12].mxu0  ;;  %1034 = vxpose.xlu0.c.b16.cont [5/8] %v1018_v11, 128 }
 0x230   : > { %v706_v15 = vpop.f32.mrb[13].mxu0  ;;  %v715_v21 = vadd.f32 %v10601_v13, %v12290_v1  ;;  %v10649_v36 = vpop.f32.mrb[12].mxu1 }
 0x231   : > { %v10602_v18 = vpop.f32.mrb[14].mxu0  ;;  %v707_v26 = vadd.f32 %v12290_v1, %v706_v15  ;;  %v12429_v38 = vadd.f32 %v10649_v36, %v12295_v2  ;;  %v935_v40 = vpop.f32.mrb[13].mxu1 }
 0x232   : > { %v718_v22 = vadd.f32 %v10602_v18, %v12290_v1  ;;  %v709_v23 = vpop.f32.mrb[15].mxu0  ;;  %v12432_v42 = vadd.f32 %v12295_v2, %v935_v40  ;;  %v10650_v44 = vpop.f32.mrb[14].mxu1 }
 0x233   : > { %v710_v27 = vadd.f32 %v12290_v1, %v709_v23  ;;  %1035 = vxpose.xlu0.c.b16.cont [6/8] %v1019_v9, 128  ;;  %v12437_v50 = vadd.f32 %v10650_v44, %v12295_v2  ;;  %v938_v52 = vpop.f32.mrb[15].mxu1 }
 0x234   : > { %v1021_v29 = vpack.c.bf16 %v718_v22, %v715_v21  ;;  %v12442_v56 = vadd.f32 %v12295_v2, %v938_v52 }
 0x235   : > { %v1020_v32 = vpack.c.bf16 %v710_v27, %v707_v26  ;;  %v1069_v58 = vpack.c.bf16 %v12437_v50, %v12429_v38 }
 0x236   : > { %v1068_v61 = vpack.c.bf16 %v12442_v56, %v12432_v42 }
 0x237   : > { %v10605_v35 = vpop.f32.mrb[16].mxu0  ;;  %1036 = vxpose.xlu0.c.b16.cont [7/8] %v1020_v32, 128 }
 0x238   : > { %v722_v37 = vpop.f32.mrb[17].mxu0  ;;  %v731_v46 = vadd.f32 %v10605_v35, %v12290_v1  ;;  %v10653_v9 = vpop.f32.mrb[16].mxu1 }
 0x239   : > { %v10606_v41 = vpop.f32.mrb[18].mxu0  ;;  %v723_v53 = vadd.f32 %v12290_v1, %v722_v37  ;;  %v12452_v13 = vadd.f32 %v10653_v9, %v12295_v2  ;;  %v951_v14 = vpop.f32.mrb[17].mxu1 }
 0x23a   : > { %v734_v48 = vadd.f32 %v10606_v41, %v12290_v1  ;;  %v725_v49 = vpop.f32.mrb[19].mxu0  ;;  %v12455_v17 = vadd.f32 %v12295_v2, %v951_v14  ;;  %v10654_v18 = vpop.f32.mrb[18].mxu1 }
 0x23b   : > { %v726_v55 = vadd.f32 %v12290_v1, %v725_v49  ;;  %1037 = vxpose.xlu0.c.b16.end [8/8] %v1021_v29, 128  ;;  %v12460_v23 = vadd.f32 %v10654_v18, %v12295_v2  ;;  %v954_v34 = vpop.f32.mrb[19].mxu1 }
 0x23c   : > { %v1023_v57 = vpack.c.bf16 %v734_v48, %v731_v46  ;;  %v12468_v25 = vadd.f32 %v12295_v2, %v954_v34 }
 0x23d   : > { %v1022_v60 = vpack.c.bf16 %v726_v55, %v723_v53  ;;  %v1071_v27 = vpack.c.bf16 %v12460_v23, %v12452_v13 }
 0x23e   : > { %v1070_v32 = vpack.c.bf16 %v12468_v25, %v12455_v17 }
 0x23f   : > { %v10609_v62 = vpop.f32.mrb[20].mxu0  ;;  %1046 = vxpose.xlu1.c.b16.start [1/8] %v1022_v60, 128  ;;  %1078 = vxpose.xlu0.c.b16.start [1/8] %v1062_v47, 128 }
 0x240   : > { %v738_v11 = vpop.f32.mrb[21].mxu0  ;;  %v747_v20 = vadd.f32 %v10609_v62, %v12290_v1  ;;  %v10657_v36 = vpop.f32.mrb[20].mxu1 }
 0x241   : > { %v10610_v15 = vpop.f32.mrb[22].mxu0  ;;  %v739_v43 = vadd.f32 %v12290_v1, %v738_v11  ;;  %v976_v39 = vadd.f32 %v10657_v36, %v12295_v2 }
 0x242   : > { %v750_v21 = vadd.f32 %v10610_v15, %v12290_v1  ;;  %v741_v22 = vpop.f32.mrb[23].mxu0 }
 0x243   : > { %v742_v47 = vadd.f32 %v12290_v1, %v741_v22  ;;  %1047 = vxpose.xlu1.c.b16.cont [2/8] %v1023_v57, 128  ;;  %1079 = vxpose.xlu0.c.b16.cont [2/8] %v1063_v45, 128  ;;  %v967_v45 = vpop.f32.mrb[21].mxu1 }
 0x244   : > { %v1025_v26 = vpack.c.bf16 %v750_v21, %v747_v20  ;;  %v968_v40 = vadd.f32 %v12295_v2, %v967_v45  ;;  %v10658_v41 = vpop.f32.mrb[22].mxu1 }
 0x245   : > { %v1024_v29 = vpack.c.bf16 %v742_v47, %v739_v43  ;;  %v979_v49 = vadd.f32 %v10658_v41, %v12295_v2  ;;  %v970_v52 = vpop.f32.mrb[23].mxu1 }
 0x247   : > { %v10613_v35 = vpop.f32.mrb[24].mxu0  ;;  %1048 = vxpose.xlu1.c.b16.cont [3/8] %v1024_v29, 128  ;;  %1080 = vxpose.xlu0.c.b16.cont [3/8] %v1064_v12, 128  ;;  %v971_v12 = vadd.f32 %v12295_v2, %v970_v52  ;;  %v1073_v55 = vpack.c.bf16 %v979_v49, %v976_v39 }
 0x248   : > { %v754_v31 = vpop.f32.mrb[25].mxu0  ;;  %v763_v44 = vadd.f32 %v10613_v35, %v12290_v1  ;;  %v10661_v9 = vpop.f32.mrb[24].mxu1 }
 0x249   : > { %v10614_v37 = vpop.f32.mrb[26].mxu0  ;;  %v755_v54 = vadd.f32 %v12290_v1, %v754_v31  ;;  %v1072_v60 = vpack.c.bf16 %v971_v12, %v968_v40  ;;  %v992_v14 = vadd.f32 %v10661_v9, %v12295_v2  ;;  %v983_v15 = vpop.f32.mrb[25].mxu1 }
 0x24a   : > { %v766_v46 = vadd.f32 %v10614_v37, %v12290_v1  ;;  %v757_v48 = vpop.f32.mrb[27].mxu0  ;;  %v984_v51 = vadd.f32 %v12295_v2, %v983_v15  ;;  %v10662_v59 = vpop.f32.mrb[26].mxu1 }
 0x24b   : > { %v758_v63 = vadd.f32 %v12290_v1, %v757_v48  ;;  %1049 = vxpose.xlu1.c.b16.cont [4/8] %v1025_v26, 128  ;;  %1081 = vxpose.xlu0.c.b16.cont [4/8] %v1065_v10, 128  ;;  %v995_v22 = vadd.f32 %v10662_v59, %v12295_v2  ;;  %v986_v34 = vpop.f32.mrb[27].mxu1 }
 0x24c   : > { %v1027_v53 = vpack.c.bf16 %v766_v46, %v763_v44 }
 0x24d   : > { %v1026_v57 = vpack.c.bf16 %v758_v63, %v755_v54  ;;  %v1075_v47 = vpack.c.bf16 %v995_v22, %v992_v14 }
 0x24f   : > { %v10617_v62 = vpop.f32.mrb[28].mxu0  ;;  %1050 = vxpose.xlu1.c.b16.cont [5/8] %v1026_v57, 128  ;;  %1082 = vxpose.xlu0.c.b16.cont [5/8] %v1066_v33, 128  ;;  %v987_v33 = vadd.f32 %v12295_v2, %v986_v34 }
 0x250   : > { %v770_v11 = vpop.f32.mrb[29].mxu0  ;;  %v779_v10 = vadd.f32 %v10617_v62, %v12290_v1  ;;  %v10665_v35 = vpop.f32.mrb[28].mxu1 }
 0x251   : > { %v10618_v18 = vpop.f32.mrb[30].mxu0  ;;  %v771_v19 = vadd.f32 %v12290_v1, %v770_v11  ;;  %v1074_v29 = vpack.c.bf16 %v987_v33, %v984_v51  ;;  %v1008_v36 = vadd.f32 %v10665_v35, %v12295_v2 }
 0x252   : > { %v782_v20 = vadd.f32 %v10618_v18, %v12290_v1  ;;  %v773_v21 = vpop.f32.mrb[31].mxu0 }
 0x253   : > { %v774_v28 = vadd.f32 %v12290_v1, %v773_v21  ;;  %1051 = vxpose.xlu1.c.b16.cont [6/8] %v1027_v53, 128  ;;  %1083 = vxpose.xlu0.c.b16.cont [6/8] %v1067_v30, 128  ;;  %v999_v1 = vpop.f32.mrb[29].mxu1 }
 0x254   : > { %v1029_v43 = vpack.c.bf16 %v782_v20, %v779_v10  ;;  %v1000_v31 = vadd.f32 %v12295_v2, %v999_v1  ;;  %v10666_v39 = vpop.f32.mrb[30].mxu1 }
 0x255   : > { %v1028_v26 = vpack.c.bf16 %v774_v28, %v771_v19  ;;  %v1011_v16 = vadd.f32 %v10666_v39, %v12295_v2  ;;  %v1002_v24 = vpop.f32.mrb[31].mxu1 }
 0x256   : > { %v1003_v30 = vadd.f32 %v12295_v2, %v1002_v24 }
 0x257   : > { %1052 = vxpose.xlu1.c.b16.cont [7/8] %v1028_v26, 128  ;;  %1084 = vxpose.xlu0.c.b16.cont [7/8] %v1068_v61, 128  ;;  %v1077_v45 = vpack.c.bf16 %v1011_v16, %v1008_v36 }
 0x258   : > { %v1076_v42 = vpack.c.bf16 %v1003_v30, %v1000_v31 }
 0x25b   : > { %1053 = vxpose.xlu1.c.b16.end [8/8] %v1029_v43, 128  ;;  %1085 = vxpose.xlu0.c.b16.end [8/8] %v1069_v58, 128 }
 0x25f   : > { %1094 = vxpose.xlu1.c.b16.start [1/8] %v1070_v32, 128 }
 0x263   : > { %1095 = vxpose.xlu1.c.b16.cont [2/8] %v1071_v27, 128 }
 0x267   : > { %1096 = vxpose.xlu1.c.b16.cont [3/8] %v1072_v60, 128 }
 0x26b   : > { %1097 = vxpose.xlu1.c.b16.cont [4/8] %v1073_v55, 128 }
 0x26f   : > { %1098 = vxpose.xlu1.c.b16.cont [5/8] %v1074_v29, 128 }
 0x273   : > { %1099 = vxpose.xlu1.c.b16.cont [6/8] %v1075_v47, 128 }
 0x277   : > { %1100 = vxpose.xlu1.c.b16.cont [7/8] %v1076_v42, 128 }
 0x27b   : > { %1101 = vxpose.xlu1.c.b16.end [8/8] %v1077_v45, 128 }
 0x285   : > { %v1038_v38 = vpop.trf.xlu0 }
 0x286   : > { %1110 = vst [vmem:[#allocation2] sm:$0xff] %v1038_v38 }
 0x289   : > { %v1039_v50 = vpop.trf.xlu0 }
 0x28a   : > { %1112 = vst [vmem:[#allocation2 + $0x10] sm:$0xff] %v1039_v50 }
 0x28d   : > { %v1040_v2 = vpop.trf.xlu0 }
 0x28e   : > { %1114 = vst [vmem:[#allocation2 + $0x20] sm:$0xff] %v1040_v2 }
 0x291   : > { %v1041_v56 = vpop.trf.xlu0 }
 0x292   : > { %1116 = vst [vmem:[#allocation2 + $0x30] sm:$0xff] %v1041_v56 }
 0x295   : > { %v1042_v58 = vpop.trf.xlu0 }
 0x296   : > { %1118 = vst [vmem:[#allocation2 + $0x40] sm:$0xff] %v1042_v58 }
 0x299   : > { %v1043_v61 = vpop.trf.xlu0 }
 0x29a   : > { %1120 = vst [vmem:[#allocation2 + $0x50] sm:$0xff] %v1043_v61 }
 0x29d   : > { %v1044_v13 = vpop.trf.xlu0 }
 0x29e   : > { %1122 = vst [vmem:[#allocation2 + $0x60] sm:$0xff] %v1044_v13 }
 0x2a1   : > { %v1045_v17 = vpop.trf.xlu0 }
 0x2a2   : > { %1124 = vst [vmem:[#allocation2 + $0x70] sm:$0xff] %v1045_v17 }
 0x2a5   : > { %v1054_v23 = vpop.trf.xlu1  ;;  %v1086_v25 = vpop.trf.xlu0 }
 0x2a6   : > { %1111 = vst [vmem:[#allocation2 + $0x8] sm:$0xff] %v1054_v23  ;;  %1126 = vst [vmem:[#allocation3] sm:$0xff] %v1086_v25 }
 0x2a9   : > { %v1055_v27 = vpop.trf.xlu1  ;;  %v1087_v32 = vpop.trf.xlu0 }
 0x2aa   : > { %1113 = vst [vmem:[#allocation2 + $0x18] sm:$0xff] %v1055_v27  ;;  %1128 = vst [vmem:[#allocation3 + $0x10] sm:$0xff] %v1087_v32 }
 0x2ad   : > { %v1056_v37 = vpop.trf.xlu1  ;;  %v1088_v40 = vpop.trf.xlu0 }
 0x2ae   : > { %1115 = vst [vmem:[#allocation2 + $0x28] sm:$0xff] %v1056_v37  ;;  %1130 = vst [vmem:[#allocation3 + $0x20] sm:$0xff] %v1088_v40 }
 0x2b1   : > { %v1057_v41 = vpop.trf.xlu1  ;;  %v1089_v44 = vpop.trf.xlu0 }
 0x2b2   : > { %1117 = vst [vmem:[#allocation2 + $0x38] sm:$0xff] %v1057_v41  ;;  %1132 = vst [vmem:[#allocation3 + $0x30] sm:$0xff] %v1089_v44 }
 0x2b5   : > { %v1058_v46 = vpop.trf.xlu1  ;;  %v1090_v48 = vpop.trf.xlu0 }
 0x2b6   : > { %1119 = vst [vmem:[#allocation2 + $0x48] sm:$0xff] %v1058_v46  ;;  %1134 = vst [vmem:[#allocation3 + $0x40] sm:$0xff] %v1090_v48 }
 0x2b9   : > { %v1059_v49 = vpop.trf.xlu1  ;;  %v1091_v52 = vpop.trf.xlu0 }
 0x2ba   : > { %1121 = vst [vmem:[#allocation2 + $0x58] sm:$0xff] %v1059_v49  ;;  %1136 = vst [vmem:[#allocation3 + $0x50] sm:$0xff] %v1091_v52 }
 0x2bd   : > { %v1060_v54 = vpop.trf.xlu1  ;;  %v1092_v63 = vpop.trf.xlu0 }
 0x2be   : > { %1123 = vst [vmem:[#allocation2 + $0x68] sm:$0xff] %v1060_v54  ;;  %1138 = vst [vmem:[#allocation3 + $0x60] sm:$0xff] %v1092_v63 }
 0x2c1   : > { %v1061_v12 = vpop.trf.xlu1  ;;  %v1093_v53 = vpop.trf.xlu0 }
 0x2c2   : > { %1125 = vst [vmem:[#allocation2 + $0x78] sm:$0xff] %v1061_v12  ;;  %1140 = vst [vmem:[#allocation3 + $0x70] sm:$0xff] %v1093_v53 }
 0x2c5   : > { %v1102_v55 = vpop.trf.xlu1 }
 0x2c6   : > { %1127 = vst [vmem:[#allocation3 + $0x8] sm:$0xff] %v1102_v55 }
 0x2c9   : > { %v1103_v57 = vpop.trf.xlu1 }
 0x2ca   : > { %1129 = vst [vmem:[#allocation3 + $0x18] sm:$0xff] %v1103_v57 }
 0x2cd   : > { %v1104_v60 = vpop.trf.xlu1 }
 0x2ce   : > { %1131 = vst [vmem:[#allocation3 + $0x28] sm:$0xff] %v1104_v60 }
 0x2d1   : > { %v1105_v62 = vpop.trf.xlu1 }
 0x2d2   : > { %1133 = vst [vmem:[#allocation3 + $0x38] sm:$0xff] %v1105_v62 }
 0x2d5   : > { %v1106_v9 = vpop.trf.xlu1 }
 0x2d6   : > { %1135 = vst [vmem:[#allocation3 + $0x48] sm:$0xff] %v1106_v9 }
 0x2d9   : > { %v1107_v11 = vpop.trf.xlu1 }
 0x2da   : > { %1137 = vst [vmem:[#allocation3 + $0x58] sm:$0xff] %v1107_v11 }
 0x2dd   : > { %v1108_v14 = vpop.trf.xlu1 }
 0x2de   : > { %1139 = vst [vmem:[#allocation3 + $0x68] sm:$0xff] %v1108_v14 }
 0x2e1   : > { %v1109_v15 = vpop.trf.xlu1 }
 0x2e2   : > { %1141 = vst [vmem:[#allocation3 + $0x78] sm:$0xff] %v1109_v15 }
 0x2e3 PF: > { %v10946_v18 = vld [vmem:[#allocation7] sm:$0xff]   ;;  %s16421_s27 = sld [smem:[#allocation28_spill]]  ;;  %v10947_v51 = vld [vmem:[#allocation7 + $0x8] sm:$0xff]   ;;  %v10948_v59 = vld [vmem:[#allocation7 + $0x10] sm:$0xff]   ;;  %v16186_v17 = vmov 0   ;;  %s11859_s1 = smov 96  }
 0x2e4   : > { %10667 = vmatprep.subr.bf16.mxu0 %v10946_v18  ;;  %v10949_v10 = vld [vmem:[#allocation7 + $0x18] sm:$0xff]   ;;  %v10950_v34 = vld [vmem:[#allocation7 + $0x20] sm:$0xff]   ;;  %v10951_v19 = vld [vmem:[#allocation7 + $0x28] sm:$0xff]   ;;  %3588 = vmatprep.mubr.bf16.mxu1 %v16186_v17  ;;  %s11860_s8 = smov 64   ;;  %vm3531_vm0 = vcmask 261120   ;;  %vm8060_vm1 = vcmask 523264  }
 0x2e5   : > { %10668 = vmatpush3.bf16.msra.mxu0 %v10946_v18  ;;  %v10952_v28 = vld [vmem:[#allocation7 + $0x30] sm:$0xff]   ;;  %v10953_v33 = vld [vmem:[#allocation7 + $0x38] sm:$0xff]   ;;  %v12543_v44 = vld [vmem:[#allocation2 + $0x28] sm:$0xff]  ;;  %vm8077_vm2 = vcmask 785408   ;;  %s16822_s13 = sld [smem:[#allocation128_spill]]  ;;  %s16826_s24 = sld [smem:[#allocation29_spill]] }
 0x2e6   : > { %10669 = vmatprep.subr.bf16.mxu0 %v10947_v51  ;;  %v12545_v46 = vld [vmem:[#allocation2 + $0x20] sm:$0xff]  ;;  %s16827_s25 = sld [smem:[#allocation131_spill]]  ;;  %p16828_p6 = scmp.ne.s32.totalorder %s16405_s10, 0 }
 0x2e9   : > { %s10038_s6 = sshll.u32 %s16421_s27, 7  ;;  %10670 = vmatpush3.bf16.msra.mxu0 %v10947_v51  ;;  %s10288_s12 = sshll.u32 %s16421_s27, 4 }
 0x2ea   : > { %s12520_s16 = scalar_lea.vmem %s12259_s0, %s10038_s6 [#allocation4]  ;;  %10671 = vmatprep.subr.bf16.mxu0 %v10948_v59  ;;  %s11858_s0 = smov 32  }
 0x2eb   : > { %v1176_v20 = vld [vmem:[%s12520_s16] sm:$0xff]  ;;  %v1177_v21 = vld [vmem:[%s12520_s16 + $0x8] sm:$0xff]  ;;  %v1178_v43 = vld [vmem:[%s12520_s16 + $0x10] sm:$0xff]  ;;  %s10289_s6 = sshll.u32 %s16826_s24, 5 }
 0x2ec   : > { %v1192_v22 = vpack.c.bf16 %v1177_v21, %v1176_v20  ;;  %v1179_v47 = vld [vmem:[%s12520_s16 + $0x18] sm:$0xff]  ;;  %v1180_v26 = vld [vmem:[%s12520_s16 + $0x20] sm:$0xff]  ;;  %v1181_v29 = vld [vmem:[%s12520_s16 + $0x28] sm:$0xff] }
 0x2ed   : > { %10672 = vmatpush3.bf16.msra.mxu0 %v10948_v59  ;;  %v1193_v35 = vpack.c.bf16 %v1179_v47, %v1178_v43  ;;  %v1194_v36 = vpack.c.bf16 %v1181_v29, %v1180_v26  ;;  %v1182_v1 = vld [vmem:[%s12520_s16 + $0x30] sm:$0xff]  ;;  %v1183_v31 = vld [vmem:[%s12520_s16 + $0x38] sm:$0xff]  ;;  %v1184_v39 = vld [vmem:[%s12520_s16 + $0x40] sm:$0xff] }
 0x2ee   : > { %10683 = vmatprep.mubr.bf16.mxu0 %v1192_v22  ;;  %10673 = vmatprep.subr.bf16.mxu0 %v10949_v10  ;;  %v1185_v16 = vld [vmem:[%s12520_s16 + $0x48] sm:$0xff]  ;;  %v1195_v24 = vpack.c.bf16 %v1183_v31, %v1182_v1  ;;  %v1186_v45 = vld [vmem:[%s12520_s16 + $0x50] sm:$0xff]  ;;  %v1187_v42 = vld [vmem:[%s12520_s16 + $0x58] sm:$0xff] }
 0x2ef   : > { %v1196_v30 = vpack.c.bf16 %v1185_v16, %v1184_v39  ;;  %v1188_v38 = vld [vmem:[%s12520_s16 + $0x60] sm:$0xff]  ;;  %v1189_v50 = vld [vmem:[%s12520_s16 + $0x68] sm:$0xff]  ;;  %v1197_v2 = vpack.c.bf16 %v1187_v42, %v1186_v45  ;;  %v1190_v58 = vld [vmem:[%s12520_s16 + $0x70] sm:$0xff] }
 0x2f0   : > { %v1198_v56 = vpack.c.bf16 %v1189_v50, %v1188_v38  ;;  %v1191_v61 = vld [vmem:[%s12520_s16 + $0x78] sm:$0xff] }
 0x2f1   : > { %10674 = vmatpush3.bf16.msra.mxu0 %v10949_v10  ;;  %v1199_v13 = vpack.c.bf16 %v1191_v61, %v1190_v58 }
 0x2f2   : > { %10675 = vmatprep.subr.bf16.mxu0 %v10950_v34 }
 0x2f5   : > { %10676 = vmatpush3.bf16.msra.mxu0 %v10950_v34 }
 0x2f6   : > { %10677 = vmatprep.subr.bf16.mxu0 %v10951_v19 }
 0x2f9   : > { %10678 = vmatpush3.bf16.msra.mxu0 %v10951_v19 }
 0x2fa   : > { %10679 = vmatprep.subr.bf16.mxu0 %v10952_v28 }
 0x2fd   : > { %10680 = vmatpush3.bf16.msra.mxu0 %v10952_v28 }
 0x2fe   : > { %10681 = vmatprep.subr.bf16.mxu0 %v10953_v33 }
 0x301   : > { %10682 = vmatpush3.bf16.msra.mxu0 %v10953_v33 }
 0x302   : > { %3693 = vmatprep.subr.bf16.mxu0 %v12543_v44 }
 0x304   : > { %10684 = vmatmul.mubr.bf16.vlgmr.msra.gmra.mrb[0].mxu0 %v1193_v35 }
 0x305   : > { %10687 = vmatprep.mubr.bf16.mxu0 %v1194_v36  ;;  %3694 = vmatpush1.bf16.msra.mxu0 %v12545_v46 }
 0x30c   : > { %10688 = vmatmul.mubr.bf16.gmra.mrb[4].mxu0 %v1195_v24 }
 0x30d   : > { %10691 = vmatprep.mubr.bf16.mxu0 %v1196_v30 }
 0x314   : > { %10692 = vmatmul.mubr.bf16.gmra.mrb[8].mxu0 %v1197_v2 }
 0x315   : > { %10695 = vmatprep.mubr.bf16.mxu0 %v1198_v56 }
 0x31c   : > { %10696 = vmatmul.mubr.bf16.gmra.mrb[12].mxu0 %v1199_v13 }
 0x31d   : > { %3725 = vmatprep.mubr.bf16.mxu0 %v16186_v17 }
 0x3d7   : > { %v10685_v23 = vpop.f32.mrb[0].mxu0 }
 0x3d8   : > { %v1311_v25 = vadd.f32 %v10685_v23, %v12285_v0  ;;  %v1302_v27 = vpop.f32.mrb[1].mxu0 }
 0x3d9   : > { %v1303_v32 = vadd.f32 %v12285_v0, %v1302_v27  ;;  %v10686_v37 = vpop.f32.mrb[2].mxu0  ;;  %v1143_v27 = vld [vmem:[#allocation2 + $0x8] sm:$0xff] }
 0x3da   : > { %v1314_v40 = vadd.f32 %v10686_v37, %v12285_v0  ;;  %v1305_v41 = vpop.f32.mrb[3].mxu0  ;;  %v1367_v49 = vmul.f32 0.17677669, %v1311_v25  ;;  %3556 = vmatprep.subr.bf16.mxu1 %v1143_v27  ;;  %v12609_v37 = vld [vmem:[#allocation2 + $0x30] sm:$0xff] }
 0x3db   : > { %v1306_v48 = vadd.f32 %v12285_v0, %v1305_v41  ;;  %v1365_v54 = vmul.f32 0.17677669, %v1303_v32  ;;  %v12606_v32 = vld [vmem:[#allocation2 + $0x38] sm:$0xff]  ;;  %v1144_v41 = vld [vmem:[#allocation2 + $0x10] sm:$0xff] }
 0x3dc   : > { %v1368_v52 = vmul.f32 0.17677669, %v1314_v40  ;;  %3695 = vmatprep.subr.bf16.mxu0 %v12606_v32  ;;  %v1145_v40 = vld [vmem:[#allocation2 + $0x18] sm:$0xff] }
 0x3dd   : > { %v1366_v63 = vmul.f32 0.17677669, %v1306_v48  ;;  %3696 = vmatpush1.bf16.msra.mxu0 %v12609_v37  ;;  %v1155_v48 = vld [vmem:[#allocation2 + $0x68] sm:$0xff] }
 0x3de   : > { %v12550_v12 = vpack.c.bf16 %v1368_v52, %v1367_v49  ;;  %3967 = vmatprep.subr.bf16.mxu0 %v1155_v48 }
 0x3df   : > { %v12552_v53 = vpack.c.bf16 %v1366_v63, %v1365_v54  ;;  %v10689_v55 = vpop.f32.mrb[4].mxu0  ;;  %v11861_v54 = vmov 1983009808  }
 0x3e0   : > { %v1327_v57 = vadd.f32 %v10689_v55, %v12285_v0  ;;  %v1318_v60 = vpop.f32.mrb[5].mxu0  ;;  %v1581_v63 = vunpack.c.l.s4 %v11861_v54  ;;  %v1583_v55 = vlaneseq }
 0x3e1   : > { %1429 = vrot.lane.b32.xlu1 %v12552_v53, %s11858_s0  ;;  %1397 = vrot.lane.b32.xlu0 %v12552_v53, %s11859_s1  ;;  %v1319_v62 = vadd.f32 %v12285_v0, %v1318_v60  ;;  %v10690_v9 = vpop.f32.mrb[6].mxu0 }
 0x3e2   : > { %v1371_v11 = vmul.f32 0.17677669, %v1327_v57  ;;  %v1330_v14 = vadd.f32 %v10690_v9, %v12285_v0  ;;  %v1321_v15 = vpop.f32.mrb[7].mxu0 }
 0x3e3   : > { %v1369_v18 = vmul.f32 0.17677669, %v1319_v62  ;;  %v1322_v51 = vadd.f32 %v12285_v0, %v1321_v15 }
 0x3e4   : > { %v1372_v59 = vmul.f32 0.17677669, %v1330_v14  ;;  %v12633_v14 = vshrl.u32 %v1583_v55, 7 }
 0x3e5   : > { %1399 = vrot.lane.b32.xlu1 %v12550_v12, %s11859_s1  ;;  %1413 = vrot.lane.b32.xlu0 %v12552_v53, %s11860_s8  ;;  %v1370_v10 = vmul.f32 0.17677669, %v1322_v51  ;;  %v12637_v51 = vpack.i.b16 %v16186_v17, %v16186_v17 }
 0x3e6   : > { %v12566_v20 = vpack.c.bf16 %v1372_v59, %v1371_v11  ;;  %v1582_v11 = vunpack.c.0.s8 %v1581_v63  ;;  %16422 = vst [vmem:[#allocation38_spill] sm:$0xff] %v12633_v14 }
 0x3e7   : > { %v12568_v21 = vpack.c.bf16 %v1370_v10, %v1369_v18  ;;  %v10693_v22 = vpop.f32.mrb[8].mxu0  ;;  %16423 = vst [vmem:[#allocation39_spill] sm:$0xff] %v12637_v51 }
 0x3e8   : > { %v1343_v34 = vadd.f32 %v10693_v22, %v12285_v0  ;;  %v1334_v19 = vpop.f32.mrb[9].mxu0 }
 0x3e9   : > { %1431 = vrot.lane.b32.xlu1 %v12550_v12, %s11858_s0  ;;  %1415 = vrot.lane.b32.xlu0 %v12550_v12, %s11860_s8  ;;  %v1335_v28 = vadd.f32 %v12285_v0, %v1334_v19  ;;  %v10694_v33 = vpop.f32.mrb[10].mxu0 }
 0x3ea   : > { %v1375_v43 = vmul.f32 0.17677669, %v1343_v34  ;;  %v1346_v47 = vadd.f32 %v10694_v33, %v12285_v0  ;;  %v1337_v26 = vpop.f32.mrb[11].mxu0 }
 0x3eb   : > { %v1373_v29 = vmul.f32 0.17677669, %v1335_v28  ;;  %v1338_v35 = vadd.f32 %v12285_v0, %v1337_v26  ;;  %v1449_v28 = vshrl.u32 %v12552_v53, 16 }
 0x3ec   : > { %v1376_v36 = vmul.f32 0.17677669, %v1346_v47 }
 0x3ed   : > { %1417 = vrot.lane.b32.xlu1 %v12568_v21, %s11860_s8  ;;  %1401 = vrot.lane.b32.xlu0 %v12568_v21, %s11859_s1  ;;  %v1374_v1 = vmul.f32 0.17677669, %v1338_v35 }
 0x3ee   : > { %v12582_v31 = vpack.c.bf16 %v1376_v36, %v1375_v43  ;;  %v12643_v43 = vsub.s32 %v1582_v11, %v12633_v14  ;;  %v1471_v36 = vshrl.u32 %v12550_v12, 16 }
 0x3ef   : > { %v12584_v39 = vpack.c.bf16 %v1374_v1, %v1373_v29  ;;  %v10697_v16 = vpop.f32.mrb[12].mxu0 }
 0x3f0   : > { %v1359_v24 = vadd.f32 %v10697_v16, %v12285_v0  ;;  %v1350_v30 = vpop.f32.mrb[13].mxu0  ;;  %16424 = vst [vmem:[#allocation40_spill] sm:$0xff] %v12643_v43 }
 0x3f1   : > { %1403 = vrot.lane.b32.xlu1 %v12566_v20, %s11859_s1  ;;  %1433 = vrot.lane.b32.xlu0 %v12568_v21, %s11858_s0  ;;  %v1351_v45 = vadd.f32 %v12285_v0, %v1350_v30  ;;  %v10698_v42 = vpop.f32.mrb[14].mxu0  ;;  %v1503_v30 = vshrl.u32 %v12566_v20, 16 }
 0x3f2   : > { %v1379_v38 = vmul.f32 0.17677669, %v1359_v24  ;;  %v1362_v50 = vadd.f32 %v10698_v42, %v12285_v0  ;;  %v1353_v2 = vpop.f32.mrb[15].mxu0 }
 0x3f3   : > { %v1377_v56 = vmul.f32 0.17677669, %v1351_v45  ;;  %v1354_v58 = vadd.f32 %v12285_v0, %v1353_v2  ;;  %v1142_v0 = vld [vmem:[#allocation2] sm:$0xff] }
 0x3f4   : > { %v1380_v61 = vmul.f32 0.17677669, %v1362_v50  ;;  %3557 = vmatpush1.bf16.msra.mxu1 %v1142_v0 }
 0x3f5   : > { %1435 = vrot.lane.b32.xlu1 %v12566_v20, %s11858_s0  ;;  %1419 = vrot.lane.b32.xlu0 %v12566_v20, %s11860_s8  ;;  %v1378_v13 = vmul.f32 0.17677669, %v1354_v58 }
 0x3f6   : > { %v12598_v23 = vpack.c.bf16 %v1380_v61, %v1379_v38  ;;  %3558 = vmatprep.subr.bf16.mxu1 %v1145_v40 }
 0x3f7   : > { %v12600_v25 = vpack.c.bf16 %v1378_v13, %v1377_v56 }
 0x3f8   : > { %3559 = vmatpush1.bf16.msra.mxu1 %v1144_v41 }
 0x3f9   : > { %1421 = vrot.lane.b32.xlu1 %v12584_v39, %s11860_s8  ;;  %1405 = vrot.lane.b32.xlu0 %v12584_v39, %s11859_s1 }
 0x3fa   : > { %10731 = vmatprep.subr.bf16.mxu1 %v12543_v44  ;;  %v11862_v44 = vmov 1934713408  }
 0x3fb   : > { %v1612_v57 = vunpack.c.l.s4 %v11862_v44 }
 0x3fd   : > { %1407 = vrot.lane.b32.xlu1 %v12582_v31, %s11859_s1  ;;  %1437 = vrot.lane.b32.xlu0 %v12584_v39, %s11858_s0  ;;  %v1613_v15 = vunpack.c.0.s8 %v1612_v57 }
 0x3ff   : > { %v12646_v47 = vsub.s32 %v1613_v15, %v12633_v14 }
 0x401   : > { %1439 = vrot.lane.b32.xlu1 %v12582_v31, %s11858_s0  ;;  %1423 = vrot.lane.b32.xlu0 %v12582_v31, %s11860_s8  ;;  %16425 = vst [vmem:[#allocation41_spill] sm:$0xff] %v12646_v47 }
 0x405   : > { %1425 = vrot.lane.b32.xlu1 %v12600_v25, %s11860_s8  ;;  %1409 = vrot.lane.b32.xlu0 %v12600_v25, %s11859_s1 }
 0x409   : > { %1411 = vrot.lane.b32.xlu1 %v12598_v23, %s11859_s1  ;;  %1441 = vrot.lane.b32.xlu0 %v12600_v25, %s11858_s0 }
 0x40d   : > { %1443 = vrot.lane.b32.xlu1 %v12598_v23, %s11858_s0  ;;  %1427 = vrot.lane.b32.xlu0 %v12598_v23, %s11860_s8 }
 0x453   : > { %v1430_v49 = vpop.permute.xlu1 %1429  ;;  %v1398_v52 = vpop.permute.xlu0 %1397 }
 0x454   : > { %v1447_v59 = vpack.i.b16 %v1398_v52, %v12552_v53  ;;  %v1450_v10 = vshrl.u32 %v1398_v52, 16  ;;  %v1458_v22 = vshrl.u32 %v1430_v49, 16  ;;  %v1487_v53 = vshrl.u32 %v12568_v21, 16 }
 0x456   : > { %v1451_v29 = vpack.i.b16 %v1450_v10, %v1449_v28  ;;  %v1579_v35 = vcombine.high %v1447_v59, %v12637_v51  ;;  %v1586_v2 = vrot.slane %v1447_v59, %v12643_v43 }
 0x457   : > { %v1400_v60 = vpop.permute.xlu1 %1399  ;;  %v1414_v62 = vpop.permute.xlu0 %1413 }
 0x458   : > { %v1455_v9 = vpack.i.b16 %v1430_v49, %v1414_v62  ;;  %v1457_v18 = vshrl.u32 %v1414_v62, 16  ;;  %v1472_v16 = vshrl.u32 %v1400_v60, 16  ;;  %v1469_v45 = vpack.i.b16 %v1400_v60, %v12550_v12 }
 0x459   : > { %v1593_v13 = vrot.slane %v1579_v35, %v12643_v43  ;;  %v1645_v27 = vcombine.high %v1451_v29, %v12637_v51  ;;  %v1652_v40 = vrot.slane %v1451_v29, %v12643_v43  ;;  %v16428_v12 = vshrl.u32 %v12584_v39, 16 }
 0x45a   : > { %v1594_v33 = vcombine.high %v1455_v9, %v12637_v51  ;;  %v1459_v26 = vpack.i.b16 %v1458_v22, %v1457_v18  ;;  %v1601_v24 = vrot.slane %v1455_v9, %v12643_v43  ;;  %v1473_v41 = vpack.i.b16 %v1472_v16, %v1471_v36 }
 0x45b   : > { %v1432_v34 = vpop.permute.xlu1 %1431  ;;  %v1416_v19 = vpop.permute.xlu0 %1415  ;;  %v1711_v52 = vcombine.high %v1469_v45, %v12637_v51  ;;  %v1659_v9 = vrot.slane %v1645_v27, %v12643_v43  ;;  %v1718_v10 = vrot.slane %v1469_v45, %v12643_v43 }
 0x45c   : > { %v1477_v1 = vpack.i.b16 %v1432_v34, %v1416_v19  ;;  %v1608_v42 = vrot.slane %v1594_v33, %v12643_v43  ;;  %v1480_v38 = vshrl.u32 %v1432_v34, 16  ;;  %v1479_v50 = vshrl.u32 %v1416_v19, 16 }
 0x45d   : > { %v1660_v56 = vcombine.high %v1459_v26, %v12637_v51  ;;  %v1667_v58 = vrot.slane %v1459_v26, %v12643_v43  ;;  %v1609_v48 = vcombine.low %v1586_v2, %v1601_v24  ;;  %v1610_v49 = vcombine.high %v1586_v2, %v1601_v24 }
 0x45e   : > { %v1726_v0 = vcombine.high %v1477_v1, %v12637_v51  ;;  %v1625_v54 = vcombine.low %v1593_v13, %v1608_v42  ;;  %v1626_v63 = vcombine.high %v1593_v13, %v1608_v42  ;;  %v1481_v55 = vpack.i.b16 %v1480_v38, %v1479_v50 }
 0x45f   : > { %v1674_v44 = vrot.slane %v1660_v56, %v12643_v43  ;;  %v1675_v57 = vcombine.low %v1652_v40, %v1667_v58  ;;  %v1676_v60 = vcombine.high %v1652_v40, %v1667_v58  ;;  %v1733_v11 = vrot.slane %v1477_v1, %v12643_v43  ;;  %v12670_v18 = vpop.permute.xlu0 %1401  ;;  %v1418_v28 = vpop.permute.xlu1 %1417 }
 0x460   : > { %v1740_v15 = vrot.slane %v1726_v0, %v12643_v43  ;;  %v1777_v22 = vcombine.high %v1473_v41, %v12637_v51  ;;  %v1617_v34 = vrot.slane %v1609_v48, %v12646_v47  ;;  %v1624_v19 = vrot.slane %v1610_v49, %v12646_v47 }
 0x461   : > { %v1725_v33 = vrot.slane %v1711_v52, %v12643_v43  ;;  %v12679_v26 = vrot.slane %v1625_v54, %v12646_v47  ;;  %v12682_v29 = vrot.slane %v1626_v63, %v12646_v47  ;;  %v1792_v35 = vcombine.high %v1481_v55, %v12637_v51 }
 0x462   : > { %v12686_v36 = vrot.slane %v1675_v57, %v12646_v47  ;;  %v12689_v1 = vrot.slane %v1676_v60, %v12646_v47  ;;  %v1691_v16 = vcombine.low %v1659_v9, %v1674_v44  ;;  %v1692_v24 = vcombine.high %v1659_v9, %v1674_v44 }
 0x463   : > { %v1741_v45 = vcombine.low %v1718_v10, %v1733_v11  ;;  %v1742_v42 = vcombine.high %v1718_v10, %v1733_v11  ;;  %v1757_v38 = vcombine.low %v1725_v33, %v1740_v15  ;;  %v1799_v50 = vrot.slane %v1481_v55, %v12643_v43  ;;  %v1434_v49 = vpop.permute.xlu0 %1433  ;;  %v1404_v55 = vpop.permute.xlu1 %1403 }
 0x464   : > { %v1784_v2 = vrot.slane %v1473_v41, %v12643_v43  ;;  %v1791_v56 = vrot.slane %v1777_v22, %v12643_v43  ;;  %v2635_v58 = vcombine.low %v1617_v34, %v1624_v19  ;;  %v1758_v13 = vcombine.high %v1725_v33, %v1740_v15 }
 0x465   : > { %v10048_v27 = vcombine.high %v1617_v34, %v1624_v19  ;;  %v1806_v48 = vrot.slane %v1792_v35, %v12643_v43  ;;  %v12700_v52 = vrot.slane %v1691_v16, %v12646_v47  ;;  %v12703_v54 = vrot.slane %v1692_v24, %v12646_v47 }
 0x466   : > { %v1749_v44 = vrot.slane %v1741_v45, %v12646_v47  ;;  %v1756_v57 = vrot.slane %v1742_v42, %v12646_v47  ;;  %v12712_v60 = vrot.slane %v1757_v38, %v12646_v47  ;;  %v1807_v9 = vcombine.low %v1784_v2, %v1799_v50 }
 0x467   : > { %v12715_v11 = vrot.slane %v1758_v13, %v12646_v47  ;;  %v1808_v15 = vcombine.high %v1784_v2, %v1799_v50  ;;  %v1493_v10 = vpack.i.b16 %v1434_v49, %v1418_v28  ;;  %v1496_v22 = vshrl.u32 %v1434_v49, 16  ;;  %v1420_v49 = vpop.permute.xlu0 %1419 }
 0x468   : > { %v12718_v34 = vrot.slane %v2635_v58, %v12643_v43  ;;  %v12721_v19 = vrot.slane %v10048_v27, %v12643_v43  ;;  %v1823_v33 = vcombine.low %v1791_v56, %v1806_v48  ;;  %v1824_v35 = vcombine.high %v1791_v56, %v1806_v48  ;;  %v1436_v48 = vpop.permute.xlu1 %1435 }
 0x469   : > { %v1495_v24 = vshrl.u32 %v1418_v28, 16  ;;  %v1485_v45 = vpack.i.b16 %v12670_v18, %v12568_v21  ;;  %v1488_v42 = vshrl.u32 %v12670_v18, 16  ;;  %v12731_v50 = vrot.slane %v1807_v9, %v12646_v47 }
 0x46a   : > { %v2735_v2 = vcombine.low %v1749_v44, %v1756_v57  ;;  %v10052_v58 = vcombine.high %v1749_v44, %v1756_v57  ;;  %v12734_v13 = vrot.slane %v1808_v15, %v12646_v47  ;;  %v1858_v27 = vcombine.high %v1493_v10, %v12637_v51 }
 0x46b   : > { %v1497_v28 = vpack.i.b16 %v1496_v22, %v1495_v24  ;;  %v12740_v18 = vrot.slane %v1823_v33, %v12646_v47  ;;  %v12743_v62 = vrot.slane %v1824_v35, %v12646_v47  ;;  %v1865_v57 = vrot.slane %v1493_v10, %v12643_v43 }
 0x46c   : > { %v1489_v9 = vpack.i.b16 %v1488_v42, %v1487_v53  ;;  %v1843_v15 = vcombine.high %v1485_v45, %v12637_v51  ;;  %v1850_v22 = vrot.slane %v1485_v45, %v12643_v43  ;;  %v1504_v24 = vshrl.u32 %v1404_v55, 16 }
 0x46d   : > { %v1501_v59 = vpack.i.b16 %v1404_v55, %v12566_v20  ;;  %v1512_v33 = vshrl.u32 %v1436_v48, 16  ;;  %v1509_v56 = vpack.i.b16 %v1436_v48, %v1420_v49  ;;  %v1511_v17 = vshrl.u32 %v1420_v49, 16 }
 0x46e   : > { %v12754_v35 = vrot.slane %v2735_v2, %v12643_v43  ;;  %v12757_v44 = vrot.slane %v10052_v58, %v12643_v43  ;;  %v1872_v10 = vrot.slane %v1858_v27, %v12643_v43  ;;  %v1924_v21 = vcombine.high %v1497_v28, %v12637_v51  ;;  %v12781_v27 = vpop.permute.xlu0 %1405 }
 0x46f   : > { %v1873_v55 = vcombine.low %v1850_v22, %v1865_v57  ;;  %v1874_v42 = vcombine.high %v1850_v22, %v1865_v57  ;;  %v1857_v48 = vrot.slane %v1843_v15, %v12643_v43  ;;  %v1909_v2 = vcombine.high %v1489_v9, %v12637_v51 }
 0x470   : > { %v1505_v58 = vpack.i.b16 %v1504_v24, %v1503_v30  ;;  %v1931_v49 = vrot.slane %v1497_v28, %v12643_v43  ;;  %v1975_v38 = vcombine.high %v1501_v59, %v12637_v51  ;;  %v1513_v53 = vpack.i.b16 %v1512_v33, %v1511_v17 }
 0x471   : > { %v1990_v16 = vcombine.high %v1509_v56, %v12637_v51  ;;  %v1916_v45 = vrot.slane %v1489_v9, %v12643_v43  ;;  %v1889_v57 = vcombine.low %v1857_v48, %v1872_v10  ;;  %v1890_v22 = vcombine.high %v1857_v48, %v1872_v10 }
 0x472   : > { %v1938_v15 = vrot.slane %v1924_v21, %v12643_v43  ;;  %v1982_v30 = vrot.slane %v1501_v59, %v12643_v43  ;;  %v1881_v28 = vrot.slane %v1873_v55, %v12646_v47  ;;  %v1888_v24 = vrot.slane %v1874_v42, %v12646_v47 }
 0x473   : > { %v1923_v17 = vrot.slane %v1909_v2, %v12643_v43  ;;  %v2041_v33 = vcombine.high %v1505_v58, %v12637_v51  ;;  %v1939_v9 = vcombine.low %v1916_v45, %v1931_v49  ;;  %v1997_v10 = vrot.slane %v1509_v56, %v12643_v43 }
 0x474   : > { %v1989_v21 = vrot.slane %v1975_v38, %v12643_v43  ;;  %v1940_v48 = vcombine.high %v1916_v45, %v1931_v49  ;;  %v2004_v20 = vrot.slane %v1990_v16, %v12643_v43  ;;  %v2056_v59 = vcombine.high %v1513_v53, %v12637_v51 }
 0x475   : > { %v12790_v55 = vrot.slane %v1889_v57, %v12646_v47  ;;  %v12793_v42 = vrot.slane %v1890_v22, %v12646_v47  ;;  %v1955_v63 = vcombine.low %v1923_v17, %v1938_v15  ;;  %v1956_v2 = vcombine.high %v1923_v17, %v1938_v15  ;;  %v1422_v17 = vpop.permute.xlu1 %1421 }
 0x476   : > { %v2048_v41 = vrot.slane %v1505_v58, %v12643_v43  ;;  %v2835_v61 = vcombine.low %v1881_v28, %v1888_v24  ;;  %v10056_v40 = vcombine.high %v1881_v28, %v1888_v24  ;;  %v2063_v56 = vrot.slane %v1513_v53, %v12643_v43  ;;  %v1438_v58 = vpop.permute.xlu0 %1437 }
 0x477   : > { %v2055_v38 = vrot.slane %v2041_v33, %v12643_v43  ;;  %v12799_v16 = vrot.slane %v1939_v9, %v12646_v47  ;;  %v2005_v45 = vcombine.low %v1982_v30, %v1997_v10  ;;  %v2006_v49 = vcombine.high %v1982_v30, %v1997_v10 }
 0x478   : > { %v12802_v57 = vrot.slane %v1940_v48, %v12646_v47  ;;  %v2021_v22 = vcombine.low %v1989_v21, %v2004_v20  ;;  %v2022_v0 = vcombine.high %v1989_v21, %v2004_v20  ;;  %v2070_v15 = vrot.slane %v2056_v59, %v12643_v43 }
 0x479   : > { %v12806_v28 = vrot.slane %v1955_v63, %v12646_v47  ;;  %v12809_v53 = vrot.slane %v1956_v2, %v12646_v47  ;;  %v12816_v33 = vrot.slane %v2835_v61, %v12643_v43  ;;  %v12819_v20 = vrot.slane %v10056_v40, %v12643_v43 }
 0x47a   : > { %v2071_v9 = vcombine.low %v2048_v41, %v2063_v56  ;;  %v1517_v63 = vpack.i.b16 %v12781_v27, %v12584_v39  ;;  %v2013_v10 = vrot.slane %v2005_v45, %v12646_v47  ;;  %v2020_v21 = vrot.slane %v2006_v49, %v12646_v47 }
 0x47b   : > { %v2072_v48 = vcombine.high %v2048_v41, %v2063_v56  ;;  %v1525_v59 = vpack.i.b16 %v1438_v58, %v1422_v17  ;;  %v12826_v2 = vrot.slane %v2021_v22, %v12646_v47  ;;  %v12829_v30 = vrot.slane %v2022_v0, %v12646_v47 }
 0x47c   : > { %v2087_v61 = vcombine.low %v2055_v38, %v2070_v15  ;;  %v2088_v24 = vcombine.high %v2055_v38, %v2070_v15  ;;  %v1527_v8 = vshrl.u32 %v1422_v17, 16  ;;  %v1528_v45 = vshrl.u32 %v1438_v58, 16  ;;  %v1408_v38 = vpop.permute.xlu1 %1407 }
 0x47d   : > { %v12840_v49 = vrot.slane %v2071_v9, %v12646_v47  ;;  %v1520_v0 = vshrl.u32 %v12781_v27, 16  ;;  %v12844_v22 = vrot.slane %v2072_v48, %v12646_v47  ;;  %v2935_v15 = vcombine.low %v2013_v10, %v2020_v21 }
 0x47e   : > { %v10060_v40 = vcombine.high %v2013_v10, %v2020_v21  ;;  %v2122_v17 = vcombine.high %v1525_v59, %v12637_v51  ;;  %v12848_v58 = vrot.slane %v2087_v61, %v12646_v47  ;;  %v12851_v41 = vrot.slane %v2088_v24, %v12646_v47 }
 0x47f   : > { %16426 = vst [vmem:[#allocation42_spill] sm:$0xff] %v12840_v49  ;;  %16427 = vst [vmem:[#allocation43_spill] sm:$0xff] %v12844_v22  ;;  %v2107_v56 = vcombine.high %v1517_v63, %v12637_v51  ;;  %v12859_v48 = vpack.i.b16 %v1408_v38, %v12582_v31  ;;  %v1536_v10 = vshrl.u32 %v1408_v38, 16  ;;  %v1529_v21 = vpack.i.b16 %v1528_v45, %v1527_v8 }
 0x480   : > { %v1521_v61 = vpack.i.b16 %v1520_v0, %v16428_v12  ;;  %v2129_v7 = vrot.slane %v1525_v59, %v12643_v43  ;;  %v16429_v24 = vcombine.low %v12679_v26, %v12682_v29  ;;  %v16430_v6 = vcombine.high %v12679_v26, %v12682_v29 }
 0x481   : > { %v12873_v14 = vrot.slane %v2935_v15, %v12643_v43  ;;  %v12876_v8 = vrot.slane %v10060_v40, %v12643_v43  ;;  %v2136_v12 = vrot.slane %v2122_v17, %v12643_v43  ;;  %v2114_v26 = vrot.slane %v1517_v63, %v12643_v43 }
 0x482   : > { %v2658_v9 = vrot.slane %v16429_v24, %v12643_v43  ;;  %v2666_v27 = vrot.slane %v16430_v6, %v12643_v43  ;;  %v2121_v6 = vrot.slane %v2107_v56, %v12643_v43  ;;  %v16432_v29 = vshrl.u32 %v12582_v31, 16 }
 0x483   : > { %16431 = vst [vmem:[#allocation44_spill] sm:$0xff] %v12873_v14  ;;  %v2239_v40 = vcombine.high %v12859_v48, %v12637_v51  ;;  %v12895_v38 = vrot.slane %v12859_v48, %v12643_v43  ;;  %v2188_v15 = vcombine.high %v1529_v21, %v12637_v51  ;;  %v2173_v17 = vcombine.high %v1521_v61, %v12637_v51 }
 0x484   : > { %v12889_v0 = vpack.i.b16 %v1536_v10, %v16432_v29  ;;  %v2137_v24 = vcombine.low %v2114_v26, %v2129_v7  ;;  %v2667_v63 = vcombine.low %v12718_v34, %v12721_v19  ;;  %v2675_v56 = vcombine.low %v2658_v9, %v2666_v27  ;;  %v1440_v27 = vpop.permute.xlu1 %1439 }
 0x485   : > { %v2138_v45 = vcombine.high %v2114_v26, %v2129_v7  ;;  %v2153_v31 = vcombine.low %v2121_v6, %v2136_v12  ;;  %v16433_v10 = vcombine.low %v12686_v36, %v12689_v1  ;;  %v16434_v48 = vcombine.high %v12686_v36, %v12689_v1  ;;  %v1424_v26 = vpop.permute.xlu0 %1423 }
 0x486   : > { %v2674_v39 = vrot.slane %v2667_v63, %v12646_v47  ;;  %v2682_v5 = vrot.slane %v2675_v56, %v12646_v47  ;;  %v16435_v7 = vcombine.low %v12700_v52, %v12703_v54  ;;  %v16436_v19 = vcombine.high %v12700_v52, %v12703_v54 }
 0x487   : > { %v2692_v29 = vrot.slane %v16433_v10, %v12643_v43  ;;  %v2700_v59 = vrot.slane %v16434_v48, %v12643_v43  ;;  %v2180_v36 = vrot.slane %v1521_v61, %v12643_v43  ;;  %v2195_v1 = vrot.slane %v1529_v21, %v12643_v43 }
 0x488   : > { %v2708_v34 = vrot.slane %v16435_v7, %v12643_v43  ;;  %v2716_v9 = vrot.slane %v16436_v19, %v12643_v43  ;;  %v2202_v63 = vrot.slane %v2188_v15, %v12643_v43  ;;  %v2187_v56 = vrot.slane %v2173_v17, %v12643_v43 }
 0x489   : > { %v2717_v10 = vcombine.low %v2692_v29, %v2700_v59  ;;  %v2305_v48 = vcombine.high %v12889_v0, %v12637_v51  ;;  %v12925_v7 = vcombine.high %v2674_v39, %v2682_v5  ;;  %v2145_v52 = vrot.slane %v2137_v24, %v12646_v47 }
 0x48a   : > { %v2725_v4 = vcombine.low %v2708_v34, %v2716_v9  ;;  %v2152_v54 = vrot.slane %v2138_v45, %v12646_v47  ;;  %v2154_v19 = vcombine.high %v2121_v6, %v2136_v12  ;;  %v1541_v3 = vpack.i.b16 %v1440_v27, %v1424_v26 }
 0x48b   : > { %v12930_v61 = vrot.slane %v2153_v31, %v12646_v47  ;;  %v2683_v21 = vcombine.low %v2674_v39, %v2682_v5  ;;  %v2724_v59 = vrot.slane %v2717_v10, %v12646_v47  ;;  %v2203_v17 = vcombine.low %v2180_v36, %v2195_v1 }
 0x48c   : > { %v2732_v15 = vrot.slane %v2725_v4, %v12646_v47  ;;  %v2204_v29 = vcombine.high %v2180_v36, %v2195_v1  ;;  %v2219_v22 = vcombine.low %v2187_v56, %v2202_v63  ;;  %v2220_v49 = vcombine.high %v2187_v56, %v2202_v63 }
 0x48d   : > { %v1544_v24 = vshrl.u32 %v1440_v27, 16  ;;  %v1543_v9 = vshrl.u32 %v1424_v26, 16  ;;  %v12937_v12 = vrot.slane %v2154_v19, %v12646_v47  ;;  %v3035_v45 = vcombine.low %v2145_v52, %v2152_v54  ;;  %v1154_v19 = vld [vmem:[#allocation2 + $0x60] sm:$0xff] }
 0x48e   : > { %v2733_v14 = vcombine.low %v2724_v59, %v2732_v15  ;;  %v12934_v34 = vcombine.high %v2724_v59, %v2732_v15  ;;  %v10064_v6 = vcombine.high %v2145_v52, %v2152_v54  ;;  %v2261_v5 = vrot.slane %v1541_v3, %v12643_v43  ;;  %v12959_v52 = vpop.permute.xlu0 %1409 }
 0x48f   : > { %v3438_v31 = vshrl.u32 %v2683_v21, 16  ;;  %v2254_v4 = vcombine.high %v1541_v3, %v12637_v51  ;;  %v12942_v36 = vrot.slane %v2203_v17, %v12646_v47  ;;  %v12945_v1 = vrot.slane %v2204_v29, %v12646_v47  ;;  %v1426_v29 = vpop.permute.xlu1 %1425 }
 0x490   : > { %v3437_v39 = vpack.i.b16 %v2733_v14, %v2683_v21  ;;  %v3439_v10 = vshrl.u32 %v2733_v14, 16  ;;  %v12948_v27 = vrot.slane %v2219_v22, %v12646_v47  ;;  %v12951_v26 = vrot.slane %v2220_v49, %v12646_v47 }
 0x491   : > { %v12956_v56 = vrot.slane %v2239_v40, %v12643_v43  ;;  %v1545_v3 = vpack.i.b16 %v1544_v24, %v1543_v9  ;;  %v12963_v54 = vrot.slane %v12889_v0, %v12643_v43  ;;  %v12966_v22 = vrot.slane %v2305_v48, %v12643_v43 }
 0x492   : > { %v3440_v14 = vpack.i.b16 %v3439_v10, %v3438_v31  ;;  %10080 = vmatmul.mubr.msk.bf16.vlgmr.msra.gmra.mrb[0].mxu1 %vm3531_vm0, %v3437_v39  ;;  %v2269_v49 = vcombine.low %v12895_v38, %v2261_v5  ;;  %v2270_v40 = vcombine.high %v12895_v38, %v2261_v5  ;;  %v12972_v21 = vrot.slane %v3035_v45, %v12643_v43 }
 0x493   : > { %10733 = vmatpush1.bf16.msra.mxu1 %v12545_v46  ;;  %v2268_v48 = vrot.slane %v2254_v4, %v12643_v43  ;;  %v12981_v46 = vrot.slane %v10064_v6, %v12643_v43  ;;  %v16437_v24 = vmov 0   ;;  %v2320_v45 = vcombine.high %v1545_v3, %v12637_v51 }
 0x494   : > { %10088 = vmatmul.mubr.msk.bf16.vlgmr.msra.gmra.mrb[16].mxu0 %vm3531_vm0, %v3440_v14  ;;  %3598 = vmatprep.mubr.bf16.mxu1 %v16437_v24  ;;  %v2327_v6 = vrot.slane %v1545_v3, %v12643_v43  ;;  %v1559_v5 = vshrl.u32 %v1426_v29, 16  ;;  %v12995_v39 = vrot.slane %v2269_v49, %v12646_v47  ;;  %v12998_v31 = vrot.slane %v2270_v40, %v12646_v47  ;;  %v1157_v3 = vld [vmem:[#allocation2 + $0x78] sm:$0xff] }
 0x495   : > { %3968 = vmatpush1.bf16.msra.mxu0 %v1154_v19  ;;  %v16438_v10 = vcombine.low %v12712_v60, %v12715_v11  ;;  %v16439_v14 = vcombine.high %v12712_v60, %v12715_v11  ;;  %3735 = vmatprep.mubr.bf16.mxu0 %v16437_v24  ;;  %v1151_v19 = vld [vmem:[#allocation2 + $0x48] sm:$0xff]  ;;  %v2285_v49 = vcombine.low %v12956_v56, %v2268_v48  ;;  %v1442_v11 = vpop.permute.xlu0 %1441 }
 0x496   : > { %v2767_v40 = vcombine.low %v12754_v35, %v12757_v44  ;;  %v16440_v17 = vcombine.low %v12731_v50, %v12734_v13  ;;  %10732 = vmatprep.subr.bf16.mxu1 %v12606_v32  ;;  %v2286_v38 = vcombine.high %v12956_v56, %v2268_v48  ;;  %v16442_v44 = vcombine.low %v12740_v18, %v12743_v62 }
 0x497   : > { %v2758_v4 = vrot.slane %v16438_v10, %v12643_v43  ;;  %v2766_v9 = vrot.slane %v16439_v14, %v12643_v43  ;;  %v16441_v10 = vcombine.high %v12731_v50, %v12734_v13  ;;  %v1156_v14 = vld [vmem:[#allocation2 + $0x70] sm:$0xff]  ;;  %10734 = vmatpush1.bf16.msra.mxu1 %v12609_v37  ;;  %v2334_v32 = vrot.slane %v2320_v45, %v12643_v43 }
 0x498   : > { %v2792_v15 = vrot.slane %v16440_v17, %v12643_v43  ;;  %v2808_v35 = vrot.slane %v16442_v44, %v12643_v43  ;;  %v16443_v17 = vcombine.high %v12740_v18, %v12743_v62  ;;  %v2335_v13 = vcombine.low %v12963_v54, %v2327_v6  ;;  %3969 = vmatprep.subr.bf16.mxu0 %v1157_v3 }
 0x499   : > { %v2800_v60 = vrot.slane %v16441_v10, %v12643_v43  ;;  %v2775_v0 = vcombine.low %v2758_v4, %v2766_v9  ;;  %3830 = vmatprep.subr.bf16.mxu1 %v1151_v19  ;;  %v13035_v48 = vrot.slane %v2767_v40, %v12646_v47  ;;  %v1557_v62 = vpack.i.b16 %v1442_v11, %v1426_v29 }
 0x49a   : > { %v2816_v59 = vrot.slane %v16443_v17, %v12643_v43  ;;  %3970 = vmatpush1.bf16.msra.mxu0 %v1156_v14  ;;  %v2336_v37 = vcombine.high %v12963_v54, %v2327_v6  ;;  %v1549_v18 = vpack.i.b16 %v12959_v52, %v12600_v25  ;;  %v1552_v45 = vshrl.u32 %v12959_v52, 16  ;;  %v1412_v14 = vpop.permute.xlu1 %1411 }
 0x49b   : > { %v2817_v56 = vcombine.low %v2792_v15, %v2800_v60  ;;  %v13038_v9 = vrot.slane %v2775_v0, %v12646_v47  ;;  %v1560_v10 = vshrl.u32 %v1442_v11, 16  ;;  %v13054_v0 = vrot.slane %v2285_v49, %v12646_v47 }
 0x49c   : > { %v2825_v4 = vcombine.low %v2808_v35, %v2816_v59  ;;  %v13057_v54 = vrot.slane %v2286_v38, %v12646_v47  ;;  %v2351_v52 = vcombine.low %v12966_v22, %v2334_v32  ;;  %v2352_v29 = vcombine.high %v12966_v22, %v2334_v32 }
 0x49d   : > { %v2783_v3 = vcombine.low %v13035_v48, %v13038_v9  ;;  %v13048_v19 = vrot.slane %v2817_v56, %v12646_v47  ;;  %v13062_v6 = vrot.slane %v2335_v13, %v12646_v47  ;;  %v3135_v40 = vcombine.low %v12995_v39, %v12998_v31 }
 0x49e   : > { %v13051_v59 = vrot.slane %v2825_v4, %v12646_v47  ;;  %v2386_v11 = vcombine.high %v1557_v62, %v12637_v51  ;;  %v13070_v49 = vrot.slane %v2336_v37, %v12646_v47  ;;  %v10068_v38 = vcombine.high %v12995_v39, %v12998_v31  ;;  %v1444_v4 = vpop.permute.xlu1 %1443 }
 0x49f   : > { %16444 = vst [vmem:[#allocation45_spill] sm:$0xff] %v13048_v19  ;;  %v1561_v44 = vpack.i.b16 %v1560_v10, %v1559_v5  ;;  %v2393_v22 = vrot.slane %v1557_v62, %v12643_v43  ;;  %v2371_v35 = vcombine.high %v1549_v18, %v12637_v51  ;;  %v3450_v32 = vshrl.u32 %v2783_v3, 16 }
 0x4a0   : > { %v2833_v60 = vcombine.low %v13048_v19, %v13051_v59  ;;  %v13077_v56 = vrot.slane %v2351_v52, %v12646_v47  ;;  %v16445_v37 = vshrl.u32 %v12600_v25, 16  ;;  %v2378_v39 = vrot.slane %v1549_v18, %v12643_v43 }
 0x4a1   : > { %v1565_v31 = vpack.i.b16 %v1412_v14, %v12598_v23  ;;  %v1568_v62 = vshrl.u32 %v1412_v14, 16  ;;  %v2400_v10 = vrot.slane %v2386_v11, %v12643_v43  ;;  %v13091_v52 = vrot.slane %v3135_v40, %v12643_v43 }
 0x4a2   : > { %v3449_v17 = vpack.i.b16 %v2833_v60, %v2783_v3  ;;  %v3451_v13 = vshrl.u32 %v2833_v60, 16  ;;  %v1553_v15 = vpack.i.b16 %v1552_v45, %v16445_v37  ;;  %v13088_v3 = vrot.slane %v2352_v29, %v12646_v47 }
 0x4a3   : > { %v2401_v60 = vcombine.low %v2378_v39, %v2393_v22  ;;  %v2459_v25 = vrot.slane %v1561_v44, %v12643_v43  ;;  %v2385_v45 = vrot.slane %v2371_v35, %v12643_v43  ;;  %v2402_v14 = vcombine.high %v2378_v39, %v2393_v22 }
 0x4a4   : > { %10081 = vmatmul.mubr.msk.bf16.gmra.mrb[4].mxu1 %vm3531_vm0, %v3449_v17  ;;  %v3452_v5 = vpack.i.b16 %v3451_v13, %v3450_v32  ;;  %v2452_v11 = vcombine.high %v1561_v44, %v12637_v51  ;;  %v13101_v29 = vrot.slane %v10068_v38, %v12643_v43  ;;  %v2437_v17 = vcombine.high %v1553_v15, %v12637_v51 }
 0x4a5   : > { %3608 = vmatprep.mubr.bf16.mxu1 %v16437_v24  ;;  %v2444_v32 = vrot.slane %v1553_v15, %v12643_v43  ;;  %v16446_v13 = vshrl.u32 %v12598_v23, 16  ;;  %v2503_v44 = vcombine.high %v1565_v31, %v12637_v51  ;;  %v2417_v37 = vcombine.low %v2385_v45, %v2400_v10  ;;  %v1428_v23 = vpop.permute.xlu0 %1427 }
 0x4a6   : > { %10089 = vmatmul.mubr.msk.bf16.gmra.mrb[20].mxu0 %vm3531_vm0, %v3452_v5  ;;  %v2409_v38 = vrot.slane %v2401_v60, %v12646_v47  ;;  %v2418_v39 = vcombine.high %v2385_v45, %v2400_v10  ;;  %v16447_v50 = vcombine.low %v12790_v55, %v12793_v42  ;;  %v2416_v40 = vrot.slane %v2402_v14, %v12646_v47 }
 0x4a7   : > { %3745 = vmatprep.mubr.bf16.mxu0 %v16437_v24  ;;  %v1569_v22 = vpack.i.b16 %v1568_v62, %v16446_v13  ;;  %v2467_v5 = vcombine.low %v2444_v32, %v2459_v25  ;;  %v2466_v18 = vrot.slane %v2452_v11, %v12643_v43  ;;  %v2468_v35 = vcombine.high %v2444_v32, %v2459_v25 }
 0x4a8   : > { %v2858_v15 = vrot.slane %v16447_v50, %v12643_v43  ;;  %v16448_v62 = vcombine.high %v12790_v55, %v12793_v42  ;;  %v2451_v50 = vrot.slane %v2437_v17, %v12643_v43  ;;  %v13130_v45 = vrot.slane %v1565_v31, %v12643_v43 }
 0x4a9   : > { %v13133_v25 = vrot.slane %v2503_v44, %v12643_v43  ;;  %v2569_v14 = vcombine.high %v1569_v22, %v12637_v51  ;;  %v13137_v11 = vrot.slane %v1569_v22, %v12643_v43  ;;  %v13140_v55 = vrot.slane %v2417_v37, %v12646_v47 }
 0x4aa   : > { %v2866_v13 = vrot.slane %v16448_v62, %v12643_v43  ;;  %v13143_v42 = vrot.slane %v2418_v39, %v12646_v47  ;;  %v13146_v32 = vrot.slane %v2467_v5, %v12646_v47  ;;  %v1573_v17 = vpack.i.b16 %v1444_v4, %v1428_v23 }
 0x4ab   : > { %v13149_v62 = vrot.slane %v2468_v35, %v12646_v47  ;;  %v2483_v44 = vcombine.low %v2451_v50, %v2466_v18  ;;  %v2484_v60 = vcombine.high %v2451_v50, %v2466_v18  ;;  %v3235_v10 = vcombine.low %v2409_v38, %v2416_v40 }
 0x4ac   : > { %v2875_v31 = vcombine.low %v2858_v15, %v2866_v13  ;;  %v10072_v63 = vcombine.high %v2409_v38, %v2416_v40  ;;  %v1576_v22 = vshrl.u32 %v1444_v4, 16  ;;  %v1575_v19 = vshrl.u32 %v1428_v23, 16 }
 0x4ad   : > { %v2867_v37 = vcombine.low %v12816_v33, %v12819_v20  ;;  %v16449_v39 = vcombine.low %v12799_v16, %v12802_v57  ;;  %v16450_v15 = vcombine.high %v12799_v16, %v12802_v57  ;;  %v16451_v18 = vcombine.low %v12806_v28, %v12809_v53 }
 0x4ae   : > { %v16452_v4 = vcombine.high %v12806_v28, %v12809_v53  ;;  %v13170_v20 = vrot.slane %v2569_v14, %v12643_v43  ;;  %v2518_v23 = vcombine.high %v1573_v17, %v12637_v51  ;;  %v13176_v16 = vrot.slane %v2875_v31, %v12646_v47 }
 0x4af   : > { %v2892_v5 = vrot.slane %v16449_v39, %v12643_v43  ;;  %v2900_v35 = vrot.slane %v16450_v15, %v12643_v43  ;;  %v2908_v40 = vrot.slane %v16451_v18, %v12643_v43  ;;  %v13179_v57 = vrot.slane %v2483_v44, %v12646_v47 }
 0x4b0   : > { %v2916_v33 = vrot.slane %v16452_v4, %v12643_v43  ;;  %v13182_v13 = vrot.slane %v2484_v60, %v12646_v47  ;;  %v2525_v53 = vrot.slane %v1573_v17, %v12643_v43  ;;  %v13188_v50 = vrot.slane %v3235_v10, %v12643_v43 }
 0x4b1   : > { %v13191_v14 = vrot.slane %v10072_v63, %v12643_v43  ;;  %v13196_v44 = vrot.slane %v2867_v37, %v12646_v47  ;;  %v1577_v39 = vpack.i.b16 %v1576_v22, %v1575_v19  ;;  %v2917_v60 = vcombine.low %v2892_v5, %v2900_v35  ;;  %v16456_v19 = vld [vmem:[#allocation44_spill] sm:$0xff] }
 0x4b2   : > { %v2925_v15 = vcombine.low %v2908_v40, %v2916_v33  ;;  %v16454_v18 = vcombine.low %v12826_v2, %v12829_v30  ;;  %v13203_v10 = vrot.slane %v2518_v23, %v12643_v43  ;;  %v16455_v4 = vcombine.high %v12826_v2, %v12829_v30  ;;  %v16457_v33 = vld [vmem:[#allocation42_spill] sm:$0xff]  ;;  %v16458_v23 = vld [vmem:[#allocation43_spill] sm:$0xff] }
 0x4b3   : > { %16453 = vst [vmem:[#allocation46_spill] sm:$0xff] %v13196_v44  ;;  %v2883_v63 = vcombine.low %v13196_v44, %v13176_v16  ;;  %v2967_v22 = vcombine.low %v16456_v19, %v12876_v8  ;;  %v2533_v5 = vcombine.low %v13130_v45, %v2525_v53  ;;  %v13215_v35 = vrot.slane %v2917_v60, %v12646_v47 }
 0x4b4   : > { %v2958_v17 = vrot.slane %v16454_v18, %v12643_v43  ;;  %v2966_v37 = vrot.slane %v16455_v4, %v12643_v43  ;;  %v13218_v40 = vrot.slane %v2925_v15, %v12646_v47  ;;  %v16459_v18 = vcombine.low %v16457_v33, %v16458_v23 }
 0x4b5   : > { %v2534_v28 = vcombine.high %v13130_v45, %v2525_v53  ;;  %v16460_v2 = vcombine.high %v16457_v33, %v16458_v23  ;;  %v16461_v60 = vcombine.low %v12848_v58, %v12851_v41  ;;  %v16462_v19 = vcombine.high %v12848_v58, %v12851_v41 }
 0x4b6   : > { %v2992_v31 = vrot.slane %v16459_v18, %v12643_v43  ;;  %v2975_v30 = vcombine.low %v2958_v17, %v2966_v37  ;;  %v2933_v15 = vcombine.low %v13215_v35, %v13218_v40  ;;  %v16463_v45 = vcombine.low %v12930_v61, %v12937_v12 }
 0x4b7   : > { %v3000_v8 = vrot.slane %v16460_v2, %v12643_v43  ;;  %v3008_v4 = vrot.slane %v16461_v60, %v12643_v43  ;;  %v3016_v18 = vrot.slane %v16462_v19, %v12643_v43  ;;  %v16464_v17 = vcombine.high %v12930_v61, %v12937_v12 }
 0x4b8   : > { %v3058_v53 = vrot.slane %v16463_v45, %v12643_v43  ;;  %v3462_v33 = vshrl.u32 %v2883_v63, 16  ;;  %v13248_v23 = vrot.slane %v2967_v22, %v12646_v47  ;;  %v13251_v2 = vrot.slane %v2975_v30, %v12646_v47 }
 0x4b9   : > { %v3066_v37 = vrot.slane %v16464_v17, %v12643_v43  ;;  %v3017_v60 = vcombine.low %v2992_v31, %v3000_v8  ;;  %v3461_v41 = vpack.i.b16 %v2933_v15, %v2883_v63  ;;  %v3463_v58 = vshrl.u32 %v2933_v15, 16 }
 0x4ba   : > { %v3025_v19 = vcombine.low %v3008_v4, %v3016_v18  ;;  %v16465_v45 = vcombine.low %v12942_v36, %v12945_v1  ;;  %v2584_v44 = vcombine.high %v1577_v39, %v12637_v51  ;;  %v2983_v61 = vcombine.low %v13248_v23, %v13251_v2 }
 0x4bb   : > { %v3075_v12 = vcombine.low %v3058_v53, %v3066_v37  ;;  %v16466_v22 = vcombine.high %v12942_v36, %v12945_v1  ;;  %10082 = vmatmul.mubr.msk.bf16.gmra.mrb[8].mxu1 %vm3531_vm0, %v3461_v41  ;;  %v3464_v31 = vpack.i.b16 %v3463_v58, %v3462_v33  ;;  %v13266_v63 = vrot.slane %v3017_v60, %v12646_v47 }
 0x4bc   : > { %v3092_v38 = vrot.slane %v16465_v45, %v12643_v43  ;;  %v13269_v8 = vrot.slane %v3025_v19, %v12646_v47  ;;  %v16467_v4 = vcombine.low %v12948_v27, %v12951_v26  ;;  %v10074_v18 = vcombine.high %v13146_v32, %v13149_v62  ;;  %3618 = vmatprep.mubr.bf16.mxu1 %v16437_v24 }
 0x4bd   : > { %v3100_v30 = vrot.slane %v16466_v22, %v12643_v43  ;;  %v13278_v36 = vrot.slane %v2533_v5, %v12646_v47  ;;  %v13281_v1 = vrot.slane %v1577_v39, %v12643_v43  ;;  %v16468_v53 = vcombine.high %v12948_v27, %v12951_v26  ;;  %10090 = vmatmul.mubr.msk.bf16.gmra.mrb[24].mxu0 %vm3531_vm0, %v3464_v31 }
 0x4be   : > { %v3108_v15 = vrot.slane %v16467_v4, %v12643_v43  ;;  %v13289_v37 = vrot.slane %v2534_v28, %v12646_v47  ;;  %v2549_v33 = vcombine.low %v13133_v25, %v13203_v10  ;;  %v3033_v5 = vcombine.low %v13266_v63, %v13269_v8  ;;  %3755 = vmatprep.mubr.bf16.mxu0 %v16437_v24 }
 0x4bf   : > { %v3116_v17 = vrot.slane %v16468_v53, %v12643_v43  ;;  %v3117_v39 = vcombine.low %v3092_v38, %v3100_v30  ;;  %v2550_v60 = vcombine.high %v13133_v25, %v13203_v10  ;;  %v2598_v41 = vrot.slane %v2584_v44, %v12643_v43 }
 0x4c0   : > { %v3067_v27 = vcombine.low %v12972_v21, %v12981_v46  ;;  %v3474_v28 = vshrl.u32 %v2983_v61, 16  ;;  %v3475_v58 = vshrl.u32 %v3033_v5, 16  ;;  %v13303_v19 = vrot.slane %v3075_v12, %v12646_v47 }
 0x4c1   : > { %v3125_v26 = vcombine.low %v3108_v15, %v3116_v17  ;;  %v16469_v38 = vcombine.low %v13054_v0, %v13057_v54  ;;  %v16470_v44 = vcombine.high %v13054_v0, %v13057_v54  ;;  %v16471_v21 = vcombine.low %v13077_v56, %v13088_v3 }
 0x4c2   : > { %v16472_v12 = vcombine.high %v13077_v56, %v13088_v3  ;;  %v3473_v30 = vpack.i.b16 %v3033_v5, %v2983_v61  ;;  %v13325_v31 = vrot.slane %v3117_v39, %v12646_v47  ;;  %v16473_v4 = vcombine.low %v13062_v6, %v13070_v49 }
 0x4c3   : > { %v3158_v45 = vrot.slane %v16469_v38, %v12643_v43  ;;  %v13310_v25 = vrot.slane %v3125_v26, %v12646_v47  ;;  %v3166_v10 = vrot.slane %v16470_v44, %v12643_v43  ;;  %v3208_v46 = vrot.slane %v16471_v21, %v12643_v43 }
 0x4c4   : > { %v3216_v22 = vrot.slane %v16472_v12, %v12643_v43  ;;  %v3192_v0 = vrot.slane %v16473_v4, %v12643_v43  ;;  %v16474_v54 = vcombine.high %v13062_v6, %v13070_v49  ;;  %v3301_v53 = vcombine.low %v13179_v57, %v13182_v13  ;;  %10083 = vmatmul.mubr.msk.bf16.gmra.mrb[12].mxu1 %vm3531_vm0, %v3473_v30 }
 0x4c5   : > { %v10075_v56 = vcombine.high %v13179_v57, %v13182_v13  ;;  %v2599_v3 = vcombine.low %v13137_v11, %v13281_v1  ;;  %v13342_v61 = vrot.slane %v3067_v27, %v12646_v47  ;;  %v2600_v17 = vcombine.high %v13137_v11, %v13281_v1  ;;  %3628 = vmatprep.mubr.bf16.mxu1 %v16437_v24 }
 0x4c6   : > { %v3200_v15 = vrot.slane %v16474_v54, %v12643_v43  ;;  %v3476_v5 = vpack.i.b16 %v3475_v58, %v3474_v28  ;;  %v3133_v6 = vcombine.low %v13325_v31, %v13310_v25  ;;  %v3225_v49 = vcombine.low %v3208_v46, %v3216_v22 }
 0x4c7   : > { %v2615_v39 = vcombine.low %v13170_v20, %v2598_v41  ;;  %v2616_v57 = vcombine.high %v13170_v20, %v2598_v41  ;;  %v3083_v13 = vcombine.low %v13342_v61, %v13303_v19  ;;  %v3175_v27 = vcombine.low %v3158_v45, %v3166_v10 }
 0x4c8   : > { %v2557_v26 = vrot.slane %v2549_v33, %v12646_v47  ;;  %v2564_v11 = vrot.slane %v2550_v60, %v12646_v47  ;;  %v3335_v1 = vcombine.low %v13278_v36, %v13289_v37  ;;  %10091 = vmatmul.mubr.msk.bf16.gmra.mrb[28].mxu0 %vm3531_vm0, %v3476_v5  ;;  %v3217_v28 = vcombine.low %v3192_v0, %v3200_v15 }
 0x4c9   : > { %v10076_v58 = vcombine.high %v13278_v36, %v13289_v37  ;;  %3765 = vmatprep.mubr.bf16.mxu0 %v16437_v24  ;;  %v3167_v20 = vcombine.low %v13091_v52, %v13101_v29  ;;  %v16475_v33 = vcombine.low %v13140_v55, %v13143_v42  ;;  %v16476_v60 = vcombine.high %v13140_v55, %v13143_v42 }
 0x4ca   : > { %v3487_v45 = vshrl.u32 %v3133_v6, 16  ;;  %v13373_v44 = vrot.slane %v3225_v49, %v12646_v47  ;;  %v3308_v10 = vrot.slane %v3301_v53, %v12643_v43  ;;  %v3316_v21 = vrot.slane %v10075_v56, %v12643_v43  ;;  %v16480_v49 = vld [vmem:[#allocation45_spill] sm:$0xff] }
 0x4cb   : > { %v3258_v41 = vrot.slane %v16475_v33, %v12643_v43  ;;  %v3266_v38 = vrot.slane %v16476_v60, %v12643_v43  ;;  %v2623_v52 = vrot.slane %v2615_v39, %v12646_v47  ;;  %v2630_v29 = vrot.slane %v2616_v57, %v12646_v47 }
 0x4cc   : > { %v3486_v46 = vshrl.u32 %v3083_v13, 16  ;;  %v13380_v12 = vrot.slane %v3175_v27, %v12646_v47  ;;  %v3485_v22 = vpack.i.b16 %v3133_v6, %v3083_v13  ;;  %v13383_v55 = vrot.slane %v3217_v28, %v12646_v47 }
 0x4cd   : > { %v16477_v42 = vcombine.low %v13146_v32, %v13149_v62  ;;  %v3300_v4 = vrot.slane %v10074_v18, %v12643_v43  ;;  %v2607_v0 = vrot.slane %v2599_v3, %v12646_v47  ;;  %v2614_v54 = vrot.slane %v2600_v17, %v12646_v47 }
 0x4ce   : > { %v13393_v15 = vrot.slane %v3167_v20, %v12646_v47  ;;  %v3275_v53 = vcombine.low %v3258_v41, %v3266_v38  ;;  %10084 = vmatmul.mubr.msk.bf16.gmra.mrb[16].mxu1 %vm3531_vm0, %v3485_v22  ;;  %v3488_v56 = vpack.i.b16 %v3487_v45, %v3486_v46  ;;  %v3233_v5 = vcombine.low %v13383_v55, %v13373_v44 }
 0x4cf   : > { %v3292_v30 = vrot.slane %v16477_v42, %v12643_v43  ;;  %v3325_v6 = vcombine.low %v3308_v10, %v3316_v21  ;;  %v16478_v32 = vshrl.u32 %v12925_v7, 16  ;;  %v16479_v62 = vshrl.u32 %v12934_v34, 16  ;;  %3638 = vmatprep.mubr.bf16.mxu1 %v16437_v24 }
 0x4d0   : > { %v3183_v3 = vcombine.low %v13393_v15, %v13380_v12  ;;  %v13409_v17 = vcombine.high %v13035_v48, %v13038_v9  ;;  %v13413_v39 = vcombine.high %v16480_v49, %v13051_v59  ;;  %v3443_v57 = vpack.i.b16 %v12934_v34, %v12925_v7  ;;  %10092 = vmatmul.mubr.msk.bf16.gmra.mrb[32].mxu0 %vm3531_vm0, %v3488_v56 }
 0x4d1   : > { %v13402_v18 = vpack.i.b16 %v16479_v62, %v16478_v32  ;;  %v3351_v13 = vcombine.low %v2557_v26, %v2564_v11  ;;  %v3401_v27 = vcombine.low %v2623_v52, %v2630_v29  ;;  %v10079_v28 = vcombine.high %v2623_v52, %v2630_v29  ;;  %3775 = vmatprep.mubr.bf16.mxu0 %v16437_v24 }
 0x4d2   : > { %v3317_v20 = vcombine.low %v3292_v30, %v3300_v4  ;;  %v10077_v33 = vcombine.high %v2557_v26, %v2564_v11  ;;  %v3267_v48 = vcombine.low %v13188_v50, %v13191_v14  ;;  %v3456_v9 = vshrl.u32 %v13409_v17, 16 }
 0x4d3   : > { %v3457_v59 = vshrl.u32 %v13413_v39, 16  ;;  %v3385_v41 = vcombine.low %v2607_v0, %v2614_v54  ;;  %v10078_v60 = vcombine.high %v2607_v0, %v2614_v54  ;;  %v3499_v38 = vshrl.u32 %v3233_v5, 16 }
 0x4d4   : > { %v13424_v45 = vrot.slane %v3325_v6, %v12646_v47  ;;  %v3498_v10 = vshrl.u32 %v3183_v3, 16  ;;  %v13427_v21 = vrot.slane %v3275_v53, %v12646_v47  ;;  %v3455_v11 = vpack.i.b16 %v13413_v39, %v13409_v17 }
 0x4d5   : > { %v3458_v26 = vpack.i.b16 %v3457_v59, %v3456_v9  ;;  %v3497_v52 = vpack.i.b16 %v3233_v5, %v3183_v3  ;;  %v13432_v50 = vrot.slane %v3317_v20, %v12646_v47  ;;  %v3408_v14 = vrot.slane %v3401_v27, %v12643_v43 }
 0x4d6   : > { %v3416_v29 = vrot.slane %v10079_v28, %v12643_v43  ;;  %v13437_v46 = vrot.slane %v3267_v48, %v12646_v47  ;;  %v3358_v22 = vrot.slane %v3351_v13, %v12643_v43  ;;  %v3366_v42 = vrot.slane %v10077_v33, %v12643_v43 }
 0x4d7   : > { %10085 = vmatmul.mubr.msk.bf16.gmra.mrb[20].mxu1 %vm3531_vm0, %v3497_v52  ;;  %v3500_v30 = vpack.i.b16 %v3499_v38, %v3498_v10  ;;  %v3333_v4 = vcombine.low %v13432_v50, %v13424_v45  ;;  %v3392_v0 = vrot.slane %v3385_v41, %v12643_v43  ;;  %v3400_v54 = vrot.slane %v10078_v60, %v12643_v43  ;;  %v1150_v60 = vld [vmem:[#allocation2 + $0x40] sm:$0xff]  ;;  %v1153_v38 = vld [vmem:[#allocation2 + $0x58] sm:$0xff]  ;;  %v1152_v52 = vld [vmem:[#allocation2 + $0x50] sm:$0xff] }
 0x4d8   : > { %3648 = vmatprep.mubr.bf16.mxu1 %v16437_v24  ;;  %v3342_v53 = vrot.slane %v3335_v1, %v12643_v43  ;;  %v3350_v56 = vrot.slane %v10076_v58, %v12643_v43  ;;  %v3283_v5 = vcombine.low %v13437_v46, %v13427_v21  ;;  %v3425_v6 = vcombine.low %v3408_v14, %v3416_v29 }
 0x4d9   : > { %10093 = vmatmul.mubr.msk.bf16.gmra.mrb[36].mxu0 %vm3531_vm0, %v3500_v30  ;;  %v3511_v32 = vshrl.u32 %v3333_v4, 16  ;;  %v3375_v62 = vcombine.low %v3358_v22, %v3366_v42  ;;  %v3417_v3 = vcombine.low %v3392_v0, %v3400_v54  ;;  %v2934_v10 = vcombine.high %v13215_v35, %v13218_v40 }
 0x4da   : > { %3785 = vmatprep.mubr.bf16.mxu0 %v16437_v24  ;;  %v3509_v49 = vpack.i.b16 %v3333_v4, %v3283_v5  ;;  %v3510_v13 = vshrl.u32 %v3283_v5, 16  ;;  %v3367_v27 = vcombine.low %v3342_v53, %v3350_v56  ;;  %v13460_v1 = vrot.slane %v3425_v6, %v12646_v47 }
 0x4db   : > { %v13464_v37 = vrot.slane %v3375_v62, %v12646_v47  ;;  %v13467_v58 = vrot.slane %v3417_v3, %v12646_v47  ;;  %v3469_v29 = vshrl.u32 %v2934_v10, 16  ;;  %v3034_v40 = vcombine.high %v13266_v63, %v13269_v8 }
 0x4dc   : > { %v3512_v36 = vpack.i.b16 %v3511_v32, %v3510_v13  ;;  %v13472_v28 = vrot.slane %v3367_v27, %v12646_v47  ;;  %v3134_v34 = vcombine.high %v13325_v31, %v13310_v25  ;;  %v3234_v39 = vcombine.high %v13383_v55, %v13373_v44 }
 0x4dd   : > { %v3433_v20 = vcombine.low %v13467_v58, %v13460_v1  ;;  %v3184_v25 = vcombine.high %v13393_v15, %v13380_v12  ;;  %v3284_v44 = vcombine.high %v13437_v46, %v13427_v21  ;;  %v3434_v4 = vcombine.high %v13467_v58, %v13460_v1 }
 0x4de   : > { %v3383_v33 = vcombine.low %v13472_v28, %v13464_v37 }
 0x4df   : > { %10086 = vmatmul.mubr.msk.bf16.gmra.mrb[24].mxu1 %vm3531_vm0, %v3509_v49  ;;  %v3523_v9 = vshrl.u32 %v3433_v20, 16  ;;  %v3516_v15 = vshrl.u32 %v3284_v44, 16  ;;  %v3529_v21 = vshrl.u32 %v3434_v4, 16 }
 0x4e0   : > { %3658 = vmatprep.mubr.bf16.mxu1 %v16437_v24  ;;  %v3521_v48 = vpack.i.b16 %v3433_v20, %v3383_v33  ;;  %v3522_v59 = vshrl.u32 %v3383_v33, 16 }
 0x4e1   : > { %10094 = vmatmul.mubr.msk.bf16.gmra.mrb[40].mxu0 %vm3531_vm0, %v3512_v36 }
 0x4e2   : > { %3999 = vmatprep.mubr.bf16.mxu0 %v16437_v24  ;;  %v3524_v41 = vpack.i.b16 %v3523_v9, %v3522_v59 }
 0x4e7   : > { %10087 = vmatmul.mubr.msk.bf16.gmra.mrb[28].mxu1 %vm3531_vm0, %v3521_v48 }
 0x4e8   : > { %3795 = vmatprep.mubr.bf16.mxu1 %v16437_v24 }
 0x4e9   : > { %10104 = vmatmul.mubr.msk.bf16.vlgmr.msra.gmra.mrb[44].mxu0 %vm3531_vm0, %v13402_v18  ;;  %v16481_v18 = vld [vmem:[#allocation46_spill] sm:$0xff] }
 0x4ea   : > { %4009 = vmatprep.mubr.bf16.mxu0 %v16437_v24  ;;  %v2884_v14 = vcombine.high %v16481_v18, %v13176_v16  ;;  %v2984_v16 = vcombine.high %v13248_v23, %v13251_v2  ;;  %v3084_v23 = vcombine.high %v13342_v61, %v13303_v19  ;;  %v3493_v2 = vshrl.u32 %v3134_v34, 16 }
 0x4eb   : > { %v3505_v19 = vshrl.u32 %v3234_v39, 16  ;;  %v3504_v61 = vshrl.u32 %v3184_v25, 16 }
 0x4ec   : > { %v3468_v22 = vshrl.u32 %v2884_v14, 16  ;;  %v3480_v42 = vshrl.u32 %v2984_v16, 16  ;;  %v3467_v63 = vpack.i.b16 %v2934_v10, %v2884_v14  ;;  %v3492_v8 = vshrl.u32 %v3084_v23, 16 }
 0x4ed   : > { %v3479_v31 = vpack.i.b16 %v3034_v40, %v2984_v16  ;;  %v3491_v55 = vpack.i.b16 %v3134_v34, %v3084_v23 }
 0x4ee   : > { %v3470_v35 = vpack.i.b16 %v3469_v29, %v3468_v22  ;;  %v3494_v17 = vpack.i.b16 %v3493_v2, %v3492_v8 }
 0x4ef   : > { %10095 = vmatmul.mubr.msk.bf16.vlgmr.msra.gmra.mrb[32].mxu1 %vm3531_vm0, %v3524_v41 }
 0x4f0   : > { %3831 = vmatpush1.bf16.msra.mxu1 %v1150_v60  ;;  %3862 = vmatprep.mubr.bf16.mxu1 %v16437_v24 }
 0x4f1   : > { %10105 = vmatmul.mubr.msk.bf16.gmra.mrb[48].mxu0 %vm3531_vm0, %v3458_v26  ;;  %3832 = vmatprep.subr.bf16.mxu1 %v1153_v38  ;;  %v3481_v26 = vshrl.u32 %v3034_v40, 16 }
 0x4f2   : > { %4019 = vmatprep.mubr.bf16.mxu0 %v16437_v24 }
 0x4f3   : > { %v3482_v7 = vpack.i.b16 %v3481_v26, %v3480_v42 }
 0x4f4   : > { %3833 = vmatpush1.bf16.msra.mxu1 %v1152_v52 }
 0x4f7   : > { %10096 = vmatmul.mubr.msk.bf16.vlgmr.msra.gmra.mrb[36].mxu1 %vm3531_vm0, %v3443_v57  ;;  %v3506_v57 = vpack.i.b16 %v3505_v19, %v3504_v61 }
 0x4f8   : > { %3872 = vmatprep.mubr.bf16.mxu1 %v16437_v24 }
 0x4f9   : > { %10106 = vmatmul.mubr.msk.bf16.gmra.mrb[52].mxu0 %vm3531_vm0, %v3470_v35 }
 0x4fa   : > { %4029 = vmatprep.mubr.bf16.mxu0 %v16437_v24 }
 0x4ff   : > { %10097 = vmatmul.mubr.msk.bf16.gmra.mrb[40].mxu1 %vm3531_vm0, %v3455_v11  ;;  %v3334_v11 = vcombine.high %v13432_v50, %v13424_v45  ;;  %v3384_v45 = vcombine.high %v13472_v28, %v13464_v37  ;;  %v3503_v50 = vpack.i.b16 %v3234_v39, %v3184_v25 }
 0x500   : > { %3882 = vmatprep.mubr.bf16.mxu1 %v16437_v24 }
 0x501   : > { %10107 = vmatmul.mubr.msk.bf16.gmra.mrb[56].mxu0 %vm3531_vm0, %v3482_v7  ;;  %v3517_v12 = vshrl.u32 %v3334_v11, 16  ;;  %v3528_v46 = vshrl.u32 %v3384_v45, 16  ;;  %v3515_v54 = vpack.i.b16 %v3334_v11, %v3284_v44  ;;  %v3527_v53 = vpack.i.b16 %v3434_v4, %v3384_v45 }
 0x502   : > { %4039 = vmatprep.mubr.bf16.mxu0 %v16437_v24 }
 0x503   : > { %v3518_v30 = vpack.i.b16 %v3517_v12, %v3516_v15  ;;  %v3530_v0 = vpack.i.b16 %v3529_v21, %v3528_v46 }
 0x507   : > { %10098 = vmatmul.mubr.msk.bf16.gmra.mrb[44].mxu1 %vm3531_vm0, %v3467_v63 }
 0x508   : > { %3892 = vmatprep.mubr.bf16.mxu1 %v16437_v24 }
 0x509   : > { %10108 = vmatmul.mubr.msk.bf16.gmra.mrb[60].mxu0 %vm3531_vm0, %v3494_v17 }
 0x50a   : > { %4049 = vmatprep.mubr.bf16.mxu0 %v16437_v24 }
 0x50f   : > { %10099 = vmatmul.mubr.msk.bf16.gmra.mrb[48].mxu1 %vm3531_vm0, %v3479_v31 }
 0x510   : > { %3902 = vmatprep.mubr.bf16.mxu1 %v16437_v24 }
 0x511   : > { %10109 = vmatmul.mubr.msk.bf16.gmra.mrb[64].mxu0 %vm3531_vm0, %v3506_v57 }
 0x512   : > { %4059 = vmatprep.mubr.bf16.mxu0 %v16437_v24 }
 0x517   : > { %10100 = vmatmul.mubr.msk.bf16.gmra.mrb[52].mxu1 %vm3531_vm0, %v3491_v55 }
 0x518   : > { %3912 = vmatprep.mubr.bf16.mxu1 %v16437_v24 }
 0x519   : > { %10110 = vmatmul.mubr.msk.bf16.gmra.mrb[68].mxu0 %vm3531_vm0, %v3518_v30 }
 0x51a   : > { %4069 = vmatprep.mubr.bf16.mxu0 %v16437_v24 }
 0x51f   : > { %10101 = vmatmul.mubr.msk.bf16.gmra.mrb[56].mxu1 %vm3531_vm0, %v3503_v50 }
 0x520   : > { %3922 = vmatprep.mubr.bf16.mxu1 %v16437_v24 }
 0x521   : > { %10111 = vmatmul.mubr.msk.bf16.gmra.mrb[72].mxu0 %vm3531_vm0, %v3530_v0 }
 0x527   : > { %10102 = vmatmul.mubr.msk.bf16.gmra.mrb[60].mxu1 %vm3531_vm0, %v3515_v54 }
 0x528   : > { %3932 = vmatprep.mubr.bf16.mxu1 %v16437_v24 }
 0x52f   : > { %10103 = vmatmul.mubr.msk.bf16.gmra.mrb[64].mxu1 %vm3531_vm0, %v3527_v53 }
 0x565   : > { %v13544_v56 = vpop.f32.mrb[0].mxu1 }
 0x566   : > { %v13546_v5 = vpop.f32.mrb[1].mxu1 }
 0x567   : > { %v13548_v6 = vpop.f32.mrb[2].mxu1  ;;  %v13550_v32 = vpop.f32.mrb[16].mxu0  ;;  %v4080_v62 = vmax.f32 %v13544_v56, %v13546_v5 }
 0x568   : > { %v13554_v3 = vpop.f32.mrb[3].mxu1  ;;  %v13556_v49 = vpop.f32.mrb[17].mxu0 }
 0x569   : > { %v13558_v13 = vpop.f32.mrb[18].mxu0  ;;  %4081 = vmax.xlane.f32.xlu0 %v4080_v62  ;;  %v4083_v27 = vmax.f32 %v13548_v6, %v13554_v3  ;;  %v4128_v1 = vmax.f32 %v13550_v32, %v13556_v49 }
 0x56a   : > { %v13564_v36 = vpop.f32.mrb[19].mxu0 }
 0x56b   : > { %4084 = vmax.xlane.f32.xlu1 %v4083_v27  ;;  %v4131_v37 = vmax.f32 %v13558_v13, %v13564_v36 }
 0x56d   : > { %4129 = vmax.xlane.f32.xlu0 %v4128_v1 }
 0x571   : > { %4132 = vmax.xlane.f32.xlu0 %v4131_v37 }
 0x577   : > { %v13568_v58 = vpop.f32.mrb[4].mxu1 }
 0x578   : > { %v13570_v28 = vpop.f32.mrb[5].mxu1 }
 0x579   : > { %v13572_v20 = vpop.f32.mrb[6].mxu1  ;;  %v13574_v33 = vpop.f32.mrb[20].mxu0  ;;  %v4086_v48 = vmax.f32 %v13568_v58, %v13570_v28 }
 0x57a   : > { %v13578_v9 = vpop.f32.mrb[7].mxu1  ;;  %v13580_v59 = vpop.f32.mrb[21].mxu0 }
 0x57b   : > { %v13582_v41 = vpop.f32.mrb[22].mxu0  ;;  %4087 = vmax.xlane.f32.xlu1 %v4086_v48  ;;  %v4134_v60 = vmax.f32 %v13574_v33, %v13580_v59  ;;  %v4089_v38 = vmax.f32 %v13572_v20, %v13578_v9 }
 0x57c   : > { %v13588_v10 = vpop.f32.mrb[23].mxu0 }
 0x57d   : > { %4090 = vmax.xlane.f32.xlu0 %v4089_v38  ;;  %v4137_v52 = vmax.f32 %v13582_v41, %v13588_v10 }
 0x57f   : > { %4135 = vmax.xlane.f32.xlu1 %v4134_v60 }
 0x581   : > { %4138 = vmax.xlane.f32.xlu0 %v4137_v52 }
 0x58e   : > { %v13592_v18 = vpop.f32.mrb[8].mxu1 }
 0x58f   : > { %v13594_v14 = vpop.f32.mrb[9].mxu1 }
 0x590   : > { %v13596_v29 = vpop.f32.mrb[10].mxu1  ;;  %v13598_v22 = vpop.f32.mrb[24].mxu0  ;;  %v4092_v35 = vmax.f32 %v13592_v18, %v13594_v14 }
 0x591   : > { %v13602_v40 = vpop.f32.mrb[11].mxu1  ;;  %v13604_v16 = vpop.f32.mrb[25].mxu0 }
 0x592   : > { %v13606_v26 = vpop.f32.mrb[26].mxu0  ;;  %4093 = vmax.xlane.f32.xlu1 %v4092_v35  ;;  %v4140_v42 = vmax.f32 %v13598_v22, %v13604_v16  ;;  %v4095_v7 = vmax.f32 %v13596_v29, %v13602_v40 }
 0x593   : > { %v13612_v34 = vpop.f32.mrb[27].mxu0 }
 0x594   : > { %4096 = vmax.xlane.f32.xlu0 %v4095_v7  ;;  %v4143_v23 = vmax.f32 %v13606_v26, %v13612_v34 }
 0x596   : > { %4141 = vmax.xlane.f32.xlu1 %v4140_v42 }
 0x597   : > { %v13616_v2 = vpop.f32.mrb[12].mxu1 }
 0x598   : > { %v13618_v63 = vpop.f32.mrb[13].mxu1  ;;  %4144 = vmax.xlane.f32.xlu0 %v4143_v23 }
 0x599   : > { %v13620_v8 = vpop.f32.mrb[14].mxu1  ;;  %v4098_v39 = vmax.f32 %v13616_v2, %v13618_v63 }
 0x59a   : > { %v13626_v25 = vpop.f32.mrb[15].mxu1 }
 0x59b   : > { %v13622_v17 = vpop.f32.mrb[28].mxu0  ;;  %4099 = vmax.xlane.f32.xlu1 %v4098_v39  ;;  %v4101_v57 = vmax.f32 %v13620_v8, %v13626_v25 }
 0x59c   : > { %v13628_v19 = vpop.f32.mrb[29].mxu0 }
 0x59d   : > { %v13630_v31 = vpop.f32.mrb[30].mxu0  ;;  %v4146_v61 = vmax.f32 %v13622_v17, %v13628_v19  ;;  %4102 = vmax.xlane.f32.xlu0 %v4101_v57 }
 0x59e   : > { %v13636_v11 = vpop.f32.mrb[31].mxu0 }
 0x59f   : > { %v4149_v44 = vmax.f32 %v13630_v31, %v13636_v11  ;;  %4147 = vmax.xlane.f32.xlu1 %v4146_v61 }
 0x5a1   : > { %v13640_v12 = vpop.f32.mrb[16].mxu1  ;;  %4150 = vmax.xlane.f32.xlu0 %v4149_v44 }
 0x5a2   : > { %v13642_v55 = vpop.f32.mrb[17].mxu1 }
 0x5a3   : > { %v13644_v15 = vpop.f32.mrb[18].mxu1  ;;  %v13646_v30 = vpop.f32.mrb[32].mxu0  ;;  %v4104_v4 = vmax.f32 %v13640_v12, %v13642_v55 }
 0x5a4   : > { %v13650_v45 = vpop.f32.mrb[19].mxu1  ;;  %v13652_v21 = vpop.f32.mrb[33].mxu0 }
 0x5a5   : > { %v13654_v50 = vpop.f32.mrb[34].mxu0  ;;  %4105 = vmax.xlane.f32.xlu1 %v4104_v4  ;;  %v4152_v46 = vmax.f32 %v13646_v30, %v13652_v21  ;;  %v4107_v0 = vmax.f32 %v13644_v15, %v13650_v45 }
 0x5a6   : > { %v13660_v54 = vpop.f32.mrb[35].mxu0 }
 0x5a7   : > { %4108 = vmax.xlane.f32.xlu0 %v4107_v0  ;;  %v4155_v53 = vmax.f32 %v13654_v50, %v13660_v54 }
 0x5a9   : > { %4153 = vmax.xlane.f32.xlu1 %v4152_v46 }
 0x5aa   : > { %v13664_v62 = vpop.f32.mrb[20].mxu1 }
 0x5ab   : > { %v13666_v27 = vpop.f32.mrb[21].mxu1  ;;  %4156 = vmax.xlane.f32.xlu0 %v4155_v53 }
 0x5ac   : > { %v13668_v1 = vpop.f32.mrb[22].mxu1  ;;  %v13670_v37 = vpop.f32.mrb[36].mxu0  ;;  %v4110_v48 = vmax.f32 %v13664_v62, %v13666_v27 }
 0x5ad   : > { %v13674_v60 = vpop.f32.mrb[23].mxu1  ;;  %v13676_v38 = vpop.f32.mrb[37].mxu0 }
 0x5ae   : > { %v13678_v52 = vpop.f32.mrb[38].mxu0  ;;  %4111 = vmax.xlane.f32.xlu1 %v4110_v48  ;;  %v4158_v35 = vmax.f32 %v13670_v37, %v13676_v38  ;;  %v4113_v42 = vmax.f32 %v13668_v1, %v13674_v60 }
 0x5af   : > { %v13684_v7 = vpop.f32.mrb[39].mxu0 }
 0x5b0   : > { %4114 = vmax.xlane.f32.xlu0 %v4113_v42  ;;  %v4161_v23 = vmax.f32 %v13678_v52, %v13684_v7 }
 0x5b2   : > { %4159 = vmax.xlane.f32.xlu1 %v4158_v35  ;;  %v13688_v39 = vpop.f32.mrb[24].mxu1 }
 0x5b3   : > { %v13690_v61 = vpop.f32.mrb[25].mxu1 }
 0x5b4   : > { %16482 = vst [vmem:[#allocation44_spill] sm:$0xff] %v13690_v61  ;;  %v13692_v57 = vpop.f32.mrb[26].mxu1  ;;  %v13694_v44 = vpop.f32.mrb[40].mxu0  ;;  %4162 = vmax.xlane.f32.xlu0 %v4161_v23  ;;  %v4116_v4 = vmax.f32 %v13688_v39, %v13690_v61 }
 0x5b5   : > { %16483 = vst [vmem:[#allocation42_spill] sm:$0xff] %v13692_v57  ;;  %16484 = vst [vmem:[#allocation43_spill] sm:$0xff] %v13694_v44  ;;  %v13698_v46 = vpop.f32.mrb[27].mxu1  ;;  %v13700_v0 = vpop.f32.mrb[41].mxu0 }
 0x5b6   : > { %16485 = vst [vmem:[#allocation45_spill] sm:$0xff] %v13698_v46  ;;  %16486 = vst [vmem:[#allocation46_spill] sm:$0xff] %v13700_v0  ;;  %v13702_v53 = vpop.f32.mrb[42].mxu0  ;;  %4117 = vmax.xlane.f32.xlu1 %v4116_v4  ;;  %v4164_v48 = vmax.f32 %v13694_v44, %v13700_v0  ;;  %v4119_v35 = vmax.f32 %v13692_v57, %v13698_v46 }
 0x5b7   : > { %16487 = vst [vmem:[#allocation47_spill] sm:$0xff] %v13702_v53  ;;  %v13708_v42 = vpop.f32.mrb[43].mxu0 }
 0x5b8   : > { %16488 = vst [vmem:[#allocation48_spill] sm:$0xff] %v13708_v42  ;;  %4120 = vmax.xlane.f32.xlu0 %v4119_v35  ;;  %v4167_v23 = vmax.f32 %v13702_v53, %v13708_v42 }
 0x5ba   : > { %4165 = vmax.xlane.f32.xlu1 %v4164_v48  ;;  %v13712_v47 = vpop.f32.mrb[28].mxu1 }
 0x5bb   : > { %16489 = vst [vmem:[#allocation49_spill] sm:$0xff] %v13712_v47  ;;  %v13714_v43 = vpop.f32.mrb[29].mxu1 }
 0x5bc   : > { %16490 = vst [vmem:[#allocation50_spill] sm:$0xff] %v13714_v43  ;;  %v13716_v51 = vpop.f32.mrb[30].mxu1  ;;  %v13718_v4 = vpop.f32.mrb[44].mxu0  ;;  %4168 = vmax.xlane.f32.xlu0 %v4167_v23  ;;  %v4122_v24 = vmax.f32 %v13712_v47, %v13714_v43 }
 0x5bd   : > { %16491 = vst [vmem:[#allocation51_spill] sm:$0xff] %v13716_v51  ;;  %16492 = vst [vmem:[#allocation52_spill] sm:$0xff] %v13718_v4  ;;  %v13722_v0 = vpop.f32.mrb[31].mxu1  ;;  %v13724_v44 = vpop.f32.mrb[45].mxu0 }
 0x5be   : > { %16493 = vst [vmem:[#allocation53_spill] sm:$0xff] %v13722_v0  ;;  %16494 = vst [vmem:[#allocation54_spill] sm:$0xff] %v13724_v44  ;;  %v13726_v35 = vpop.f32.mrb[46].mxu0  ;;  %4123 = vmax.xlane.f32.xlu1 %v4122_v24  ;;  %v4224_v48 = vmax.f32 %v13718_v4, %v13724_v44  ;;  %v4125_v42 = vmax.f32 %v13716_v51, %v13722_v0 }
 0x5bf   : > { %16495 = vst [vmem:[#allocation55_spill] sm:$0xff] %v13726_v35  ;;  %v13732_v53 = vpop.f32.mrb[47].mxu0 }
 0x5c0   : > { %16496 = vst [vmem:[#allocation56_spill] sm:$0xff] %v13732_v53  ;;  %4126 = vmax.xlane.f32.xlu0 %v4125_v42  ;;  %v4227_v23 = vmax.f32 %v13726_v35, %v13732_v53 }
 0x5c2   : > { %4225 = vmax.xlane.f32.xlu1 %v4224_v48  ;;  %v13736_v43 = vpop.f32.mrb[32].mxu1 }
 0x5c3   : > { %16497 = vst [vmem:[#allocation57_spill] sm:$0xff] %v13736_v43  ;;  %v13738_v47 = vpop.f32.mrb[33].mxu1 }
 0x5c4   : > { %16498 = vst [vmem:[#allocation58_spill] sm:$0xff] %v13738_v47  ;;  %v13740_v46 = vpop.f32.mrb[34].mxu1  ;;  %v13742_v24 = vpop.f32.mrb[48].mxu0  ;;  %4228 = vmax.xlane.f32.xlu0 %v4227_v23  ;;  %v4170_v44 = vmax.f32 %v13736_v43, %v13738_v47 }
 0x5c5   : > { %16499 = vst [vmem:[#allocation59_spill] sm:$0xff] %v13740_v46  ;;  %16500 = vst [vmem:[#allocation60_spill] sm:$0xff] %v13742_v24  ;;  %v13746_v4 = vpop.f32.mrb[35].mxu1  ;;  %v13748_v0 = vpop.f32.mrb[49].mxu0 }
 0x5c6   : > { %16501 = vst [vmem:[#allocation61_spill] sm:$0xff] %v13746_v4  ;;  %16502 = vst [vmem:[#allocation62_spill] sm:$0xff] %v13748_v0  ;;  %v13750_v42 = vpop.f32.mrb[50].mxu0  ;;  %4171 = vmax.xlane.f32.xlu1 %v4170_v44  ;;  %v4230_v48 = vmax.f32 %v13742_v24, %v13748_v0  ;;  %v4173_v53 = vmax.f32 %v13740_v46, %v13746_v4 }
 0x5c7   : > { %16503 = vst [vmem:[#allocation63_spill] sm:$0xff] %v13750_v42  ;;  %v13756_v35 = vpop.f32.mrb[51].mxu0 }
 0x5c8   : > { %16504 = vst [vmem:[#allocation64_spill] sm:$0xff] %v13756_v35  ;;  %4174 = vmax.xlane.f32.xlu0 %v4173_v53  ;;  %v4233_v23 = vmax.f32 %v13750_v42, %v13756_v35 }
 0x5ca   : > { %4231 = vmax.xlane.f32.xlu1 %v4230_v48  ;;  %v13760_v47 = vpop.f32.mrb[36].mxu1 }
 0x5cb   : > { %16505 = vst [vmem:[#allocation65_spill] sm:$0xff] %v13760_v47  ;;  %v13762_v43 = vpop.f32.mrb[37].mxu1 }
 0x5cc   : > { %16506 = vst [vmem:[#allocation66_spill] sm:$0xff] %v13762_v43  ;;  %v13764_v51 = vpop.f32.mrb[38].mxu1  ;;  %v13766_v44 = vpop.f32.mrb[52].mxu0  ;;  %4234 = vmax.xlane.f32.xlu0 %v4233_v23  ;;  %v4176_v0 = vmax.f32 %v13760_v47, %v13762_v43 }
 0x5cd   : > { %16507 = vst [vmem:[#allocation67_spill] sm:$0xff] %v13764_v51  ;;  %16508 = vst [vmem:[#allocation68_spill] sm:$0xff] %v13766_v44  ;;  %v13770_v24 = vpop.f32.mrb[39].mxu1  ;;  %v13772_v4 = vpop.f32.mrb[53].mxu0 }
 0x5ce   : > { %16509 = vst [vmem:[#allocation69_spill] sm:$0xff] %v13770_v24  ;;  %16510 = vst [vmem:[#allocation70_spill] sm:$0xff] %v13772_v4  ;;  %v13774_v53 = vpop.f32.mrb[54].mxu0  ;;  %4177 = vmax.xlane.f32.xlu1 %v4176_v0  ;;  %v4236_v48 = vmax.f32 %v13766_v44, %v13772_v4  ;;  %v4179_v35 = vmax.f32 %v13764_v51, %v13770_v24 }
 0x5cf   : > { %16511 = vst [vmem:[#allocation71_spill] sm:$0xff] %v13774_v53  ;;  %v13780_v42 = vpop.f32.mrb[55].mxu0 }
 0x5d0   : > { %16512 = vst [vmem:[#allocation72_spill] sm:$0xff] %v13780_v42  ;;  %4180 = vmax.xlane.f32.xlu0 %v4179_v35  ;;  %v4239_v23 = vmax.f32 %v13774_v53, %v13780_v42 }
 0x5d2   : > { %4237 = vmax.xlane.f32.xlu1 %v4236_v48  ;;  %v13784_v43 = vpop.f32.mrb[40].mxu1 }
 0x5d3   : > { %16513 = vst [vmem:[#allocation73_spill] sm:$0xff] %v13784_v43  ;;  %v13786_v47 = vpop.f32.mrb[41].mxu1 }
 0x5d4   : > { %16514 = vst [vmem:[#allocation74_spill] sm:$0xff] %v13786_v47  ;;  %v13788_v46 = vpop.f32.mrb[42].mxu1  ;;  %v13790_v0 = vpop.f32.mrb[56].mxu0  ;;  %4240 = vmax.xlane.f32.xlu0 %v4239_v23  ;;  %v4182_v4 = vmax.f32 %v13784_v43, %v13786_v47 }
 0x5d5   : > { %16515 = vst [vmem:[#allocation75_spill] sm:$0xff] %v13788_v46  ;;  %16516 = vst [vmem:[#allocation76_spill] sm:$0xff] %v13790_v0  ;;  %v13794_v44 = vpop.f32.mrb[43].mxu1  ;;  %v13796_v24 = vpop.f32.mrb[57].mxu0 }
 0x5d6   : > { %16517 = vst [vmem:[#allocation77_spill] sm:$0xff] %v13794_v44  ;;  %16518 = vst [vmem:[#allocation78_spill] sm:$0xff] %v13796_v24  ;;  %v13798_v35 = vpop.f32.mrb[58].mxu0  ;;  %4183 = vmax.xlane.f32.xlu1 %v4182_v4  ;;  %v4242_v48 = vmax.f32 %v13790_v0, %v13796_v24  ;;  %v4185_v42 = vmax.f32 %v13788_v46, %v13794_v44 }
 0x5d7   : > { %16519 = vst [vmem:[#allocation79_spill] sm:$0xff] %v13798_v35  ;;  %v13804_v53 = vpop.f32.mrb[59].mxu0 }
 0x5d8   : > { %16520 = vst [vmem:[#allocation80_spill] sm:$0xff] %v13804_v53  ;;  %4186 = vmax.xlane.f32.xlu0 %v4185_v42  ;;  %v4245_v23 = vmax.f32 %v13798_v35, %v13804_v53 }
 0x5da   : > { %4243 = vmax.xlane.f32.xlu1 %v4242_v48  ;;  %v13808_v47 = vpop.f32.mrb[44].mxu1 }
 0x5db   : > { %16521 = vst [vmem:[#allocation81_spill] sm:$0xff] %v13808_v47  ;;  %v13810_v43 = vpop.f32.mrb[45].mxu1 }
 0x5dc   : > { %16522 = vst [vmem:[#allocation82_spill] sm:$0xff] %v13810_v43  ;;  %v13812_v51 = vpop.f32.mrb[46].mxu1  ;;  %v13814_v4 = vpop.f32.mrb[60].mxu0  ;;  %4246 = vmax.xlane.f32.xlu0 %v4245_v23  ;;  %v4188_v24 = vmax.f32 %v13808_v47, %v13810_v43 }
 0x5dd   : > { %16523 = vst [vmem:[#allocation83_spill] sm:$0xff] %v13812_v51  ;;  %16524 = vst [vmem:[#allocation84_spill] sm:$0xff] %v13814_v4  ;;  %v13818_v0 = vpop.f32.mrb[47].mxu1  ;;  %v13820_v44 = vpop.f32.mrb[61].mxu0 }
 0x5de   : > { %16525 = vst [vmem:[#allocation85_spill] sm:$0xff] %v13818_v0  ;;  %16526 = vst [vmem:[#allocation86_spill] sm:$0xff] %v13820_v44  ;;  %v13822_v42 = vpop.f32.mrb[62].mxu0  ;;  %4189 = vmax.xlane.f32.xlu1 %v4188_v24  ;;  %v4248_v48 = vmax.f32 %v13814_v4, %v13820_v44  ;;  %v4191_v53 = vmax.f32 %v13812_v51, %v13818_v0 }
 0x5df   : > { %16527 = vst [vmem:[#allocation87_spill] sm:$0xff] %v13822_v42  ;;  %v13828_v35 = vpop.f32.mrb[63].mxu0 }
 0x5e0   : > { %16528 = vst [vmem:[#allocation88_spill] sm:$0xff] %v13828_v35  ;;  %4192 = vmax.xlane.f32.xlu0 %v4191_v53  ;;  %v4251_v23 = vmax.f32 %v13822_v42, %v13828_v35 }
 0x5e2   : > { %4249 = vmax.xlane.f32.xlu1 %v4248_v48  ;;  %v13832_v43 = vpop.f32.mrb[48].mxu1 }
 0x5e3   : > { %16529 = vst [vmem:[#allocation89_spill] sm:$0xff] %v13832_v43  ;;  %v13834_v47 = vpop.f32.mrb[49].mxu1 }
 0x5e4   : > { %16530 = vst [vmem:[#allocation90_spill] sm:$0xff] %v13834_v47  ;;  %v13836_v46 = vpop.f32.mrb[50].mxu1  ;;  %v13838_v24 = vpop.f32.mrb[64].mxu0  ;;  %4252 = vmax.xlane.f32.xlu0 %v4251_v23  ;;  %v4194_v44 = vmax.f32 %v13832_v43, %v13834_v47 }
 0x5e5   : > { %16531 = vst [vmem:[#allocation91_spill] sm:$0xff] %v13836_v46  ;;  %16532 = vst [vmem:[#allocation92_spill] sm:$0xff] %v13838_v24  ;;  %v13842_v4 = vpop.f32.mrb[51].mxu1  ;;  %v13844_v0 = vpop.f32.mrb[65].mxu0 }
 0x5e6   : > { %16533 = vst [vmem:[#allocation93_spill] sm:$0xff] %v13842_v4  ;;  %16534 = vst [vmem:[#allocation94_spill] sm:$0xff] %v13844_v0  ;;  %v13846_v53 = vpop.f32.mrb[66].mxu0  ;;  %4195 = vmax.xlane.f32.xlu1 %v4194_v44  ;;  %v4254_v48 = vmax.f32 %v13838_v24, %v13844_v0  ;;  %v4197_v35 = vmax.f32 %v13836_v46, %v13842_v4 }
 0x5e7   : > { %16535 = vst [vmem:[#allocation95_spill] sm:$0xff] %v13846_v53  ;;  %v13852_v42 = vpop.f32.mrb[67].mxu0 }
 0x5e8   : > { %16536 = vst [vmem:[#allocation96_spill] sm:$0xff] %v13852_v42  ;;  %4198 = vmax.xlane.f32.xlu0 %v4197_v35  ;;  %v4257_v23 = vmax.f32 %v13846_v53, %v13852_v42 }
 0x5ea   : > { %4255 = vmax.xlane.f32.xlu1 %v4254_v48  ;;  %v13856_v47 = vpop.f32.mrb[52].mxu1 }
 0x5eb   : > { %16537 = vst [vmem:[#allocation97_spill] sm:$0xff] %v13856_v47  ;;  %v13858_v43 = vpop.f32.mrb[53].mxu1 }
 0x5ec   : > { %16538 = vst [vmem:[#allocation98_spill] sm:$0xff] %v13858_v43  ;;  %v13860_v51 = vpop.f32.mrb[54].mxu1  ;;  %v13862_v44 = vpop.f32.mrb[68].mxu0  ;;  %4258 = vmax.xlane.f32.xlu0 %v4257_v23  ;;  %v4200_v0 = vmax.f32 %v13856_v47, %v13858_v43 }
 0x5ed   : > { %16539 = vst [vmem:[#allocation99_spill] sm:$0xff] %v13860_v51  ;;  %16540 = vst [vmem:[#allocation100_spill] sm:$0xff] %v13862_v44  ;;  %v13866_v24 = vpop.f32.mrb[55].mxu1  ;;  %v13868_v4 = vpop.f32.mrb[69].mxu0 }
 0x5ee   : > { %16541 = vst [vmem:[#allocation101_spill] sm:$0xff] %v13866_v24  ;;  %16542 = vst [vmem:[#allocation102_spill] sm:$0xff] %v13868_v4  ;;  %v13870_v35 = vpop.f32.mrb[70].mxu0  ;;  %4201 = vmax.xlane.f32.xlu1 %v4200_v0  ;;  %v4260_v48 = vmax.f32 %v13862_v44, %v13868_v4  ;;  %v4203_v42 = vmax.f32 %v13860_v51, %v13866_v24 }
 0x5ef   : > { %16543 = vst [vmem:[#allocation103_spill] sm:$0xff] %v13870_v35  ;;  %v13876_v53 = vpop.f32.mrb[71].mxu0 }
 0x5f0   : > { %16544 = vst [vmem:[#allocation104_spill] sm:$0xff] %v13876_v53  ;;  %4204 = vmax.xlane.f32.xlu0 %v4203_v42  ;;  %v4263_v23 = vmax.f32 %v13870_v35, %v13876_v53 }
 0x5f2   : > { %4261 = vmax.xlane.f32.xlu1 %v4260_v48  ;;  %v13880_v43 = vpop.f32.mrb[56].mxu1 }
 0x5f3   : > { %16545 = vst [vmem:[#allocation105_spill] sm:$0xff] %v13880_v43  ;;  %v13882_v47 = vpop.f32.mrb[57].mxu1 }
 0x5f4   : > { %16546 = vst [vmem:[#allocation106_spill] sm:$0xff] %v13882_v47  ;;  %v13884_v46 = vpop.f32.mrb[58].mxu1  ;;  %v13886_v0 = vpop.f32.mrb[72].mxu0  ;;  %4264 = vmax.xlane.f32.xlu0 %v4263_v23  ;;  %v4206_v4 = vmax.f32 %v13880_v43, %v13882_v47 }
 0x5f5   : > { %16547 = vst [vmem:[#allocation107_spill] sm:$0xff] %v13884_v46  ;;  %16548 = vst [vmem:[#allocation108_spill] sm:$0xff] %v13886_v0  ;;  %v13890_v44 = vpop.f32.mrb[59].mxu1  ;;  %v13892_v24 = vpop.f32.mrb[73].mxu0 }
 0x5f6   : > { %16549 = vst [vmem:[#allocation109_spill] sm:$0xff] %v13890_v44  ;;  %16550 = vst [vmem:[#allocation110_spill] sm:$0xff] %v13892_v24  ;;  %v13894_v42 = vpop.f32.mrb[74].mxu0  ;;  %4207 = vmax.xlane.f32.xlu1 %v4206_v4  ;;  %v4266_v48 = vmax.f32 %v13886_v0, %v13892_v24  ;;  %v4209_v53 = vmax.f32 %v13884_v46, %v13890_v44  ;;  %v4082_v43 = vpop.xlane.xlu0 %4081 }
 0x5f7   : > { %16551 = vst [vmem:[#allocation111_spill] sm:$0xff] %v13894_v42  ;;  %v13900_v35 = vpop.f32.mrb[75].mxu0  ;;  %v4272_v4 = vsub.f32 %v13544_v56, %v4082_v43  ;;  %v4273_v57 = vsub.f32 %v13546_v5, %v4082_v43 }
 0x5f8   : > { %16552 = vst [vmem:[#allocation112_spill] sm:$0xff] %v13900_v35  ;;  %4210 = vmax.xlane.f32.xlu0 %v4209_v53  ;;  %v4269_v23 = vmax.f32 %v13894_v42, %v13900_v35  ;;  %v4085_v53 = vpop.xlane.xlu1 %4084 }
 0x5f9   : > { %v4400_v35 = vmul.f32 1.442695, %v4272_v4  ;;  %v4274_v42 = vsub.f32 %v13548_v6, %v4085_v53  ;;  %v4275_v46 = vsub.f32 %v13554_v3, %v4085_v53 }
 0x5fa   : > { %4267 = vmax.xlane.f32.xlu1 %v4266_v48  ;;  %v13904_v47 = vpop.f32.mrb[60].mxu1  ;;  %v4402_v48 = vmul.f32 1.442695, %v4273_v57  ;;  %v4130_v43 = vpop.xlane.xlu0 %4129 }
 0x5fb   : > { %v13906_v51 = vpop.f32.mrb[61].mxu1  ;;  %11042 = vpow2.f32 %v4400_v35  ;;  %v4404_v5 = vmul.f32 1.442695, %v4274_v42  ;;  %v4304_v61 = vsub.f32 %v13550_v32, %v4130_v43 }
 0x5fc   : > { %16553 = vst [vmem:[#allocation113_spill] sm:$0xff] %v13906_v51  ;;  %v13910_v24 = vpop.f32.mrb[62].mxu1  ;;  %4270 = vmax.xlane.f32.xlu0 %v4269_v23  ;;  %v4212_v0 = vmax.f32 %v13904_v47, %v13906_v51  ;;  %v4406_v23 = vmul.f32 1.442695, %v4275_v46  ;;  %11044 = vpow2.f32 %v4402_v48  ;;  %v4305_v51 = vsub.f32 %v13556_v49, %v4130_v43 }
 0x5fd   : > { %v13914_v44 = vpop.f32.mrb[63].mxu1  ;;  %11046 = vpow2.f32 %v4404_v5  ;;  %v4464_v57 = vmul.f32 1.442695, %v4304_v61 }
 0x5fe   : > { %4213 = vmax.xlane.f32.xlu1 %v4212_v0  ;;  %v4215_v56 = vmax.f32 %v13910_v24, %v13914_v44  ;;  %11048 = vpow2.f32 %v4406_v23  ;;  %v4466_v6 = vmul.f32 1.442695, %v4305_v51  ;;  %v4133_v3 = vpop.xlane.xlu0 %4132 }
 0x5ff   : > { %11050 = vpow2.f32 %v4464_v57  ;;  %v4306_v35 = vsub.f32 %v13558_v13, %v4133_v3  ;;  %v4307_v46 = vsub.f32 %v13564_v36, %v4133_v3 }
 0x600   : > { %4216 = vmax.xlane.f32.xlu0 %v4215_v56  ;;  %11052 = vpow2.f32 %v4466_v6 }
 0x601   : > { %v4468_v61 = vmul.f32 1.442695, %v4306_v35  ;;  %v4470_v53 = vmul.f32 1.442695, %v4307_v46 }
 0x602   : > { %v13922_v4 = vpop.f32.mrb[64].mxu1 }
 0x603   : > { %v13924_v0 = vpop.f32.mrb[65].mxu1  ;;  %11054 = vpow2.f32 %v4468_v61 }
 0x604   : > { %v13928_v42 = vpop.f32.mrb[66].mxu1  ;;  %v4218_v32 = vmax.f32 %v13922_v4, %v13924_v0  ;;  %11056 = vpow2.f32 %v4470_v53 }
 0x605   : > { %v13932_v49 = vpop.f32.mrb[67].mxu1  ;;  %v13936_v13 = vpop.eup %11042 }
 0x606   : > { %4219 = vmax.xlane.f32.xlu1 %v4218_v32  ;;  %v4221_v51 = vmax.f32 %v13928_v42, %v13932_v49  ;;  %v13938_v36 = vpop.eup %11044 }
 0x607   : > { %16554 = vst [vmem:[#allocation114_spill] sm:$0xff] %v13938_v36  ;;  %v13940_v48 = vpop.eup %11046  ;;  %v4656_v43 = vadd.f32 %v13938_v36, %v13936_v13 }
 0x608   : > { %4222 = vmax.xlane.f32.xlu0 %v4221_v51  ;;  %v4088_v56 = vpop.xlane.xlu1 %4087  ;;  %v13944_v5 = vpop.eup %11048 }
 0x609   : > { %16555 = vst [vmem:[#allocation115_spill] sm:$0xff] %v13944_v5  ;;  %v4276_v23 = vsub.f32 %v13568_v58, %v4088_v56  ;;  %v4277_v57 = vsub.f32 %v13570_v28, %v4088_v56  ;;  %v13948_v6 = vpop.eup %11050  ;;  %v4659_v35 = vadd.f32 %v13944_v5, %v13940_v48 }
 0x60a   : > { %v4091_v3 = vpop.xlane.xlu0 %4090  ;;  %4657 = vadd.xlane.f32.xlu1 %v4656_v43  ;;  %v13952_v46 = vpop.eup %11052 }
 0x60b   : > { %v4408_v32 = vmul.f32 1.442695, %v4276_v23  ;;  %v4410_v61 = vmul.f32 1.442695, %v4277_v57  ;;  %v4278_v53 = vsub.f32 %v13572_v20, %v4091_v3  ;;  %v4279_v51 = vsub.f32 %v13578_v9, %v4091_v3 }
 0x60c   : > { %v4136_v36 = vpop.xlane.xlu1 %4135  ;;  %4660 = vadd.xlane.f32.xlu0 %v4659_v35  ;;  %v4704_v58 = vadd.f32 %v13952_v46, %v13948_v6 }
 0x60d   : > { %11058 = vpow2.f32 %v4408_v32  ;;  %v4308_v28 = vsub.f32 %v13574_v33, %v4136_v36  ;;  %v4309_v56 = vsub.f32 %v13580_v59, %v4136_v36  ;;  %v4412_v43 = vmul.f32 1.442695, %v4278_v53  ;;  %v13960_v5 = vpop.eup %11054  ;;  %v1159_v59 = vld [vmem:[#allocation3 + $0x8] sm:$0xff]  ;;  %v1158_v53 = vld [vmem:[#allocation3] sm:$0xff] }
 0x60e   : > { %11060 = vpow2.f32 %v4410_v61  ;;  %v4414_v23 = vmul.f32 1.442695, %v4279_v51  ;;  %v4139_v57 = vpop.xlane.xlu0 %4138  ;;  %4705 = vadd.xlane.f32.xlu1 %v4704_v58  ;;  %v13962_v20 = vpop.eup %11056  ;;  %v1163_v36 = vld [vmem:[#allocation3 + $0x28] sm:$0xff]  ;;  %5488 = vmatprep.subr.bf16.mxu1 %v1159_v59  ;;  %v1162_v51 = vld [vmem:[#allocation3 + $0x20] sm:$0xff] }
 0x60f   : > { %v4472_v9 = vmul.f32 1.442695, %v4308_v28  ;;  %v4474_v3 = vmul.f32 1.442695, %v4309_v56  ;;  %11062 = vpow2.f32 %v4412_v43  ;;  %v4310_v35 = vsub.f32 %v13582_v41, %v4139_v57  ;;  %5585 = vmatprep.subr.bf16.mxu0 %v1163_v36  ;;  %5489 = vmatpush1.bf16.xpose.msra.mxu1 %v1158_v53 }
 0x610   : > { %11064 = vpow2.f32 %v4414_v23  ;;  %v4311_v32 = vsub.f32 %v13588_v10, %v4139_v57  ;;  %v4707_v33 = vadd.f32 %v13962_v20, %v13960_v5  ;;  %5586 = vmatpush1.bf16.xpose.msra.mxu0 %v1162_v51 }
 0x611   : > { %11066 = vpow2.f32 %v4472_v9  ;;  %v4476_v61 = vmul.f32 1.442695, %v4310_v35 }
 0x612   : > { %11068 = vpow2.f32 %v4474_v3  ;;  %v4478_v58 = vmul.f32 1.442695, %v4311_v32  ;;  %4708 = vadd.xlane.f32.xlu0 %v4707_v33 }
 0x613   : > { %11070 = vpow2.f32 %v4476_v61 }
 0x614   : > { %11072 = vpow2.f32 %v4478_v58 }
 0x617   : > { %v13968_v41 = vpop.eup %11058 }
 0x618   : > { %v13970_v10 = vpop.eup %11060 }
 0x619   : > { %v13972_v28 = vpop.eup %11062  ;;  %v4662_v56 = vadd.f32 %v13970_v10, %v13968_v41 }
 0x61a   : > { %16556 = vst [vmem:[#allocation116_spill] sm:$0xff] %v13972_v28  ;;  %v13976_v43 = vpop.eup %11064 }
 0x61b   : > { %v13978_v23 = vpop.eup %11066  ;;  %4663 = vadd.xlane.f32.xlu1 %v4662_v56  ;;  %v4665_v57 = vadd.f32 %v13976_v43, %v13972_v28 }
 0x61c   : > { %16557 = vst [vmem:[#allocation117_spill] sm:$0xff] %v13978_v23  ;;  %v13982_v9 = vpop.eup %11068 }
 0x61d   : > { %16558 = vst [vmem:[#allocation118_spill] sm:$0xff] %v13982_v9  ;;  %v13984_v3 = vpop.eup %11070  ;;  %v4710_v35 = vadd.f32 %v13982_v9, %v13978_v23  ;;  %4666 = vadd.xlane.f32.xlu0 %v4665_v57 }
 0x61e   : > { %16559 = vst [vmem:[#allocation119_spill] sm:$0xff] %v13984_v3  ;;  %v13988_v32 = vpop.eup %11072 }
 0x61f   : > { %16560 = vst [vmem:[#allocation120_spill] sm:$0xff] %v13988_v32  ;;  %4711 = vadd.xlane.f32.xlu1 %v4710_v35  ;;  %v4713_v33 = vadd.f32 %v13988_v32, %v13984_v3  ;;  %v4094_v59 = vpop.xlane.xlu1 %4093 }
 0x620   : > { %v4280_v36 = vsub.f32 %v13592_v18, %v4094_v59  ;;  %v4281_v53 = vsub.f32 %v13594_v14, %v4094_v59 }
 0x621   : > { %4714 = vadd.xlane.f32.xlu0 %v4713_v33  ;;  %v4097_v61 = vpop.xlane.xlu0 %4096 }
 0x622   : > { %v4416_v51 = vmul.f32 1.442695, %v4280_v36  ;;  %v4418_v58 = vmul.f32 1.442695, %v4281_v53  ;;  %v4282_v56 = vsub.f32 %v13596_v29, %v4097_v61  ;;  %v4283_v23 = vsub.f32 %v13602_v40, %v4097_v61  ;;  %v1165_v53 = vld [vmem:[#allocation3 + $0x38] sm:$0xff]  ;;  %v1160_v61 = vld [vmem:[#allocation3 + $0x10] sm:$0xff] }
 0x623   : > { %v4142_v57 = vpop.xlane.xlu1 %4141  ;;  %5587 = vmatprep.subr.bf16.mxu0 %v1165_v53 }
 0x624   : > { %11074 = vpow2.f32 %v4416_v51  ;;  %v4312_v35 = vsub.f32 %v13598_v22, %v4142_v57  ;;  %v4313_v9 = vsub.f32 %v13604_v16, %v4142_v57  ;;  %v4420_v3 = vmul.f32 1.442695, %v4282_v56  ;;  %v1161_v16 = vld [vmem:[#allocation3 + $0x18] sm:$0xff] }
 0x625   : > { %11076 = vpow2.f32 %v4418_v58  ;;  %v4422_v32 = vmul.f32 1.442695, %v4283_v23  ;;  %v4145_v18 = vpop.xlane.xlu0 %4144  ;;  %5490 = vmatprep.subr.bf16.mxu1 %v1161_v16 }
 0x626   : > { %v4480_v28 = vmul.f32 1.442695, %v4312_v35  ;;  %v4482_v14 = vmul.f32 1.442695, %v4313_v9  ;;  %11078 = vpow2.f32 %v4420_v3  ;;  %v4314_v33 = vsub.f32 %v13606_v26, %v4145_v18  ;;  %v1164_v9 = vld [vmem:[#allocation3 + $0x30] sm:$0xff]  ;;  %5491 = vmatpush1.bf16.xpose.msra.mxu1 %v1160_v61 }
 0x627   : > { %11080 = vpow2.f32 %v4422_v32  ;;  %v4315_v29 = vsub.f32 %v13612_v34, %v4145_v18  ;;  %5588 = vmatpush1.bf16.xpose.msra.mxu0 %v1164_v9 }
 0x628   : > { %v4100_v59 = vpop.xlane.xlu1 %4099  ;;  %11082 = vpow2.f32 %v4480_v28  ;;  %v4484_v40 = vmul.f32 1.442695, %v4314_v33 }
 0x629   : > { %v4284_v36 = vsub.f32 %v13616_v2, %v4100_v59  ;;  %v4285_v22 = vsub.f32 %v13618_v63, %v4100_v59  ;;  %11084 = vpow2.f32 %v4482_v14  ;;  %v4486_v23 = vmul.f32 1.442695, %v4315_v29 }
 0x62a   : > { %v4103_v51 = vpop.xlane.xlu0 %4102  ;;  %11086 = vpow2.f32 %v4484_v40 }
 0x62b   : > { %v4424_v26 = vmul.f32 1.442695, %v4284_v36  ;;  %v4426_v3 = vmul.f32 1.442695, %v4285_v22  ;;  %v4286_v34 = vsub.f32 %v13620_v8, %v4103_v51  ;;  %11088 = vpow2.f32 %v4486_v23 }
 0x62c   : > { %v4148_v2 = vpop.xlane.xlu1 %4147  ;;  %v4287_v63 = vsub.f32 %v13626_v25, %v4103_v51 }
 0x62d   : > { %11090 = vpow2.f32 %v4424_v26  ;;  %v4316_v28 = vsub.f32 %v13622_v17, %v4148_v2  ;;  %v4317_v32 = vsub.f32 %v13628_v19, %v4148_v2  ;;  %v4428_v58 = vmul.f32 1.442695, %v4286_v34 }
 0x62e   : > { %11092 = vpow2.f32 %v4426_v3  ;;  %v4430_v56 = vmul.f32 1.442695, %v4287_v63  ;;  %v4151_v57 = vpop.xlane.xlu0 %4150  ;;  %v14006_v35 = vpop.eup %11074 }
 0x62f   : > { %v4488_v18 = vmul.f32 1.442695, %v4316_v28  ;;  %v4490_v14 = vmul.f32 1.442695, %v4317_v32  ;;  %11094 = vpow2.f32 %v4428_v58  ;;  %v4318_v8 = vsub.f32 %v13630_v31, %v4151_v57  ;;  %v14009_v33 = vpop.eup %11076 }
 0x630   : > { %11096 = vpow2.f32 %v4430_v56  ;;  %v4319_v25 = vsub.f32 %v13636_v11, %v4151_v57  ;;  %v14012_v17 = vpop.eup %11078  ;;  %v4668_v31 = vadd.f32 %v14009_v33, %v14006_v35 }
 0x631   : > { %11098 = vpow2.f32 %v4488_v18  ;;  %v4492_v19 = vmul.f32 1.442695, %v4318_v8  ;;  %v14016_v36 = vpop.eup %11080 }
 0x632   : > { %v4106_v29 = vpop.xlane.xlu1 %4105  ;;  %11100 = vpow2.f32 %v4490_v14  ;;  %v4494_v22 = vmul.f32 1.442695, %v4319_v25  ;;  %v14020_v53 = vpop.eup %11082  ;;  %4669 = vadd.xlane.f32.xlu1 %v4668_v31  ;;  %v4671_v9 = vadd.f32 %v14016_v36, %v14012_v17 }
 0x633   : > { %v4288_v59 = vsub.f32 %v13640_v12, %v4106_v29  ;;  %v4289_v40 = vsub.f32 %v13642_v55, %v4106_v29  ;;  %11102 = vpow2.f32 %v4492_v19  ;;  %v14023_v51 = vpop.eup %11084 }
 0x634   : > { %v4109_v16 = vpop.xlane.xlu0 %4108  ;;  %11104 = vpow2.f32 %v4494_v22  ;;  %v14028_v26 = vpop.eup %11086  ;;  %v4716_v28 = vadd.f32 %v14023_v51, %v14020_v53  ;;  %4672 = vadd.xlane.f32.xlu0 %v4671_v9 }
 0x635   : > { %v4432_v11 = vmul.f32 1.442695, %v4288_v59  ;;  %v4434_v61 = vmul.f32 1.442695, %v4289_v40  ;;  %v4290_v23 = vsub.f32 %v13644_v15, %v4109_v16  ;;  %v4291_v55 = vsub.f32 %v13650_v45, %v4109_v16  ;;  %v14032_v63 = vpop.eup %11088 }
 0x636   : > { %v4154_v12 = vpop.xlane.xlu1 %4153  ;;  %4717 = vadd.xlane.f32.xlu1 %v4716_v28  ;;  %v4719_v14 = vadd.f32 %v14032_v63, %v14028_v26 }
 0x637   : > { %11106 = vpow2.f32 %v4432_v11  ;;  %v4320_v3 = vsub.f32 %v13646_v30, %v4154_v12  ;;  %v4321_v34 = vsub.f32 %v13652_v21, %v4154_v12  ;;  %v4436_v2 = vmul.f32 1.442695, %v4290_v23  ;;  %v14036_v32 = vpop.eup %11090 }
 0x638   : > { %11108 = vpow2.f32 %v4434_v61  ;;  %v4438_v15 = vmul.f32 1.442695, %v4291_v55  ;;  %v4157_v45 = vpop.xlane.xlu0 %4156  ;;  %v14039_v30 = vpop.eup %11092  ;;  %4720 = vadd.xlane.f32.xlu0 %v4719_v14 }
 0x639   : > { %v4496_v58 = vmul.f32 1.442695, %v4320_v3  ;;  %v4498_v56 = vmul.f32 1.442695, %v4321_v34  ;;  %11110 = vpow2.f32 %v4436_v2  ;;  %v4322_v57 = vsub.f32 %v13654_v50, %v4157_v45  ;;  %v14044_v8 = vpop.eup %11094 }
 0x63a   : > { %11112 = vpow2.f32 %v4438_v15  ;;  %v4323_v21 = vsub.f32 %v13660_v54, %v4157_v45  ;;  %v14048_v59 = vpop.eup %11096  ;;  %v4674_v40 = vadd.f32 %v14039_v30, %v14036_v32 }
 0x63b   : > { %v4112_v18 = vpop.xlane.xlu1 %4111  ;;  %11114 = vpow2.f32 %v4496_v58  ;;  %v4500_v25 = vmul.f32 1.442695, %v4322_v57  ;;  %v14052_v22 = vpop.eup %11098  ;;  %v4677_v23 = vadd.f32 %v14048_v59, %v14044_v8 }
 0x63c   : > { %v4292_v29 = vsub.f32 %v13664_v62, %v4112_v18  ;;  %v4293_v19 = vsub.f32 %v13666_v27, %v4112_v18  ;;  %11116 = vpow2.f32 %v4498_v56  ;;  %v4502_v50 = vmul.f32 1.442695, %v4323_v21  ;;  %v14055_v61 = vpop.eup %11100  ;;  %4675 = vadd.xlane.f32.xlu1 %v4674_v40 }
 0x63d   : > { %v4115_v54 = vpop.xlane.xlu0 %4114  ;;  %11118 = vpow2.f32 %v4500_v25  ;;  %v14060_v12 = vpop.eup %11102  ;;  %v4722_v2 = vadd.f32 %v14055_v61, %v14052_v22  ;;  %4678 = vadd.xlane.f32.xlu0 %v4677_v23  ;;  %v16561_v25 = vld [vmem:[#allocation44_spill] sm:$0xff] }
 0x63e   : > { %v4440_v31 = vmul.f32 1.442695, %v4292_v29  ;;  %v4442_v16 = vmul.f32 1.442695, %v4293_v19  ;;  %v4294_v11 = vsub.f32 %v13668_v1, %v4115_v54  ;;  %11120 = vpow2.f32 %v4502_v50  ;;  %v14064_v34 = vpop.eup %11104 }
 0x63f   : > { %v4160_v62 = vpop.xlane.xlu1 %4159  ;;  %v4295_v27 = vsub.f32 %v13674_v60, %v4115_v54  ;;  %v4725_v57 = vadd.f32 %v14064_v34, %v14060_v12 }
 0x640   : > { %11122 = vpow2.f32 %v4440_v31  ;;  %v4324_v55 = vsub.f32 %v13670_v37, %v4160_v62  ;;  %v4325_v9 = vsub.f32 %v13676_v38, %v4160_v62  ;;  %v4444_v3 = vmul.f32 1.442695, %v4294_v11  ;;  %4723 = vadd.xlane.f32.xlu1 %v4722_v2  ;;  %v16567_v2 = vld [vmem:[#allocation46_spill] sm:$0xff] }
 0x641   : > { %11124 = vpow2.f32 %v4442_v16  ;;  %v4446_v1 = vmul.f32 1.442695, %v4295_v27  ;;  %v4163_v60 = vpop.xlane.xlu0 %4162  ;;  %v14068_v15 = vpop.eup %11106  ;;  %4726 = vadd.xlane.f32.xlu0 %v4725_v57  ;;  %v16563_v16 = vld [vmem:[#allocation42_spill] sm:$0xff]  ;;  %v16564_v27 = vld [vmem:[#allocation45_spill] sm:$0xff] }
 0x642   : > { %v4504_v28 = vmul.f32 1.442695, %v4324_v55  ;;  %v4506_v45 = vmul.f32 1.442695, %v4325_v9  ;;  %11126 = vpow2.f32 %v4444_v3  ;;  %v4326_v58 = vsub.f32 %v13678_v52, %v4163_v60  ;;  %v14071_v37 = vpop.eup %11108  ;;  %v16566_v3 = vld [vmem:[#allocation43_spill] sm:$0xff] }
 0x643   : > { %11128 = vpow2.f32 %v4446_v1  ;;  %v4327_v38 = vsub.f32 %v13684_v7, %v4163_v60  ;;  %v4118_v56 = vpop.xlane.xlu1 %4117  ;;  %v14076_v21 = vpop.eup %11110  ;;  %v4680_v50 = vadd.f32 %v14071_v37, %v14068_v15 }
 0x644   : > { %11130 = vpow2.f32 %v4504_v28  ;;  %v4508_v18 = vmul.f32 1.442695, %v4326_v58  ;;  %v4296_v14 = vsub.f32 %v13688_v39, %v4118_v56  ;;  %v4297_v29 = vsub.f32 %v16561_v25, %v4118_v56  ;;  %v14080_v19 = vpop.eup %11112  ;;  %v16570_v25 = vld [vmem:[#allocation47_spill] sm:$0xff] }
 0x645   : > { %11132 = vpow2.f32 %v4506_v45  ;;  %v4510_v52 = vmul.f32 1.442695, %v4327_v38  ;;  %v4121_v7 = vpop.xlane.xlu0 %4120  ;;  %v14084_v40 = vpop.eup %11114  ;;  %4681 = vadd.xlane.f32.xlu1 %v4680_v50  ;;  %v4683_v55 = vadd.f32 %v14080_v19, %v14076_v21  ;;  %v16572_v50 = vld [vmem:[#allocation48_spill] sm:$0xff] }
 0x646   : > { %16562 = vst [vmem:[#allocation44_spill] sm:$0xff] %v14084_v40  ;;  %11134 = vpow2.f32 %v4508_v18  ;;  %v4448_v54 = vmul.f32 1.442695, %v4296_v14  ;;  %v4450_v31 = vmul.f32 1.442695, %v4297_v29  ;;  %v4298_v11 = vsub.f32 %v16563_v16, %v4121_v7  ;;  %v14087_v62 = vpop.eup %11116 }
 0x647   : > { %11136 = vpow2.f32 %v4510_v52  ;;  %v4166_v39 = vpop.xlane.xlu1 %4165  ;;  %v4299_v23 = vsub.f32 %v16564_v27, %v4121_v7  ;;  %v14092_v9 = vpop.eup %11118  ;;  %v4728_v38 = vadd.f32 %v14087_v62, %v14084_v40  ;;  %4684 = vadd.xlane.f32.xlu0 %v4683_v55 }
 0x648   : > { %16565 = vst [vmem:[#allocation42_spill] sm:$0xff] %v14092_v9  ;;  %11138 = vpow2.f32 %v4448_v54  ;;  %v4328_v1 = vsub.f32 %v16566_v3, %v4166_v39  ;;  %v4329_v60 = vsub.f32 %v16567_v2, %v4166_v39  ;;  %v4452_v28 = vmul.f32 1.442695, %v4298_v11  ;;  %v14096_v45 = vpop.eup %11120  ;;  %v16574_v39 = vld [vmem:[#allocation49_spill] sm:$0xff] }
 0x649   : > { %16568 = vst [vmem:[#allocation45_spill] sm:$0xff] %v14096_v45  ;;  %11140 = vpow2.f32 %v4450_v31  ;;  %v4454_v58 = vmul.f32 1.442695, %v4299_v23  ;;  %v4169_v56 = vpop.xlane.xlu0 %4168  ;;  %4729 = vadd.xlane.f32.xlu1 %v4728_v38  ;;  %v4731_v31 = vadd.f32 %v14096_v45, %v14092_v9  ;;  %v16575_v23 = vld [vmem:[#allocation50_spill] sm:$0xff] }
 0x64a   : > { %v14100_v57 = vpop.eup %11122  ;;  %v4512_v18 = vmul.f32 1.442695, %v4328_v1  ;;  %v4514_v14 = vmul.f32 1.442695, %v4329_v60  ;;  %11142 = vpow2.f32 %v4452_v28  ;;  %v4330_v29 = vsub.f32 %v16570_v25, %v4169_v56 }
 0x64b   : > { %16569 = vst [vmem:[#allocation43_spill] sm:$0xff] %v14100_v57  ;;  %v14103_v52 = vpop.eup %11124  ;;  %11144 = vpow2.f32 %v4454_v58  ;;  %v4331_v7 = vsub.f32 %v16572_v50, %v4169_v56  ;;  %v4124_v54 = vpop.xlane.xlu1 %4123  ;;  %4732 = vadd.xlane.f32.xlu0 %v4731_v31  ;;  %v16578_v56 = vld [vmem:[#allocation51_spill] sm:$0xff]  ;;  %v16580_v50 = vld [vmem:[#allocation53_spill] sm:$0xff]  ;;  %v16582_v31 = vld [vmem:[#allocation52_spill] sm:$0xff] }
 0x64c   : > { %16571 = vst [vmem:[#allocation46_spill] sm:$0xff] %v14103_v52  ;;  %v14108_v16 = vpop.eup %11126  ;;  %11146 = vpow2.f32 %v4512_v18  ;;  %v4516_v11 = vmul.f32 1.442695, %v4330_v29  ;;  %v4300_v27 = vsub.f32 %v16574_v39, %v4124_v54  ;;  %v4301_v55 = vsub.f32 %v16575_v23, %v4124_v54 }
 0x64d   : > { %16573 = vst [vmem:[#allocation47_spill] sm:$0xff] %v14108_v16  ;;  %v14112_v3 = vpop.eup %11128  ;;  %11148 = vpow2.f32 %v4514_v14  ;;  %v4518_v1 = vmul.f32 1.442695, %v4331_v7  ;;  %v4686_v2 = vadd.f32 %v14103_v52, %v14100_v57  ;;  %v4127_v60 = vpop.xlane.xlu0 %4126 }
 0x64e   : > { %16576 = vst [vmem:[#allocation48_spill] sm:$0xff] %v14112_v3  ;;  %v14116_v28 = vpop.eup %11130  ;;  %11150 = vpow2.f32 %v4516_v11  ;;  %v4456_v58 = vmul.f32 1.442695, %v4300_v27  ;;  %v4458_v38 = vmul.f32 1.442695, %v4301_v55  ;;  %v4302_v18 = vsub.f32 %v16578_v56, %v4127_v60  ;;  %v16583_v11 = vld [vmem:[#allocation54_spill] sm:$0xff] }
 0x64f   : > { %16577 = vst [vmem:[#allocation49_spill] sm:$0xff] %v14116_v28  ;;  %v14119_v25 = vpop.eup %11132  ;;  %11152 = vpow2.f32 %v4518_v1  ;;  %4687 = vadd.xlane.f32.xlu1 %v4686_v2  ;;  %v4226_v29 = vpop.xlane.xlu1 %4225  ;;  %v4303_v14 = vsub.f32 %v16580_v50, %v4127_v60  ;;  %v4689_v7 = vadd.f32 %v14112_v3, %v14108_v16  ;;  %v1167_v60 = vld [vmem:[#allocation3 + $0x48] sm:$0xff] }
 0x650   : > { %16579 = vst [vmem:[#allocation50_spill] sm:$0xff] %v14119_v25  ;;  %v14124_v54 = vpop.eup %11134  ;;  %11154 = vpow2.f32 %v4456_v58  ;;  %v4368_v39 = vsub.f32 %v16582_v31, %v4226_v29  ;;  %v4369_v27 = vsub.f32 %v16583_v11, %v4226_v29  ;;  %v4460_v23 = vmul.f32 1.442695, %v4302_v18  ;;  %v1171_v50 = vld [vmem:[#allocation3 + $0x68] sm:$0xff]  ;;  %5682 = vmatprep.subr.bf16.mxu1 %v1167_v60  ;;  %v16592_v60 = vld [vmem:[#allocation56_spill] sm:$0xff] }
 0x651   : > { %16581 = vst [vmem:[#allocation51_spill] sm:$0xff] %v14124_v54  ;;  %v14128_v55 = vpop.eup %11136  ;;  %11156 = vpow2.f32 %v4458_v38  ;;  %v4462_v56 = vmul.f32 1.442695, %v4303_v14  ;;  %v4734_v1 = vadd.f32 %v14119_v25, %v14116_v28  ;;  %4690 = vadd.xlane.f32.xlu0 %v4689_v7  ;;  %v4229_v2 = vpop.xlane.xlu0 %4228  ;;  %5779 = vmatprep.subr.bf16.mxu0 %v1171_v50  ;;  %v16587_v38 = vld [vmem:[#allocation55_spill] sm:$0xff]  ;;  %v16589_v11 = vld [vmem:[#allocation57_spill] sm:$0xff]  ;;  %v16590_v25 = vld [vmem:[#allocation58_spill] sm:$0xff] }
 0x652   : > { %16584 = vst [vmem:[#allocation53_spill] sm:$0xff] %v14128_v55  ;;  %v14132_v16 = vpop.eup %11138  ;;  %v4592_v3 = vmul.f32 1.442695, %v4368_v39  ;;  %11158 = vpow2.f32 %v4460_v23  ;;  %v4594_v18 = vmul.f32 1.442695, %v4369_v27  ;;  %v4370_v29 = vsub.f32 %v16587_v38, %v4229_v2 }
 0x653   : > { %16585 = vst [vmem:[#allocation52_spill] sm:$0xff] %v14132_v16  ;;  %v14134_v58 = vpop.eup %11140  ;;  %11160 = vpow2.f32 %v4462_v56  ;;  %4735 = vadd.xlane.f32.xlu1 %v4734_v1  ;;  %v4172_v14 = vpop.xlane.xlu1 %4171  ;;  %v4737_v7 = vadd.f32 %v14128_v55, %v14124_v54  ;;  %v4371_v50 = vsub.f32 %v16592_v60, %v4229_v2  ;;  %v16594_v55 = vld [vmem:[#allocation59_spill] sm:$0xff] }
 0x654   : > { %16586 = vst [vmem:[#allocation54_spill] sm:$0xff] %v14134_v58  ;;  %v14139_v31 = vpop.eup %11142  ;;  %v4332_v28 = vsub.f32 %v16589_v11, %v4172_v14  ;;  %v4333_v39 = vsub.f32 %v16590_v25, %v4172_v14  ;;  %v4692_v27 = vadd.f32 %v14134_v58, %v14132_v16  ;;  %11162 = vpow2.f32 %v4592_v3  ;;  %v16596_v11 = vld [vmem:[#allocation61_spill] sm:$0xff]  ;;  %v16598_v16 = vld [vmem:[#allocation60_spill] sm:$0xff] }
 0x655   : > { %16588 = vst [vmem:[#allocation55_spill] sm:$0xff] %v14139_v31  ;;  %v14143_v23 = vpop.eup %11144  ;;  %4738 = vadd.xlane.f32.xlu0 %v4737_v7  ;;  %v4175_v56 = vpop.xlane.xlu0 %4174  ;;  %11164 = vpow2.f32 %v4594_v18  ;;  %v4596_v25 = vmul.f32 1.442695, %v4370_v29  ;;  %v4598_v9 = vmul.f32 1.442695, %v4371_v50 }
 0x656   : > { %16591 = vst [vmem:[#allocation57_spill] sm:$0xff] %v14143_v23  ;;  %v14148_v1 = vpop.eup %11146  ;;  %v4520_v38 = vmul.f32 1.442695, %v4332_v28  ;;  %v4522_v54 = vmul.f32 1.442695, %v4333_v39  ;;  %v4334_v57 = vsub.f32 %v16594_v55, %v4175_v56  ;;  %v4335_v2 = vsub.f32 %v16596_v11, %v4175_v56  ;;  %v16599_v28 = vld [vmem:[#allocation62_spill] sm:$0xff] }
 0x657   : > { %16593 = vst [vmem:[#allocation58_spill] sm:$0xff] %v14148_v1  ;;  %v14151_v52 = vpop.eup %11148  ;;  %4693 = vadd.xlane.f32.xlu1 %v4692_v27  ;;  %v4232_v14 = vpop.xlane.xlu1 %4231  ;;  %v4695_v60 = vadd.f32 %v14143_v23, %v14139_v31  ;;  %v16624_v23 = vld [vmem:[#allocation75_spill] sm:$0xff] }
 0x658   : > { %16595 = vst [vmem:[#allocation56_spill] sm:$0xff] %v14151_v52  ;;  %v14156_v7 = vpop.eup %11150  ;;  %11166 = vpow2.f32 %v4520_v38  ;;  %v4372_v3 = vsub.f32 %v16598_v16, %v4232_v14  ;;  %v4373_v39 = vsub.f32 %v16599_v28, %v4232_v14  ;;  %v4524_v58 = vmul.f32 1.442695, %v4334_v57  ;;  %v16603_v57 = vld [vmem:[#allocation63_spill] sm:$0xff] }
 0x659   : > { %16597 = vst [vmem:[#allocation59_spill] sm:$0xff] %v14156_v7  ;;  %v14160_v55 = vpop.eup %11152  ;;  %11168 = vpow2.f32 %v4522_v54  ;;  %v4526_v18 = vmul.f32 1.442695, %v4335_v2  ;;  %v4740_v29 = vadd.f32 %v14151_v52, %v14148_v1  ;;  %4696 = vadd.xlane.f32.xlu0 %v4695_v60  ;;  %v4235_v27 = vpop.xlane.xlu0 %4234  ;;  %v16605_v2 = vld [vmem:[#allocation65_spill] sm:$0xff]  ;;  %v16606_v1 = vld [vmem:[#allocation66_spill] sm:$0xff] }
 0x65a   : > { %16600 = vst [vmem:[#allocation61_spill] sm:$0xff] %v14160_v55  ;;  %v14164_v56 = vpop.eup %11154  ;;  %v4600_v11 = vmul.f32 1.442695, %v4372_v3  ;;  %11170 = vpow2.f32 %v4524_v58  ;;  %v4602_v16 = vmul.f32 1.442695, %v4373_v39  ;;  %v4374_v14 = vsub.f32 %v16603_v57, %v4235_v27  ;;  %v16608_v58 = vld [vmem:[#allocation64_spill] sm:$0xff] }
 0x65b   : > { %16601 = vst [vmem:[#allocation60_spill] sm:$0xff] %v14164_v56  ;;  %v14166_v38 = vpop.eup %11156  ;;  %11172 = vpow2.f32 %v4526_v18  ;;  %4741 = vadd.xlane.f32.xlu1 %v4740_v29  ;;  %v4178_v28 = vpop.xlane.xlu1 %4177  ;;  %v4743_v54 = vadd.f32 %v14160_v55, %v14156_v7  ;;  %v4375_v39 = vsub.f32 %v16608_v58, %v4235_v27  ;;  %v16609_v55 = vld [vmem:[#allocation67_spill] sm:$0xff]  ;;  %v16612_v58 = vld [vmem:[#allocation68_spill] sm:$0xff] }
 0x65c   : > { %16602 = vst [vmem:[#allocation62_spill] sm:$0xff] %v14166_v38  ;;  %v14171_v50 = vpop.eup %11158  ;;  %11174 = vpow2.f32 %v4596_v25  ;;  %v4336_v60 = vsub.f32 %v16605_v2, %v4178_v28  ;;  %v4337_v52 = vsub.f32 %v16606_v1, %v4178_v28  ;;  %v4698_v18 = vadd.f32 %v14166_v38, %v14164_v56  ;;  %v16610_v1 = vld [vmem:[#allocation69_spill] sm:$0xff]  ;;  %v16613_v56 = vld [vmem:[#allocation70_spill] sm:$0xff] }
 0x65d   : > { %16604 = vst [vmem:[#allocation63_spill] sm:$0xff] %v14171_v50  ;;  %v14175_v3 = vpop.eup %11160  ;;  %11176 = vpow2.f32 %v4598_v9  ;;  %4744 = vadd.xlane.f32.xlu0 %v4743_v54  ;;  %v4181_v29 = vpop.xlane.xlu0 %4180  ;;  %v4604_v25 = vmul.f32 1.442695, %v4374_v14 }
 0x65e   : > { %16607 = vst [vmem:[#allocation65_spill] sm:$0xff] %v14175_v3  ;;  %11178 = vpow2.f32 %v4600_v11  ;;  %v4528_v57 = vmul.f32 1.442695, %v4336_v60  ;;  %v4530_v7 = vmul.f32 1.442695, %v4337_v52  ;;  %v4338_v31 = vsub.f32 %v16609_v55, %v4181_v29  ;;  %v14184_v27 = vpop.eup %11162 }
 0x65f   : > { %11180 = vpow2.f32 %v4602_v16  ;;  %4699 = vadd.xlane.f32.xlu1 %v4698_v18  ;;  %v4238_v2 = vpop.xlane.xlu1 %4237  ;;  %v4339_v28 = vsub.f32 %v16610_v1, %v4181_v29  ;;  %v4701_v9 = vadd.f32 %v14175_v3, %v14171_v50  ;;  %16611 = vst [vmem:[#allocation66_spill] sm:$0xff] %v14184_v27  ;;  %v14188_v52 = vpop.eup %11164  ;;  %v4606_v55 = vmul.f32 1.442695, %v4375_v39 }
 0x660   : > { %11182 = vpow2.f32 %v4528_v57  ;;  %v4376_v54 = vsub.f32 %v16612_v58, %v4238_v2  ;;  %v4377_v11 = vsub.f32 %v16613_v56, %v4238_v2  ;;  %v4532_v60 = vmul.f32 1.442695, %v4338_v31  ;;  %16614 = vst [vmem:[#allocation64_spill] sm:$0xff] %v14188_v52  ;;  %v16617_v57 = vld [vmem:[#allocation71_spill] sm:$0xff]  ;;  %v16619_v31 = vld [vmem:[#allocation73_spill] sm:$0xff] }
 0x661   : > { %11184 = vpow2.f32 %v4530_v7  ;;  %v4534_v16 = vmul.f32 1.442695, %v4339_v28  ;;  %4702 = vadd.xlane.f32.xlu0 %v4701_v9  ;;  %v4241_v14 = vpop.xlane.xlu0 %4240  ;;  %v16620_v7 = vld [vmem:[#allocation74_spill] sm:$0xff]  ;;  %v16622_v9 = vld [vmem:[#allocation72_spill] sm:$0xff] }
 0x662   : > { %v14190_v18 = vpop.eup %11166  ;;  %v4608_v29 = vmul.f32 1.442695, %v4376_v54  ;;  %11186 = vpow2.f32 %v4532_v60  ;;  %v4610_v50 = vmul.f32 1.442695, %v4377_v11  ;;  %v4378_v58 = vsub.f32 %v16617_v57, %v4241_v14 }
 0x663   : > { %16615 = vst [vmem:[#allocation67_spill] sm:$0xff] %v14190_v18  ;;  %v14192_v1 = vpop.eup %11168  ;;  %11188 = vpow2.f32 %v4534_v16  ;;  %v4184_v3 = vpop.xlane.xlu1 %4183  ;;  %v4379_v54 = vsub.f32 %v16622_v9, %v4241_v14 }
 0x664   : > { %16616 = vst [vmem:[#allocation69_spill] sm:$0xff] %v14192_v1  ;;  %v14195_v56 = vpop.eup %11170  ;;  %11190 = vpow2.f32 %v4604_v25  ;;  %v4340_v39 = vsub.f32 %v16619_v31, %v4184_v3  ;;  %v4341_v2 = vsub.f32 %v16620_v7, %v4184_v3  ;;  %v4746_v60 = vadd.f32 %v14192_v1, %v14190_v18  ;;  %v16628_v18 = vld [vmem:[#allocation76_spill] sm:$0xff] }
 0x665   : > { %16618 = vst [vmem:[#allocation68_spill] sm:$0xff] %v14195_v56  ;;  %v14199_v28 = vpop.eup %11172  ;;  %11192 = vpow2.f32 %v4606_v55  ;;  %v4187_v11 = vpop.xlane.xlu0 %4186  ;;  %v4612_v3 = vmul.f32 1.442695, %v4378_v58  ;;  %v16626_v55 = vld [vmem:[#allocation77_spill] sm:$0xff]  ;;  %v4614_v40 = vmul.f32 1.442695, %v4379_v54  ;;  %v4800_v58 = vadd.f32 %v14188_v52, %v14184_v27 }
 0x666   : > { %16621 = vst [vmem:[#allocation70_spill] sm:$0xff] %v14199_v28  ;;  %v14204_v16 = vpop.eup %11174  ;;  %11194 = vpow2.f32 %v4608_v29  ;;  %v4536_v57 = vmul.f32 1.442695, %v4340_v39  ;;  %v4538_v38 = vmul.f32 1.442695, %v4341_v2  ;;  %v4342_v25 = vsub.f32 %v16624_v23, %v4187_v11  ;;  %4747 = vadd.xlane.f32.xlu1 %v4746_v60  ;;  %v16629_v39 = vld [vmem:[#allocation78_spill] sm:$0xff] }
 0x667   : > { %16623 = vst [vmem:[#allocation71_spill] sm:$0xff] %v14204_v16  ;;  %v14207_v45 = vpop.eup %11176  ;;  %11196 = vpow2.f32 %v4610_v50  ;;  %v4244_v31 = vpop.xlane.xlu1 %4243  ;;  %v4343_v7 = vsub.f32 %v16626_v55, %v4187_v11  ;;  %v4749_v14 = vadd.f32 %v14199_v28, %v14195_v56  ;;  %v16636_v52 = vld [vmem:[#allocation82_spill] sm:$0xff] }
 0x668   : > { %16625 = vst [vmem:[#allocation73_spill] sm:$0xff] %v14207_v45  ;;  %v14212_v9 = vpop.eup %11178  ;;  %11198 = vpow2.f32 %v4536_v57  ;;  %v4380_v29 = vsub.f32 %v16628_v18, %v4244_v31  ;;  %v4381_v2 = vsub.f32 %v16629_v39, %v4244_v31  ;;  %v4540_v1 = vmul.f32 1.442695, %v4342_v25  ;;  %v16633_v25 = vld [vmem:[#allocation79_spill] sm:$0xff] }
 0x669   : > { %16627 = vst [vmem:[#allocation74_spill] sm:$0xff] %v14212_v9  ;;  %v14216_v23 = vpop.eup %11180  ;;  %11200 = vpow2.f32 %v4538_v38  ;;  %v4542_v50 = vmul.f32 1.442695, %v4343_v7  ;;  %4750 = vadd.xlane.f32.xlu0 %v4749_v14  ;;  %v4247_v60 = vpop.xlane.xlu0 %4246  ;;  %v4803_v38 = vadd.f32 %v14207_v45, %v14204_v16  ;;  %v16635_v7 = vld [vmem:[#allocation81_spill] sm:$0xff] }
 0x66a   : > { %16630 = vst [vmem:[#allocation72_spill] sm:$0xff] %v14216_v23  ;;  %v14220_v11 = vpop.eup %11182  ;;  %v4616_v55 = vmul.f32 1.442695, %v4380_v29  ;;  %11202 = vpow2.f32 %v4540_v1  ;;  %v4618_v18 = vmul.f32 1.442695, %v4381_v2  ;;  %4801 = vadd.xlane.f32.xlu1 %v4800_v58  ;;  %v4382_v31 = vsub.f32 %v16633_v25, %v4247_v60  ;;  %v16638_v1 = vld [vmem:[#allocation80_spill] sm:$0xff] }
 0x66b   : > { %16631 = vst [vmem:[#allocation75_spill] sm:$0xff] %v14220_v11  ;;  %v14222_v57 = vpop.eup %11184  ;;  %11204 = vpow2.f32 %v4542_v50  ;;  %v4190_v39 = vpop.xlane.xlu1 %4189  ;;  %v4383_v2 = vsub.f32 %v16638_v1, %v4247_v60 }
 0x66c   : > { %16632 = vst [vmem:[#allocation77_spill] sm:$0xff] %v14222_v57  ;;  %v14227_v54 = vpop.eup %11186  ;;  %11206 = vpow2.f32 %v4612_v3  ;;  %v4344_v14 = vsub.f32 %v16635_v7, %v4190_v39  ;;  %v4345_v27 = vsub.f32 %v16636_v52, %v4190_v39  ;;  %v4752_v50 = vadd.f32 %v14222_v57, %v14220_v11  ;;  %v16640_v3 = vld [vmem:[#allocation83_spill] sm:$0xff]  ;;  %v16642_v39 = vld [vmem:[#allocation85_spill] sm:$0xff]  ;;  %v16644_v57 = vld [vmem:[#allocation84_spill] sm:$0xff] }
 0x66d   : > { %16634 = vst [vmem:[#allocation76_spill] sm:$0xff] %v14227_v54  ;;  %v14231_v29 = vpop.eup %11188  ;;  %11208 = vpow2.f32 %v4614_v40  ;;  %4804 = vadd.xlane.f32.xlu0 %v4803_v38  ;;  %v4193_v58 = vpop.xlane.xlu0 %4192  ;;  %v4620_v52 = vmul.f32 1.442695, %v4382_v31  ;;  %v4622_v28 = vmul.f32 1.442695, %v4383_v2  ;;  %v4806_v31 = vadd.f32 %v14216_v23, %v14212_v9  ;;  %v16652_v9 = vld [vmem:[#allocation90_spill] sm:$0xff] }
 0x66e   : > { %16637 = vst [vmem:[#allocation78_spill] sm:$0xff] %v14231_v29  ;;  %v14236_v25 = vpop.eup %11190  ;;  %11210 = vpow2.f32 %v4616_v55  ;;  %v4544_v45 = vmul.f32 1.442695, %v4344_v14  ;;  %v4546_v16 = vmul.f32 1.442695, %v4345_v27  ;;  %v4346_v56 = vsub.f32 %v16640_v3, %v4193_v58  ;;  %4753 = vadd.xlane.f32.xlu1 %v4752_v50  ;;  %v16645_v14 = vld [vmem:[#allocation86_spill] sm:$0xff] }
 0x66f   : > { %16639 = vst [vmem:[#allocation79_spill] sm:$0xff] %v14236_v25  ;;  %v14239_v7 = vpop.eup %11192  ;;  %11212 = vpow2.f32 %v4618_v18  ;;  %v4250_v40 = vpop.xlane.xlu1 %4249  ;;  %v4347_v60 = vsub.f32 %v16642_v39, %v4193_v58  ;;  %v4755_v1 = vadd.f32 %v14231_v29, %v14227_v54 }
 0x670   : > { %16641 = vst [vmem:[#allocation81_spill] sm:$0xff] %v14239_v7  ;;  %v14244_v38 = vpop.eup %11194  ;;  %11214 = vpow2.f32 %v4544_v45  ;;  %v4384_v55 = vsub.f32 %v16644_v57, %v4250_v40  ;;  %v4385_v27 = vsub.f32 %v16645_v14, %v4250_v40  ;;  %v4548_v11 = vmul.f32 1.442695, %v4346_v56  ;;  %v16649_v56 = vld [vmem:[#allocation87_spill] sm:$0xff] }
 0x671   : > { %16643 = vst [vmem:[#allocation82_spill] sm:$0xff] %v14244_v38  ;;  %v14248_v3 = vpop.eup %11196  ;;  %11216 = vpow2.f32 %v4546_v16  ;;  %v4550_v18 = vmul.f32 1.442695, %v4347_v60  ;;  %4756 = vadd.xlane.f32.xlu0 %v4755_v1  ;;  %v4253_v50 = vpop.xlane.xlu0 %4252  ;;  %v4809_v16 = vadd.f32 %v14239_v7, %v14236_v25  ;;  %v16651_v60 = vld [vmem:[#allocation89_spill] sm:$0xff] }
 0x672   : > { %16646 = vst [vmem:[#allocation80_spill] sm:$0xff] %v14248_v3  ;;  %v14252_v58 = vpop.eup %11198  ;;  %v4624_v39 = vmul.f32 1.442695, %v4384_v55  ;;  %11218 = vpow2.f32 %v4548_v11  ;;  %v4626_v57 = vmul.f32 1.442695, %v4385_v27  ;;  %4807 = vadd.xlane.f32.xlu1 %v4806_v31  ;;  %v4386_v40 = vsub.f32 %v16649_v56, %v4253_v50  ;;  %v16654_v11 = vld [vmem:[#allocation88_spill] sm:$0xff] }
 0x673   : > { %16647 = vst [vmem:[#allocation83_spill] sm:$0xff] %v14252_v58  ;;  %v14254_v45 = vpop.eup %11200  ;;  %11220 = vpow2.f32 %v4550_v18  ;;  %v4196_v14 = vpop.xlane.xlu1 %4195  ;;  %v4387_v27 = vsub.f32 %v16654_v11, %v4253_v50 }
 0x674   : > { %16648 = vst [vmem:[#allocation85_spill] sm:$0xff] %v14254_v45  ;;  %v14259_v2 = vpop.eup %11202  ;;  %11222 = vpow2.f32 %v4620_v52  ;;  %v4348_v1 = vsub.f32 %v16651_v60, %v4196_v14  ;;  %v4349_v23 = vsub.f32 %v16652_v9, %v4196_v14  ;;  %v4758_v18 = vadd.f32 %v14254_v45, %v14252_v58  ;;  %v16656_v52 = vld [vmem:[#allocation91_spill] sm:$0xff]  ;;  %v16658_v14 = vld [vmem:[#allocation93_spill] sm:$0xff]  ;;  %v16660_v58 = vld [vmem:[#allocation92_spill] sm:$0xff] }
 0x675   : > { %16650 = vst [vmem:[#allocation84_spill] sm:$0xff] %v14259_v2  ;;  %v14263_v55 = vpop.eup %11204  ;;  %11224 = vpow2.f32 %v4622_v28  ;;  %4810 = vadd.xlane.f32.xlu0 %v4809_v16  ;;  %v4199_v31 = vpop.xlane.xlu0 %4198  ;;  %v4628_v9 = vmul.f32 1.442695, %v4386_v40  ;;  %v4630_v54 = vmul.f32 1.442695, %v4387_v27  ;;  %v4812_v40 = vadd.f32 %v14248_v3, %v14244_v38  ;;  %v16668_v38 = vld [vmem:[#allocation98_spill] sm:$0xff] }
 0x676   : > { %16653 = vst [vmem:[#allocation86_spill] sm:$0xff] %v14263_v55  ;;  %v14268_v56 = vpop.eup %11206  ;;  %11226 = vpow2.f32 %v4624_v39  ;;  %v4552_v25 = vmul.f32 1.442695, %v4348_v1  ;;  %v4554_v7 = vmul.f32 1.442695, %v4349_v23  ;;  %v4350_v29 = vsub.f32 %v16656_v52, %v4199_v31  ;;  %4759 = vadd.xlane.f32.xlu1 %v4758_v18  ;;  %v16661_v1 = vld [vmem:[#allocation94_spill] sm:$0xff] }
 0x677   : > { %16655 = vst [vmem:[#allocation87_spill] sm:$0xff] %v14268_v56  ;;  %v14271_v60 = vpop.eup %11208  ;;  %11228 = vpow2.f32 %v4626_v57  ;;  %v4256_v28 = vpop.xlane.xlu1 %4255  ;;  %v4351_v50 = vsub.f32 %v16658_v14, %v4199_v31  ;;  %v4761_v11 = vadd.f32 %v14263_v55, %v14259_v2 }
 0x678   : > { %16657 = vst [vmem:[#allocation89_spill] sm:$0xff] %v14271_v60  ;;  %v14276_v16 = vpop.eup %11210  ;;  %11230 = vpow2.f32 %v4552_v25  ;;  %v4388_v39 = vsub.f32 %v16660_v58, %v4256_v28  ;;  %v4389_v23 = vsub.f32 %v16661_v1, %v4256_v28  ;;  %v4556_v45 = vmul.f32 1.442695, %v4350_v29  ;;  %v16666_v28 = vld [vmem:[#allocation95_spill] sm:$0xff] }
 0x679   : > { %16659 = vst [vmem:[#allocation90_spill] sm:$0xff] %v14276_v16  ;;  %v14280_v52 = vpop.eup %11212  ;;  %11232 = vpow2.f32 %v4554_v7  ;;  %v4558_v57 = vmul.f32 1.442695, %v4351_v50  ;;  %4762 = vadd.xlane.f32.xlu0 %v4761_v11  ;;  %v4259_v18 = vpop.xlane.xlu0 %4258  ;;  %v4815_v27 = vadd.f32 %v14271_v60, %v14268_v56  ;;  %v16667_v11 = vld [vmem:[#allocation97_spill] sm:$0xff] }
 0x67a   : > { %16662 = vst [vmem:[#allocation88_spill] sm:$0xff] %v14280_v52  ;;  %v14284_v31 = vpop.eup %11214  ;;  %v4632_v14 = vmul.f32 1.442695, %v4388_v39  ;;  %11234 = vpow2.f32 %v4556_v45  ;;  %v4634_v58 = vmul.f32 1.442695, %v4389_v23  ;;  %4813 = vadd.xlane.f32.xlu1 %v4812_v40  ;;  %v4390_v50 = vsub.f32 %v16666_v28, %v4259_v18  ;;  %v16670_v45 = vld [vmem:[#allocation96_spill] sm:$0xff] }
 0x67b   : > { %16663 = vst [vmem:[#allocation91_spill] sm:$0xff] %v14284_v31  ;;  %v14286_v25 = vpop.eup %11216  ;;  %11236 = vpow2.f32 %v4558_v57  ;;  %v4202_v29 = vpop.xlane.xlu1 %4201  ;;  %v4391_v23 = vsub.f32 %v16670_v45, %v4259_v18  ;;  %v16672_v28 = vld [vmem:[#allocation99_spill] sm:$0xff] }
 0x67c   : > { %16664 = vst [vmem:[#allocation93_spill] sm:$0xff] %v14286_v25  ;;  %v14290_v7 = vpop.eup %11218  ;;  %11238 = vpow2.f32 %v4628_v9  ;;  %v4352_v1 = vsub.f32 %v16667_v11, %v4202_v29  ;;  %v4353_v3 = vsub.f32 %v16668_v38, %v4202_v29  ;;  %v4764_v57 = vadd.f32 %v14286_v25, %v14284_v31  ;;  %v16676_v31 = vld [vmem:[#allocation100_spill] sm:$0xff] }
 0x67d   : > { %16665 = vst [vmem:[#allocation92_spill] sm:$0xff] %v14290_v7  ;;  %v14295_v39 = vpop.eup %11220  ;;  %11240 = vpow2.f32 %v4630_v54  ;;  %4816 = vadd.xlane.f32.xlu0 %v4815_v27  ;;  %v4205_v40 = vpop.xlane.xlu0 %4204  ;;  %v16674_v54 = vld [vmem:[#allocation101_spill] sm:$0xff]  ;;  %v4636_v27 = vmul.f32 1.442695, %v4390_v50 }
 0x67e   : > { %16669 = vst [vmem:[#allocation94_spill] sm:$0xff] %v14295_v39  ;;  %v14300_v56 = vpop.eup %11222  ;;  %11242 = vpow2.f32 %v4632_v14  ;;  %v4560_v9 = vmul.f32 1.442695, %v4352_v1  ;;  %v4562_v60 = vmul.f32 1.442695, %v4353_v3  ;;  %v4354_v2 = vsub.f32 %v16672_v28, %v4205_v40  ;;  %4765 = vadd.xlane.f32.xlu1 %v4764_v57 }
 0x67f   : > { %16671 = vst [vmem:[#allocation95_spill] sm:$0xff] %v14300_v56  ;;  %v14303_v11 = vpop.eup %11224  ;;  %11244 = vpow2.f32 %v4634_v58  ;;  %v4262_v38 = vpop.xlane.xlu1 %4261  ;;  %v4355_v29 = vsub.f32 %v16674_v54, %v4205_v40  ;;  %v4767_v18 = vadd.f32 %v14295_v39, %v14290_v7  ;;  %v4638_v28 = vmul.f32 1.442695, %v4391_v23 }
 0x680   : > { %16673 = vst [vmem:[#allocation97_spill] sm:$0xff] %v14303_v11  ;;  %v14308_v45 = vpop.eup %11226  ;;  %11246 = vpow2.f32 %v4560_v9  ;;  %v4392_v14 = vsub.f32 %v16676_v31, %v4262_v38  ;;  %v4564_v1 = vmul.f32 1.442695, %v4354_v2  ;;  %v4818_v58 = vadd.f32 %v14280_v52, %v14276_v16  ;;  %v16682_v16 = vld [vmem:[#allocation106_spill] sm:$0xff] }
 0x681   : > { %16675 = vst [vmem:[#allocation98_spill] sm:$0xff] %v14308_v45  ;;  %v14311_v3 = vpop.eup %11228  ;;  %11248 = vpow2.f32 %v4562_v60  ;;  %v4566_v25 = vmul.f32 1.442695, %v4355_v29  ;;  %4768 = vadd.xlane.f32.xlu0 %v4767_v18  ;;  %v4265_v57 = vpop.xlane.xlu0 %4264  ;;  %v4821_v2 = vadd.f32 %v14303_v11, %v14300_v56  ;;  %v16680_v60 = vld [vmem:[#allocation102_spill] sm:$0xff]  ;;  %v16681_v29 = vld [vmem:[#allocation105_spill] sm:$0xff]  ;;  %v16685_v11 = vld [vmem:[#allocation104_spill] sm:$0xff] }
 0x682   : > { %v14315_v40 = vpop.eup %11230  ;;  %11250 = vpow2.f32 %v4564_v1  ;;  %v4640_v50 = vmul.f32 1.442695, %v4392_v14  ;;  %4819 = vadd.xlane.f32.xlu1 %v4818_v58  ;;  %v4393_v9 = vsub.f32 %v16680_v60, %v4262_v38  ;;  %v16683_v1 = vld [vmem:[#allocation103_spill] sm:$0xff] }
 0x683   : > { %16677 = vst [vmem:[#allocation96_spill] sm:$0xff] %v14315_v40  ;;  %v14317_v54 = vpop.eup %11232  ;;  %11252 = vpow2.f32 %v4566_v25  ;;  %v4208_v31 = vpop.xlane.xlu1 %4207  ;;  %v4394_v14 = vsub.f32 %v16683_v1, %v4265_v57  ;;  %v16686_v60 = vld [vmem:[#allocation107_spill] sm:$0xff] }
 0x684   : > { %16678 = vst [vmem:[#allocation99_spill] sm:$0xff] %v14317_v54  ;;  %v14321_v23 = vpop.eup %11234  ;;  %11254 = vpow2.f32 %v4636_v27  ;;  %v4356_v18 = vsub.f32 %v16681_v29, %v4208_v31  ;;  %v4357_v52 = vsub.f32 %v16682_v16, %v4208_v31  ;;  %v4770_v25 = vadd.f32 %v14317_v54, %v14315_v40  ;;  %v16689_v54 = vld [vmem:[#allocation108_spill] sm:$0xff] }
 0x685   : > { %16679 = vst [vmem:[#allocation101_spill] sm:$0xff] %v14321_v23  ;;  %v14326_v7 = vpop.eup %11236  ;;  %11256 = vpow2.f32 %v4638_v28  ;;  %4822 = vadd.xlane.f32.xlu0 %v4821_v2  ;;  %v4211_v58 = vpop.xlane.xlu0 %4210  ;;  %v4395_v27 = vsub.f32 %v16685_v11, %v4265_v57  ;;  %v16688_v28 = vld [vmem:[#allocation109_spill] sm:$0xff]  ;;  %v4642_v40 = vmul.f32 1.442695, %v4393_v9 }
 0x686   : > { %v14331_v56 = vpop.eup %11238  ;;  %v4568_v39 = vmul.f32 1.442695, %v4356_v18  ;;  %v4570_v38 = vmul.f32 1.442695, %v4357_v52  ;;  %v4358_v29 = vsub.f32 %v16686_v60, %v4211_v58  ;;  %11258 = vpow2.f32 %v4640_v50  ;;  %4771 = vadd.xlane.f32.xlu1 %v4770_v25 }
 0x687   : > { %16684 = vst [vmem:[#allocation100_spill] sm:$0xff] %v14331_v56  ;;  %v14335_v55 = vpop.eup %11240  ;;  %v4268_v16 = vpop.xlane.xlu1 %4267  ;;  %v4359_v31 = vsub.f32 %v16688_v28, %v4211_v58  ;;  %v4773_v1 = vadd.f32 %v14326_v7, %v14321_v23  ;;  %v4644_v18 = vmul.f32 1.442695, %v4394_v14  ;;  %v4824_v50 = vadd.f32 %v14311_v3, %v14308_v45 }
 0x688   : > { %16687 = vst [vmem:[#allocation102_spill] sm:$0xff] %v14335_v55  ;;  %v14340_v2 = vpop.eup %11242  ;;  %11260 = vpow2.f32 %v4568_v39  ;;  %v4396_v11 = vsub.f32 %v16689_v54, %v4268_v16  ;;  %v4572_v57 = vmul.f32 1.442695, %v4358_v29  ;;  %v4646_v28 = vmul.f32 1.442695, %v4395_v27 }
 0x689   : > { %v14343_v52 = vpop.eup %11244  ;;  %11262 = vpow2.f32 %v4570_v38  ;;  %v4574_v60 = vmul.f32 1.442695, %v4359_v31  ;;  %4774 = vadd.xlane.f32.xlu0 %v4773_v1  ;;  %v4271_v25 = vpop.xlane.xlu0 %4270  ;;  %v4827_v9 = vadd.f32 %v14335_v55, %v14331_v56  ;;  %v16691_v38 = vld [vmem:[#allocation110_spill] sm:$0xff]  ;;  %v16692_v1 = vld [vmem:[#allocation113_spill] sm:$0xff] }
 0x68a   : > { %v14347_v58 = vpop.eup %11246  ;;  %11264 = vpow2.f32 %v4572_v57  ;;  %v4648_v39 = vmul.f32 1.442695, %v4396_v11  ;;  %4825 = vadd.xlane.f32.xlu1 %v4824_v50  ;;  %v4397_v29 = vsub.f32 %v16691_v38, %v4268_v16  ;;  %v16693_v57 = vld [vmem:[#allocation111_spill] sm:$0xff] }
 0x68b   : > { %16690 = vst [vmem:[#allocation105_spill] sm:$0xff] %v14347_v58  ;;  %v14349_v23 = vpop.eup %11248  ;;  %11266 = vpow2.f32 %v4574_v60  ;;  %v4214_v54 = vpop.xlane.xlu1 %4213  ;;  %v4398_v11 = vsub.f32 %v16693_v57, %v4271_v25 }
 0x68c   : > { %v14353_v14 = vpop.eup %11250  ;;  %11268 = vpow2.f32 %v4642_v40  ;;  %v4360_v31 = vsub.f32 %v13904_v47, %v4214_v54  ;;  %v4361_v45 = vsub.f32 %v16692_v1, %v4214_v54  ;;  %v4776_v60 = vadd.f32 %v14349_v23, %v14347_v58  ;;  %v16694_v54 = vld [vmem:[#allocation112_spill] sm:$0xff] }
 0x68d   : > { %v14358_v27 = vpop.eup %11252  ;;  %11270 = vpow2.f32 %v4644_v18  ;;  %4828 = vadd.xlane.f32.xlu0 %v4827_v9  ;;  %v4217_v50 = vpop.xlane.xlu0 %4216  ;;  %v4399_v38 = vsub.f32 %v16694_v54, %v4271_v25  ;;  %v4650_v9 = vmul.f32 1.442695, %v4397_v29 }
 0x68e   : > { %v14363_v56 = vpop.eup %11254  ;;  %11272 = vpow2.f32 %v4646_v28  ;;  %v4576_v40 = vmul.f32 1.442695, %v4360_v31  ;;  %v4578_v55 = vmul.f32 1.442695, %v4361_v45  ;;  %v4362_v16 = vsub.f32 %v13910_v24, %v4217_v50  ;;  %4777 = vadd.xlane.f32.xlu1 %v4776_v60 }
 0x68f   : > { %v14366_v47 = vpop.eup %11256  ;;  %11274 = vpow2.f32 %v4648_v39  ;;  %v4363_v18 = vsub.f32 %v13914_v44, %v4217_v50  ;;  %v4779_v1 = vadd.f32 %v14358_v27, %v14353_v14  ;;  %v4652_v28 = vmul.f32 1.442695, %v4398_v11 }
 0x690   : > { %11276 = vpow2.f32 %v4576_v40  ;;  %v4580_v57 = vmul.f32 1.442695, %v4362_v16  ;;  %v14372_v58 = vpop.eup %11258  ;;  %v4830_v24 = vadd.f32 %v14343_v52, %v14340_v2  ;;  %v4654_v44 = vmul.f32 1.442695, %v4399_v38 }
 0x691   : > { %11278 = vpow2.f32 %v4578_v55  ;;  %v4582_v45 = vmul.f32 1.442695, %v4363_v18  ;;  %4780 = vadd.xlane.f32.xlu0 %v4779_v1  ;;  %v4833_v31 = vadd.f32 %v14366_v47, %v14363_v56 }
 0x692   : > { %v14376_v39 = vpop.eup %11260  ;;  %11280 = vpow2.f32 %v4580_v57  ;;  %4831 = vadd.xlane.f32.xlu1 %v4830_v24 }
 0x693   : > { %v14378_v25 = vpop.eup %11262  ;;  %11282 = vpow2.f32 %v4582_v45  ;;  %v4220_v29 = vpop.xlane.xlu1 %4219 }
 0x694   : > { %v14382_v60 = vpop.eup %11264  ;;  %11284 = vpow2.f32 %v4650_v9  ;;  %v4364_v55 = vsub.f32 %v13922_v4, %v4220_v29  ;;  %v4365_v11 = vsub.f32 %v13924_v0, %v4220_v29  ;;  %v4782_v50 = vadd.f32 %v14378_v25, %v14376_v39 }
 0x695   : > { %v14388_v40 = vpop.eup %11266  ;;  %11286 = vpow2.f32 %v4652_v28  ;;  %4834 = vadd.xlane.f32.xlu0 %v4833_v31  ;;  %v4223_v16 = vpop.xlane.xlu0 %4222 }
 0x696   : > { %v14390_v54 = vpop.eup %11268  ;;  %v4584_v38 = vmul.f32 1.442695, %v4364_v55  ;;  %v4586_v18 = vmul.f32 1.442695, %v4365_v11  ;;  %v4366_v1 = vsub.f32 %v13928_v42, %v4223_v16  ;;  %v4367_v9 = vsub.f32 %v13932_v49, %v4223_v16  ;;  %4783 = vadd.xlane.f32.xlu1 %v4782_v50 }
 0x697   : > { %v14394_v57 = vpop.eup %11270  ;;  %11288 = vpow2.f32 %v4654_v44  ;;  %v4785_v4 = vadd.f32 %v14388_v40, %v14382_v60  ;;  %v4836_v42 = vadd.f32 %v14390_v54, %v14372_v58  ;;  %v4658_v44 = vpop.xlane.xlu1 %4657 }
 0x698   : > { %16695 = vst [vmem:[#allocation106_spill] sm:$0xff] %v14394_v57  ;;  %v14398_v0 = vpop.eup %11272  ;;  %11290 = vpow2.f32 %v4584_v38  ;;  %v4588_v28 = vmul.f32 1.442695, %v4366_v1  ;;  %v4590_v45 = vmul.f32 1.442695, %v4367_v9 }
 0x699   : > { %16696 = vst [vmem:[#allocation103_spill] sm:$0xff] %v14398_v0  ;;  %v14400_v24 = vpop.eup %11274  ;;  %11292 = vpow2.f32 %v4586_v18  ;;  %4786 = vadd.xlane.f32.xlu0 %v4785_v4  ;;  %v4839_v31 = vadd.f32 %v14398_v0, %v14394_v57  ;;  %v4661_v50 = vpop.xlane.xlu0 %4660 }
 0x69a   : > { %v14404_v49 = vpop.eup %11276  ;;  %11294 = vpow2.f32 %v4588_v28  ;;  %4837 = vadd.xlane.f32.xlu1 %v4836_v42 }
 0x69b   : > { %16697 = vst [vmem:[#allocation104_spill] sm:$0xff] %v14404_v49  ;;  %v14406_v29 = vpop.eup %11278  ;;  %11296 = vpow2.f32 %v4590_v45  ;;  %v4706_v1 = vpop.xlane.xlu1 %4705 }
 0x69c   : > { %16698 = vst [vmem:[#allocation107_spill] sm:$0xff] %v14406_v29  ;;  %v14410_v55 = vpop.eup %11280  ;;  %v4788_v11 = vadd.f32 %v14406_v29, %v14404_v49  ;;  %11298 = vrcp.f32 %v4658_v44 }
 0x69d   : > { %16699 = vst [vmem:[#allocation109_spill] sm:$0xff] %v14410_v55  ;;  %v14414_v16 = vpop.eup %11282  ;;  %4840 = vadd.xlane.f32.xlu0 %v4839_v31  ;;  %11300 = vrcp.f32 %v4661_v50 }
 0x69e   : > { %16700 = vst [vmem:[#allocation108_spill] sm:$0xff] %v14414_v16  ;;  %v14416_v38 = vpop.eup %11284  ;;  %v4791_v18 = vadd.f32 %v14414_v16, %v14410_v55  ;;  %4789 = vadd.xlane.f32.xlu1 %v4788_v11  ;;  %11302 = vrcp.f32 %v4706_v1  ;;  %v16706_v16 = vld [vmem:[#allocation114_spill] sm:$0xff] }
 0x69f   : > { %v14420_v9 = vpop.eup %11286  ;;  %v4709_v45 = vpop.xlane.xlu0 %4708 }
 0x6a0   : > { %16701 = vst [vmem:[#allocation110_spill] sm:$0xff] %v14420_v9  ;;  %11304 = vrcp.f32 %v4709_v45  ;;  %v4842_v45 = vadd.f32 %v14416_v38, %v14400_v24 }
 0x6a1   : > { %v14422_v4 = vpop.eup %11288  ;;  %4792 = vadd.xlane.f32.xlu0 %v4791_v18 }
 0x6a2   : > { %v14424_v28 = vpop.eup %11290 }
 0x6a3   : > { %16702 = vst [vmem:[#allocation113_spill] sm:$0xff] %v14424_v28  ;;  %v14426_v42 = vpop.eup %11292 }
 0x6a4   : > { %16703 = vst [vmem:[#allocation111_spill] sm:$0xff] %v14426_v42  ;;  %v14428_v44 = vpop.eup %11294  ;;  %v4794_v31 = vadd.f32 %v14426_v42, %v14424_v28  ;;  %v16707_v28 = vld [vmem:[#allocation115_spill] sm:$0xff] }
 0x6a5   : > { %16704 = vst [vmem:[#allocation112_spill] sm:$0xff] %v14428_v44  ;;  %v14432_v50 = vpop.eup %11296 }
 0x6a6   : > { %16705 = vst [vmem:[#allocation121_spill] sm:$0xff] %v14432_v50  ;;  %v11299_v55 = vpop.eup %11298  ;;  %4795 = vadd.xlane.f32.xlu1 %v4794_v31  ;;  %v4797_v11 = vadd.f32 %v14432_v50, %v14428_v44  ;;  %v4845_v31 = vadd.f32 %v14422_v4, %v14420_v9 }
 0x6a7   : > { %v11301_v1 = vpop.eup %11300  ;;  %v4912_v18 = vmul.f32 %v11299_v55, %v13936_v13  ;;  %v4913_v49 = vmul.f32 %v11299_v55, %v16706_v16 }
 0x6a8   : > { %4798 = vadd.xlane.f32.xlu0 %v4797_v11  ;;  %v4914_v29 = vmul.f32 %v11301_v1, %v13940_v48  ;;  %v4915_v42 = vmul.f32 %v11301_v1, %v16707_v28  ;;  %v11303_v57 = vpop.eup %11302  ;;  %v4664_v16 = vpop.xlane.xlu1 %4663  ;;  %v1166_v48 = vld [vmem:[#allocation3 + $0x40] sm:$0xff]  ;;  %v1169_v28 = vld [vmem:[#allocation3 + $0x58] sm:$0xff] }
 0x6a9   : > { %v10298_v44 = vpack.c.bf16 %v4913_v49, %v4912_v18  ;;  %v4944_v55 = vmul.f32 %v11303_v57, %v13948_v6  ;;  %v4945_v11 = vmul.f32 %v11303_v57, %v13952_v46  ;;  %11306 = vrcp.f32 %v4664_v16 }
 0x6aa   : > { %4843 = vadd.xlane.f32.xlu1 %v4842_v45  ;;  %v5041_v50 = vpack.c.bf16 %v4915_v42, %v4913_v49  ;;  %v10299_v0 = vpack.c.bf16 %v4915_v42, %v4914_v29  ;;  %v5040_v13 = vpack.c.bf16 %v4914_v29, %v4912_v18  ;;  %v11305_v1 = vpop.eup %11304  ;;  %v4667_v9 = vpop.xlane.xlu0 %4666  ;;  %v1173_v18 = vld [vmem:[#allocation3 + $0x78] sm:$0xff] }
 0x6ab   : > { %5424 = vst [vmem:[%s12329_s26] sm:$0xff] %v10298_v44  ;;  %v10314_v49 = vpack.c.bf16 %v4945_v11, %v4944_v55  ;;  %11308 = vrcp.f32 %v4667_v9  ;;  %v4946_v29 = vmul.f32 %v11305_v1, %v13960_v5  ;;  %v4947_v6 = vmul.f32 %v11305_v1, %v13962_v20  ;;  %v1168_v9 = vld [vmem:[#allocation3 + $0x50] sm:$0xff] }
 0x6ac   : > { %4846 = vadd.xlane.f32.xlu0 %v4845_v31  ;;  %5425 = vst [vmem:[%s12329_s26 + $0x8] sm:$0xff] %v10299_v0  ;;  %5520 = vmatprep.mubr.bf16.mxu1 %v5041_v50  ;;  %v4712_v42 = vpop.xlane.xlu1 %4711  ;;  %v1170_v50 = vld [vmem:[#allocation3 + $0x60] sm:$0xff] }
 0x6ad   : > { %5521 = vmatmul.mubr.bf16.vlgmr.msra.gmra.mrb[68].mxu1 %v5040_v13  ;;  %5440 = vst [vmem:[%s12329_s26 + $0x80] sm:$0xff] %v10314_v49  ;;  %11310 = vrcp.f32 %v4712_v42  ;;  %v5057_v46 = vpack.c.bf16 %v4947_v6, %v4945_v11  ;;  %v10315_v57 = vpack.c.bf16 %v4947_v6, %v4946_v29  ;;  %v5056_v0 = vpack.c.bf16 %v4946_v29, %v4944_v55  ;;  %v16708_v55 = vld [vmem:[#allocation116_spill] sm:$0xff]  ;;  %v16709_v6 = vld [vmem:[#allocation118_spill] sm:$0xff] }
 0x6ae   : > { %5683 = vmatpush1.bf16.xpose.msra.mxu1 %v1166_v48  ;;  %v4715_v44 = vpop.xlane.xlu0 %4714  ;;  %v1172_v48 = vld [vmem:[#allocation3 + $0x70] sm:$0xff] }
 0x6af   : > { %5684 = vmatprep.subr.bf16.mxu1 %v1169_v28  ;;  %11312 = vrcp.f32 %v4715_v44  ;;  %5441 = vst [vmem:[%s12329_s26 + $0x88] sm:$0xff] %v10315_v57  ;;  %5617 = vmatprep.mubr.bf16.mxu0 %v5057_v46  ;;  %v16710_v46 = vld [vmem:[#allocation117_spill] sm:$0xff] }
 0x6b0   : > { %5618 = vmatmul.mubr.bf16.vlgmr.msra.gmra.mrb[76].mxu0 %v5056_v0  ;;  %v16712_v0 = vld [vmem:[#allocation119_spill] sm:$0xff] }
 0x6b1   : > { %5780 = vmatpush1.bf16.xpose.msra.mxu0 %v1170_v50 }
 0x6b2   : > { %5781 = vmatprep.subr.bf16.mxu0 %v1173_v18 }
 0x6b3   : > { %v11307_v5 = vpop.eup %11306 }
 0x6b4   : > { %v4917_v20 = vmul.f32 %v11307_v5, %v13970_v10  ;;  %v4916_v45 = vmul.f32 %v11307_v5, %v13968_v41 }
 0x6b5   : > { %v11309_v31 = vpop.eup %11308 }
 0x6b6   : > { %5685 = vmatpush1.bf16.xpose.msra.mxu1 %v1168_v9  ;;  %v4919_v13 = vmul.f32 %v11309_v31, %v13976_v43  ;;  %v4918_v16 = vmul.f32 %v11309_v31, %v16708_v55  ;;  %v10300_v11 = vpack.c.bf16 %v4917_v20, %v4916_v45  ;;  %v16711_v43 = vld [vmem:[#allocation120_spill] sm:$0xff] }
 0x6b7   : > { %v11311_v28 = vpop.eup %11310 }
 0x6b8   : > { %v5043_v1 = vpack.c.bf16 %v4919_v13, %v4917_v20  ;;  %v5042_v49 = vpack.c.bf16 %v4918_v16, %v4916_v45  ;;  %v10301_v29 = vpack.c.bf16 %v4919_v13, %v4918_v16  ;;  %5426 = vst [vmem:[%s12329_s26 + $0x10] sm:$0xff] %v10300_v11  ;;  %v4949_v42 = vmul.f32 %v11311_v28, %v16709_v6 }
 0x6b9   : > { %v11313_v10 = vpop.eup %11312  ;;  %v4948_v41 = vmul.f32 %v11311_v28, %v16710_v46  ;;  %5782 = vmatpush1.bf16.xpose.msra.mxu0 %v1172_v48 }
 0x6ba   : > { %5528 = vmatprep.mubr.bf16.mxu1 %v5043_v1  ;;  %5427 = vst [vmem:[%s12329_s26 + $0x18] sm:$0xff] %v10301_v29  ;;  %v4951_v57 = vmul.f32 %v11313_v10, %v16711_v43  ;;  %v4950_v44 = vmul.f32 %v11313_v10, %v16712_v0 }
 0x6bb   : > { %5529 = vmatmul.mubr.bf16.gmra.mrb[72].mxu1 %v5042_v49  ;;  %v10316_v50 = vpack.c.bf16 %v4949_v42, %v4948_v41 }
 0x6bc   : > { %v5059_v18 = vpack.c.bf16 %v4951_v57, %v4949_v42  ;;  %v5058_v9 = vpack.c.bf16 %v4950_v44, %v4948_v41  ;;  %v10317_v5 = vpack.c.bf16 %v4951_v57, %v4950_v44 }
 0x6bd   : > { %5442 = vst [vmem:[%s12329_s26 + $0x90] sm:$0xff] %v10316_v50 }
 0x6be   : > { %5625 = vmatprep.mubr.bf16.mxu0 %v5059_v18  ;;  %5443 = vst [vmem:[%s12329_s26 + $0x98] sm:$0xff] %v10317_v5 }
 0x6bf   : > { %5626 = vmatmul.mubr.bf16.gmra.mrb[80].mxu0 %v5058_v9  ;;  %v4670_v20 = vpop.xlane.xlu1 %4669 }
 0x6c0   : > { %11314 = vrcp.f32 %v4670_v20 }
 0x6c1   : > { %v4673_v45 = vpop.xlane.xlu0 %4672 }
 0x6c2   : > { %11316 = vrcp.f32 %v4673_v45 }
 0x6c3   : > { %v4718_v31 = vpop.xlane.xlu1 %4717 }
 0x6c4   : > { %11318 = vrcp.f32 %v4718_v31 }
 0x6c5   : > { %v4721_v13 = vpop.xlane.xlu0 %4720 }
 0x6c6   : > { %11320 = vrcp.f32 %v4721_v13 }
 0x6c9   : > { %v4676_v55 = vpop.xlane.xlu1 %4675 }
 0x6ca   : > { %11322 = vrcp.f32 %v4676_v55  ;;  %v4679_v16 = vpop.xlane.xlu0 %4678  ;;  %v11315_v11 = vpop.eup %11314 }
 0x6cb   : > { %11324 = vrcp.f32 %v4679_v16  ;;  %v4921_v28 = vmul.f32 %v11315_v11, %v14009_v33  ;;  %v4920_v1 = vmul.f32 %v11315_v11, %v14006_v35 }
 0x6cc   : > { %v11317_v49 = vpop.eup %11316 }
 0x6cd   : > { %v4724_v48 = vpop.xlane.xlu1 %4723  ;;  %v4923_v6 = vmul.f32 %v11317_v49, %v14016_v36  ;;  %v4922_v42 = vmul.f32 %v11317_v49, %v14012_v17  ;;  %v10302_v10 = vpack.c.bf16 %v4921_v28, %v4920_v1 }
 0x6ce   : > { %11326 = vrcp.f32 %v4724_v48  ;;  %v4727_v29 = vpop.xlane.xlu0 %4726  ;;  %v11319_v46 = vpop.eup %11318 }
 0x6cf   : > { %11328 = vrcp.f32 %v4727_v29  ;;  %v5045_v43 = vpack.c.bf16 %v4923_v6, %v4921_v28  ;;  %v5044_v57 = vpack.c.bf16 %v4922_v42, %v4920_v1  ;;  %v10303_v0 = vpack.c.bf16 %v4923_v6, %v4922_v42  ;;  %5428 = vst [vmem:[%s12329_s26 + $0x20] sm:$0xff] %v10302_v10 }
 0x6d0   : > { %v4953_v33 = vmul.f32 %v11319_v46, %v14023_v51  ;;  %v11321_v44 = vpop.eup %11320  ;;  %v4952_v35 = vmul.f32 %v11319_v46, %v14020_v53 }
 0x6d1   : > { %5536 = vmatprep.mubr.bf16.mxu1 %v5045_v43  ;;  %5429 = vst [vmem:[%s12329_s26 + $0x28] sm:$0xff] %v10303_v0  ;;  %v4955_v17 = vmul.f32 %v11321_v44, %v14032_v63  ;;  %v4954_v50 = vmul.f32 %v11321_v44, %v14028_v26 }
 0x6d2   : > { %v4682_v41 = vpop.xlane.xlu1 %4681  ;;  %5537 = vmatmul.mubr.bf16.gmra.mrb[76].mxu1 %v5044_v57  ;;  %v10318_v9 = vpack.c.bf16 %v4953_v33, %v4952_v35 }
 0x6d3   : > { %11330 = vrcp.f32 %v4682_v41  ;;  %v5061_v20 = vpack.c.bf16 %v4955_v17, %v4953_v33  ;;  %v5060_v51 = vpack.c.bf16 %v4954_v50, %v4952_v35  ;;  %v10319_v45 = vpack.c.bf16 %v4955_v17, %v4954_v50 }
 0x6d4   : > { %v4685_v36 = vpop.xlane.xlu0 %4684  ;;  %v11323_v18 = vpop.eup %11322  ;;  %5444 = vst [vmem:[%s12329_s26 + $0xa0] sm:$0xff] %v10318_v9  ;;  %v16713_v9 = vld [vmem:[#allocation44_spill] sm:$0xff] }
 0x6d5   : > { %11332 = vrcp.f32 %v4685_v36  ;;  %v4925_v31 = vmul.f32 %v11323_v18, %v14039_v30  ;;  %v11325_v53 = vpop.eup %11324  ;;  %v4924_v13 = vmul.f32 %v11323_v18, %v14036_v32  ;;  %5633 = vmatprep.mubr.bf16.mxu0 %v5061_v20  ;;  %5445 = vst [vmem:[%s12329_s26 + $0xa8] sm:$0xff] %v10319_v45 }
 0x6d6   : > { %v4730_v5 = vpop.xlane.xlu1 %4729  ;;  %v4927_v26 = vmul.f32 %v11325_v53, %v14048_v59  ;;  %v4926_v55 = vmul.f32 %v11325_v53, %v14044_v8  ;;  %5634 = vmatmul.mubr.bf16.gmra.mrb[84].mxu0 %v5060_v51  ;;  %v16715_v51 = vld [vmem:[#allocation42_spill] sm:$0xff] }
 0x6d7   : > { %11334 = vrcp.f32 %v4730_v5  ;;  %v10304_v11 = vpack.c.bf16 %v4925_v31, %v4924_v13 }
 0x6d8   : > { %v4733_v63 = vpop.xlane.xlu0 %4732  ;;  %v11327_v16 = vpop.eup %11326  ;;  %v5047_v30 = vpack.c.bf16 %v4927_v26, %v4925_v31  ;;  %v5046_v28 = vpack.c.bf16 %v4926_v55, %v4924_v13  ;;  %v10305_v1 = vpack.c.bf16 %v4927_v26, %v4926_v55  ;;  %v16716_v55 = vld [vmem:[#allocation46_spill] sm:$0xff] }
 0x6d9   : > { %11336 = vrcp.f32 %v4733_v63  ;;  %v4957_v49 = vmul.f32 %v11327_v16, %v14055_v61  ;;  %v11329_v32 = vpop.eup %11328  ;;  %5430 = vst [vmem:[%s12329_s26 + $0x30] sm:$0xff] %v10304_v11  ;;  %v4956_v29 = vmul.f32 %v11327_v16, %v14052_v22 }
 0x6da   : > { %5544 = vmatprep.mubr.bf16.mxu1 %v5047_v30  ;;  %5431 = vst [vmem:[%s12329_s26 + $0x38] sm:$0xff] %v10305_v1  ;;  %v4959_v8 = vmul.f32 %v11329_v32, %v14064_v34  ;;  %v4958_v6 = vmul.f32 %v11329_v32, %v14060_v12  ;;  %v16718_v1 = vld [vmem:[#allocation48_spill] sm:$0xff]  ;;  %v16719_v32 = vld [vmem:[#allocation47_spill] sm:$0xff] }
 0x6db   : > { %5545 = vmatmul.mubr.bf16.gmra.mrb[80].mxu1 %v5046_v28  ;;  %v10320_v10 = vpack.c.bf16 %v4957_v49, %v4956_v29 }
 0x6dc   : > { %v4688_v48 = vpop.xlane.xlu1 %4687  ;;  %v5063_v61 = vpack.c.bf16 %v4959_v8, %v4957_v49  ;;  %v5062_v41 = vpack.c.bf16 %v4958_v6, %v4956_v29  ;;  %v10321_v43 = vpack.c.bf16 %v4959_v8, %v4958_v6 }
 0x6dd   : > { %11338 = vrcp.f32 %v4688_v48  ;;  %v11331_v42 = vpop.eup %11330  ;;  %5446 = vst [vmem:[%s12329_s26 + $0xb0] sm:$0xff] %v10320_v10  ;;  %v16717_v48 = vld [vmem:[#allocation43_spill] sm:$0xff] }
 0x6de   : > { %v4691_v59 = vpop.xlane.xlu0 %4690  ;;  %v4929_v57 = vmul.f32 %v11331_v42, %v14071_v37  ;;  %v4928_v0 = vmul.f32 %v11331_v42, %v14068_v15  ;;  %5641 = vmatprep.mubr.bf16.mxu0 %v5063_v61  ;;  %5447 = vst [vmem:[%s12329_s26 + $0xb8] sm:$0xff] %v10321_v43  ;;  %v16720_v61 = vld [vmem:[#allocation50_spill] sm:$0xff] }
 0x6df   : > { %11340 = vrcp.f32 %v4691_v59  ;;  %v11333_v22 = vpop.eup %11332  ;;  %5642 = vmatmul.mubr.bf16.gmra.mrb[88].mxu0 %v5062_v41 }
 0x6e0   : > { %v4736_v46 = vpop.xlane.xlu1 %4735  ;;  %v4931_v12 = vmul.f32 %v11333_v22, %v14080_v19  ;;  %v4930_v33 = vmul.f32 %v11333_v22, %v14076_v21  ;;  %v10306_v35 = vpack.c.bf16 %v4929_v57, %v4928_v0  ;;  %v16714_v21 = vld [vmem:[#allocation45_spill] sm:$0xff] }
 0x6e1   : > { %11342 = vrcp.f32 %v4736_v46  ;;  %v11335_v44 = vpop.eup %11334 }
 0x6e2   : > { %v4739_v34 = vpop.xlane.xlu0 %4738  ;;  %v5049_v37 = vpack.c.bf16 %v4931_v12, %v4929_v57  ;;  %v5048_v17 = vpack.c.bf16 %v4930_v33, %v4928_v0  ;;  %v10307_v50 = vpack.c.bf16 %v4931_v12, %v4930_v33  ;;  %v4961_v18 = vmul.f32 %v11335_v44, %v14087_v62  ;;  %5432 = vst [vmem:[%s12329_s26 + $0x40] sm:$0xff] %v10306_v35  ;;  %v16721_v57 = vld [vmem:[#allocation49_spill] sm:$0xff]  ;;  %v16723_v33 = vld [vmem:[#allocation51_spill] sm:$0xff] }
 0x6e3   : > { %11344 = vrcp.f32 %v4739_v34  ;;  %v11337_v15 = vpop.eup %11336  ;;  %v4960_v5 = vmul.f32 %v11335_v44, %v16713_v9  ;;  %v16722_v34 = vld [vmem:[#allocation53_spill] sm:$0xff] }
 0x6e4   : > { %v4694_v36 = vpop.xlane.xlu1 %4693  ;;  %5552 = vmatprep.mubr.bf16.mxu1 %v5049_v37  ;;  %5433 = vst [vmem:[%s12329_s26 + $0x48] sm:$0xff] %v10307_v50  ;;  %v4963_v20 = vmul.f32 %v11337_v15, %v16714_v21  ;;  %v4962_v45 = vmul.f32 %v11337_v15, %v16715_v51  ;;  %v16726_v21 = vld [vmem:[#allocation57_spill] sm:$0xff]  ;;  %v16727_v51 = vld [vmem:[#allocation55_spill] sm:$0xff] }
 0x6e5   : > { %11346 = vrcp.f32 %v4694_v36  ;;  %5553 = vmatmul.mubr.bf16.gmra.mrb[84].mxu1 %v5048_v17  ;;  %v10322_v53 = vpack.c.bf16 %v4961_v18, %v4960_v5 }
 0x6e6   : > { %v4697_v19 = vpop.xlane.xlu0 %4696  ;;  %v5065_v62 = vpack.c.bf16 %v4963_v20, %v4961_v18  ;;  %v5064_v63 = vpack.c.bf16 %v4962_v45, %v4960_v5  ;;  %v10323_v26 = vpack.c.bf16 %v4963_v20, %v4962_v45  ;;  %v16724_v18 = vld [vmem:[#allocation54_spill] sm:$0xff]  ;;  %v16725_v5 = vld [vmem:[#allocation52_spill] sm:$0xff] }
 0x6e7   : > { %v11339_v31 = vpop.eup %11338  ;;  %11348 = vrcp.f32 %v4697_v19  ;;  %5448 = vst [vmem:[%s12329_s26 + $0xc0] sm:$0xff] %v10322_v53 }
 0x6e8   : > { %v4742_v13 = vpop.xlane.xlu1 %4741  ;;  %v4933_v16 = vmul.f32 %v11339_v31, %v16716_v55  ;;  %v4932_v30 = vmul.f32 %v11339_v31, %v16717_v48  ;;  %5649 = vmatprep.mubr.bf16.mxu0 %v5065_v62  ;;  %5449 = vst [vmem:[%s12329_s26 + $0xc8] sm:$0xff] %v10323_v26  ;;  %v16728_v55 = vld [vmem:[#allocation56_spill] sm:$0xff]  ;;  %v16729_v48 = vld [vmem:[#allocation58_spill] sm:$0xff] }
 0x6e9   : > { %v11341_v11 = vpop.eup %11340  ;;  %11350 = vrcp.f32 %v4742_v13  ;;  %5650 = vmatmul.mubr.bf16.gmra.mrb[92].mxu0 %v5064_v63 }
 0x6ea   : > { %v4745_v28 = vpop.xlane.xlu0 %4744  ;;  %v4935_v49 = vmul.f32 %v11341_v11, %v16718_v1  ;;  %v4934_v29 = vmul.f32 %v11341_v11, %v16719_v32  ;;  %v10308_v8 = vpack.c.bf16 %v4933_v16, %v4932_v30  ;;  %v16730_v1 = vld [vmem:[#allocation61_spill] sm:$0xff]  ;;  %v16731_v32 = vld [vmem:[#allocation59_spill] sm:$0xff] }
 0x6eb   : > { %v11343_v59 = vpop.eup %11342  ;;  %11352 = vrcp.f32 %v4745_v28 }
 0x6ec   : > { %v4700_v6 = vpop.xlane.xlu1 %4699  ;;  %v5051_v42 = vpack.c.bf16 %v4935_v49, %v4933_v16  ;;  %v5050_v10 = vpack.c.bf16 %v4934_v29, %v4932_v30  ;;  %v10309_v46 = vpack.c.bf16 %v4935_v49, %v4934_v29  ;;  %v4965_v41 = vmul.f32 %v11343_v59, %v16720_v61  ;;  %5434 = vst [vmem:[%s12329_s26 + $0x50] sm:$0xff] %v10308_v8  ;;  %v16732_v61 = vld [vmem:[#allocation62_spill] sm:$0xff] }
 0x6ed   : > { %v11345_v43 = vpop.eup %11344  ;;  %11354 = vrcp.f32 %v4700_v6  ;;  %v4964_v22 = vmul.f32 %v11343_v59, %v16721_v57  ;;  %v16733_v57 = vld [vmem:[#allocation60_spill] sm:$0xff] }
 0x6ee   : > { %5560 = vmatprep.mubr.bf16.mxu1 %v5051_v42  ;;  %v4703_v0 = vpop.xlane.xlu0 %4702  ;;  %5435 = vst [vmem:[%s12329_s26 + $0x58] sm:$0xff] %v10309_v46  ;;  %v4967_v12 = vmul.f32 %v11345_v43, %v16722_v34  ;;  %v4966_v44 = vmul.f32 %v11345_v43, %v16723_v33  ;;  %v16734_v34 = vld [vmem:[#allocation65_spill] sm:$0xff]  ;;  %v16735_v33 = vld [vmem:[#allocation63_spill] sm:$0xff] }
 0x6ef   : > { %v11347_v35 = vpop.eup %11346  ;;  %11356 = vrcp.f32 %v4703_v0  ;;  %5561 = vmatmul.mubr.bf16.gmra.mrb[88].mxu1 %v5050_v10  ;;  %v10324_v36 = vpack.c.bf16 %v4965_v41, %v4964_v22 }
 0x6f0   : > { %v5067_v37 = vpack.c.bf16 %v4967_v12, %v4965_v41  ;;  %v5066_v17 = vpack.c.bf16 %v4966_v44, %v4964_v22  ;;  %v10325_v50 = vpack.c.bf16 %v4967_v12, %v4966_v44  ;;  %v4937_v15 = vmul.f32 %v11347_v35, %v16724_v18 }
 0x6f1   : > { %v11349_v9 = vpop.eup %11348  ;;  %5450 = vst [vmem:[%s12329_s26 + $0xd0] sm:$0xff] %v10324_v36  ;;  %v4936_v19 = vmul.f32 %v11347_v35, %v16725_v5  ;;  %v16736_v5 = vld [vmem:[#allocation69_spill] sm:$0xff] }
 0x6f2   : > { %5657 = vmatprep.mubr.bf16.mxu0 %v5067_v37  ;;  %5451 = vst [vmem:[%s12329_s26 + $0xd8] sm:$0xff] %v10325_v50  ;;  %v4939_v20 = vmul.f32 %v11349_v9, %v16726_v21  ;;  %v4938_v45 = vmul.f32 %v11349_v9, %v16727_v51  ;;  %v16737_v21 = vld [vmem:[#allocation67_spill] sm:$0xff] }
 0x6f3   : > { %v11351_v31 = vpop.eup %11350  ;;  %5658 = vmatmul.mubr.bf16.gmra.mrb[96].mxu0 %v5066_v17  ;;  %v10310_v53 = vpack.c.bf16 %v4937_v15, %v4936_v19  ;;  %v4748_v13 = vpop.xlane.xlu1 %4747 }
 0x6f4   : > { %v5053_v62 = vpack.c.bf16 %v4939_v20, %v4937_v15  ;;  %v5052_v63 = vpack.c.bf16 %v4938_v45, %v4936_v19  ;;  %v10311_v26 = vpack.c.bf16 %v4939_v20, %v4938_v45  ;;  %v4969_v16 = vmul.f32 %v11351_v31, %v16728_v55 }
 0x6f5   : > { %v11353_v11 = vpop.eup %11352  ;;  %11358 = vrcp.f32 %v4748_v13  ;;  %5436 = vst [vmem:[%s12329_s26 + $0x60] sm:$0xff] %v10310_v53  ;;  %v4968_v30 = vmul.f32 %v11351_v31, %v16729_v48  ;;  %v16738_v31 = vld [vmem:[#allocation70_spill] sm:$0xff]  ;;  %v16739_v13 = vld [vmem:[#allocation68_spill] sm:$0xff] }
 0x6f6   : > { %5568 = vmatprep.mubr.bf16.mxu1 %v5053_v62  ;;  %v4751_v28 = vpop.xlane.xlu0 %4750  ;;  %5437 = vst [vmem:[%s12329_s26 + $0x68] sm:$0xff] %v10311_v26  ;;  %v4971_v49 = vmul.f32 %v11353_v11, %v16730_v1  ;;  %v4970_v29 = vmul.f32 %v11353_v11, %v16731_v32 }
 0x6f7   : > { %v11355_v59 = vpop.eup %11354  ;;  %11360 = vrcp.f32 %v4751_v28  ;;  %5569 = vmatmul.mubr.bf16.gmra.mrb[92].mxu1 %v5052_v63  ;;  %v10326_v8 = vpack.c.bf16 %v4969_v16, %v4968_v30  ;;  %v4802_v6 = vpop.xlane.xlu1 %4801 }
 0x6f8   : > { %v5069_v42 = vpack.c.bf16 %v4971_v49, %v4969_v16  ;;  %v5068_v10 = vpack.c.bf16 %v4970_v29, %v4968_v30  ;;  %v10327_v46 = vpack.c.bf16 %v4971_v49, %v4970_v29  ;;  %v4941_v41 = vmul.f32 %v11355_v59, %v16732_v61  ;;  %v16740_v30 = vld [vmem:[#allocation66_spill] sm:$0xff]  ;;  %v16741_v49 = vld [vmem:[#allocation64_spill] sm:$0xff] }
 0x6f9   : > { %v11357_v43 = vpop.eup %11356  ;;  %11362 = vrcp.f32 %v4802_v6  ;;  %5452 = vst [vmem:[%s12329_s26 + $0xe0] sm:$0xff] %v10326_v8  ;;  %v4940_v22 = vmul.f32 %v11355_v59, %v16733_v57  ;;  %v16742_v59 = vld [vmem:[#allocation71_spill] sm:$0xff]  ;;  %v16743_v6 = vld [vmem:[#allocation73_spill] sm:$0xff] }
 0x6fa   : > { %5665 = vmatprep.mubr.bf16.mxu0 %v5069_v42  ;;  %v4805_v0 = vpop.xlane.xlu0 %4804  ;;  %5453 = vst [vmem:[%s12329_s26 + $0xe8] sm:$0xff] %v10327_v46  ;;  %v4943_v12 = vmul.f32 %v11357_v43, %v16734_v34  ;;  %v4942_v44 = vmul.f32 %v11357_v43, %v16735_v33  ;;  %v16744_v57 = vld [vmem:[#allocation75_spill] sm:$0xff] }
 0x6fb   : > { %11364 = vrcp.f32 %v4805_v0  ;;  %5666 = vmatmul.mubr.bf16.gmra.mrb[100].mxu0 %v5068_v10  ;;  %v10312_v35 = vpack.c.bf16 %v4941_v41, %v4940_v22  ;;  %v4754_v36 = vpop.xlane.xlu1 %4753  ;;  %v16745_v0 = vld [vmem:[#allocation77_spill] sm:$0xff] }
 0x6fc   : > { %v5055_v37 = vpack.c.bf16 %v4943_v12, %v4941_v41  ;;  %v5054_v17 = vpack.c.bf16 %v4942_v44, %v4940_v22  ;;  %v10313_v50 = vpack.c.bf16 %v4943_v12, %v4942_v44  ;;  %11366 = vrcp.f32 %v4754_v36  ;;  %v16746_v44 = vld [vmem:[#allocation76_spill] sm:$0xff]  ;;  %v16747_v36 = vld [vmem:[#allocation78_spill] sm:$0xff] }
 0x6fd   : > { %5438 = vst [vmem:[%s12329_s26 + $0x70] sm:$0xff] %v10312_v35 }
 0x6fe   : > { %5576 = vmatprep.mubr.bf16.mxu1 %v5055_v37  ;;  %v4757_v18 = vpop.xlane.xlu0 %4756  ;;  %5439 = vst [vmem:[%s12329_s26 + $0x78] sm:$0xff] %v10313_v50 }
 0x6ff   : > { %v11359_v15 = vpop.eup %11358  ;;  %11368 = vrcp.f32 %v4757_v18  ;;  %5577 = vmatmul.mubr.bf16.gmra.mrb[96].mxu1 %v5054_v17  ;;  %v4808_v9 = vpop.xlane.xlu1 %4807 }
 0x700   : > { %v4973_v19 = vmul.f32 %v11359_v15, %v16736_v5  ;;  %v4972_v20 = vmul.f32 %v11359_v15, %v16737_v21  ;;  %11370 = vrcp.f32 %v4808_v9 }
 0x701   : > { %v11361_v51 = vpop.eup %11360 }
 0x702   : > { %v4811_v45 = vpop.xlane.xlu0 %4810  ;;  %v4975_v53 = vmul.f32 %v11361_v51, %v16738_v31  ;;  %v4974_v62 = vmul.f32 %v11361_v51, %v16739_v13  ;;  %v10328_v63 = vpack.c.bf16 %v4973_v19, %v4972_v20  ;;  %v16750_v13 = vld [vmem:[#allocation81_spill] sm:$0xff] }
 0x703   : > { %v11363_v26 = vpop.eup %11362  ;;  %11372 = vrcp.f32 %v4811_v45  ;;  %v4760_v55 = vpop.xlane.xlu1 %4759  ;;  %v16749_v45 = vld [vmem:[#allocation74_spill] sm:$0xff] }
 0x704   : > { %v5071_v16 = vpack.c.bf16 %v4975_v53, %v4973_v19  ;;  %v5070_v11 = vpack.c.bf16 %v4974_v62, %v4972_v20  ;;  %v10329_v48 = vpack.c.bf16 %v4975_v53, %v4974_v62  ;;  %5454 = vst [vmem:[%s12329_s26 + $0xf0] sm:$0xff] %v10328_v63  ;;  %v5008_v28 = vmul.f32 %v11363_v26, %v16740_v30  ;;  %v16748_v19 = vld [vmem:[#allocation72_spill] sm:$0xff]  ;;  %v16751_v63 = vld [vmem:[#allocation79_spill] sm:$0xff]  ;;  %v16752_v30 = vld [vmem:[#allocation85_spill] sm:$0xff] }
 0x705   : > { %v11365_v1 = vpop.eup %11364  ;;  %11374 = vrcp.f32 %v4760_v55  ;;  %v5009_v32 = vmul.f32 %v11363_v26, %v16741_v49 }
 0x706   : > { %5673 = vmatprep.mubr.bf16.mxu0 %v5071_v16  ;;  %v4763_v29 = vpop.xlane.xlu0 %4762  ;;  %5455 = vst [vmem:[%s12329_s26 + $0xf8] sm:$0xff] %v10329_v48  ;;  %v5010_v8 = vmul.f32 %v11365_v1, %v16742_v59  ;;  %v5011_v42 = vmul.f32 %v11365_v1, %v16743_v6  ;;  %v11367_v10 = vpop.eup %11366  ;;  %v16753_v1 = vld [vmem:[#allocation83_spill] sm:$0xff] }
 0x707   : > { %11376 = vrcp.f32 %v4763_v29  ;;  %5674 = vmatmul.mubr.bf16.gmra.mrb[104].mxu0 %v5070_v11  ;;  %v10346_v46 = vpack.c.bf16 %v5009_v32, %v5008_v28  ;;  %v4814_v61 = vpop.xlane.xlu1 %4813  ;;  %v4976_v22 = vmul.f32 %v11367_v10, %v16744_v57  ;;  %v4977_v34 = vmul.f32 %v11367_v10, %v16745_v0  ;;  %v16756_v0 = vld [vmem:[#allocation80_spill] sm:$0xff] }
 0x708   : > { %v5089_v41 = vpack.c.bf16 %v5011_v42, %v5009_v32  ;;  %v10347_v43 = vpack.c.bf16 %v5011_v42, %v5010_v8  ;;  %11378 = vrcp.f32 %v4814_v61  ;;  %v5088_v51 = vpack.c.bf16 %v5010_v8, %v5008_v28  ;;  %v16754_v8 = vld [vmem:[#allocation86_spill] sm:$0xff]  ;;  %v16755_v42 = vld [vmem:[#allocation84_spill] sm:$0xff] }
 0x709   : > { %v11369_v12 = vpop.eup %11368  ;;  %5472 = vst [vmem:[%s12329_s26 + $0x180] sm:$0xff] %v10346_v46  ;;  %v10330_v17 = vpack.c.bf16 %v4977_v34, %v4976_v22 }
 0x70a   : > { %5473 = vst [vmem:[%s12329_s26 + $0x188] sm:$0xff] %v10347_v43  ;;  %5811 = vmatprep.mubr.bf16.mxu0 %v5089_v41  ;;  %v4817_v33 = vpop.xlane.xlu0 %4816  ;;  %v4978_v35 = vmul.f32 %v11369_v12, %v16746_v44  ;;  %v4979_v37 = vmul.f32 %v11369_v12, %v16747_v36  ;;  %v11371_v50 = vpop.eup %11370  ;;  %v16757_v44 = vld [vmem:[#allocation82_spill] sm:$0xff] }
 0x70b   : > { %11380 = vrcp.f32 %v4817_v33  ;;  %v4766_v18 = vpop.xlane.xlu1 %4765  ;;  %5456 = vst [vmem:[%s12329_s26 + $0x100] sm:$0xff] %v10330_v17  ;;  %v5013_v21 = vmul.f32 %v11371_v50, %v16748_v19  ;;  %v5012_v31 = vmul.f32 %v11371_v50, %v16749_v45  ;;  %v16759_v50 = vld [vmem:[#allocation87_spill] sm:$0xff] }
 0x70c   : > { %v5073_v15 = vpack.c.bf16 %v4979_v37, %v4977_v34  ;;  %v10331_v9 = vpack.c.bf16 %v4979_v37, %v4978_v35  ;;  %v5072_v5 = vpack.c.bf16 %v4978_v35, %v4976_v22  ;;  %11382 = vrcp.f32 %v4766_v18  ;;  %v16758_v37 = vld [vmem:[#allocation89_spill] sm:$0xff] }
 0x70d   : > { %v11373_v20 = vpop.eup %11372  ;;  %v10348_v16 = vpack.c.bf16 %v5013_v21, %v5012_v31 }
 0x70e   : > { %5457 = vst [vmem:[%s12329_s26 + $0x108] sm:$0xff] %v10331_v9  ;;  %5714 = vmatprep.mubr.bf16.mxu1 %v5073_v15  ;;  %v4769_v53 = vpop.xlane.xlu0 %4768  ;;  %v5015_v62 = vmul.f32 %v11373_v20, %v16750_v13  ;;  %v5014_v26 = vmul.f32 %v11373_v20, %v16751_v63 }
 0x70f   : > { %v11375_v55 = vpop.eup %11374  ;;  %11384 = vrcp.f32 %v4769_v53  ;;  %5715 = vmatmul.mubr.bf16.vlgmr.msra.gmra.mrb[100].mxu1 %v5072_v5  ;;  %5812 = vmatmul.mubr.bf16.vlgmr.msra.gmra.mrb[108].mxu0 %v5088_v51  ;;  %v4820_v11 = vpop.xlane.xlu1 %4819  ;;  %5474 = vst [vmem:[%s12329_s26 + $0x190] sm:$0xff] %v10348_v16  ;;  %v16761_v51 = vld [vmem:[#allocation91_spill] sm:$0xff] }
 0x710   : > { %v5091_v48 = vpack.c.bf16 %v5015_v62, %v5013_v21  ;;  %v4981_v28 = vmul.f32 %v11375_v55, %v16752_v30  ;;  %v4980_v49 = vmul.f32 %v11375_v55, %v16753_v1  ;;  %11386 = vrcp.f32 %v4820_v11  ;;  %v16760_v21 = vld [vmem:[#allocation93_spill] sm:$0xff] }
 0x711   : > { %v11377_v32 = vpop.eup %11376  ;;  %v10349_v29 = vpack.c.bf16 %v5015_v62, %v5014_v26  ;;  %v5090_v33 = vpack.c.bf16 %v5014_v26, %v5012_v31  ;;  %v16762_v62 = vld [vmem:[#allocation94_spill] sm:$0xff]  ;;  %v16763_v26 = vld [vmem:[#allocation92_spill] sm:$0xff] }
 0x712   : > { %5819 = vmatprep.mubr.bf16.mxu0 %v5091_v48  ;;  %v4823_v59 = vpop.xlane.xlu0 %4822  ;;  %v4983_v6 = vmul.f32 %v11377_v32, %v16754_v8  ;;  %v4982_v10 = vmul.f32 %v11377_v32, %v16755_v42  ;;  %v10332_v46 = vpack.c.bf16 %v4981_v28, %v4980_v49  ;;  %v11379_v61 = vpop.eup %11378  ;;  %v16765_v8 = vld [vmem:[#allocation90_spill] sm:$0xff] }
 0x713   : > { %11388 = vrcp.f32 %v4823_v59  ;;  %5475 = vst [vmem:[%s12329_s26 + $0x198] sm:$0xff] %v10349_v29  ;;  %v4772_v41 = vpop.xlane.xlu1 %4771  ;;  %v5017_v34 = vmul.f32 %v11379_v61, %v16756_v0  ;;  %v5016_v35 = vmul.f32 %v11379_v61, %v16757_v44  ;;  %v16767_v61 = vld [vmem:[#allocation95_spill] sm:$0xff] }
 0x714   : > { %v5075_v43 = vpack.c.bf16 %v4983_v6, %v4981_v28  ;;  %v5074_v57 = vpack.c.bf16 %v4982_v10, %v4980_v49  ;;  %v10333_v22 = vpack.c.bf16 %v4983_v6, %v4982_v10  ;;  %5458 = vst [vmem:[%s12329_s26 + $0x110] sm:$0xff] %v10332_v46  ;;  %11390 = vrcp.f32 %v4772_v41  ;;  %v16764_v49 = vld [vmem:[#allocation88_spill] sm:$0xff]  ;;  %v16766_v10 = vld [vmem:[#allocation97_spill] sm:$0xff] }
 0x715   : > { %v11381_v12 = vpop.eup %11380  ;;  %v10350_v9 = vpack.c.bf16 %v5017_v34, %v5016_v35 }
 0x716   : > { %5722 = vmatprep.mubr.bf16.mxu1 %v5075_v43  ;;  %v4775_v36 = vpop.xlane.xlu0 %4774  ;;  %5459 = vst [vmem:[%s12329_s26 + $0x118] sm:$0xff] %v10333_v22  ;;  %v5019_v17 = vmul.f32 %v11381_v12, %v16758_v37  ;;  %v5018_v18 = vmul.f32 %v11381_v12, %v16759_v50  ;;  %v11383_v15 = vpop.eup %11382  ;;  %v16770_v50 = vld [vmem:[#allocation101_spill] sm:$0xff] }
 0x717   : > { %11392 = vrcp.f32 %v4775_v36  ;;  %5723 = vmatmul.mubr.bf16.gmra.mrb[104].mxu1 %v5074_v57  ;;  %5820 = vmatmul.mubr.bf16.gmra.mrb[112].mxu0 %v5090_v33  ;;  %v4826_v5 = vpop.xlane.xlu1 %4825  ;;  %v4985_v20 = vmul.f32 %v11383_v15, %v16760_v21  ;;  %v4984_v45 = vmul.f32 %v11383_v15, %v16761_v51  ;;  %5476 = vst [vmem:[%s12329_s26 + $0x1a0] sm:$0xff] %v10350_v9  ;;  %v16769_v33 = vld [vmem:[#allocation96_spill] sm:$0xff] }
 0x718   : > { %v5093_v19 = vpack.c.bf16 %v5019_v17, %v5017_v34  ;;  %11394 = vrcp.f32 %v4826_v5  ;;  %v10351_v53 = vpack.c.bf16 %v5019_v17, %v5018_v18  ;;  %v5092_v59 = vpack.c.bf16 %v5018_v18, %v5016_v35  ;;  %v16768_v34 = vld [vmem:[#allocation99_spill] sm:$0xff] }
 0x719   : > { %v11385_v31 = vpop.eup %11384  ;;  %v10334_v16 = vpack.c.bf16 %v4985_v20, %v4984_v45 }
 0x71a   : > { %5827 = vmatprep.mubr.bf16.mxu0 %v5093_v19  ;;  %v4829_v13 = vpop.xlane.xlu0 %4828  ;;  %v4987_v63 = vmul.f32 %v11385_v31, %v16762_v62  ;;  %v4986_v55 = vmul.f32 %v11385_v31, %v16763_v26  ;;  %v11387_v11 = vpop.eup %11386  ;;  %5477 = vst [vmem:[%s12329_s26 + $0x1a8] sm:$0xff] %v10351_v53  ;;  %v16771_v53 = vld [vmem:[#allocation98_spill] sm:$0xff]  ;;  %v16773_v26 = vld [vmem:[#allocation100_spill] sm:$0xff] }
 0x71b   : > { %11396 = vrcp.f32 %v4829_v13  ;;  %v4778_v48 = vpop.xlane.xlu1 %4777  ;;  %5460 = vst [vmem:[%s12329_s26 + $0x120] sm:$0xff] %v10334_v16  ;;  %v5021_v32 = vmul.f32 %v11387_v11, %v16764_v49  ;;  %v5020_v6 = vmul.f32 %v11387_v11, %v16765_v8  ;;  %v16772_v62 = vld [vmem:[#allocation102_spill] sm:$0xff] }
 0x71c   : > { %v5077_v30 = vpack.c.bf16 %v4987_v63, %v4985_v20  ;;  %v5076_v28 = vpack.c.bf16 %v4986_v55, %v4984_v45  ;;  %v10335_v1 = vpack.c.bf16 %v4987_v63, %v4986_v55  ;;  %11398 = vrcp.f32 %v4778_v48 }
 0x71d   : > { %v11389_v29 = vpop.eup %11388  ;;  %v10352_v57 = vpack.c.bf16 %v5021_v32, %v5020_v6 }
 0x71e   : > { %5730 = vmatprep.mubr.bf16.mxu1 %v5077_v30  ;;  %v4781_v42 = vpop.xlane.xlu0 %4780  ;;  %5461 = vst [vmem:[%s12329_s26 + $0x128] sm:$0xff] %v10335_v1  ;;  %v5023_v46 = vmul.f32 %v11389_v29, %v16766_v10  ;;  %v5022_v41 = vmul.f32 %v11389_v29, %v16767_v61  ;;  %v11391_v43 = vpop.eup %11390 }
 0x71f   : > { %11400 = vrcp.f32 %v4781_v42  ;;  %5731 = vmatmul.mubr.bf16.gmra.mrb[108].mxu1 %v5076_v28  ;;  %5828 = vmatmul.mubr.bf16.gmra.mrb[116].mxu0 %v5092_v59  ;;  %v4832_v22 = vpop.xlane.xlu1 %4831  ;;  %v4989_v12 = vmul.f32 %v11391_v43, %v16768_v34  ;;  %v4988_v44 = vmul.f32 %v11391_v43, %v16769_v33  ;;  %5478 = vst [vmem:[%s12329_s26 + $0x1b0] sm:$0xff] %v10352_v57  ;;  %v16774_v28 = vld [vmem:[#allocation105_spill] sm:$0xff] }
 0x720   : > { %v5095_v0 = vpack.c.bf16 %v5023_v46, %v5021_v32  ;;  %11402 = vrcp.f32 %v4832_v22  ;;  %v10353_v36 = vpack.c.bf16 %v5023_v46, %v5022_v41  ;;  %v5094_v31 = vpack.c.bf16 %v5022_v41, %v5020_v6 }
 0x721   : > { %v11393_v35 = vpop.eup %11392  ;;  %v10336_v15 = vpack.c.bf16 %v4989_v12, %v4988_v44 }
 0x722   : > { %5835 = vmatprep.mubr.bf16.mxu0 %v5095_v0  ;;  %v4835_v37 = vpop.xlane.xlu0 %4834  ;;  %v4991_v17 = vmul.f32 %v11393_v35, %v14326_v7  ;;  %v4990_v18 = vmul.f32 %v11393_v35, %v16770_v50  ;;  %v11395_v9 = vpop.eup %11394  ;;  %5479 = vst [vmem:[%s12329_s26 + $0x1b8] sm:$0xff] %v10353_v36 }
 0x723   : > { %11404 = vrcp.f32 %v4835_v37  ;;  %v4784_v5 = vpop.xlane.xlu1 %4783  ;;  %5462 = vst [vmem:[%s12329_s26 + $0x130] sm:$0xff] %v10336_v15  ;;  %v5025_v51 = vmul.f32 %v11395_v9, %v14311_v3  ;;  %v5024_v13 = vmul.f32 %v11395_v9, %v16771_v53 }
 0x724   : > { %v5079_v19 = vpack.c.bf16 %v4991_v17, %v4989_v12  ;;  %v5078_v21 = vpack.c.bf16 %v4990_v18, %v4988_v44  ;;  %v10337_v20 = vpack.c.bf16 %v4991_v17, %v4990_v18  ;;  %11406 = vrcp.f32 %v4784_v5 }
 0x725   : > { %v11397_v45 = vpop.eup %11396  ;;  %v10354_v11 = vpack.c.bf16 %v5025_v51, %v5024_v13 }
 0x726   : > { %5738 = vmatprep.mubr.bf16.mxu1 %v5079_v19  ;;  %v4787_v7 = vpop.xlane.xlu0 %4786  ;;  %5463 = vst [vmem:[%s12329_s26 + $0x138] sm:$0xff] %v10337_v20  ;;  %v5027_v63 = vmul.f32 %v11397_v45, %v16772_v62  ;;  %v5026_v55 = vmul.f32 %v11397_v45, %v16773_v26  ;;  %v11399_v16 = vpop.eup %11398 }
 0x727   : > { %11408 = vrcp.f32 %v4787_v7  ;;  %5739 = vmatmul.mubr.bf16.gmra.mrb[112].mxu1 %v5078_v21  ;;  %5836 = vmatmul.mubr.bf16.gmra.mrb[120].mxu0 %v5094_v31  ;;  %v4838_v3 = vpop.xlane.xlu1 %4837  ;;  %v4993_v30 = vmul.f32 %v11399_v16, %v14349_v23  ;;  %v4992_v1 = vmul.f32 %v11399_v16, %v16774_v28  ;;  %5480 = vst [vmem:[%s12329_s26 + $0x1c0] sm:$0xff] %v10354_v11  ;;  %v16776_v21 = vld [vmem:[#allocation106_spill] sm:$0xff]  ;;  %v16780_v11 = vld [vmem:[#allocation109_spill] sm:$0xff] }
 0x728   : > { %v5097_v48 = vpack.c.bf16 %v5027_v63, %v5025_v51  ;;  %11410 = vrcp.f32 %v4838_v3  ;;  %v10355_v32 = vpack.c.bf16 %v5027_v63, %v5026_v55  ;;  %v5096_v57 = vpack.c.bf16 %v5026_v55, %v5024_v13  ;;  %v16777_v13 = vld [vmem:[#allocation107_spill] sm:$0xff]  ;;  %v16779_v55 = vld [vmem:[#allocation108_spill] sm:$0xff] }
 0x729   : > { %v11401_v49 = vpop.eup %11400  ;;  %v10338_v6 = vpack.c.bf16 %v4993_v30, %v4992_v1 }
 0x72a   : > { %5843 = vmatprep.mubr.bf16.mxu0 %v5097_v48  ;;  %v4841_v29 = vpop.xlane.xlu0 %4840  ;;  %v4995_v59 = vmul.f32 %v11401_v49, %v14358_v27  ;;  %v4994_v8 = vmul.f32 %v11401_v49, %v14353_v14  ;;  %v11403_v42 = vpop.eup %11402  ;;  %5481 = vst [vmem:[%s12329_s26 + $0x1c8] sm:$0xff] %v10355_v32 }
 0x72b   : > { %11412 = vrcp.f32 %v4841_v29  ;;  %v4790_v10 = vpop.xlane.xlu1 %4789  ;;  %5464 = vst [vmem:[%s12329_s26 + $0x140] sm:$0xff] %v10338_v6  ;;  %v5029_v41 = vmul.f32 %v11403_v42, %v14343_v52  ;;  %v5028_v22 = vmul.f32 %v11403_v42, %v14340_v2  ;;  %v16781_v29 = vld [vmem:[#allocation111_spill] sm:$0xff] }
 0x72c   : > { %v5081_v23 = vpack.c.bf16 %v4995_v59, %v4993_v30  ;;  %v5080_v46 = vpack.c.bf16 %v4994_v8, %v4992_v1  ;;  %v10339_v61 = vpack.c.bf16 %v4995_v59, %v4994_v8  ;;  %11414 = vrcp.f32 %v4790_v10  ;;  %v16782_v8 = vld [vmem:[#allocation113_spill] sm:$0xff] }
 0x72d   : > { %v11405_v43 = vpop.eup %11404  ;;  %v10356_v12 = vpack.c.bf16 %v5029_v41, %v5028_v22  ;;  %v16783_v10 = vld [vmem:[#allocation121_spill] sm:$0xff] }
 0x72e   : > { %5746 = vmatprep.mubr.bf16.mxu1 %v5081_v23  ;;  %v4793_v14 = vpop.xlane.xlu0 %4792  ;;  %5465 = vst [vmem:[%s12329_s26 + $0x148] sm:$0xff] %v10339_v61  ;;  %v5031_v27 = vmul.f32 %v11405_v43, %v14366_v47  ;;  %v5030_v0 = vmul.f32 %v11405_v43, %v14363_v56  ;;  %v11407_v34 = vpop.eup %11406 }
 0x72f   : > { %11416 = vrcp.f32 %v4793_v14  ;;  %5747 = vmatmul.mubr.bf16.gmra.mrb[116].mxu1 %v5080_v46  ;;  %5844 = vmatmul.mubr.bf16.gmra.mrb[124].mxu0 %v5096_v57  ;;  %v4997_v33 = vmul.f32 %v11407_v34, %v14378_v25  ;;  %v4996_v2 = vmul.f32 %v11407_v34, %v14376_v39  ;;  %5482 = vst [vmem:[%s12329_s26 + $0x1d0] sm:$0xff] %v10356_v12  ;;  %v16784_v46 = vld [vmem:[#allocation112_spill] sm:$0xff] }
 0x730   : > { %v5099_v52 = vpack.c.bf16 %v5031_v27, %v5029_v41  ;;  %v10357_v35 = vpack.c.bf16 %v5031_v27, %v5030_v0  ;;  %v5098_v9 = vpack.c.bf16 %v5030_v0, %v5028_v22 }
 0x731   : > { %v11409_v44 = vpop.eup %11408  ;;  %v10340_v36 = vpack.c.bf16 %v4997_v33, %v4996_v2 }
 0x732   : > { %5851 = vmatprep.mubr.bf16.mxu0 %v5099_v52  ;;  %v4999_v47 = vmul.f32 %v11409_v44, %v14388_v40  ;;  %v4998_v56 = vmul.f32 %v11409_v44, %v14382_v60  ;;  %v11411_v37 = vpop.eup %11410  ;;  %5483 = vst [vmem:[%s12329_s26 + $0x1d8] sm:$0xff] %v10357_v35  ;;  %v16775_v60 = vld [vmem:[#allocation103_spill] sm:$0xff]  ;;  %v16785_v52 = vld [vmem:[#allocation110_spill] sm:$0xff] }
 0x733   : > { %v4796_v17 = vpop.xlane.xlu1 %4795  ;;  %5466 = vst [vmem:[%s12329_s26 + $0x150] sm:$0xff] %v10340_v36  ;;  %v5033_v5 = vmul.f32 %v11411_v37, %v14390_v54  ;;  %v5032_v19 = vmul.f32 %v11411_v37, %v14372_v58  ;;  %v16778_v58 = vld [vmem:[#allocation104_spill] sm:$0xff] }
 0x734   : > { %11418 = vrcp.f32 %v4796_v17  ;;  %v5083_v50 = vpack.c.bf16 %v4999_v47, %v4997_v33  ;;  %v5082_v18 = vpack.c.bf16 %v4998_v56, %v4996_v2  ;;  %v10341_v25 = vpack.c.bf16 %v4999_v47, %v4998_v56 }
 0x735   : > { %v11413_v15 = vpop.eup %11412  ;;  %v4799_v39 = vpop.xlane.xlu0 %4798  ;;  %v10358_v31 = vpack.c.bf16 %v5033_v5, %v5032_v19 }
 0x736   : > { %11420 = vrcp.f32 %v4799_v39  ;;  %5754 = vmatprep.mubr.bf16.mxu1 %v5083_v50  ;;  %5467 = vst [vmem:[%s12329_s26 + $0x158] sm:$0xff] %v10341_v25  ;;  %v5035_v40 = vmul.f32 %v11413_v15, %v16775_v60  ;;  %v5034_v20 = vmul.f32 %v11413_v15, %v16776_v21  ;;  %v11415_v51 = vpop.eup %11414 }
 0x737   : > { %v4844_v45 = vpop.xlane.xlu1 %4843  ;;  %5755 = vmatmul.mubr.bf16.gmra.mrb[120].mxu1 %v5082_v18  ;;  %5852 = vmatmul.mubr.bf16.gmra.mrb[128].mxu0 %v5098_v9  ;;  %v5001_v54 = vmul.f32 %v11415_v51, %v16777_v13  ;;  %v5000_v7 = vmul.f32 %v11415_v51, %v16778_v58  ;;  %5484 = vst [vmem:[%s12329_s26 + $0x1e0] sm:$0xff] %v10358_v31 }
 0x738   : > { %11422 = vrcp.f32 %v4844_v45  ;;  %v5101_v53 = vpack.c.bf16 %v5035_v40, %v5033_v5  ;;  %v10359_v26 = vpack.c.bf16 %v5035_v40, %v5034_v20  ;;  %v5100_v49 = vpack.c.bf16 %v5034_v20, %v5032_v19 }
 0x739   : > { %v11417_v62 = vpop.eup %11416  ;;  %v4847_v63 = vpop.xlane.xlu0 %4846  ;;  %v10342_v48 = vpack.c.bf16 %v5001_v54, %v5000_v7 }
 0x73a   : > { %11424 = vrcp.f32 %v4847_v63  ;;  %5859 = vmatprep.mubr.bf16.mxu0 %v5101_v53  ;;  %v5003_v16 = vmul.f32 %v11417_v62, %v16779_v55  ;;  %v5002_v3 = vmul.f32 %v11417_v62, %v16780_v11  ;;  %5485 = vst [vmem:[%s12329_s26 + $0x1e8] sm:$0xff] %v10359_v26 }
 0x73b   : > { %5468 = vst [vmem:[%s12329_s26 + $0x160] sm:$0xff] %v10342_v48 }
 0x73c   : > { %v5085_v30 = vpack.c.bf16 %v5003_v16, %v5001_v54  ;;  %v5084_v28 = vpack.c.bf16 %v5002_v3, %v5000_v7  ;;  %v10343_v1 = vpack.c.bf16 %v5003_v16, %v5002_v3 }
 0x73e   : > { %v11419_v32 = vpop.eup %11418  ;;  %5762 = vmatprep.mubr.bf16.mxu1 %v5085_v30  ;;  %5469 = vst [vmem:[%s12329_s26 + $0x168] sm:$0xff] %v10343_v1 }
 0x73f   : > { %5763 = vmatmul.mubr.bf16.gmra.mrb[124].mxu1 %v5084_v28  ;;  %5860 = vmatmul.mubr.bf16.gmra.mrb[132].mxu0 %v5100_v49  ;;  %v5005_v59 = vmul.f32 %v11419_v32, %v16781_v29  ;;  %v5004_v6 = vmul.f32 %v11419_v32, %v16782_v8 }
 0x740   : > { %v11421_v42 = vpop.eup %11420 }
 0x741   : > { %v5007_v23 = vmul.f32 %v11421_v42, %v16783_v10  ;;  %v5006_v61 = vmul.f32 %v11421_v42, %v16784_v46  ;;  %v10344_v41 = vpack.c.bf16 %v5005_v59, %v5004_v6 }
 0x742   : > { %v11423_v43 = vpop.eup %11422 }
 0x743   : > { %v5087_v57 = vpack.c.bf16 %v5007_v23, %v5005_v59  ;;  %v10345_v22 = vpack.c.bf16 %v5007_v23, %v5006_v61  ;;  %5470 = vst [vmem:[%s12329_s26 + $0x170] sm:$0xff] %v10344_v41  ;;  %v5037_v14 = vmul.f32 %v11423_v43, %v14416_v38  ;;  %v5036_v0 = vmul.f32 %v11423_v43, %v14400_v24 }
 0x744   : > { %v11425_v27 = vpop.eup %11424  ;;  %v5086_v34 = vpack.c.bf16 %v5006_v61, %v5004_v6  ;;  %v16786_v38 = vmov 0  }
 0x745   : > { %5770 = vmatprep.mubr.bf16.mxu1 %v5087_v57  ;;  %5471 = vst [vmem:[%s12329_s26 + $0x178] sm:$0xff] %v10345_v22  ;;  %v5039_v12 = vmul.f32 %v11425_v27, %v14422_v4  ;;  %v5038_v33 = vmul.f32 %v11425_v27, %v16785_v52  ;;  %v10360_v2 = vpack.c.bf16 %v5037_v14, %v5036_v0 }
 0x747   : > { %5771 = vmatmul.mubr.bf16.gmra.mrb[128].mxu1 %v5086_v34  ;;  %v5103_v44 = vpack.c.bf16 %v5039_v12, %v5037_v14  ;;  %v5102_v35 = vpack.c.bf16 %v5038_v33, %v5036_v0  ;;  %v10361_v47 = vpack.c.bf16 %v5039_v12, %v5038_v33  ;;  %5486 = vst [vmem:[%s12329_s26 + $0x1f0] sm:$0xff] %v10360_v2 }
 0x749   : > { %5867 = vmatprep.mubr.bf16.mxu0 %v5103_v44  ;;  %5487 = vst [vmem:[%s12329_s26 + $0x1f8] sm:$0xff] %v10361_v47 }
 0x74a   : > { %5868 = vmatmul.mubr.bf16.gmra.mrb[136].mxu0 %v5102_v35 }
 0x74b   : > { %8867 = vmatprep.mubr.bf16.mxu0 %v16786_v38 }
 0x780   : > { %v5522_v56 = vpop.f32.mrb[68].mxu1 }
 0x781   : > { %v5524_v24 = vpop.f32.mrb[69].mxu1 }
 0x782   : > { %v5525_v36 = vpop.f32.mrb[70].mxu1 }
 0x783   : > { %v5876_v37 = vpack.c.bf16 %v5525_v36, %v5522_v56  ;;  %v5527_v17 = vpop.f32.mrb[71].mxu1  ;;  %v5619_v50 = vpop.f32.mrb[76].mxu0 }
 0x784   : > { %v5621_v4 = vpop.f32.mrb[77].mxu0 }
 0x785   : > { %v5622_v18 = vpop.f32.mrb[78].mxu0  ;;  %v5912_v39 = vshrl.u32 %v5876_v37, 16 }
 0x786   : > { %v5884_v25 = vpack.c.bf16 %v5622_v18, %v5619_v50  ;;  %v5624_v15 = vpop.f32.mrb[79].mxu0 }
 0x788   : > { %v14633_v9 = vpack.i.b16 %v5884_v25, %v5876_v37  ;;  %v5913_v5 = vshrl.u32 %v5884_v25, 16 }
 0x78a   : > { %v14635_v19 = vpack.i.b16 %v5913_v5, %v5912_v39 }
 0x78e   : > { %v5530_v60 = vpop.f32.mrb[72].mxu1 }
 0x78f   : > { %v5532_v40 = vpop.f32.mrb[73].mxu1 }
 0x790   : > { %v5533_v21 = vpop.f32.mrb[74].mxu1 }
 0x791   : > { %v5877_v20 = vpack.c.bf16 %v5533_v21, %v5530_v60  ;;  %v5535_v51 = vpop.f32.mrb[75].mxu1 }
 0x792   : > { %v5627_v45 = vpop.f32.mrb[80].mxu0 }
 0x793   : > { %v5629_v31 = vpop.f32.mrb[81].mxu0  ;;  %v5928_v58 = vshrl.u32 %v5877_v20, 16 }
 0x794   : > { %v5630_v53 = vpop.f32.mrb[82].mxu0 }
 0x795   : > { %v5885_v13 = vpack.c.bf16 %v5630_v53, %v5627_v45  ;;  %v5632_v54 = vpop.f32.mrb[83].mxu0 }
 0x797   : > { %v14637_v7 = vpack.i.b16 %v5885_v13, %v5877_v20  ;;  %v5929_v62 = vshrl.u32 %v5885_v13, 16 }
 0x799   : > { %v14639_v63 = vpack.i.b16 %v5929_v62, %v5928_v58 }
 0x7a5   : > { %v5538_v26 = vpop.f32.mrb[76].mxu1 }
 0x7a6   : > { %v5540_v55 = vpop.f32.mrb[77].mxu1 }
 0x7a7   : > { %v5541_v16 = vpop.f32.mrb[78].mxu1 }
 0x7a8   : > { %v5878_v11 = vpack.c.bf16 %v5541_v16, %v5538_v26  ;;  %v5543_v3 = vpop.f32.mrb[79].mxu1 }
 0x7a9   : > { %v5635_v48 = vpop.f32.mrb[84].mxu0 }
 0x7aa   : > { %v5637_v30 = vpop.f32.mrb[85].mxu0  ;;  %v5944_v29 = vshrl.u32 %v5878_v11, 16 }
 0x7ab   : > { %v5638_v28 = vpop.f32.mrb[86].mxu0 }
 0x7ac   : > { %v5886_v1 = vpack.c.bf16 %v5638_v28, %v5635_v48  ;;  %v5640_v49 = vpop.f32.mrb[87].mxu0 }
 0x7ae   : > { %v5546_v32 = vpop.f32.mrb[80].mxu1  ;;  %v14641_v59 = vpack.i.b16 %v5886_v1, %v5878_v11  ;;  %v5945_v8 = vshrl.u32 %v5886_v1, 16 }
 0x7af   : > { %v5548_v6 = vpop.f32.mrb[81].mxu1 }
 0x7b0   : > { %v5549_v42 = vpop.f32.mrb[82].mxu1  ;;  %v14643_v10 = vpack.i.b16 %v5945_v8, %v5944_v29 }
 0x7b1   : > { %v5879_v23 = vpack.c.bf16 %v5549_v42, %v5546_v32  ;;  %v5551_v46 = vpop.f32.mrb[83].mxu1 }
 0x7b2   : > { %v5643_v61 = vpop.f32.mrb[88].mxu0  ;;  %v16787_v46 = vld [vmem:[#allocation39_spill] sm:$0xff] }
 0x7b3   : > { %v5645_v41 = vpop.f32.mrb[89].mxu0  ;;  %v5960_v27 = vshrl.u32 %v5879_v23, 16 }
 0x7b4   : > { %v5646_v43 = vpop.f32.mrb[90].mxu0 }
 0x7b5   : > { %v5887_v57 = vpack.c.bf16 %v5646_v43, %v5643_v61  ;;  %v5648_v22 = vpop.f32.mrb[91].mxu0  ;;  %v6036_v61 = vcombine.high %v14633_v9, %v16787_v46 }
 0x7b6   : > { %v6168_v22 = vcombine.high %v14637_v7, %v16787_v46 }
 0x7b7   : > { %v14645_v0 = vpack.i.b16 %v5887_v57, %v5879_v23  ;;  %v5961_v34 = vshrl.u32 %v5887_v57, 16  ;;  %v6102_v57 = vcombine.high %v14635_v19, %v16787_v46 }
 0x7b8   : > { %v5554_v14 = vpop.f32.mrb[84].mxu1 }
 0x7b9   : > { %v5556_v12 = vpop.f32.mrb[85].mxu1  ;;  %v14647_v33 = vpack.i.b16 %v5961_v34, %v5960_v27  ;;  %v16788_v27 = vld [vmem:[#allocation40_spill] sm:$0xff] }
 0x7ba   : > { %v5557_v52 = vpop.f32.mrb[86].mxu1  ;;  %v14669_v34 = vrot.slane %v14633_v9, %v16788_v27  ;;  %v6234_v12 = vcombine.high %v14639_v63, %v16787_v46  ;;  %v6432_v9 = vcombine.high %v14645_v0, %v16787_v46 }
 0x7bb   : > { %v5880_v2 = vpack.c.bf16 %v5557_v52, %v5554_v14  ;;  %v5559_v44 = vpop.f32.mrb[87].mxu1 }
 0x7bc   : > { %v5651_v35 = vpop.f32.mrb[92].mxu0  ;;  %v14674_v44 = vrot.slane %v6036_v61, %v16788_v27 }
 0x7bd   : > { %v5653_v47 = vpop.f32.mrb[93].mxu0  ;;  %v5976_v17 = vshrl.u32 %v5880_v2, 16 }
 0x7be   : > { %v5654_v56 = vpop.f32.mrb[94].mxu0  ;;  %v6300_v47 = vcombine.high %v14641_v59, %v16787_v46 }
 0x7bf   : > { %v5888_v24 = vpack.c.bf16 %v5654_v56, %v5651_v35  ;;  %v5656_v36 = vpop.f32.mrb[95].mxu0  ;;  %v14678_v35 = vrot.slane %v14635_v19, %v16788_v27  ;;  %v6366_v56 = vcombine.high %v14643_v10, %v16787_v46  ;;  %v14693_v19 = vrot.slane %v14637_v7, %v16788_v27 }
 0x7c0   : > { %v14711_v7 = vrot.slane %v14641_v59, %v16788_v27  ;;  %v14730_v59 = vrot.slane %v6432_v9, %v16788_v27 }
 0x7c1   : > { %v14649_v50 = vpack.i.b16 %v5888_v24, %v5880_v2  ;;  %v5977_v4 = vshrl.u32 %v5888_v24, 16 }
 0x7c2   : > { %v5562_v37 = vpop.f32.mrb[88].mxu1 }
 0x7c3   : > { %v5564_v18 = vpop.f32.mrb[89].mxu1  ;;  %v14651_v15 = vpack.i.b16 %v5977_v4, %v5976_v17  ;;  %v14689_v17 = vrot.slane %v6102_v57, %v16788_v27  ;;  %v14696_v4 = vrot.slane %v6168_v22, %v16788_v27 }
 0x7c4   : > { %v5565_v25 = vpop.f32.mrb[90].mxu1  ;;  %v6498_v18 = vcombine.high %v14647_v33, %v16787_v46 }
 0x7c5   : > { %v5881_v39 = vpack.c.bf16 %v5565_v25, %v5562_v37  ;;  %v5567_v5 = vpop.f32.mrb[91].mxu1  ;;  %v14702_v25 = vrot.slane %v14639_v63, %v16788_v27  ;;  %v6630_v63 = vcombine.high %v14651_v15, %v16787_v46 }
 0x7c6   : > { %v5659_v60 = vpop.f32.mrb[96].mxu0  ;;  %v6564_v5 = vcombine.high %v14649_v50, %v16787_v46 }
 0x7c7   : > { %v5661_v40 = vpop.f32.mrb[97].mxu0  ;;  %v5992_v31 = vshrl.u32 %v5881_v39, 16 }
 0x7c8   : > { %v5662_v21 = vpop.f32.mrb[98].mxu0  ;;  %v14714_v40 = vrot.slane %v6300_v47, %v16788_v27 }
 0x7c9   : > { %v5889_v20 = vpack.c.bf16 %v5662_v21, %v5659_v60  ;;  %v5664_v51 = vpop.f32.mrb[99].mxu0  ;;  %v14718_v21 = vrot.slane %v14643_v10, %v16788_v27 }
 0x7ca   : > { %v5570_v45 = vpop.f32.mrb[92].mxu1 }
 0x7cb   : > { %v14653_v53 = vpack.i.b16 %v5889_v20, %v5881_v39  ;;  %v5993_v13 = vshrl.u32 %v5889_v20, 16  ;;  %v5572_v54 = vpop.f32.mrb[93].mxu1  ;;  %v14705_v39 = vrot.slane %v6234_v12, %v16788_v27 }
 0x7cc   : > { %v5573_v58 = vpop.f32.mrb[94].mxu1 }
 0x7cd   : > { %v14655_v62 = vpack.i.b16 %v5993_v13, %v5992_v31  ;;  %v5882_v26 = vpack.c.bf16 %v5573_v58, %v5570_v45  ;;  %v5575_v55 = vpop.f32.mrb[95].mxu1  ;;  %v14723_v45 = vrot.slane %v6366_v56, %v16788_v27  ;;  %v14727_v31 = vrot.slane %v14645_v0, %v16788_v27 }
 0x7ce   : > { %v5667_v16 = vpop.f32.mrb[100].mxu0  ;;  %v6696_v13 = vcombine.high %v14653_v53, %v16787_v46  ;;  %v14736_v58 = vrot.slane %v14647_v33, %v16788_v27  ;;  %v14743_v55 = vrot.slane %v14649_v50, %v16788_v27  ;;  %v14759_v50 = vrot.slane %v14653_v53, %v16788_v27 }
 0x7cf   : > { %v5669_v11 = vpop.f32.mrb[101].mxu0  ;;  %v6008_v1 = vshrl.u32 %v5882_v26, 16  ;;  %v6762_v0 = vcombine.high %v14655_v62, %v16787_v46 }
 0x7d0   : > { %v5670_v3 = vpop.f32.mrb[102].mxu0 }
 0x7d1   : > { %v5890_v48 = vpack.c.bf16 %v5670_v3, %v5667_v16  ;;  %v5672_v30 = vpop.f32.mrb[103].mxu0  ;;  %v14748_v3 = vrot.slane %v6564_v5, %v16788_v27 }
 0x7d2   : > { %v5578_v28 = vpop.f32.mrb[96].mxu1 }
 0x7d3   : > { %v14657_v49 = vpack.i.b16 %v5890_v48, %v5882_v26  ;;  %v6009_v32 = vshrl.u32 %v5890_v48, 16  ;;  %v5580_v29 = vpop.f32.mrb[97].mxu1  ;;  %v14739_v26 = vrot.slane %v6498_v18, %v16788_v27  ;;  %v14752_v48 = vrot.slane %v14651_v15, %v16788_v27 }
 0x7d4   : > { %v5581_v8 = vpop.f32.mrb[98].mxu1  ;;  %v14766_v15 = vrot.slane %v6696_v13, %v16788_v27 }
 0x7d5   : > { %v14659_v6 = vpack.i.b16 %v6009_v32, %v6008_v1  ;;  %v5883_v42 = vpack.c.bf16 %v5581_v8, %v5578_v28  ;;  %v5583_v23 = vpop.f32.mrb[99].mxu1  ;;  %v14755_v32 = vrot.slane %v6630_v63, %v16788_v27  ;;  %v6828_v29 = vcombine.high %v14657_v49, %v16787_v46 }
 0x7d6   : > { %v14780_v22 = vrot.slane %v14657_v49, %v16788_v27 }
 0x7d7   : > { %v6024_v24 = vshrl.u32 %v5883_v42, 16  ;;  %v6894_v8 = vcombine.high %v14659_v6, %v16787_v46 }
 0x7d9   : > { %v14792_v47 = vrot.slane %v6894_v8, %v16788_v27 }
 0x7da   : > { %v5675_v41 = vpop.f32.mrb[104].mxu0 }
 0x7db   : > { %v5677_v43 = vpop.f32.mrb[105].mxu0  ;;  %16789 = vst [vmem:[#allocation114_spill] sm:$0xff] %v14792_v47 }
 0x7dc   : > { %v5678_v14 = vpop.f32.mrb[106].mxu0  ;;  %v14773_v43 = vrot.slane %v6762_v0, %v16788_v27  ;;  %v16794_v0 = vld [vmem:[#allocation41_spill] sm:$0xff] }
 0x7dd   : > { %v5891_v52 = vpack.c.bf16 %v5678_v14, %v5675_v41  ;;  %v5680_v2 = vpop.f32.mrb[107].mxu0  ;;  %v14770_v41 = vrot.slane %v14655_v62, %v16788_v27  ;;  %v14785_v62 = vrot.slane %v6828_v29, %v16788_v27 }
 0x7de   : > { %v14789_v2 = vrot.slane %v14659_v6, %v16788_v27 }
 0x7df   : > { %v14686_v36 = vpack.i.b16 %v5891_v52, %v5883_v42  ;;  %v6025_v37 = vshrl.u32 %v5891_v52, 16 }
 0x7e1   : > { %v6026_v60 = vpack.i.b16 %v6025_v37, %v6024_v24  ;;  %v6960_v53 = vcombine.high %v14686_v36, %v16787_v46  ;;  %v14796_v56 = vrot.slane %v14686_v36, %v16788_v27 }
 0x7e2   : > { %v5716_v20 = vpop.f32.mrb[100].mxu1  ;;  %v5813_v51 = vpop.f32.mrb[108].mxu0 }
 0x7e3   : > { %v5718_v10 = vpop.f32.mrb[101].mxu1  ;;  %v5815_v54 = vpop.f32.mrb[109].mxu0  ;;  %v7026_v57 = vcombine.high %v6026_v60, %v16787_v46  ;;  %16790 = vst [vmem:[#allocation115_spill] sm:$0xff] %v14796_v56 }
 0x7e4   : > { %v5719_v16 = vpop.f32.mrb[102].mxu1  ;;  %v5816_v11 = vpop.f32.mrb[110].mxu0 }
 0x7e5   : > { %v5892_v33 = vpack.c.bf16 %v5719_v16, %v5716_v20  ;;  %v5900_v30 = vpack.c.bf16 %v5816_v11, %v5813_v51  ;;  %v5721_v28 = vpop.f32.mrb[103].mxu1  ;;  %v5818_v1 = vpop.f32.mrb[111].mxu0  ;;  %v14803_v20 = vrot.slane %v6960_v53, %v16788_v27  ;;  %v14806_v51 = vrot.slane %v6026_v60, %v16788_v27 }
 0x7e6   : > { %v14809_v36 = vrot.slane %v7026_v57, %v16788_v27 }
 0x7e7   : > { %v5920_v42 = vshrl.u32 %v5892_v33, 16  ;;  %v5918_v23 = vpack.i.b16 %v5900_v30, %v5892_v33  ;;  %v5921_v61 = vshrl.u32 %v5900_v30, 16  ;;  %16791 = vst [vmem:[#allocation116_spill] sm:$0xff] %v14803_v20  ;;  %16792 = vst [vmem:[#allocation118_spill] sm:$0xff] %v14806_v51  ;;  %v10960_v20 = vld [vmem:[#allocation12 + $0x30] sm:$0xff]  }
 0x7e8   : > { %16793 = vst [vmem:[#allocation117_spill] sm:$0xff] %v14809_v36 }
 0x7e9   : > { %v5922_v14 = vpack.i.b16 %v5921_v61, %v5920_v42  ;;  %v6051_v12 = vcombine.high %v5918_v23, %v16787_v46  ;;  %v6058_v52 = vrot.slane %v5918_v23, %v16788_v27 }
 0x7ea   : > { %v5724_v49 = vpop.f32.mrb[104].mxu1  ;;  %v5821_v9 = vpop.f32.mrb[112].mxu0 }
 0x7eb   : > { %v6065_v24 = vrot.slane %v6051_v12, %v16788_v27  ;;  %v6066_v37 = vcombine.low %v14669_v34, %v6058_v52  ;;  %v6067_v18 = vcombine.high %v14669_v34, %v6058_v52  ;;  %v6117_v5 = vcombine.high %v5922_v14, %v16787_v46  ;;  %v5726_v63 = vpop.f32.mrb[105].mxu1  ;;  %v5823_v6 = vpop.f32.mrb[113].mxu0 }
 0x7ec   : > { %v6124_v13 = vrot.slane %v5922_v14, %v16788_v27  ;;  %v5727_v10 = vpop.f32.mrb[106].mxu1  ;;  %v5824_v54 = vpop.f32.mrb[114].mxu0 }
 0x7ed   : > { %v6074_v16 = vrot.slane %v6066_v37, %v16794_v0  ;;  %v6081_v34 = vrot.slane %v6067_v18, %v16794_v0  ;;  %v6082_v11 = vcombine.low %v14674_v44, %v6065_v24  ;;  %v6083_v33 = vcombine.high %v14674_v44, %v6065_v24  ;;  %v5729_v30 = vpop.f32.mrb[107].mxu1  ;;  %v5826_v28 = vpop.f32.mrb[115].mxu0 }
 0x7ee   : > { %v6131_v60 = vrot.slane %v6117_v5, %v16788_v27  ;;  %v6132_v1 = vcombine.low %v14678_v35, %v6124_v13  ;;  %v6133_v29 = vcombine.high %v14678_v35, %v6124_v13  ;;  %v5893_v8 = vpack.c.bf16 %v5727_v10, %v5724_v49 }
 0x7ef   : > { %v6090_v42 = vrot.slane %v6082_v11, %v16794_v0  ;;  %v6097_v23 = vrot.slane %v6083_v33, %v16794_v0  ;;  %v7092_v61 = vcombine.low %v6074_v16, %v6081_v34  ;;  %v10176_v53 = vcombine.high %v6074_v16, %v6081_v34 }
 0x7f0   : > { %v6140_v57 = vrot.slane %v6132_v1, %v16794_v0  ;;  %v6147_v14 = vrot.slane %v6133_v29, %v16794_v0  ;;  %v6148_v44 = vcombine.low %v14689_v17, %v6131_v60  ;;  %v6149_v12 = vcombine.high %v14689_v17, %v6131_v60 }
 0x7f1   : > { %v7099_v52 = vrot.slane %v7092_v61, %v16788_v27  ;;  %v7107_v24 = vrot.slane %v10176_v53, %v16788_v27  ;;  %v7108_v35 = vcombine.low %v6090_v42, %v6097_v23  ;;  %v10177_v49 = vcombine.high %v6090_v42, %v6097_v23 }
 0x7f2   : > { %v6156_v37 = vrot.slane %v6148_v44, %v16794_v0  ;;  %v6163_v18 = vrot.slane %v6149_v12, %v16794_v0  ;;  %v7142_v5 = vcombine.low %v6140_v57, %v6147_v14  ;;  %v10178_v63 = vcombine.high %v6140_v57, %v6147_v14  ;;  %v5732_v6 = vpop.f32.mrb[108].mxu1  ;;  %v5829_v13 = vpop.f32.mrb[116].mxu0 }
 0x7f3   : > { %v7115_v10 = vrot.slane %v7108_v35, %v16788_v27  ;;  %v7123_v16 = vrot.slane %v10177_v49, %v16788_v27  ;;  %v5936_v34 = vshrl.u32 %v5893_v8, 16  ;;  %v5901_v17 = vpack.c.bf16 %v5824_v54, %v5821_v9  ;;  %v5734_v11 = vpop.f32.mrb[109].mxu1  ;;  %v5831_v33 = vpop.f32.mrb[117].mxu0  ;;  %v10954_v49 = vld [vmem:[#allocation12] sm:$0xff]  }
 0x7f4   : > { %v14832_v30 = vrot.slane %v7142_v5, %v16788_v27  ;;  %v14835_v28 = vrot.slane %v10178_v63, %v16788_v27  ;;  %v7158_v60 = vcombine.low %v6156_v37, %v6163_v18  ;;  %v10179_v1 = vcombine.high %v6156_v37, %v6163_v18  ;;  %v5735_v29 = vpop.f32.mrb[110].mxu1  ;;  %v5832_v42 = vpop.f32.mrb[118].mxu0  ;;  %v10955_v5 = vld [vmem:[#allocation12 + $0x8] sm:$0xff]   ;;  %10699 = vmatprep.subr.bf16.mxu1 %v10954_v49 }
 0x7f5   : > { %v5934_v23 = vpack.i.b16 %v5901_v17, %v5893_v8  ;;  %v5937_v61 = vshrl.u32 %v5901_v17, 16  ;;  %v5894_v53 = vpack.c.bf16 %v5735_v29, %v5732_v6  ;;  %v5902_v57 = vpack.c.bf16 %v5832_v42, %v5829_v13  ;;  %v5737_v14 = vpop.f32.mrb[111].mxu1  ;;  %v5834_v44 = vpop.f32.mrb[119].mxu0  ;;  %10700 = vmatpush3.bf16.msra.mxu1 %v10954_v49 }
 0x7f6   : > { %v7124_v12 = vcombine.low %v7099_v52, %v7107_v24  ;;  %v7132_v9 = vcombine.low %v7115_v10, %v7123_v16  ;;  %v14838_v54 = vrot.slane %v7158_v60, %v16788_v27  ;;  %v14841_v35 = vrot.slane %v10179_v1, %v16788_v27  ;;  %10701 = vmatprep.subr.bf16.mxu1 %v10955_v5 }
 0x7f7   : > { %v5938_v63 = vpack.i.b16 %v5937_v61, %v5936_v34  ;;  %v6183_v37 = vcombine.high %v5934_v23, %v16787_v46  ;;  %v6190_v8 = vrot.slane %v5934_v23, %v16788_v27  ;;  %v5952_v18 = vshrl.u32 %v5894_v53, 16  ;;  %v10956_v23 = vld [vmem:[#allocation12 + $0x10] sm:$0xff]  }
 0x7f8   : > { %v5950_v6 = vpack.i.b16 %v5902_v57, %v5894_v53  ;;  %v5953_v13 = vshrl.u32 %v5902_v57, 16  ;;  %v14846_v17 = vrot.slane %v7124_v12, %v16794_v0  ;;  %v14849_v52 = vrot.slane %v7132_v9, %v16794_v0 }
 0x7f9   : > { %v6197_v24 = vrot.slane %v6183_v37, %v16788_v27  ;;  %v6198_v10 = vcombine.low %v14693_v19, %v6190_v8  ;;  %v6199_v16 = vcombine.high %v14693_v19, %v6190_v8  ;;  %v6249_v34 = vcombine.high %v5938_v63, %v16787_v46  ;;  %10702 = vmatpush3.bf16.msra.mxu1 %v10955_v5 }
 0x7fa   : > { %v6256_v11 = vrot.slane %v5938_v63, %v16788_v27  ;;  %v14856_v33 = vpack.i.b16 %v5953_v13, %v5952_v18  ;;  %v6315_v60 = vcombine.high %v5950_v6, %v16787_v46  ;;  %v6322_v1 = vrot.slane %v5950_v6, %v16788_v27  ;;  %v5740_v29 = vpop.f32.mrb[112].mxu1  ;;  %v5837_v42 = vpop.f32.mrb[120].mxu0  ;;  %10703 = vmatprep.subr.bf16.mxu1 %v10956_v23 }
 0x7fb   : > { %v6206_v61 = vrot.slane %v6198_v10, %v16794_v0  ;;  %v6213_v53 = vrot.slane %v6199_v16, %v16794_v0  ;;  %v6214_v19 = vcombine.low %v14696_v4, %v6197_v24  ;;  %v6215_v57 = vcombine.high %v14696_v4, %v6197_v24  ;;  %v5742_v14 = vpop.f32.mrb[113].mxu1  ;;  %v5839_v44 = vpop.f32.mrb[121].mxu0 }
 0x7fc   : > { %v6263_v12 = vrot.slane %v6249_v34, %v16788_v27  ;;  %v6264_v9 = vcombine.low %v14702_v25, %v6256_v11  ;;  %v6265_v49 = vcombine.high %v14702_v25, %v6256_v11  ;;  %v6329_v63 = vrot.slane %v6315_v60, %v16788_v27  ;;  %v5743_v37 = vpop.f32.mrb[114].mxu1  ;;  %v5840_v8 = vpop.f32.mrb[122].mxu0  ;;  %v10957_v11 = vld [vmem:[#allocation12 + $0x18] sm:$0xff]  }
 0x7fd   : > { %v6222_v18 = vrot.slane %v6214_v19, %v16794_v0  ;;  %v6229_v6 = vrot.slane %v6215_v57, %v16794_v0  ;;  %v7192_v13 = vcombine.low %v6206_v61, %v6213_v53  ;;  %v10180_v10 = vcombine.high %v6206_v61, %v6213_v53  ;;  %v5745_v16 = vpop.f32.mrb[115].mxu1  ;;  %v5842_v4 = vpop.f32.mrb[123].mxu0  ;;  %10704 = vmatpush3.bf16.msra.mxu1 %v10956_v23 }
 0x7fe   : > { %v6272_v24 = vrot.slane %v6264_v9, %v16794_v0  ;;  %v6279_v34 = vrot.slane %v6265_v49, %v16794_v0  ;;  %v6280_v14 = vcombine.low %v14705_v39, %v6263_v12  ;;  %v6281_v25 = vcombine.high %v14705_v39, %v6263_v12  ;;  %10705 = vmatprep.subr.bf16.mxu1 %v10957_v11 }
 0x7ff   : > { %v14875_v60 = vrot.slane %v7192_v13, %v16788_v27  ;;  %v14878_v19 = vrot.slane %v10180_v10, %v16788_v27  ;;  %v7208_v61 = vcombine.low %v6222_v18, %v6229_v6  ;;  %v10181_v53 = vcombine.high %v6222_v18, %v6229_v6 }
 0x800   : > { %v14881_v5 = vrot.slane %v6280_v14, %v16794_v0  ;;  %v14884_v57 = vrot.slane %v6281_v25, %v16794_v0  ;;  %v7242_v44 = vcombine.low %v6272_v24, %v6279_v34  ;;  %v10182_v9 = vcombine.high %v6272_v24, %v6279_v34  ;;  %v10958_v34 = vld [vmem:[#allocation12 + $0x20] sm:$0xff]  }
 0x801   : > { %v14887_v39 = vrot.slane %v7208_v61, %v16788_v27  ;;  %v14890_v12 = vrot.slane %v10181_v53, %v16788_v27  ;;  %v6330_v49 = vcombine.low %v14711_v7, %v6322_v1  ;;  %v6331_v13 = vcombine.high %v14711_v7, %v6322_v1  ;;  %10706 = vmatpush3.bf16.msra.mxu1 %v10957_v11 }
 0x802   : > { %v14895_v18 = vrot.slane %v7242_v44, %v16788_v27  ;;  %v14898_v6 = vrot.slane %v10182_v9, %v16788_v27  ;;  %v14904_v4 = vpop.f32.mrb[116].mxu1  ;;  %v14906_v24 = vpop.f32.mrb[124].mxu0  ;;  %v6346_v23 = vcombine.low %v14714_v40, %v6329_v63  ;;  %v6347_v14 = vcombine.high %v14714_v40, %v6329_v63  ;;  %10707 = vmatprep.subr.bf16.mxu1 %v10958_v34 }
 0x803   : > { %v6338_v7 = vrot.slane %v6330_v49, %v16794_v0  ;;  %v6345_v1 = vrot.slane %v6331_v13, %v16794_v0  ;;  %v5750_v25 = vpop.f32.mrb[117].mxu1  ;;  %v5847_v61 = vpop.f32.mrb[125].mxu0  ;;  %v6381_v53 = vcombine.high %v14856_v33, %v16787_v46  ;;  %v6388_v44 = vrot.slane %v14856_v33, %v16788_v27 }
 0x804   : > { %v5895_v9 = vpack.c.bf16 %v5743_v37, %v5740_v29  ;;  %v5903_v16 = vpack.c.bf16 %v5840_v8, %v5837_v42  ;;  %v14916_v10 = vpop.f32.mrb[118].mxu1  ;;  %v14918_v38 = vpop.f32.mrb[126].mxu0  ;;  %v6354_v49 = vrot.slane %v6346_v23, %v16794_v0  ;;  %v6361_v13 = vrot.slane %v6347_v14, %v16794_v0  ;;  %v10959_v42 = vld [vmem:[#allocation12 + $0x28] sm:$0xff]  }
 0x805   : > { %v7292_v36 = vcombine.low %v6338_v7, %v6345_v1  ;;  %v10184_v40 = vcombine.high %v6338_v7, %v6345_v1  ;;  %v5753_v63 = vpop.f32.mrb[119].mxu1  ;;  %v5850_v25 = vpop.f32.mrb[127].mxu0  ;;  %v6395_v61 = vrot.slane %v6381_v53, %v16788_v27  ;;  %v6396_v51 = vcombine.low %v14718_v21, %v6388_v44  ;;  %10708 = vmatpush3.bf16.msra.mxu1 %v10958_v34 }
 0x806   : > { %v6397_v33 = vcombine.high %v14718_v21, %v6388_v44  ;;  %v5968_v29 = vshrl.u32 %v5895_v9, 16  ;;  %v7308_v23 = vcombine.low %v6354_v49, %v6361_v13  ;;  %v10185_v7 = vcombine.high %v6354_v49, %v6361_v13  ;;  %10709 = vmatprep.subr.bf16.mxu1 %v10959_v42 }
 0x807   : > { %v14926_v37 = vrot.slane %v7292_v36, %v16788_v27  ;;  %v14929_v8 = vrot.slane %v10184_v40, %v16788_v27  ;;  %v6404_v1 = vrot.slane %v6396_v51, %v16794_v0  ;;  %v6412_v14 = vcombine.low %v14723_v45, %v6395_v61 }
 0x808   : > { %v6411_v11 = vrot.slane %v6397_v33, %v16794_v0  ;;  %v6413_v53 = vcombine.high %v14723_v45, %v6395_v61  ;;  %v14936_v21 = vrot.slane %v7308_v23, %v16788_v27  ;;  %v14939_v44 = vrot.slane %v10185_v7, %v16788_v27 }
 0x809   : > { %v5966_v36 = vpack.i.b16 %v5903_v16, %v5895_v9  ;;  %v5969_v63 = vshrl.u32 %v5903_v16, 16  ;;  %v14942_v40 = vrot.slane %v6412_v14, %v16794_v0  ;;  %v14955_v16 = vcombine.high %v14846_v17, %v14849_v52  ;;  %10710 = vmatpush3.bf16.msra.mxu1 %v10959_v42 }
 0x80a   : > { %v14945_v51 = vrot.slane %v6413_v53, %v16794_v0  ;;  %v7342_v49 = vcombine.low %v6404_v1, %v6411_v11  ;;  %v10186_v13 = vcombine.high %v6404_v1, %v6411_v11  ;;  %v14947_v25 = vpop.f32.mrb[120].mxu1  ;;  %v14949_v45 = vpop.f32.mrb[128].mxu0  ;;  %v7182_v56 = vcombine.low %v14838_v54, %v14841_v35  ;;  %10711 = vmatprep.subr.bf16.mxu1 %v10960_v20 }
 0x80b   : > { %v5970_v61 = vpack.i.b16 %v5969_v63, %v5968_v29  ;;  %v6447_v33 = vcombine.high %v5966_v36, %v16787_v46  ;;  %v6454_v9 = vrot.slane %v5966_v36, %v16788_v27  ;;  %v5758_v34 = vpop.f32.mrb[121].mxu1  ;;  %v5855_v23 = vpop.f32.mrb[129].mxu0  ;;  %v7174_v29 = vcombine.low %v14832_v30, %v14835_v28 }
 0x80c   : > { %v14958_v7 = vrot.slane %v7342_v49, %v16788_v27  ;;  %v14961_v1 = vrot.slane %v10186_v13, %v16788_v27  ;;  %v14967_v14 = vpop.f32.mrb[122].mxu1  ;;  %v14969_v53 = vpop.f32.mrb[130].mxu0 }
 0x80d   : > { %v6461_v36 = vrot.slane %v6447_v33, %v16788_v27  ;;  %v6462_v63 = vcombine.low %v14727_v31, %v6454_v9  ;;  %v6463_v49 = vcombine.high %v14727_v31, %v6454_v9  ;;  %v6513_v34 = vcombine.high %v5970_v61, %v16787_v46  ;;  %v5761_v13 = vpop.f32.mrb[123].mxu1  ;;  %v5858_v23 = vpop.f32.mrb[131].mxu0  ;;  %10712 = vmatpush3.bf16.msra.mxu1 %v10960_v20 }
 0x80e   : > { %v6520_v11 = vrot.slane %v5970_v61, %v16788_v27  ;;  %v14982_v33 = vcombine.low %v14846_v17, %v14849_v52  ;;  %v7181_v54 = vrot.slane %v7174_v29, %v16794_v0 }
 0x80f   : > { %v6470_v31 = vrot.slane %v6462_v63, %v16794_v0  ;;  %v6477_v9 = vrot.slane %v6463_v49, %v16794_v0  ;;  %v6478_v13 = vcombine.low %v14730_v59, %v6461_v36  ;;  %v6479_v42 = vcombine.high %v14730_v59, %v6461_v36 }
 0x810   : > { %16795 = vst [vmem:[#allocation120_spill] sm:$0xff] %v14982_v33  ;;  %v6527_v61 = vrot.slane %v6513_v34, %v16788_v27  ;;  %v6528_v30 = vcombine.low %v14736_v58, %v6520_v11  ;;  %v6529_v28 = vcombine.high %v14736_v58, %v6520_v11 }
 0x811   : > { %v6486_v35 = vrot.slane %v6478_v13, %v16794_v0  ;;  %v6493_v17 = vrot.slane %v6479_v42, %v16794_v0  ;;  %v7392_v52 = vcombine.low %v6470_v31, %v6477_v9  ;;  %v10188_v63 = vcombine.high %v6470_v31, %v6477_v9 }
 0x812   : > { %v6536_v49 = vrot.slane %v6528_v30, %v16794_v0  ;;  %v6543_v59 = vrot.slane %v6529_v28, %v16794_v0  ;;  %v6544_v36 = vcombine.low %v14739_v26, %v6527_v61  ;;  %v6545_v34 = vcombine.high %v14739_v26, %v6527_v61  ;;  %v14998_v23 = vpop.f32.mrb[124].mxu1  ;;  %v15000_v58 = vpop.f32.mrb[132].mxu0 }
 0x813   : > { %v15003_v11 = vrot.slane %v7392_v52, %v16788_v27  ;;  %v15006_v29 = vrot.slane %v10188_v63, %v16788_v27  ;;  %v7408_v31 = vcombine.low %v6486_v35, %v6493_v17  ;;  %v10189_v20 = vcombine.high %v6486_v35, %v6493_v17  ;;  %v5766_v9 = vpop.f32.mrb[125].mxu1  ;;  %v5863_v13 = vpop.f32.mrb[133].mxu0 }
 0x814   : > { %v15009_v42 = vrot.slane %v6544_v36, %v16794_v0  ;;  %v15012_v30 = vrot.slane %v6545_v34, %v16794_v0  ;;  %v7442_v26 = vcombine.low %v6536_v49, %v6543_v59  ;;  %v10190_v61 = vcombine.high %v6536_v49, %v6543_v59  ;;  %v15014_v28 = vpop.f32.mrb[126].mxu1  ;;  %v15016_v47 = vpop.f32.mrb[134].mxu0 }
 0x815   : > { %v15019_v52 = vrot.slane %v7408_v31, %v16788_v27  ;;  %v15022_v63 = vrot.slane %v10189_v20, %v16788_v27  ;;  %v7189_v35 = vrot.slane %v7182_v56, %v16794_v0  ;;  %v7895_v17 = vshrl.u32 %v14982_v33, 16  ;;  %v5769_v36 = vpop.f32.mrb[127].mxu1  ;;  %v5866_v9 = vpop.f32.mrb[135].mxu0 }
 0x816   : > { %v15027_v34 = vrot.slane %v7442_v26, %v16788_v27  ;;  %v15030_v49 = vrot.slane %v10190_v61, %v16788_v27  ;;  %v5896_v56 = vpack.c.bf16 %v14916_v10, %v14904_v4  ;;  %v5904_v26 = vpack.c.bf16 %v14918_v38, %v14906_v24 }
 0x817   : > { %v15036_v20 = vcombine.high %v7181_v54, %v7189_v35  ;;  %v15038_v13 = vcombine.low %v7181_v54, %v7189_v35  ;;  %v7224_v61 = vcombine.low %v14875_v60, %v14878_v19  ;;  %v7232_v36 = vcombine.low %v14887_v39, %v14890_v12 }
 0x818   : > { %v16797_v9 = vcombine.low %v14881_v5, %v14884_v57  ;;  %v16798_v54 = vcombine.high %v14881_v5, %v14884_v57  ;;  %v5984_v4 = vshrl.u32 %v5896_v56, 16  ;;  %v5982_v60 = vpack.i.b16 %v5904_v26, %v5896_v56 }
 0x819   : > { %16796 = vst [vmem:[#allocation119_spill] sm:$0xff] %v15038_v13  ;;  %v7900_v10 = vpack.i.b16 %v15036_v20, %v14955_v16  ;;  %v7896_v38 = vshrl.u32 %v15038_v13, 16  ;;  %v5985_v19 = vshrl.u32 %v5904_v26, 16  ;;  %v7231_v39 = vrot.slane %v7224_v61, %v16794_v0 }
 0x81a   : > { %v7265_v31 = vrot.slane %v16797_v9, %v16788_v27  ;;  %v7273_v35 = vrot.slane %v16798_v54, %v16788_v27  ;;  %v7239_v12 = vrot.slane %v7232_v36, %v16794_v0  ;;  %v7274_v24 = vcombine.low %v14895_v18, %v14898_v6  ;;  %v15063_v9 = vpop.f32.mrb[128].mxu1 }
 0x81b   : > { %8004 = vrot.lane.b32.xlu1 %v7900_v10, %s11860_s8  ;;  %v7897_v5 = vpack.i.b16 %v7896_v38, %v7895_v17  ;;  %v6579_v57 = vcombine.high %v5982_v60, %v16787_v46  ;;  %v6586_v54 = vrot.slane %v5982_v60, %v16788_v27  ;;  %v5774_v13 = vpop.f32.mrb[129].mxu1  ;;  %v5986_v56 = vpack.i.b16 %v5985_v19, %v5984_v4 }
 0x81c   : > { %v7282_v59 = vcombine.low %v7265_v31, %v7273_v35  ;;  %v15068_v26 = vcombine.high %v7231_v39, %v7239_v12  ;;  %v7281_v61 = vrot.slane %v7274_v24, %v16794_v0  ;;  %v15071_v36 = vcombine.low %v7231_v39, %v7239_v12  ;;  %v15073_v33 = vpop.f32.mrb[130].mxu1  ;;  %v10961_v39 = vld [vmem:[#allocation12 + $0x38] sm:$0xff]  }
 0x81d   : > { %v6593_v18 = vrot.slane %v6579_v57, %v16788_v27  ;;  %v6594_v6 = vcombine.low %v14743_v55, %v6586_v54  ;;  %v6595_v17 = vcombine.high %v14743_v55, %v6586_v54  ;;  %v15079_v38 = vpop.f32.mrb[136].mxu0  ;;  %v5777_v31 = vpop.f32.mrb[131].mxu1  ;;  %v6645_v13 = vcombine.high %v5986_v56, %v16787_v46  ;;  %10713 = vmatprep.subr.bf16.mxu1 %v10961_v39 }
 0x81e   : > { %16799 = vst [vmem:[#allocation44_spill] sm:$0xff] %v15071_v36  ;;  %v7289_v10 = vrot.slane %v7282_v59, %v16794_v0  ;;  %16800 = vst [vmem:[#allocation45_spill] sm:$0xff] %v15079_v38  ;;  %v6652_v35 = vrot.slane %v5986_v56, %v16788_v27  ;;  %v7907_v4 = vshrl.u32 %v15071_v36, 16  ;;  %v7913_v60 = vshrl.u32 %v15068_v26, 16  ;;  %v5871_v19 = vpop.f32.mrb[137].mxu0  ;;  %10714 = vmatpush3.bf16.msra.mxu1 %v10961_v39 }
 0x81f   : > { %7988 = vrot.lane.b32.xlu1 %v7897_v5, %s11858_s0  ;;  %v6602_v12 = vrot.slane %v6594_v6, %v16794_v0  ;;  %v6609_v55 = vrot.slane %v6595_v17, %v16794_v0  ;;  %v6610_v59 = vcombine.low %v14748_v3, %v6593_v18  ;;  %v6611_v24 = vcombine.high %v14748_v3, %v6593_v18  ;;  %v15090_v57 = vpop.f32.mrb[138].mxu0 }
 0x820   : > { %16801 = vst [vmem:[#allocation42_spill] sm:$0xff] %v15090_v57  ;;  %v6659_v54 = vrot.slane %v6645_v13, %v16788_v27  ;;  %v6660_v56 = vcombine.low %v14752_v48, %v6652_v35  ;;  %v6661_v31 = vcombine.high %v14752_v48, %v6652_v35  ;;  %v7291_v19 = vcombine.high %v7281_v61, %v7289_v10  ;;  %v5874_v36 = vpop.f32.mrb[139].mxu0 }
 0x821   : > { %v6618_v5 = vrot.slane %v6610_v59, %v16794_v0  ;;  %v6625_v6 = vrot.slane %v6611_v24, %v16794_v0  ;;  %v7492_v17 = vcombine.low %v6602_v12, %v6609_v55  ;;  %v10192_v38 = vcombine.high %v6602_v12, %v6609_v55 }
 0x822   : > { %v6668_v3 = vrot.slane %v6660_v56, %v16794_v0  ;;  %v6675_v18 = vrot.slane %v6661_v31, %v16794_v0  ;;  %v6676_v13 = vcombine.low %v14755_v32, %v6659_v54  ;;  %v6677_v57 = vcombine.high %v14755_v32, %v6659_v54 }
 0x823   : > { %v15102_v48 = vrot.slane %v7492_v17, %v16788_v27  ;;  %v15105_v36 = vrot.slane %v10192_v38, %v16788_v27  ;;  %v7508_v35 = vcombine.low %v6618_v5, %v6625_v6  ;;  %v10193_v59 = vcombine.high %v6618_v5, %v6625_v6 }
 0x824   : > { %v15108_v24 = vrot.slane %v6676_v13, %v16794_v0  ;;  %v15111_v39 = vrot.slane %v6677_v57, %v16794_v0  ;;  %v7542_v12 = vcombine.low %v6668_v3, %v6675_v18  ;;  %v10194_v55 = vcombine.high %v6668_v3, %v6675_v18 }
 0x825   : > { %v15114_v56 = vrot.slane %v7508_v35, %v16788_v27  ;;  %v15117_v32 = vrot.slane %v10193_v59, %v16788_v27  ;;  %v7912_v54 = vpack.i.b16 %v7291_v19, %v15068_v26  ;;  %v15120_v38 = vcombine.low %v7281_v61, %v7289_v10 }
 0x826   : > { %v15123_v31 = vrot.slane %v7542_v12, %v16788_v27  ;;  %v15126_v5 = vrot.slane %v10194_v55, %v16788_v27  ;;  %v7558_v57 = vcombine.low %v15108_v24, %v15111_v39  ;;  %v7914_v3 = vshrl.u32 %v7291_v19, 16 }
 0x827   : > { %8006 = vrot.lane.b32.xlu1 %v7912_v54, %s11860_s8  ;;  %v7908_v17 = vshrl.u32 %v15120_v38, 16  ;;  %v5897_v26 = vpack.c.bf16 %v14967_v14, %v14947_v25  ;;  %v5905_v61 = vpack.c.bf16 %v14969_v53, %v14949_v45  ;;  %v7901_v10 = vshrl.u32 %v14955_v16, 16 }
 0x828   : > { %v7902_v18 = vshrl.u32 %v15036_v20, 16  ;;  %v7324_v13 = vcombine.low %v14926_v37, %v14929_v8  ;;  %v7332_v35 = vcombine.low %v14936_v21, %v14939_v44  ;;  %v7915_v12 = vpack.i.b16 %v7914_v3, %v7913_v60 }
 0x829   : > { %v7909_v59 = vpack.i.b16 %v7908_v17, %v7907_v4  ;;  %v6000_v55 = vshrl.u32 %v5897_v26, 16  ;;  %v5998_v19 = vpack.i.b16 %v5905_v61, %v5897_v26  ;;  %v6001_v54 = vshrl.u32 %v5905_v61, 16 }
 0x82a   : > { %v7903_v6 = vpack.i.b16 %v7902_v18, %v7901_v10  ;;  %v7331_v25 = vrot.slane %v7324_v13, %v16794_v0  ;;  %v7339_v45 = vrot.slane %v7332_v35, %v16794_v0  ;;  %v16802_v8 = vcombine.low %v14942_v40, %v14945_v51 }
 0x82b   : > { %7990 = vrot.lane.b32.xlu0 %v7909_v59, %s11858_s0  ;;  %8022 = vrot.lane.b32.xlu1 %v7915_v12, %s11859_s1  ;;  %v6711_v16 = vcombine.high %v5998_v19, %v16787_v46  ;;  %v6718_v37 = vrot.slane %v5998_v19, %v16788_v27  ;;  %v6002_v44 = vpack.i.b16 %v6001_v54, %v6000_v55 }
 0x82c   : > { %v7365_v21 = vrot.slane %v16802_v8, %v16788_v27  ;;  %v15154_v14 = vcombine.high %v7331_v25, %v7339_v45  ;;  %v16803_v53 = vcombine.high %v14942_v40, %v14945_v51  ;;  %v7374_v4 = vcombine.low %v14958_v7, %v14961_v1 }
 0x82d   : > { %v6725_v60 = vrot.slane %v6711_v16, %v16788_v27  ;;  %v6726_v17 = vcombine.low %v14759_v50, %v6718_v37  ;;  %v6727_v3 = vcombine.high %v14759_v50, %v6718_v37  ;;  %v5898_v26 = vpack.c.bf16 %v15014_v28, %v14998_v23 }
 0x82e   : > { %v7373_v20 = vrot.slane %v16803_v53, %v16788_v27  ;;  %v6777_v61 = vcombine.high %v6002_v44, %v16787_v46  ;;  %v6784_v10 = vrot.slane %v6002_v44, %v16788_v27  ;;  %v7381_v18 = vrot.slane %v7374_v4, %v16794_v0 }
 0x82f   : > { %v6734_v51 = vrot.slane %v6726_v17, %v16794_v0  ;;  %v6741_v7 = vrot.slane %v6727_v3, %v16794_v0  ;;  %v6742_v1 = vcombine.low %v14766_v15, %v6725_v60  ;;  %v6743_v13 = vcombine.high %v14766_v15, %v6725_v60  ;;  %8020 = vrot.lane.b32.xlu0 %v7903_v6, %s11859_s1 }
 0x830   : > { %v7382_v40 = vcombine.low %v7365_v21, %v7373_v20  ;;  %v6791_v50 = vrot.slane %v6777_v61, %v16788_v27  ;;  %v6792_v23 = vcombine.low %v14770_v41, %v6784_v10  ;;  %v6793_v28 = vcombine.high %v14770_v41, %v6784_v10 }
 0x831   : > { %v6750_v59 = vrot.slane %v6742_v1, %v16794_v0  ;;  %v6757_v12 = vrot.slane %v6743_v13, %v16794_v0  ;;  %v7592_v55 = vcombine.low %v6734_v51, %v6741_v7  ;;  %v10196_v19 = vcombine.high %v6734_v51, %v6741_v7 }
 0x832   : > { %v7389_v35 = vrot.slane %v7382_v40, %v16794_v0  ;;  %v6800_v54 = vrot.slane %v6792_v23, %v16794_v0  ;;  %v6807_v15 = vrot.slane %v6793_v28, %v16794_v0  ;;  %v6808_v6 = vcombine.low %v14773_v43, %v6791_v50 }
 0x833   : > { %v6809_v16 = vcombine.high %v14773_v43, %v6791_v50  ;;  %v15186_v37 = vrot.slane %v7592_v55, %v16788_v27  ;;  %v15189_v41 = vrot.slane %v10196_v19, %v16788_v27  ;;  %v7608_v8 = vcombine.low %v6750_v59, %v6757_v12 }
 0x834   : > { %v10197_v21 = vcombine.high %v6750_v59, %v6757_v12  ;;  %v15192_v44 = vrot.slane %v6808_v6, %v16794_v0  ;;  %v7642_v20 = vcombine.low %v6800_v54, %v6807_v15  ;;  %v10198_v4 = vcombine.high %v6800_v54, %v6807_v15 }
 0x835   : > { %v15195_v53 = vrot.slane %v6809_v16, %v16794_v0  ;;  %v15198_v60 = vrot.slane %v7608_v8, %v16788_v27  ;;  %v15203_v17 = vcombine.high %v7381_v18, %v7389_v35  ;;  %v6016_v3 = vshrl.u32 %v5898_v26, 16 }
 0x836   : > { %v15201_v43 = vrot.slane %v10197_v21, %v16788_v27  ;;  %v15206_v61 = vrot.slane %v7642_v20, %v16788_v27  ;;  %v15209_v10 = vrot.slane %v10198_v4, %v16788_v27  ;;  %v5906_v1 = vpack.c.bf16 %v15016_v47, %v15000_v58 }
 0x837   : > { %v7658_v40 = vcombine.low %v15192_v44, %v15195_v53  ;;  %v10199_v51 = vcombine.high %v15192_v44, %v15195_v53  ;;  %v7924_v7 = vpack.i.b16 %v15203_v17, %v15154_v14  ;;  %v15219_v13 = vcombine.low %v7331_v25, %v7339_v45 }
 0x838   : > { %v15221_v50 = vcombine.low %v7381_v18, %v7389_v35  ;;  %v7424_v23 = vcombine.low %v15003_v11, %v15006_v29  ;;  %v7432_v28 = vcombine.low %v15019_v52, %v15022_v63  ;;  %v16804_v59 = vcombine.low %v15009_v42, %v15012_v30 }
 0x839   : > { %v16805_v55 = vcombine.high %v15009_v42, %v15012_v30  ;;  %8008 = vrot.lane.b32.xlu0 %v7924_v7, %s11860_s8  ;;  %v6014_v58 = vpack.i.b16 %v5906_v1, %v5898_v26  ;;  %v6017_v25 = vshrl.u32 %v5906_v1, 16  ;;  %v7919_v45 = vshrl.u32 %v15219_v13, 16 }
 0x83a   : > { %v7465_v12 = vrot.slane %v16804_v59, %v16788_v27  ;;  %v7920_v11 = vshrl.u32 %v15221_v50, 16  ;;  %v7431_v29 = vrot.slane %v7424_v23, %v16794_v0  ;;  %v7439_v52 = vrot.slane %v7432_v28, %v16794_v0 }
 0x83b   : > { %v7473_v47 = vrot.slane %v16805_v55, %v16788_v27  ;;  %v7474_v63 = vcombine.low %v15027_v34, %v15030_v49  ;;  %v6018_v35 = vpack.i.b16 %v6017_v25, %v6016_v3  ;;  %v6843_v42 = vcombine.high %v6014_v58, %v16787_v46 }
 0x83c   : > { %v6850_v30 = vrot.slane %v6014_v58, %v16788_v27  ;;  %v7921_v19 = vpack.i.b16 %v7920_v11, %v7919_v45  ;;  %v7441_v26 = vcombine.high %v7431_v29, %v7439_v52  ;;  %v7925_v6 = vshrl.u32 %v15154_v14, 16  ;;  %v16806_v11 = vld [vmem:[#allocation114_spill] sm:$0xff] }
 0x83d   : > { %v7482_v18 = vcombine.low %v7465_v12, %v7473_v47  ;;  %v7481_v54 = vrot.slane %v7474_v63, %v16794_v0  ;;  %v6857_v16 = vrot.slane %v6843_v42, %v16788_v27  ;;  %v6909_v49 = vcombine.high %v6018_v35, %v16787_v46 }
 0x83e   : > { %v6858_v8 = vcombine.low %v14780_v22, %v6850_v30  ;;  %v6859_v34 = vcombine.high %v14780_v22, %v6850_v30  ;;  %7992 = vrot.lane.b32.xlu0 %v7921_v19, %s11858_s0  ;;  %v6916_v21 = vrot.slane %v6018_v35, %v16788_v27  ;;  %v7926_v4 = vshrl.u32 %v15203_v17, 16 }
 0x83f   : > { %v7489_v15 = vrot.slane %v7482_v18, %v16794_v0  ;;  %v15254_v3 = vcombine.low %v7431_v29, %v7439_v52  ;;  %v6874_v1 = vcombine.low %v14785_v62, %v6857_v16  ;;  %v6875_v23 = vcombine.high %v14785_v62, %v6857_v16 }
 0x840   : > { %v6866_v7 = vrot.slane %v6858_v8, %v16794_v0  ;;  %v6873_v14 = vrot.slane %v6859_v34, %v16794_v0  ;;  %v6923_v22 = vrot.slane %v6909_v49, %v16788_v27  ;;  %v6924_v28 = vcombine.low %v14789_v2, %v6916_v21 }
 0x841   : > { %v7491_v20 = vcombine.high %v7481_v54, %v7489_v15  ;;  %v6925_v59 = vcombine.high %v14789_v2, %v6916_v21  ;;  %v6882_v55 = vrot.slane %v6874_v1, %v16794_v0  ;;  %v6889_v17 = vrot.slane %v6875_v23, %v16794_v0 }
 0x842   : > { %v7692_v47 = vcombine.low %v6866_v7, %v6873_v14  ;;  %v10200_v58 = vcombine.high %v6866_v7, %v6873_v14  ;;  %v6932_v25 = vrot.slane %v6924_v28, %v16794_v0  ;;  %v6940_v29 = vcombine.low %v16806_v11, %v6923_v22 }
 0x843   : > { %v7936_v12 = vpack.i.b16 %v7491_v20, %v7441_v26  ;;  %v6939_v45 = vrot.slane %v6925_v59, %v16794_v0  ;;  %v6941_v62 = vcombine.high %v16806_v11, %v6923_v22  ;;  %v7708_v63 = vcombine.low %v6882_v55, %v6889_v17 }
 0x844   : > { %v15271_v52 = vrot.slane %v7692_v47, %v16788_v27  ;;  %v15274_v2 = vrot.slane %v10200_v58, %v16788_v27  ;;  %v10201_v18 = vcombine.high %v6882_v55, %v6889_v17  ;;  %v15277_v35 = vrot.slane %v6940_v29, %v16794_v0 }
 0x845   : > { %8010 = vrot.lane.b32.xlu1 %v7936_v12, %s11860_s8  ;;  %v15280_v42 = vrot.slane %v6941_v62, %v16794_v0  ;;  %v7742_v30 = vcombine.low %v6932_v25, %v6939_v45  ;;  %v10202_v19 = vcombine.high %v6932_v25, %v6939_v45  ;;  %v15283_v16 = vrot.slane %v7708_v63, %v16788_v27 }
 0x846   : > { %v15286_v8 = vrot.slane %v10201_v18, %v16788_v27  ;;  %v7927_v34 = vpack.i.b16 %v7926_v4, %v7925_v6  ;;  %v15288_v49 = vcombine.low %v7481_v54, %v7489_v15  ;;  %v7931_v23 = vshrl.u32 %v15254_v3, 16  ;;  %v16807_v15 = vld [vmem:[#allocation45_spill] sm:$0xff]  ;;  %v16808_v4 = vld [vmem:[#allocation42_spill] sm:$0xff]  ;;  %v16810_v18 = vld [vmem:[#allocation115_spill] sm:$0xff] }
 0x847   : > { %v15291_v21 = vrot.slane %v7742_v30, %v16788_v27  ;;  %v15294_v7 = vrot.slane %v10202_v19, %v16788_v27  ;;  %v7758_v14 = vcombine.low %v15277_v35, %v15280_v42  ;;  %v10203_v1 = vcombine.high %v15277_v35, %v15280_v42 }
 0x848   : > { %8024 = vrot.lane.b32.xlu0 %v7927_v34, %s11859_s1  ;;  %v7932_v6 = vshrl.u32 %v15288_v49, 16  ;;  %v5899_v54 = vpack.c.bf16 %v15073_v33, %v15063_v9  ;;  %v5907_v22 = vpack.c.bf16 %v16808_v4, %v16807_v15  ;;  %v7937_v28 = vshrl.u32 %v7441_v26, 16 }
 0x849   : > { %v7938_v59 = vshrl.u32 %v7491_v20, 16  ;;  %v7524_v12 = vcombine.low %v15102_v48, %v15105_v36  ;;  %v7532_v55 = vcombine.low %v15114_v56, %v15117_v32  ;;  %v7565_v9 = vrot.slane %v7558_v57, %v16788_v27 }
 0x84a   : > { %v7933_v17 = vpack.i.b16 %v7932_v6, %v7931_v23  ;;  %v6032_v47 = vshrl.u32 %v5899_v54, 16  ;;  %v6030_v58 = vpack.i.b16 %v5907_v22, %v5899_v54  ;;  %v6033_v25 = vshrl.u32 %v5907_v22, 16 }
 0x84b   : > { %v7939_v45 = vpack.i.b16 %v7938_v59, %v7937_v28  ;;  %v7531_v11 = vrot.slane %v7524_v12, %v16794_v0  ;;  %v7539_v33 = vrot.slane %v7532_v55, %v16794_v0  ;;  %v16809_v32 = vcombine.high %v15108_v24, %v15111_v39 }
 0x84c   : > { %7994 = vrot.lane.b32.xlu1 %v7933_v17, %s11858_s0  ;;  %v6034_v48 = vpack.i.b16 %v6033_v25, %v6032_v47  ;;  %v6975_v36 = vcombine.high %v6030_v58, %v16787_v46  ;;  %v6982_v56 = vrot.slane %v6030_v58, %v16788_v27  ;;  %v7574_v29 = vcombine.low %v15123_v31, %v15126_v5  ;;  %v16813_v25 = vld [vmem:[#allocation117_spill] sm:$0xff] }
 0x84d   : > { %v7573_v26 = vrot.slane %v16809_v32, %v16788_v27  ;;  %v7541_v20 = vcombine.high %v7531_v11, %v7539_v33  ;;  %v15326_v62 = vcombine.low %v7531_v11, %v7539_v33  ;;  %v7624_v57 = vcombine.low %v15186_v37, %v15189_v41  ;;  %v16811_v37 = vld [vmem:[#allocation116_spill] sm:$0xff] }
 0x84e   : > { %v6989_v63 = vrot.slane %v6975_v36, %v16788_v27  ;;  %v6990_v30 = vcombine.low %v16810_v18, %v6982_v56  ;;  %v6991_v19 = vcombine.high %v16810_v18, %v6982_v56  ;;  %v7041_v34 = vcombine.high %v6034_v48, %v16787_v46  ;;  %v16812_v46 = vld [vmem:[#allocation118_spill] sm:$0xff] }
 0x84f   : > { %v7048_v24 = vrot.slane %v6034_v48, %v16788_v27  ;;  %v7581_v39 = vrot.slane %v7574_v29, %v16794_v0  ;;  %v7582_v23 = vcombine.low %v7565_v9, %v7573_v26  ;;  %v7943_v31 = vshrl.u32 %v15326_v62, 16 }
 0x850   : > { %v6998_v5 = vrot.slane %v6990_v30, %v16794_v0  ;;  %v7005_v6 = vrot.slane %v6991_v19, %v16794_v0  ;;  %v7006_v41 = vcombine.low %v16811_v37, %v6989_v63  ;;  %v7007_v54 = vcombine.high %v16811_v37, %v6989_v63  ;;  %8026 = vrot.lane.b32.xlu1 %v7939_v45, %s11859_s1 }
 0x851   : > { %v7055_v15 = vrot.slane %v7041_v34, %v16788_v27  ;;  %v7056_v4 = vcombine.low %v16812_v46, %v7048_v24  ;;  %v7057_v22 = vcombine.high %v16812_v46, %v7048_v24  ;;  %v7589_v28 = vrot.slane %v7582_v23, %v16794_v0 }
 0x852   : > { %v7014_v59 = vrot.slane %v7006_v41, %v16794_v0  ;;  %v7021_v12 = vrot.slane %v7007_v54, %v16794_v0  ;;  %v7792_v55 = vcombine.low %v6998_v5, %v7005_v6  ;;  %v10204_v17 = vcombine.high %v6998_v5, %v7005_v6 }
 0x853   : > { %v7064_v47 = vrot.slane %v7056_v4, %v16794_v0  ;;  %v7071_v58 = vrot.slane %v7057_v22, %v16794_v0  ;;  %v7072_v45 = vcombine.low %v16813_v25, %v7055_v15  ;;  %v7073_v11 = vcombine.high %v16813_v25, %v7055_v15 }
 0x854   : > { %v7799_v33 = vrot.slane %v7792_v55, %v16788_v27  ;;  %v7807_v9 = vrot.slane %v10204_v17, %v16788_v27  ;;  %v7808_v48 = vcombine.low %v7014_v59, %v7021_v12  ;;  %v10205_v36 = vcombine.high %v7014_v59, %v7021_v12 }
 0x855   : > { %v15355_v56 = vrot.slane %v7072_v45, %v16794_v0  ;;  %v15358_v32 = vrot.slane %v7073_v11, %v16794_v0  ;;  %v7842_v26 = vcombine.low %v7064_v47, %v7071_v58  ;;  %v10206_v29 = vcombine.high %v7064_v47, %v7071_v58 }
 0x856   : > { %v7815_v63 = vrot.slane %v7808_v48, %v16788_v27  ;;  %v7823_v18 = vrot.slane %v10205_v36, %v16788_v27  ;;  %v7591_v30 = vcombine.high %v7581_v39, %v7589_v28  ;;  %v15362_v19 = vcombine.low %v7581_v39, %v7589_v28 }
 0x857   : > { %v15365_v34 = vrot.slane %v7842_v26, %v16788_v27  ;;  %v15368_v24 = vrot.slane %v10206_v29, %v16788_v27  ;;  %v7858_v23 = vcombine.low %v15355_v56, %v15358_v32  ;;  %v10207_v5 = vcombine.high %v15355_v56, %v15358_v32 }
 0x858   : > { %v7948_v6 = vpack.i.b16 %v7591_v30, %v7541_v20  ;;  %v7944_v37 = vshrl.u32 %v15362_v19, 16  ;;  %v7949_v41 = vshrl.u32 %v7541_v20, 16  ;;  %v7950_v54 = vshrl.u32 %v7591_v30, 16 }
 0x859   : > { %v7631_v39 = vrot.slane %v7624_v57, %v16794_v0  ;;  %v7632_v15 = vcombine.low %v15198_v60, %v15201_v43  ;;  %v7665_v46 = vrot.slane %v7658_v40, %v16788_v27  ;;  %v7673_v4 = vrot.slane %v10199_v51, %v16788_v27 }
 0x85a   : > { %8012 = vrot.lane.b32.xlu0 %v7948_v6, %s11860_s8  ;;  %v7945_v22 = vpack.i.b16 %v7944_v37, %v7943_v31  ;;  %v7951_v20 = vpack.i.b16 %v7950_v54, %v7949_v41  ;;  %v7674_v57 = vcombine.low %v15206_v61, %v15209_v10  ;;  %v7724_v60 = vcombine.low %v15271_v52, %v15274_v2 }
 0x85b   : > { %v7639_v43 = vrot.slane %v7632_v15, %v16794_v0  ;;  %v7682_v28 = vcombine.low %v7665_v46, %v7673_v4  ;;  %v7732_v40 = vcombine.low %v15283_v16, %v15286_v8  ;;  %v7765_v44 = vrot.slane %v7758_v14, %v16788_v27 }
 0x85c   : > { %v7681_v53 = vrot.slane %v7674_v57, %v16794_v0  ;;  %v7731_v51 = vrot.slane %v7724_v60, %v16794_v0  ;;  %v7773_v61 = vrot.slane %v10203_v1, %v16788_v27  ;;  %v7774_v10 = vcombine.low %v15291_v21, %v15294_v7 }
 0x85d   : > { %v7641_v52 = vcombine.high %v7631_v39, %v7639_v43  ;;  %v7689_v2 = vrot.slane %v7682_v28, %v16794_v0  ;;  %v15407_v16 = vcombine.low %v7631_v39, %v7639_v43  ;;  %v7739_v8 = vrot.slane %v7732_v40, %v16794_v0  ;;  %v16814_v40 = vld [vmem:[#allocation120_spill] sm:$0xff] }
 0x85e   : > { %7996 = vrot.lane.b32.xlu0 %v7945_v22, %s11858_s0  ;;  %v7781_v14 = vrot.slane %v7774_v10, %v16794_v0  ;;  %v7782_v31 = vcombine.low %v7765_v44, %v7773_v61  ;;  %v7824_v59 = vcombine.low %v7799_v33, %v7807_v9  ;;  %v7832_v12 = vcombine.low %v7815_v63, %v7823_v18  ;;  %v16815_v44 = vld [vmem:[#allocation119_spill] sm:$0xff] }
 0x85f   : > { %v7691_v55 = vcombine.high %v7681_v53, %v7689_v2  ;;  %v15412_v35 = vcombine.low %v7681_v53, %v7689_v2  ;;  %v7955_v42 = vshrl.u32 %v15407_v16, 16  ;;  %v7961_v21 = vshrl.u32 %v7641_v52, 16 }
 0x860   : > { %v7741_v7 = vcombine.high %v7731_v51, %v7739_v8  ;;  %v7789_v1 = vrot.slane %v7782_v31, %v16794_v0  ;;  %v15416_v17 = vcombine.low %v7731_v51, %v7739_v8  ;;  %v7831_v47 = vrot.slane %v7824_v59, %v16794_v0  ;;  %v16816_v51 = vld [vmem:[#allocation44_spill] sm:$0xff] }
 0x861   : > { %v7960_v58 = vpack.i.b16 %v7691_v55, %v7641_v52  ;;  %v7956_v25 = vshrl.u32 %v15412_v35, 16  ;;  %v7962_v45 = vshrl.u32 %v7691_v55, 16  ;;  %v7839_v11 = vrot.slane %v7832_v12, %v16794_v0 }
 0x862   : > { %8028 = vrot.lane.b32.xlu0 %v7951_v20, %s11859_s1  ;;  %v7791_v33 = vcombine.high %v7781_v14, %v7789_v1  ;;  %v15422_v9 = vcombine.low %v7781_v14, %v7789_v1  ;;  %v7967_v48 = vshrl.u32 %v15416_v17, 16  ;;  %v7973_v36 = vshrl.u32 %v7741_v7, 16 }
 0x863   : > { %8014 = vrot.lane.b32.xlu1 %v7960_v58, %s11860_s8  ;;  %v7957_v56 = vpack.i.b16 %v7956_v25, %v7955_v42  ;;  %v7963_v32 = vpack.i.b16 %v7962_v45, %v7961_v21  ;;  %v7841_v26 = vcombine.high %v7831_v47, %v7839_v11  ;;  %v7865_v29 = vrot.slane %v7858_v23, %v16788_v27 }
 0x864   : > { %v7972_v63 = vpack.i.b16 %v7791_v33, %v7741_v7  ;;  %v7968_v18 = vshrl.u32 %v15422_v9, 16  ;;  %v7974_v30 = vshrl.u32 %v7791_v33, 16  ;;  %v7873_v6 = vrot.slane %v10207_v5, %v16788_v27 }
 0x865   : > { %v7874_v37 = vcombine.low %v15365_v34, %v15368_v24  ;;  %v15431_v41 = vcombine.low %v7831_v47, %v7839_v11  ;;  %v7918_v46 = vpack.i.b16 %v15221_v50, %v15219_v13  ;;  %v7930_v27 = vpack.i.b16 %v15288_v49, %v15254_v3 }
 0x866   : > { %8016 = vrot.lane.b32.xlu0 %v7972_v63, %s11860_s8  ;;  %v7969_v54 = vpack.i.b16 %v7968_v18, %v7967_v48  ;;  %v7975_v39 = vpack.i.b16 %v7974_v30, %v7973_v36  ;;  %v7882_v15 = vcombine.low %v7865_v29, %v7873_v6  ;;  %v7942_v34 = vpack.i.b16 %v15362_v19, %v15326_v62 }
 0x867   : > { %7998 = vrot.lane.b32.xlu1 %v7957_v56, %s11858_s0  ;;  %v7881_v23 = vrot.slane %v7874_v37, %v16794_v0  ;;  %v7954_v24 = vpack.i.b16 %v15412_v35, %v15407_v16  ;;  %v7966_v5 = vpack.i.b16 %v15422_v9, %v15416_v17  ;;  %v7985_v13 = vshrl.u32 %v7841_v26, 16 }
 0x868   : > { %v7889_v4 = vrot.slane %v7882_v15, %v16794_v0  ;;  %v7979_v0 = vshrl.u32 %v15431_v41, 16  ;;  %v7894_v53 = vpack.i.b16 %v16815_v44, %v16814_v40  ;;  %v7906_v61 = vpack.i.b16 %v15120_v38, %v16816_v51 }
 0x86a   : > { %8000 = vrot.lane.b32.xlu0 %v7969_v54, %s11858_s0  ;;  %v7891_v22 = vcombine.high %v7881_v23, %v7889_v4  ;;  %v15448_v20 = vcombine.low %v7881_v23, %v7889_v4 }
 0x86b   : > { %8030 = vrot.lane.b32.xlu1 %v7963_v32, %s11859_s1 }
 0x86c   : > { %v7984_v50 = vpack.i.b16 %v7891_v22, %v7841_v26  ;;  %v7980_v3 = vshrl.u32 %v15448_v20, 16  ;;  %v7986_v49 = vshrl.u32 %v7891_v22, 16  ;;  %v7978_v62 = vpack.i.b16 %v15448_v20, %v15431_v41  ;;  %v11490_v20 = vld [vmem:[%s12520_s16] sm:$0xff] }
 0x86d   : > { %v16817_v22 = vmov 0  }
 0x86e   : > { %8032 = vrot.lane.b32.xlu0 %v7975_v39, %s11859_s1  ;;  %v7981_v19 = vpack.i.b16 %v7980_v3, %v7979_v0  ;;  %v7987_v57 = vpack.i.b16 %v7986_v49, %v7985_v13 }
 0x86f   : > { %8018 = vrot.lane.b32.xlu1 %v7984_v50, %s11860_s8  ;;  %v16818_v50 = vld [vmem:[#allocation32_spill] sm:$0xff] }
 0x873   : > { %8002 = vrot.lane.b32.xlu1 %v7981_v19, %s11858_s0 }
 0x877   : > { %8034 = vrot.lane.b32.xlu1 %v7987_v57, %s11859_s1  ;;  %s9767_s1 = sshll.u32 %s12327_s2, 4  ;;  %s16072_s1 = int_to_ptr.vmem [resolvable:$true] %s9767_s1 }
 0x88d   : > { %v8005_v60 = vpop.permute.xlu1 %8004 }
 0x891   : > { %v7989_v43 = vpop.permute.xlu1 %7988 }
 0x892   : > { %v8038_v52 = vsel %vm3531_vm0, %v7894_v53, %v7989_v43  ;;  %v11493_v53 = vld [vmem:[%s12520_s16 + $0x18] sm:$0xff] }
 0x893   : > { %v8062_v31 = vsel %vm8060_vm1, %v8038_v52, %v8005_v60  ;;  %v11491_v60 = vld [vmem:[%s12520_s16 + $0x8] sm:$0xff] }
 0x899   : > { %v8007_v28 = vpop.permute.xlu1 %8006 }
 0x89d   : > { %v7991_v10 = vpop.permute.xlu0 %7990  ;;  %v8023_v16 = vpop.permute.xlu1 %8022 }
 0x89e   : > { %v8041_v2 = vsel %vm3531_vm0, %v7906_v61, %v7991_v10 }
 0x89f   : > { %v8064_v8 = vsel %vm8060_vm1, %v8041_v2, %v8007_v28  ;;  %v11492_v28 = vld [vmem:[%s12520_s16 + $0x10] sm:$0xff] }
 0x8a0   : > { %v8082_v12 = vsel %vm8077_vm2, %v8064_v8, %v8023_v16 }
 0x8a1   : > { %v8021_v14 = vpop.permute.xlu0 %8020 }
 0x8a2   : > { %v8079_v59 = vsel %vm8077_vm2, %v8062_v31, %v8021_v14  ;;  %v11494_v14 = vld [vmem:[%s12520_s16 + $0x20] sm:$0xff] }
 0x8a3   : > { %10715 = vmatprep.mubr.bf16.mxu1 %v8079_v59 }
 0x8a4   : > { %10716 = vmatmul.mubr.bf16.vlgmr.msra.gmra.mrb[132].mxu1 %v8082_v12 }
 0x8ab   : > { %v8009_v38 = vpop.permute.xlu0 %8008 }
 0x8b0   : > { %v7993_v55 = vpop.permute.xlu0 %7992 }
 0x8b1   : > { %v8044_v35 = vsel %vm3531_vm0, %v7918_v46, %v7993_v55 }
 0x8b2   : > { %v8066_v7 = vsel %vm8060_vm1, %v8044_v35, %v8009_v38  ;;  %v11495_v38 = vld [vmem:[%s12520_s16 + $0x28] sm:$0xff]  ;;  %v11496_v35 = vld [vmem:[%s12520_s16 + $0x30] sm:$0xff] }
 0x8b7   : > { %v8011_v42 = vpop.permute.xlu1 %8010 }
 0x8ba   : > { %v8025_v21 = vpop.permute.xlu0 %8024 }
 0x8bb   : > { %v8085_v1 = vsel %vm8077_vm2, %v8066_v7, %v8025_v21  ;;  %v11497_v21 = vld [vmem:[%s12520_s16 + $0x38] sm:$0xff] }
 0x8bc   : > { %10719 = vmatprep.mubr.bf16.mxu1 %v8085_v1 }
 0x8be   : > { %v7995_v47 = vpop.permute.xlu1 %7994 }
 0x8bf   : > { %v8047_v58 = vsel %vm3531_vm0, %v7930_v27, %v7995_v47 }
 0x8c0   : > { %v8068_v45 = vsel %vm8060_vm1, %v8047_v58, %v8011_v42 }
 0x8c2   : > { %v8027_v25 = vpop.permute.xlu1 %8026 }
 0x8c3   : > { %v8088_v11 = vsel %vm8077_vm2, %v8068_v45, %v8027_v25 }
 0x8c4   : > { %10720 = vmatmul.mubr.bf16.gmra.mrb[136].mxu1 %v8088_v11 }
 0x8cc   : > { %v8013_v33 = vpop.permute.xlu0 %8012 }
 0x8d0   : > { %v7997_v48 = vpop.permute.xlu0 %7996 }
 0x8d1   : > { %v8050_v36 = vsel %vm3531_vm0, %v7942_v34, %v7997_v48 }
 0x8d2   : > { %v8070_v32 = vsel %vm8060_vm1, %v8050_v36, %v8013_v33  ;;  %v11498_v33 = vld [vmem:[%s12520_s16 + $0x40] sm:$0xff] }
 0x8d4   : > { %v8029_v56 = vpop.permute.xlu0 %8028 }
 0x8d5   : > { %v8015_v26 = vpop.permute.xlu1 %8014  ;;  %v8091_v29 = vsel %vm8077_vm2, %v8070_v32, %v8029_v56  ;;  %v11499_v32 = vld [vmem:[%s12520_s16 + $0x48] sm:$0xff] }
 0x8d6   : > { %10723 = vmatprep.mubr.bf16.mxu1 %v8091_v29  ;;  %v11500_v29 = vld [vmem:[%s12520_s16 + $0x50] sm:$0xff] }
 0x8d8   : > { %v8017_v63 = vpop.permute.xlu0 %8016 }
 0x8d9   : > { %v7999_v18 = vpop.permute.xlu1 %7998 }
 0x8da   : > { %v8053_v30 = vsel %vm3531_vm0, %v7954_v24, %v7999_v18  ;;  %v11501_v18 = vld [vmem:[%s12520_s16 + $0x58] sm:$0xff] }
 0x8db   : > { %v8072_v54 = vsel %vm8060_vm1, %v8053_v30, %v8015_v26 }
 0x8dc   : > { %v8001_v6 = vpop.permute.xlu0 %8000 }
 0x8dd   : > { %v8031_v37 = vpop.permute.xlu1 %8030  ;;  %v8056_v39 = vsel %vm3531_vm0, %v7966_v5, %v8001_v6 }
 0x8de   : > { %v8094_v15 = vsel %vm8077_vm2, %v8072_v54, %v8031_v37  ;;  %v8074_v46 = vsel %vm8060_vm1, %v8056_v39, %v8017_v63 }
 0x8df   : > { %10724 = vmatmul.mubr.bf16.gmra.mrb[140].mxu1 %v8094_v15 }
 0x8e0   : > { %v8033_v23 = vpop.permute.xlu0 %8032 }
 0x8e1   : > { %v8019_v4 = vpop.permute.xlu1 %8018  ;;  %v8097_v27 = vsel %vm8077_vm2, %v8074_v46, %v8033_v23  ;;  %v11502_v46 = vld [vmem:[%s12520_s16 + $0x60] sm:$0xff] }
 0x8e2   : > { %10727 = vmatprep.mubr.bf16.mxu1 %v8097_v27 }
 0x8e5   : > { %v8003_v34 = vpop.permute.xlu1 %8002 }
 0x8e6   : > { %v8059_v17 = vsel %vm3531_vm0, %v7978_v62, %v8003_v34 }
 0x8e7   : > { %v8076_v24 = vsel %vm8060_vm1, %v8059_v17, %v8019_v4  ;;  %v11503_v17 = vld [vmem:[%s12520_s16 + $0x68] sm:$0xff] }
 0x8e9   : > { %v8035_v9 = vpop.permute.xlu1 %8034 }
 0x8ea   : > { %v8100_v5 = vsel %vm8077_vm2, %v8076_v24, %v8035_v9  ;;  %v11504_v24 = vld [vmem:[%s12520_s16 + $0x70] sm:$0xff] }
 0x8eb   : > { %10728 = vmatmul.mubr.bf16.gmra.mrb[144].mxu1 %v8100_v5 }
 0x8ec   : > { %8754 = vmatprep.mubr.bf16.mxu1 %v16817_v22 }
 0x977   : > { %v10717_v0 = vpop.f32.mrb[132].mxu1 }
 0x978   : > { %v8204_v13 = vpop.f32.mrb[133].mxu1  ;;  %v8213_v41 = vadd.f32 %v10717_v0, %v16818_v50  ;;  %v11505_v0 = vld [vmem:[%s12520_s16 + $0x78] sm:$0xff]  ;;  %s9764_s16 = sadd.s32 %s10289_s6, %s10288_s12  ;;  %s11704_s6 = scalar_lea.vmem %s16072_s1, 2048 }
 0x979   : > { %v8205_v3 = vadd.f32 %v16818_v50, %v8204_v13  ;;  %v10718_v49 = vpop.f32.mrb[134].mxu1  ;;  %s10290_s0 = sshll.u32 %s9764_s16, 7  ;;  %p11705_p13 = scmp.ne.s32.totalorder %s16072_s1, %s11704_s6 }
 0x97a   : > { %v8207_v19 = vpop.f32.mrb[135].mxu1  ;;  %v15505_v40 = vadd.f32 %v11492_v28, %v8213_v41  ;;  %v8216_v44 = vadd.f32 %v10718_v49, %v16818_v50  ;;  %v10964_v49 = vld [vmem:[#allocation13 + $0xc] ss:$16 sps:$4 sm:$0xff]   ;;  %v10965_v41 = vld [vmem:[#allocation13 + $0x28] ss:$16 sps:$4 sm:$0xff]   ;;  %s11863_s16 = smov [#allocation16]  }
 0x97b   : > { %v15497_v62 = vadd.f32 %v11490_v20, %v8205_v3  ;;  %v8208_v57 = vadd.f32 %v16818_v50, %v8207_v19  ;;  %v10962_v3 = vld [vmem:[#allocation13 + $0x8] ss:$16 sps:$4 sm:$0xff]   ;;  %8835 = vmatprep.subr.bf16.mxu0 %v10964_v49  ;;  %v10974_v19 = vld [vmem:[#allocation13] ss:$16 sps:$4 sm:$0xff]   ;;  %v10976_v20 = vld [vmem:[#allocation13 + $0x4] ss:$16 sps:$4 sm:$0xff]   ;;  %p11706_p9 = pnand %p11705_p13, %p16828_p6 }
 0x97c   : > { %v15511_v51 = vadd.f32 %v11493_v53, %v8216_v44  ;;  %8836 = vmatpush1.bf16.msra.mxu0 %v10962_v3  ;;  %8722 = vmatprep.subr.bf16.mxu1 %v10976_v20  ;;  %v10977_v28 = vld [vmem:[#allocation13 + $0x20] ss:$16 sps:$4 sm:$0xff]   ;;  %v10968_v44 = vld [vmem:[#allocation13 + $0x48] ss:$16 sps:$4 sm:$0xff]   ;;  %v10973_v53 = vld [vmem:[#allocation13 + $0x6c] ss:$16 sps:$4 sm:$0xff]  }
 0x97d   : > { %v15501_v43 = vadd.f32 %v11491_v60, %v8208_v57  ;;  %8283 = vadd.xlane.f32.xlu0 %v15497_v62  ;;  %v10979_v57 = vld [vmem:[#allocation13 + $0x24] ss:$16 sps:$4 sm:$0xff]   ;;  %v10970_v60 = vld [vmem:[#allocation13 + $0x4c] ss:$16 sps:$4 sm:$0xff]   ;;  %8723 = vmatpush1.bf16.msra.mxu1 %v10974_v19  ;;  %v10992_v3 = vld [vmem:[#allocation13 + $0x80] ss:$16 sps:$4 sm:$0xff]   ;;  %p11707_p11 = pneg %p11706_p9 }
 0x97e   : > { %8724 = vmatprep.subr.bf16.mxu1 %v10979_v57  ;;  %v10997_v49 = vld [vmem:[#allocation13 + $0xa4] ss:$16 sps:$4 sm:$0xff]   ;;  %v11001_v19 = vld [vmem:[#allocation13 + $0xc0] ss:$16 sps:$4 sm:$0xff]   ;;  %s11708_s4 = sshll.u32 %s11863_s16, 4  ;;  %s11709_s4 = int_to_ptr.vmem [resolvable:$false] %s11708_s4 }
 0x97f   : > { %8285 = vadd.xlane.f32.xlu1 %v15501_v43  ;;  %p11711_p12 = scmp.lt.s32.totalorder %s16072_s1, %s11709_s4 }
 0x981   : > { %8287 = vadd.xlane.f32.xlu0 %v15505_v40  ;;  %8725 = vmatpush1.bf16.msra.mxu1 %v10977_v28  ;;  %v11004_v28 = vld [vmem:[#allocation13 + $0xe0] ss:$16 sps:$4 sm:$0xff]  }
 0x985   : > { %8289 = vadd.xlane.f32.xlu0 %v15511_v51 }
 0x997   : > { %v10721_v61 = vpop.f32.mrb[136].mxu1 }
 0x998   : > { %v8220_v10 = vpop.f32.mrb[137].mxu1  ;;  %v8229_v8 = vadd.f32 %v10721_v61, %v16818_v50  ;;  %v10971_v61 = vld [vmem:[#allocation13 + $0x68] ss:$16 sps:$4 sm:$0xff]  }
 0x999   : > { %v8221_v52 = vadd.f32 %v16818_v50, %v8220_v10  ;;  %v10722_v2 = vpop.f32.mrb[138].mxu1  ;;  %v10982_v10 = vld [vmem:[#allocation13 + $0x8c] ss:$16 sps:$4 sm:$0xff]  }
 0x99a   : > { %v8223_v16 = vpop.f32.mrb[139].mxu1  ;;  %v8232_v12 = vadd.f32 %v10722_v2, %v16818_v50  ;;  %v15526_v42 = vadd.f32 %v11496_v35, %v8229_v8 }
 0x99b   : > { %v15517_v31 = vadd.f32 %v11494_v14, %v8221_v52  ;;  %v8224_v59 = vadd.f32 %v16818_v50, %v8223_v16  ;;  %v10980_v52 = vld [vmem:[#allocation13 + $0x88] ss:$16 sps:$4 sm:$0xff]  }
 0x99c   : > { %v15530_v7 = vadd.f32 %v11497_v21, %v8232_v12 }
 0x99d   : > { %v15522_v55 = vadd.f32 %v11495_v38, %v8224_v59  ;;  %8291 = vadd.xlane.f32.xlu1 %v15517_v31 }
 0x99f   : > { %8293 = vadd.xlane.f32.xlu0 %v15522_v55 }
 0x9a1   : > { %8295 = vadd.xlane.f32.xlu1 %v15526_v42 }
 0x9a3   : > { %8297 = vadd.xlane.f32.xlu0 %v15530_v7 }
 0x9b2   : > { %v10725_v1 = vpop.f32.mrb[140].mxu1 }
 0x9b3   : > { %v8236_v47 = vpop.f32.mrb[141].mxu1  ;;  %v8245_v11 = vadd.f32 %v10725_v1, %v16818_v50 }
 0x9b4   : > { %v8237_v58 = vadd.f32 %v16818_v50, %v8236_v47  ;;  %v10726_v25 = vpop.f32.mrb[142].mxu1 }
 0x9b5   : > { %v8239_v45 = vpop.f32.mrb[143].mxu1  ;;  %v8248_v56 = vadd.f32 %v10726_v25, %v16818_v50  ;;  %v15546_v63 = vadd.f32 %v11500_v29, %v8245_v11 }
 0x9b6   : > { %v15537_v48 = vadd.f32 %v11498_v33, %v8237_v58  ;;  %v8240_v36 = vadd.f32 %v16818_v50, %v8239_v45 }
 0x9b7   : > { %v15550_v30 = vadd.f32 %v11501_v18, %v8248_v56 }
 0x9b8   : > { %v15542_v26 = vadd.f32 %v11499_v32, %v8240_v36  ;;  %8299 = vadd.xlane.f32.xlu1 %v15537_v48 }
 0x9ba   : > { %8301 = vadd.xlane.f32.xlu0 %v15542_v26 }
 0x9bc   : > { %8303 = vadd.xlane.f32.xlu1 %v15546_v63 }
 0x9be   : > { %8305 = vadd.xlane.f32.xlu0 %v15550_v30  ;;  %v10729_v6 = vpop.f32.mrb[144].mxu1 }
 0x9bf   : > { %v8252_v37 = vpop.f32.mrb[145].mxu1  ;;  %v8261_v23 = vadd.f32 %v10729_v6, %v16818_v50 }
 0x9c0   : > { %v8253_v54 = vadd.f32 %v16818_v50, %v8252_v37  ;;  %v10730_v39 = vpop.f32.mrb[146].mxu1 }
 0x9c1   : > { %v8255_v15 = vpop.f32.mrb[147].mxu1  ;;  %v8264_v34 = vadd.f32 %v10730_v39, %v16818_v50  ;;  %v15566_v5 = vadd.f32 %v11504_v24, %v8261_v23  ;;  %v10985_v23 = vld [vmem:[#allocation13 + $0x44] ss:$16 sps:$4 sm:$0xff]   ;;  %v11000_v24 = vld [vmem:[#allocation13 + $0xcc] ss:$16 sps:$4 sm:$0xff]  }
 0x9c2   : > { %v15557_v4 = vadd.f32 %v11502_v46, %v8253_v54  ;;  %v8256_v27 = vadd.f32 %v16818_v50, %v8255_v15  ;;  %v10967_v50 = vld [vmem:[#allocation13 + $0x2c] ss:$16 sps:$4 sm:$0xff]   ;;  %v10983_v15 = vld [vmem:[#allocation13 + $0x40] ss:$16 sps:$4 sm:$0xff]   ;;  %8726 = vmatprep.subr.bf16.mxu1 %v10985_v23 }
 0x9c3   : > { %v15570_v13 = vadd.f32 %v11505_v0, %v8264_v34  ;;  %8837 = vmatprep.subr.bf16.mxu0 %v10967_v50  ;;  %8727 = vmatpush1.bf16.msra.mxu1 %v10983_v15  ;;  %v10986_v34 = vld [vmem:[#allocation13 + $0x60] ss:$16 sps:$4 sm:$0xff]   ;;  %v10998_v0 = vld [vmem:[#allocation13 + $0xc8] ss:$16 sps:$4 sm:$0xff]  }
 0x9c4   : > { %v15562_v9 = vadd.f32 %v11503_v17, %v8256_v27  ;;  %8307 = vadd.xlane.f32.xlu1 %v15557_v4  ;;  %8838 = vmatpush1.bf16.msra.mxu0 %v10965_v41  ;;  %v10989_v27 = vld [vmem:[#allocation13 + $0xa8] ss:$16 sps:$4 sm:$0xff]   ;;  %v10991_v17 = vld [vmem:[#allocation13 + $0xac] ss:$16 sps:$4 sm:$0xff]   ;;  %v10995_v50 = vld [vmem:[#allocation13 + $0xa0] ss:$16 sps:$4 sm:$0xff]  }
 0x9c5   : > { %8839 = vmatprep.subr.bf16.mxu0 %v10970_v60  ;;  %v11003_v41 = vld [vmem:[#allocation13 + $0xc4] ss:$16 sps:$4 sm:$0xff]  }
 0x9c6   : > { %8309 = vadd.xlane.f32.xlu0 %v15562_v9 }
 0x9c8   : > { %8311 = vadd.xlane.f32.xlu1 %v15566_v5  ;;  %8840 = vmatpush1.bf16.msra.mxu0 %v10968_v44  ;;  %v11006_v44 = vld [vmem:[#allocation13 + $0xe4] ss:$16 sps:$4 sm:$0xff]  }
 0x9c9   : > { %8841 = vmatprep.subr.bf16.mxu0 %v10973_v53  ;;  %v11007_v53 = vld [vmem:[#allocation13 + $0xe8] ss:$16 sps:$4 sm:$0xff]  }
 0x9ca   : > { %8313 = vadd.xlane.f32.xlu0 %v15570_v13 }
 0x9cc   : > { %8842 = vmatpush1.bf16.msra.mxu0 %v10971_v61 }
 0x9cd   : > { %8843 = vmatprep.subr.bf16.mxu0 %v10982_v10 }
 0x9d0   : > { %8844 = vmatpush1.bf16.msra.mxu0 %v10980_v52  ;;  %v11009_v52 = vld [vmem:[#allocation13 + $0xec] ss:$16 sps:$4 sm:$0xff]  }
 0x9d1   : > { %8845 = vmatprep.subr.bf16.mxu0 %v10991_v17 }
 0x9d4   : > { %8846 = vmatpush1.bf16.msra.mxu0 %v10989_v27 }
 0x9d5   : > { %8847 = vmatprep.subr.bf16.mxu0 %v11000_v24 }
 0x9d8   : > { %8848 = vmatpush1.bf16.msra.mxu0 %v10998_v0 }
 0x9d9   : > { %8849 = vmatprep.subr.bf16.mxu0 %v11009_v52 }
 0x9dc   : > { %8850 = vmatpush1.bf16.msra.mxu0 %v11007_v53 }
 0xa0a   : > { %v8284_v2 = vpop.xlane.xlu0 %8283 }
 0xa0b   : > { %v8316_v16 = vmul.f32 0.0078125, %v8284_v2 }
 0xa0c   : > { %v8286_v8 = vpop.xlane.xlu1 %8285 }
 0xa0d   : > { %v15575_v14 = vsub.f32 %v15497_v62, %v8316_v16  ;;  %v8317_v59 = vmul.f32 0.0078125, %v8286_v8 }
 0xa0e   : > { %v8288_v12 = vpop.xlane.xlu0 %8287 }
 0xa0f   : > { %v15578_v38 = vsub.f32 %v15501_v43, %v8317_v59  ;;  %v8318_v35 = vmul.f32 0.0078125, %v8288_v12  ;;  %v8348_v21 = vmul.f32 %v15575_v14, %v15575_v14 }
 0xa11   : > { %v15583_v1 = vsub.f32 %v15505_v40, %v8318_v35  ;;  %8364 = vadd.xlane.f32.xlu1 %v8348_v21  ;;  %v8349_v47 = vmul.f32 %v15578_v38, %v15578_v38 }
 0xa12   : > { %v8290_v58 = vpop.xlane.xlu0 %8289 }
 0xa13   : > { %v8319_v25 = vmul.f32 0.0078125, %v8290_v58  ;;  %8366 = vadd.xlane.f32.xlu0 %v8349_v47  ;;  %v8350_v62 = vmul.f32 %v15583_v1, %v15583_v1 }
 0xa15   : > { %v15590_v43 = vsub.f32 %v15511_v51, %v8319_v25  ;;  %8368 = vadd.xlane.f32.xlu1 %v8350_v62 }
 0xa17   : > { %v8351_v45 = vmul.f32 %v15590_v43, %v15590_v43 }
 0xa19   : > { %8370 = vadd.xlane.f32.xlu0 %v8351_v45 }
 0xa2a   : > { %v8292_v40 = vpop.xlane.xlu1 %8291 }
 0xa2b   : > { %v8320_v11 = vmul.f32 0.0078125, %v8292_v40 }
 0xa2c   : > { %v8294_v33 = vpop.xlane.xlu0 %8293 }
 0xa2d   : > { %v15595_v36 = vsub.f32 %v15517_v31, %v8320_v11  ;;  %v8321_v56 = vmul.f32 0.0078125, %v8294_v33 }
 0xa2e   : > { %v8296_v32 = vpop.xlane.xlu1 %8295 }
 0xa2f   : > { %v15598_v29 = vsub.f32 %v15522_v55, %v8321_v56  ;;  %v8322_v18 = vmul.f32 0.0078125, %v8296_v32  ;;  %v8352_v51 = vmul.f32 %v15595_v36, %v15595_v36 }
 0xa30   : > { %v8298_v6 = vpop.xlane.xlu0 %8297 }
 0xa31   : > { %v15603_v37 = vsub.f32 %v15526_v42, %v8322_v18  ;;  %v8323_v54 = vmul.f32 0.0078125, %v8298_v6  ;;  %8372 = vadd.xlane.f32.xlu1 %v8352_v51  ;;  %v8353_v39 = vmul.f32 %v15598_v29, %v15598_v29  ;;  %v10988_v42 = vld [vmem:[#allocation13 + $0x64] ss:$16 sps:$4 sm:$0xff]  }
 0xa32   : > { %8728 = vmatprep.subr.bf16.mxu1 %v10988_v42 }
 0xa33   : > { %v15608_v31 = vsub.f32 %v15530_v7, %v8323_v54  ;;  %8374 = vadd.xlane.f32.xlu0 %v8353_v39  ;;  %v8354_v55 = vmul.f32 %v15603_v37, %v15603_v37  ;;  %v10994_v7 = vld [vmem:[#allocation13 + $0x84] ss:$16 sps:$4 sm:$0xff]   ;;  %8729 = vmatpush1.bf16.msra.mxu1 %v10986_v34 }
 0xa34   : > { %8730 = vmatprep.subr.bf16.mxu1 %v10994_v7  ;;  %v11010_v39 = vld [vmem:[#allocation15 + $0x40] sm:$0xff]  }
 0xa35   : > { %8376 = vadd.xlane.f32.xlu1 %v8354_v55  ;;  %v8355_v46 = vmul.f32 %v15608_v31, %v15608_v31 }
 0xa37   : > { %8378 = vadd.xlane.f32.xlu0 %v8355_v46  ;;  %8731 = vmatpush1.bf16.msra.mxu1 %v10992_v3 }
 0xa38   : > { %8732 = vmatprep.subr.bf16.mxu1 %v10997_v49 }
 0xa3b   : > { %8733 = vmatpush1.bf16.msra.mxu1 %v10995_v50 }
 0xa3c   : > { %8734 = vmatprep.subr.bf16.mxu1 %v11003_v41 }
 0xa3f   : > { %8735 = vmatpush1.bf16.msra.mxu1 %v11001_v19  ;;  %v16819_v19 = vld [vmem:[#allocation33_spill] sm:$0xff] }
 0xa40   : > { %8736 = vmatprep.subr.bf16.mxu1 %v11006_v44 }
 0xa43   : > { %8737 = vmatpush1.bf16.msra.mxu1 %v11004_v28  ;;  %v16820_v28 = vld [vmem:[#allocation34_spill] sm:$0xff] }
 0xa44   : > { %10443 = vmatprep.subr.bf16.mxu1 %v11010_v39 }
 0xa45   : > { %v8300_v20 = vpop.xlane.xlu1 %8299 }
 0xa46   : > { %v8324_v57 = vmul.f32 0.0078125, %v8300_v20 }
 0xa47   : > { %v8302_v60 = vpop.xlane.xlu0 %8301 }
 0xa48   : > { %v15615_v61 = vsub.f32 %v15537_v48, %v8324_v57  ;;  %v8325_v10 = vmul.f32 0.0078125, %v8302_v60 }
 0xa49   : > { %v8304_v2 = vpop.xlane.xlu1 %8303 }
 0xa4a   : > { %v15618_v16 = vsub.f32 %v15542_v26, %v8325_v10  ;;  %v8326_v8 = vmul.f32 0.0078125, %v8304_v2  ;;  %v8356_v59 = vmul.f32 %v15615_v61, %v15615_v61 }
 0xa4b   : > { %v8306_v12 = vpop.xlane.xlu0 %8305 }
 0xa4c   : > { %v15623_v35 = vsub.f32 %v15546_v63, %v8326_v8  ;;  %v8327_v48 = vmul.f32 0.0078125, %v8306_v12  ;;  %8380 = vadd.xlane.f32.xlu1 %v8356_v59  ;;  %v8357_v21 = vmul.f32 %v15618_v16, %v15618_v16  ;;  %v11011_v8 = vld [vmem:[#allocation15] sm:$0xff]   ;;  %v11016_v12 = vld [vmem:[#allocation15 + $0xc8] sm:$0xff]  }
 0xa4d   : > { %v11013_v59 = vld [vmem:[#allocation15 + $0x80] sm:$0xff]  }
 0xa4e   : > { %v15628_v47 = vsub.f32 %v15550_v30, %v8327_v48  ;;  %8382 = vadd.xlane.f32.xlu0 %v8357_v21  ;;  %v8358_v26 = vmul.f32 %v15623_v35, %v15623_v35 }
 0xa50   : > { %8384 = vadd.xlane.f32.xlu1 %v8358_v26  ;;  %v8359_v58 = vmul.f32 %v15628_v47, %v15628_v47  ;;  %v11017_v26 = vld [vmem:[#allocation15 + $0x88] sm:$0xff]  }
 0xa51   : > { %v8308_v25 = vpop.xlane.xlu1 %8307 }
 0xa52   : > { %8386 = vadd.xlane.f32.xlu0 %v8359_v58  ;;  %v8328_v63 = vmul.f32 0.0078125, %v8308_v25  ;;  %v11018_v58 = vld [vmem:[#allocation15 + $0x50] sm:$0xff]  }
 0xa53   : > { %v8310_v62 = vpop.xlane.xlu0 %8309  ;;  %v11020_v25 = vld [vmem:[#allocation15 + $0xd0] sm:$0xff]  }
 0xa54   : > { %v15635_v45 = vsub.f32 %v15557_v4, %v8328_v63  ;;  %v8329_v40 = vmul.f32 0.0078125, %v8310_v62 }
 0xa55   : > { %v8312_v11 = vpop.xlane.xlu1 %8311 }
 0xa56   : > { %v15638_v30 = vsub.f32 %v15562_v9, %v8329_v40  ;;  %v8330_v33 = vmul.f32 0.0078125, %v8312_v11  ;;  %v8360_v56 = vmul.f32 %v15635_v45, %v15635_v45 }
 0xa57   : > { %v8314_v32 = vpop.xlane.xlu0 %8313 }
 0xa58   : > { %v15643_v18 = vsub.f32 %v15566_v5, %v8330_v33  ;;  %v8331_v51 = vmul.f32 0.0078125, %v8314_v32  ;;  %8388 = vadd.xlane.f32.xlu1 %v8360_v56  ;;  %v8361_v6 = vmul.f32 %v15638_v30, %v15638_v30  ;;  %v11012_v5 = vld [vmem:[#allocation15 + $0xc0] sm:$0xff]   ;;  %v11019_v33 = vld [vmem:[#allocation15 + $0x10] sm:$0xff]  }
 0xa59   : > { %10507 = vmatprep.subr.bf16.mxu0 %v11012_v5  ;;  %v11021_v56 = vld [vmem:[#allocation15 + $0x90] sm:$0xff]  }
 0xa5a   : > { %v15648_v4 = vsub.f32 %v15570_v13, %v8331_v51  ;;  %8390 = vadd.xlane.f32.xlu0 %v8361_v6  ;;  %v8362_v9 = vmul.f32 %v15643_v18, %v15643_v18  ;;  %v11022_v51 = vld [vmem:[#allocation15 + $0x58] sm:$0xff]  }
 0xa5b   : > { %v11024_v6 = vld [vmem:[#allocation15 + $0xd8] sm:$0xff]  }
 0xa5c   : > { %8392 = vadd.xlane.f32.xlu1 %v8362_v9  ;;  %v8363_v54 = vmul.f32 %v15648_v4, %v15648_v4 }
 0xa5e   : > { %8394 = vadd.xlane.f32.xlu0 %v8363_v54 }
 0xa9e   : > { %v8365_v55 = vpop.xlane.xlu1 %8364 }
 0xa9f   : > { %v8396_v15 = vmul.f32 0.0078125, %v8365_v55 }
 0xaa0   : > { %v8367_v23 = vpop.xlane.xlu0 %8366 }
 0xaa1   : > { %v8412_v46 = vadd.f32 1e-05, %v8396_v15  ;;  %v8397_v42 = vmul.f32 0.0078125, %v8367_v23  ;;  %v11023_v15 = vld [vmem:[#allocation15 + $0x18] sm:$0xff]  }
 0xaa2   : > { %v8369_v13 = vpop.xlane.xlu1 %8368  ;;  %v11025_v23 = vld [vmem:[#allocation15 + $0x98] sm:$0xff]  }
 0xaa3   : > { %11426 = vrsqrt.f32 %v8412_v46  ;;  %v8413_v27 = vadd.f32 1e-05, %v8397_v42  ;;  %v8398_v34 = vmul.f32 0.0078125, %v8369_v13  ;;  %v11026_v42 = vld [vmem:[#allocation15 + $0x60] sm:$0xff]  }
 0xaa4   : > { %v11028_v13 = vld [vmem:[#allocation15 + $0xe0] sm:$0xff]  }
 0xaa5   : > { %11428 = vrsqrt.f32 %v8413_v27  ;;  %v8414_v17 = vadd.f32 1e-05, %v8398_v34 }
 0xaa6   : > { %v8371_v7 = vpop.xlane.xlu0 %8370 }
 0xaa7   : > { %11430 = vrsqrt.f32 %v8414_v17  ;;  %v8399_v24 = vmul.f32 0.0078125, %v8371_v7  ;;  %v11027_v7 = vld [vmem:[#allocation15 + $0x20] sm:$0xff]  }
 0xaa9   : > { %v8415_v0 = vadd.f32 1e-05, %v8399_v24  ;;  %v11029_v24 = vld [vmem:[#allocation15 + $0xa0] sm:$0xff]  }
 0xaab   : > { %11432 = vrsqrt.f32 %v8415_v0  ;;  %v11030_v0 = vld [vmem:[#allocation15 + $0x68] sm:$0xff]  }
 0xaad   : > { %v11427_v3 = vpop.eup %11426 }
 0xaae   : > { %v8444_v49 = vmul.f32 %v11427_v3, %v15575_v14  ;;  %v11032_v3 = vld [vmem:[#allocation15 + $0xe8] sm:$0xff]  }
 0xaaf   : > { %v11429_v50 = vpop.eup %11428 }
 0xab0   : > { %v8464_v41 = vmul.f32 %v16819_v19, %v8444_v49  ;;  %v8445_v20 = vmul.f32 %v11429_v50, %v15578_v38  ;;  %v11014_v38 = vld [vmem:[#allocation15 + $0x48] sm:$0xff]  }
 0xab1   : > { %v11431_v57 = vpop.eup %11430  ;;  %v11031_v49 = vld [vmem:[#allocation15 + $0x28] sm:$0xff]  }
 0xab2   : > { %v8465_v60 = vmul.f32 %v16819_v19, %v8445_v20  ;;  %v15659_v44 = vadd.f32 %v16820_v28, %v8464_v41  ;;  %v8446_v10 = vmul.f32 %v11431_v57, %v15583_v1  ;;  %v11033_v50 = vld [vmem:[#allocation15 + $0xa8] sm:$0xff]   ;;  %v11034_v41 = vld [vmem:[#allocation15 + $0x70] sm:$0xff]  }
 0xab3   : > { %v11036_v20 = vld [vmem:[#allocation15 + $0xf0] sm:$0xff]  }
 0xab4   : > { %v15662_v53 = vadd.f32 %v16820_v28, %v8465_v60  ;;  %v8466_v48 = vmul.f32 %v16819_v19, %v8446_v10 }
 0xab5   : > { %v11433_v52 = vpop.eup %11432 }
 0xab6   : > { %v8500_v14 = vpack.c.bf16 %v15662_v53, %v15659_v44  ;;  %v8447_v2 = vmul.f32 %v11433_v52, %v15590_v43  ;;  %v11015_v43 = vld [vmem:[#allocation15 + $0x8] sm:$0xff]   ;;  %v15676_v63 = vadd.f32 %v16820_v28, %v8466_v48  ;;  %v11035_v52 = vld [vmem:[#allocation15 + $0x30] sm:$0xff]  }
 0xab8   : > { %8755 = vmatmul.mubr.bf16.vlgmr.msra.gmra.mrb[148].mxu1 %v8500_v14  ;;  %8868 = vmatmul.mubr.bf16.vlgmr.msra.gmra.mrb[140].mxu0 %v8500_v14  ;;  %v8467_v21 = vmul.f32 %v16819_v19, %v8447_v2 }
 0xab9   : > { %8764 = vmatprep.mubr.bf16.mxu1 %v16817_v22  ;;  %8877 = vmatprep.mubr.bf16.mxu0 %v16817_v22 }
 0xaba   : > { %v15673_v1 = vadd.f32 %v16820_v28, %v8467_v21  ;;  %10444 = vmatpush3.bf16.msra.mxu1 %v11011_v8  ;;  %10508 = vmatpush3.bf16.msra.mxu0 %v11013_v59 }
 0xabb   : > { %10445 = vmatprep.subr.bf16.mxu1 %v11014_v38  ;;  %10509 = vmatprep.subr.bf16.mxu0 %v11016_v12 }
 0xabc   : > { %v8501_v11 = vpack.c.bf16 %v15673_v1, %v15676_v63 }
 0xabe   : > { %v8373_v62 = vpop.xlane.xlu1 %8372  ;;  %10446 = vmatpush3.bf16.msra.mxu1 %v11015_v43  ;;  %10510 = vmatpush3.bf16.msra.mxu0 %v11017_v26 }
 0xabf   : > { %v8400_v40 = vmul.f32 0.0078125, %v8373_v62  ;;  %10447 = vmatprep.subr.bf16.mxu1 %v11018_v58  ;;  %10511 = vmatprep.subr.bf16.mxu0 %v11020_v25 }
 0xac0   : > { %v8375_v32 = vpop.xlane.xlu0 %8374  ;;  %8765 = vmatmul.mubr.bf16.gmra.mrb[152].mxu1 %v8501_v11  ;;  %8878 = vmatmul.mubr.bf16.gmra.mrb[144].mxu0 %v8501_v11 }
 0xac1   : > { %v8416_v9 = vadd.f32 1e-05, %v8400_v40  ;;  %v8401_v54 = vmul.f32 0.0078125, %v8375_v32  ;;  %8774 = vmatprep.mubr.bf16.mxu1 %v16817_v22  ;;  %8887 = vmatprep.mubr.bf16.mxu0 %v16817_v22 }
 0xac2   : > { %v8377_v39 = vpop.xlane.xlu1 %8376  ;;  %10448 = vmatpush3.bf16.msra.mxu1 %v11019_v33  ;;  %10512 = vmatpush3.bf16.msra.mxu0 %v11021_v56 }
 0xac3   : > { %11434 = vrsqrt.f32 %v8416_v9  ;;  %v8417_v5 = vadd.f32 1e-05, %v8401_v54  ;;  %v8402_v55 = vmul.f32 0.0078125, %v8377_v39  ;;  %10449 = vmatprep.subr.bf16.mxu1 %v11022_v51  ;;  %10513 = vmatprep.subr.bf16.mxu0 %v11024_v6 }
 0xac4   : > { %v8379_v46 = vpop.xlane.xlu0 %8378 }
 0xac5   : > { %11436 = vrsqrt.f32 %v8417_v5  ;;  %v8418_v27 = vadd.f32 1e-05, %v8402_v55  ;;  %v8403_v34 = vmul.f32 0.0078125, %v8379_v46 }
 0xac6   : > { %10450 = vmatpush3.bf16.msra.mxu1 %v11023_v15  ;;  %10514 = vmatpush3.bf16.msra.mxu0 %v11025_v23 }
 0xac7   : > { %11438 = vrsqrt.f32 %v8418_v27  ;;  %v8419_v17 = vadd.f32 1e-05, %v8403_v34  ;;  %10451 = vmatprep.subr.bf16.mxu1 %v11026_v42  ;;  %10515 = vmatprep.subr.bf16.mxu0 %v11028_v13 }
 0xac9   : > { %11440 = vrsqrt.f32 %v8419_v17 }
 0xaca   : > { %10452 = vmatpush3.bf16.msra.mxu1 %v11027_v7  ;;  %10516 = vmatpush3.bf16.msra.mxu0 %v11029_v24 }
 0xacb   : > { %10453 = vmatprep.subr.bf16.mxu1 %v11030_v0  ;;  %10517 = vmatprep.subr.bf16.mxu0 %v11032_v3 }
 0xacd   : > { %v11435_v57 = vpop.eup %11434 }
 0xace   : > { %v8448_v60 = vmul.f32 %v11435_v57, %v15595_v36  ;;  %10454 = vmatpush3.bf16.msra.mxu1 %v11031_v49  ;;  %10518 = vmatpush3.bf16.msra.mxu0 %v11033_v50 }
 0xacf   : > { %v11437_v10 = vpop.eup %11436  ;;  %10455 = vmatprep.subr.bf16.mxu1 %v11034_v41  ;;  %10519 = vmatprep.subr.bf16.mxu0 %v11036_v20 }
 0xad0   : > { %v8449_v14 = vmul.f32 %v11437_v10, %v15598_v29  ;;  %v8468_v2 = vmul.f32 %v16819_v19, %v8448_v60 }
 0xad1   : > { %v11439_v8 = vpop.eup %11438 }
 0xad2   : > { %v8469_v59 = vmul.f32 %v16819_v19, %v8449_v14  ;;  %10456 = vmatpush3.bf16.msra.mxu1 %v11035_v52  ;;  %v15687_v12 = vadd.f32 %v16820_v28, %v8468_v2  ;;  %v8450_v48 = vmul.f32 %v11439_v8, %v15603_v37 }
 0xad3   : > { %v11441_v38 = vpop.eup %11440 }
 0xad4   : > { %v15690_v36 = vadd.f32 %v16820_v28, %v8469_v59  ;;  %v8451_v21 = vmul.f32 %v11441_v38, %v15608_v31  ;;  %v8470_v26 = vmul.f32 %v16819_v19, %v8450_v48 }
 0xad6   : > { %v8502_v29 = vpack.c.bf16 %v15690_v36, %v15687_v12  ;;  %v8471_v43 = vmul.f32 %v16819_v19, %v8451_v21  ;;  %v15704_v11 = vadd.f32 %v16820_v28, %v8470_v26 }
 0xad8   : > { %8775 = vmatmul.mubr.bf16.gmra.mrb[156].mxu1 %v8502_v29  ;;  %8888 = vmatmul.mubr.bf16.gmra.mrb[148].mxu0 %v8502_v29  ;;  %v15701_v62 = vadd.f32 %v16820_v28, %v8471_v43 }
 0xad9   : > { %v8381_v58 = vpop.xlane.xlu1 %8380  ;;  %8784 = vmatprep.mubr.bf16.mxu1 %v16817_v22  ;;  %8897 = vmatprep.mubr.bf16.mxu0 %v16817_v22 }
 0xada   : > { %v8404_v25 = vmul.f32 0.0078125, %v8381_v58  ;;  %v8503_v51 = vpack.c.bf16 %v15701_v62, %v15704_v11 }
 0xadb   : > { %v8383_v37 = vpop.xlane.xlu0 %8382 }
 0xadc   : > { %v8420_v31 = vadd.f32 1e-05, %v8404_v25  ;;  %v8405_v40 = vmul.f32 0.0078125, %v8383_v37 }
 0xadd   : > { %v8385_v33 = vpop.xlane.xlu1 %8384 }
 0xade   : > { %11442 = vrsqrt.f32 %v8420_v31  ;;  %v8421_v56 = vadd.f32 1e-05, %v8405_v40  ;;  %v8406_v32 = vmul.f32 0.0078125, %v8385_v33 }
 0xadf   : > { %v8387_v6 = vpop.xlane.xlu0 %8386 }
 0xae0   : > { %11444 = vrsqrt.f32 %v8421_v56  ;;  %v8422_v9 = vadd.f32 1e-05, %v8406_v32  ;;  %v8407_v54 = vmul.f32 0.0078125, %v8387_v6  ;;  %8785 = vmatmul.mubr.bf16.gmra.mrb[160].mxu1 %v8503_v51  ;;  %8898 = vmatmul.mubr.bf16.gmra.mrb[152].mxu0 %v8503_v51  ;;  %v11038_v6 = vld [vmem:[#allocation15 + $0x78] sm:$0xff]  }
 0xae1   : > { %8794 = vmatprep.mubr.bf16.mxu1 %v16817_v22  ;;  %8907 = vmatprep.mubr.bf16.mxu0 %v16817_v22 }
 0xae2   : > { %11446 = vrsqrt.f32 %v8422_v9  ;;  %v8423_v39 = vadd.f32 1e-05, %v8407_v54  ;;  %v11039_v9 = vld [vmem:[#allocation15 + $0x38] sm:$0xff]   ;;  %10457 = vmatprep.subr.bf16.mxu1 %v11038_v6  ;;  %v16821_v54 = vld [vmem:[#allocation38_spill] sm:$0xff] }
 0xae3   : > { %10458 = vmatpush3.bf16.msra.mxu1 %v11039_v9 }
 0xae4   : > { %11448 = vrsqrt.f32 %v8423_v39  ;;  %v8544_v39 = vsub.s32 0, %v16821_v54 }
 0xae5   : > { %v8389_v5 = vpop.xlane.xlu1 %8388 }
 0xae6   : > { %v8408_v55 = vmul.f32 0.0078125, %v8389_v5  ;;  %v8540_v5 = vld [vmem:[%s16822_s13] sm:$0xf]  ;;  %s16070_s13 = scalar_lea.hbm %s16827_s25, %s10290_s0  ;;  %s11710_s0 = scalar_lea.vmem %s11709_s4, 4096 }
 0xae7   : > { %v8391_v15 = vpop.xlane.xlu0 %8390  ;;  %p11712_p1 = scmp.lt.s32.totalorder %s11710_s0, %s11704_s6 }
 0xae8   : > { %v11443_v23 = vpop.eup %11442  ;;  %v8424_v46 = vadd.f32 1e-05, %v8408_v55  ;;  %v8409_v42 = vmul.f32 0.0078125, %v8391_v15  ;;  %v8548_v55 = vsub.s32 1, %v16821_v54  ;;  %v8556_v15 = vsub.s32 3, %v16821_v54 }
 0xae9   : > { %v8393_v13 = vpop.xlane.xlu1 %8392  ;;  %v8452_v27 = vmul.f32 %v11443_v23, %v15615_v61  ;;  %v15771_v23 = vrot.slane %v8540_v5, %v8544_v39  ;;  %p11713_p0 = por %p11712_p1, %p11711_p12 }
 0xaea   : > { %v11445_v34 = vpop.eup %11444  ;;  %11450 = vrsqrt.f32 %v8424_v46  ;;  %v8425_v17 = vadd.f32 1e-05, %v8409_v42  ;;  %v8410_v7 = vmul.f32 0.0078125, %v8393_v13  ;;  %v15775_v42 = vrot.slane %v8540_v5, %v8548_v55 }
 0xaeb   : > { %v8395_v24 = vpop.xlane.xlu0 %8394  ;;  %v8453_v0 = vmul.f32 %v11445_v34, %v15618_v16  ;;  %v8472_v3 = vmul.f32 %v16819_v19, %v8452_v27  ;;  %v15777_v13 = vrot.slane %v8540_v5, %v8556_v15  ;;  %p11714_p7 = pnand %p11713_p0, %p11707_p11 }
 0xaec   : > { %v11447_v49 = vpop.eup %11446  ;;  %11452 = vrsqrt.f32 %v8425_v17  ;;  %v8411_v50 = vmul.f32 0.0078125, %v8395_v24  ;;  %v8426_v57 = vadd.f32 1e-05, %v8410_v7 }
 0xaed   : > { %v8473_v41 = vmul.f32 %v16819_v19, %v8453_v0  ;;  %v15715_v10 = vadd.f32 %v16820_v28, %v8472_v3  ;;  %v8454_v52 = vmul.f32 %v11447_v49, %v15623_v35 }
 0xaee   : > { %v11449_v20 = vpop.eup %11448  ;;  %v8427_v60 = vadd.f32 1e-05, %v8411_v50 }
 0xaef   : > { %v15718_v61 = vadd.f32 %v16820_v28, %v8473_v41  ;;  %v8455_v16 = vmul.f32 %v11449_v20, %v15628_v47  ;;  %v8474_v8 = vmul.f32 %v16819_v19, %v8454_v52 }
 0xaf0   : > { %11454 = vrsqrt.f32 %v8427_v60 }
 0xaf1   : > { %v8504_v14 = vpack.c.bf16 %v15718_v61, %v15715_v10  ;;  %v8475_v2 = vmul.f32 %v16819_v19, %v8455_v16  ;;  %11456 = vrsqrt.f32 %v8426_v57  ;;  %v15733_v48 = vadd.f32 %v16820_v28, %v8474_v8 }
 0xaf3   : > { %8795 = vmatmul.mubr.bf16.gmra.mrb[164].mxu1 %v8504_v14  ;;  %8908 = vmatmul.mubr.bf16.gmra.mrb[156].mxu0 %v8504_v14  ;;  %v15729_v35 = vadd.f32 %v16820_v28, %v8475_v2 }
 0xaf4   : > { %v11451_v59 = vpop.eup %11450  ;;  %8804 = vmatprep.mubr.bf16.mxu1 %v16817_v22  ;;  %8917 = vmatprep.mubr.bf16.mxu0 %v16817_v22 }
 0xaf5   : > { %v8456_v47 = vmul.f32 %v11451_v59, %v15635_v45  ;;  %v8505_v29 = vpack.c.bf16 %v15729_v35, %v15733_v48 }
 0xaf6   : > { %v11453_v38 = vpop.eup %11452 }
 0xaf7   : > { %v8457_v21 = vmul.f32 %v11453_v38, %v15638_v30  ;;  %v8476_v43 = vmul.f32 %v16819_v19, %v8456_v47 }
 0xaf9   : > { %v8477_v26 = vmul.f32 %v16819_v19, %v8457_v21  ;;  %v15746_v30 = vadd.f32 %v16820_v28, %v8476_v43 }
 0xafa   : > { %v11455_v58 = vpop.eup %11454 }
 0xafb   : > { %8805 = vmatmul.mubr.bf16.gmra.mrb[168].mxu1 %v8505_v29  ;;  %8918 = vmatmul.mubr.bf16.gmra.mrb[160].mxu0 %v8505_v29  ;;  %v15741_v25 = vadd.f32 %v16820_v28, %v8477_v26  ;;  %v11457_v45 = vpop.eup %11456  ;;  %v8459_v37 = vmul.f32 %v11455_v58, %v15648_v4 }
 0xafc   : > { %8814 = vmatprep.mubr.bf16.mxu1 %v16817_v22  ;;  %8927 = vmatprep.mubr.bf16.mxu0 %v16817_v22  ;;  %v8458_v40 = vmul.f32 %v11457_v45, %v15643_v18  ;;  %v11037_v18 = vld [vmem:[#allocation15 + $0xb0] sm:$0xff]  }
 0xafd   : > { %v8506_v31 = vpack.c.bf16 %v15741_v25, %v15746_v30  ;;  %v8479_v33 = vmul.f32 %v16819_v19, %v8459_v37  ;;  %10520 = vmatpush3.bf16.msra.mxu0 %v11037_v18 }
 0xafe   : > { %v8478_v56 = vmul.f32 %v16819_v19, %v8458_v40  ;;  %v11040_v19 = vld [vmem:[#allocation15 + $0xf8] sm:$0xff]  }
 0xaff   : > { %v15757_v32 = vadd.f32 %v16820_v28, %v8479_v33  ;;  %10521 = vmatprep.subr.bf16.mxu0 %v11040_v19 }
 0xb00   : > { %v15760_v4 = vadd.f32 %v16820_v28, %v8478_v56  ;;  %v8552_v28 = vsub.s32 2, %v16821_v54 }
 0xb02   : > { %v8507_v51 = vpack.c.bf16 %v15757_v32, %v15760_v4  ;;  %v15773_v46 = vrot.slane %v8540_v5, %v8552_v28 }
 0xb03   : > { %8815 = vmatmul.mubr.bf16.gmra.mrb[172].mxu1 %v8506_v31  ;;  %8928 = vmatmul.mubr.bf16.gmra.mrb[164].mxu0 %v8506_v31 }
 0xb04   : > { %8824 = vmatprep.mubr.bf16.mxu1 %v16817_v22  ;;  %8937 = vmatprep.mubr.bf16.mxu0 %v16817_v22  ;;  %v11041_v22 = vld [vmem:[#allocation15 + $0xb8] sm:$0xff]  }
 0xb05   : > { %10522 = vmatpush3.bf16.msra.mxu0 %v11041_v22 }
 0xb0b   : > { %8825 = vmatmul.mubr.bf16.gmra.mrb[176].mxu1 %v8507_v51  ;;  %8938 = vmatmul.mubr.bf16.gmra.mrb[168].mxu0 %v8507_v51 }
 0xb8b   : > { %v8756_v27 = vpop.f32.mrb[148].mxu1  ;;  %v8869_v34 = vpop.f32.mrb[140].mxu0 }
 0xb8c   : > { %v8757_v17 = vadd.f32 %v8756_v27, %v15771_v23  ;;  %v8870_v7 = vadd.f32 %v8869_v34, %v15773_v46  ;;  %v8758_v24 = vpop.f32.mrb[149].mxu1  ;;  %v8871_v0 = vpop.f32.mrb[141].mxu0 }
 0xb8d   : > { %v8759_v3 = vadd.f32 %v8758_v24, %v15775_v42  ;;  %v8872_v49 = vadd.f32 %v8871_v0, %v15777_v13  ;;  %v8760_v50 = vpop.f32.mrb[150].mxu1  ;;  %v8873_v41 = vpop.f32.mrb[142].mxu0 }
 0xb8e   : > { %v8761_v20 = vadd.f32 %v8760_v50, %v15771_v23  ;;  %v8874_v57 = vadd.f32 %v8873_v41, %v15773_v46  ;;  %v8762_v60 = vpop.f32.mrb[151].mxu1  ;;  %v8875_v52 = vpop.f32.mrb[143].mxu0  ;;  %v8948_v2 = vmax.f32 %v8757_v17, 0.0  ;;  %v8950_v8 = vmax.f32 %v8870_v7, 0.0 }
 0xb8f   : > { %v8763_v16 = vadd.f32 %v8762_v60, %v15775_v42  ;;  %v8876_v14 = vadd.f32 %v8875_v52, %v15777_v13  ;;  %v8949_v38 = vmax.f32 %v8759_v3, 0.0  ;;  %v8951_v21 = vmax.f32 %v8872_v49, 0.0 }
 0xb90   : > { %v8952_v59 = vmax.f32 %v8761_v20, 0.0  ;;  %v8954_v47 = vmax.f32 %v8874_v57, 0.0 }
 0xb91   : > { %v8953_v29 = vmax.f32 %v8763_v16, 0.0  ;;  %v8955_v43 = vmax.f32 %v8876_v14, 0.0 }
 0xb92   : > { %v9012_v26 = vpack.c.bf16 %v8952_v59, %v8948_v2  ;;  %v9014_v58 = vpack.c.bf16 %v8954_v47, %v8950_v8 }
 0xb93   : > { %v9013_v45 = vpack.c.bf16 %v8953_v29, %v8949_v38  ;;  %v9015_v37 = vpack.c.bf16 %v8955_v43, %v8951_v21  ;;  %v8766_v31 = vpop.f32.mrb[152].mxu1  ;;  %v8879_v40 = vpop.f32.mrb[144].mxu0 }
 0xb94   : > { %v8767_v33 = vadd.f32 %v8766_v31, %v15771_v23  ;;  %v8880_v56 = vadd.f32 %v8879_v40, %v15773_v46  ;;  %v8768_v51 = vpop.f32.mrb[153].mxu1  ;;  %v8881_v18 = vpop.f32.mrb[145].mxu0 }
 0xb95   : > { %v8769_v6 = vadd.f32 %v8768_v51, %v15775_v42  ;;  %v8882_v9 = vadd.f32 %v8881_v18, %v15777_v13  ;;  %v8770_v19 = vpop.f32.mrb[154].mxu1  ;;  %v8883_v22 = vpop.f32.mrb[146].mxu0  ;;  %9336 = vmatprep.mubr.bf16.mxu1 %v9013_v45  ;;  %9433 = vmatprep.mubr.bf16.mxu0 %v9015_v37 }
 0xb96   : > { %v8771_v54 = vadd.f32 %v8770_v19, %v15771_v23  ;;  %v8884_v39 = vadd.f32 %v8883_v22, %v15773_v46  ;;  %v8772_v28 = vpop.f32.mrb[155].mxu1  ;;  %v8885_v5 = vpop.f32.mrb[147].mxu0  ;;  %9337 = vmatmul.mubr.bf16.vlgmr.msra.gmra.mrb[180].mxu1 %v9012_v26  ;;  %9434 = vmatmul.mubr.bf16.vlgmr.msra.gmra.mrb[172].mxu0 %v9014_v58  ;;  %v8956_v27 = vmax.f32 %v8767_v33, 0.0  ;;  %v8958_v34 = vmax.f32 %v8880_v56, 0.0 }
 0xb97   : > { %v8773_v55 = vadd.f32 %v8772_v28, %v15775_v42  ;;  %v8886_v15 = vadd.f32 %v8885_v5, %v15777_v13  ;;  %v8957_v24 = vmax.f32 %v8769_v6, 0.0  ;;  %v8959_v0 = vmax.f32 %v8882_v9, 0.0 }
 0xb98   : > { %v8960_v17 = vmax.f32 %v8771_v54, 0.0  ;;  %v8962_v7 = vmax.f32 %v8884_v39, 0.0 }
 0xb99   : > { %v8961_v3 = vmax.f32 %v8773_v55, 0.0  ;;  %v8963_v49 = vmax.f32 %v8886_v15, 0.0 }
 0xb9a   : > { %v9016_v50 = vpack.c.bf16 %v8960_v17, %v8956_v27  ;;  %v9018_v41 = vpack.c.bf16 %v8962_v7, %v8958_v34 }
 0xb9b   : > { %v9017_v20 = vpack.c.bf16 %v8961_v3, %v8957_v24  ;;  %v9019_v57 = vpack.c.bf16 %v8963_v49, %v8959_v0 }
 0xb9d   : > { %9344 = vmatprep.mubr.bf16.mxu1 %v9017_v20  ;;  %9441 = vmatprep.mubr.bf16.mxu0 %v9019_v57 }
 0xb9e   : > { %9345 = vmatmul.mubr.bf16.gmra.mrb[184].mxu1 %v9016_v50  ;;  %9442 = vmatmul.mubr.bf16.gmra.mrb[176].mxu0 %v9018_v41 }
 0xbab   : > { %v8776_v60 = vpop.f32.mrb[156].mxu1  ;;  %v8889_v52 = vpop.f32.mrb[148].mxu0 }
 0xbac   : > { %v8777_v16 = vadd.f32 %v8776_v60, %v15771_v23  ;;  %v8890_v14 = vadd.f32 %v8889_v52, %v15773_v46  ;;  %v8778_v2 = vpop.f32.mrb[157].mxu1  ;;  %v8891_v8 = vpop.f32.mrb[149].mxu0 }
 0xbad   : > { %v8779_v59 = vadd.f32 %v8778_v2, %v15775_v42  ;;  %v8892_v47 = vadd.f32 %v8891_v8, %v15777_v13  ;;  %v8780_v38 = vpop.f32.mrb[158].mxu1  ;;  %v8893_v21 = vpop.f32.mrb[150].mxu0 }
 0xbae   : > { %v8781_v29 = vadd.f32 %v8780_v38, %v15771_v23  ;;  %v8894_v43 = vadd.f32 %v8893_v21, %v15773_v46  ;;  %v8782_v26 = vpop.f32.mrb[159].mxu1  ;;  %v8895_v58 = vpop.f32.mrb[151].mxu0  ;;  %v8964_v31 = vmax.f32 %v8777_v16, 0.0  ;;  %v8966_v40 = vmax.f32 %v8890_v14, 0.0 }
 0xbaf   : > { %v8783_v45 = vadd.f32 %v8782_v26, %v15775_v42  ;;  %v8896_v37 = vadd.f32 %v8895_v58, %v15777_v13  ;;  %v8965_v51 = vmax.f32 %v8779_v59, 0.0  ;;  %v8967_v18 = vmax.f32 %v8892_v47, 0.0 }
 0xbb0   : > { %v8968_v33 = vmax.f32 %v8781_v29, 0.0  ;;  %v8970_v56 = vmax.f32 %v8894_v43, 0.0 }
 0xbb1   : > { %v8969_v6 = vmax.f32 %v8783_v45, 0.0  ;;  %v8971_v9 = vmax.f32 %v8896_v37, 0.0 }
 0xbb2   : > { %v9020_v19 = vpack.c.bf16 %v8968_v33, %v8964_v31  ;;  %v9022_v22 = vpack.c.bf16 %v8970_v56, %v8966_v40 }
 0xbb3   : > { %v9021_v54 = vpack.c.bf16 %v8969_v6, %v8965_v51  ;;  %v9023_v39 = vpack.c.bf16 %v8971_v9, %v8967_v18  ;;  %v8786_v28 = vpop.f32.mrb[160].mxu1  ;;  %v8899_v5 = vpop.f32.mrb[152].mxu0 }
 0xbb4   : > { %v8787_v55 = vadd.f32 %v8786_v28, %v15771_v23  ;;  %v8900_v15 = vadd.f32 %v8899_v5, %v15773_v46  ;;  %v8788_v27 = vpop.f32.mrb[161].mxu1  ;;  %v8901_v34 = vpop.f32.mrb[153].mxu0 }
 0xbb5   : > { %v8789_v17 = vadd.f32 %v8788_v27, %v15775_v42  ;;  %v8902_v7 = vadd.f32 %v8901_v34, %v15777_v13  ;;  %v8790_v24 = vpop.f32.mrb[162].mxu1  ;;  %v8903_v0 = vpop.f32.mrb[154].mxu0  ;;  %9352 = vmatprep.mubr.bf16.mxu1 %v9021_v54  ;;  %9449 = vmatprep.mubr.bf16.mxu0 %v9023_v39 }
 0xbb6   : > { %v8791_v3 = vadd.f32 %v8790_v24, %v15771_v23  ;;  %v8904_v49 = vadd.f32 %v8903_v0, %v15773_v46  ;;  %v8792_v50 = vpop.f32.mrb[163].mxu1  ;;  %v8905_v41 = vpop.f32.mrb[155].mxu0  ;;  %9353 = vmatmul.mubr.bf16.gmra.mrb[188].mxu1 %v9020_v19  ;;  %9450 = vmatmul.mubr.bf16.gmra.mrb[180].mxu0 %v9022_v22  ;;  %v8972_v60 = vmax.f32 %v8787_v55, 0.0  ;;  %v8974_v52 = vmax.f32 %v8900_v15, 0.0 }
 0xbb7   : > { %v8793_v20 = vadd.f32 %v8792_v50, %v15775_v42  ;;  %v8906_v57 = vadd.f32 %v8905_v41, %v15777_v13  ;;  %v8973_v2 = vmax.f32 %v8789_v17, 0.0  ;;  %v8975_v8 = vmax.f32 %v8902_v7, 0.0 }
 0xbb8   : > { %v8976_v16 = vmax.f32 %v8791_v3, 0.0  ;;  %v8978_v14 = vmax.f32 %v8904_v49, 0.0 }
 0xbb9   : > { %v8977_v59 = vmax.f32 %v8793_v20, 0.0  ;;  %v8979_v47 = vmax.f32 %v8906_v57, 0.0 }
 0xbba   : > { %v9024_v38 = vpack.c.bf16 %v8976_v16, %v8972_v60  ;;  %v9026_v21 = vpack.c.bf16 %v8978_v14, %v8974_v52 }
 0xbbb   : > { %v9025_v29 = vpack.c.bf16 %v8977_v59, %v8973_v2  ;;  %v9027_v43 = vpack.c.bf16 %v8979_v47, %v8975_v8 }
 0xbbd   : > { %9360 = vmatprep.mubr.bf16.mxu1 %v9025_v29  ;;  %9457 = vmatprep.mubr.bf16.mxu0 %v9027_v43 }
 0xbbe   : > { %9361 = vmatmul.mubr.bf16.gmra.mrb[192].mxu1 %v9024_v38  ;;  %9458 = vmatmul.mubr.bf16.gmra.mrb[184].mxu0 %v9026_v21 }
 0xbc6   : > { %v8796_v26 = vpop.f32.mrb[164].mxu1  ;;  %v8909_v58 = vpop.f32.mrb[156].mxu0 }
 0xbc7   : > { %v8797_v45 = vadd.f32 %v8796_v26, %v15771_v23  ;;  %v8910_v37 = vadd.f32 %v8909_v58, %v15773_v46  ;;  %v8798_v31 = vpop.f32.mrb[165].mxu1  ;;  %v8911_v40 = vpop.f32.mrb[157].mxu0 }
 0xbc8   : > { %v8799_v33 = vadd.f32 %v8798_v31, %v15775_v42  ;;  %v8912_v56 = vadd.f32 %v8911_v40, %v15777_v13  ;;  %v8800_v51 = vpop.f32.mrb[166].mxu1  ;;  %v8913_v18 = vpop.f32.mrb[158].mxu0 }
 0xbc9   : > { %v8801_v6 = vadd.f32 %v8800_v51, %v15771_v23  ;;  %v8914_v9 = vadd.f32 %v8913_v18, %v15773_v46  ;;  %v8802_v19 = vpop.f32.mrb[167].mxu1  ;;  %v8915_v22 = vpop.f32.mrb[159].mxu0  ;;  %v8980_v28 = vmax.f32 %v8797_v45, 0.0  ;;  %v8982_v5 = vmax.f32 %v8910_v37, 0.0 }
 0xbca   : > { %v8803_v54 = vadd.f32 %v8802_v19, %v15775_v42  ;;  %v8916_v39 = vadd.f32 %v8915_v22, %v15777_v13  ;;  %v8981_v27 = vmax.f32 %v8799_v33, 0.0  ;;  %v8983_v34 = vmax.f32 %v8912_v56, 0.0 }
 0xbcb   : > { %v8984_v55 = vmax.f32 %v8801_v6, 0.0  ;;  %v8986_v15 = vmax.f32 %v8914_v9, 0.0 }
 0xbcc   : > { %v8985_v17 = vmax.f32 %v8803_v54, 0.0  ;;  %v8987_v7 = vmax.f32 %v8916_v39, 0.0 }
 0xbcd   : > { %v9028_v24 = vpack.c.bf16 %v8984_v55, %v8980_v28  ;;  %v9030_v0 = vpack.c.bf16 %v8986_v15, %v8982_v5 }
 0xbce   : > { %v9029_v3 = vpack.c.bf16 %v8985_v17, %v8981_v27  ;;  %v9031_v49 = vpack.c.bf16 %v8987_v7, %v8983_v34  ;;  %v8806_v50 = vpop.f32.mrb[168].mxu1  ;;  %v8919_v41 = vpop.f32.mrb[160].mxu0 }
 0xbcf   : > { %v8807_v20 = vadd.f32 %v8806_v50, %v15771_v23  ;;  %v8920_v57 = vadd.f32 %v8919_v41, %v15773_v46  ;;  %v8808_v60 = vpop.f32.mrb[169].mxu1  ;;  %v8921_v52 = vpop.f32.mrb[161].mxu0 }
 0xbd0   : > { %v8809_v16 = vadd.f32 %v8808_v60, %v15775_v42  ;;  %v8922_v14 = vadd.f32 %v8921_v52, %v15777_v13  ;;  %v8810_v2 = vpop.f32.mrb[170].mxu1  ;;  %v8923_v8 = vpop.f32.mrb[162].mxu0  ;;  %9368 = vmatprep.mubr.bf16.mxu1 %v9029_v3  ;;  %9465 = vmatprep.mubr.bf16.mxu0 %v9031_v49 }
 0xbd1   : > { %v8811_v59 = vadd.f32 %v8810_v2, %v15771_v23  ;;  %v8924_v47 = vadd.f32 %v8923_v8, %v15773_v46  ;;  %v8812_v38 = vpop.f32.mrb[171].mxu1  ;;  %v8925_v21 = vpop.f32.mrb[163].mxu0  ;;  %9369 = vmatmul.mubr.bf16.gmra.mrb[196].mxu1 %v9028_v24  ;;  %9466 = vmatmul.mubr.bf16.gmra.mrb[188].mxu0 %v9030_v0  ;;  %v8988_v26 = vmax.f32 %v8807_v20, 0.0  ;;  %v8990_v58 = vmax.f32 %v8920_v57, 0.0 }
 0xbd2   : > { %v8813_v29 = vadd.f32 %v8812_v38, %v15775_v42  ;;  %v8926_v43 = vadd.f32 %v8925_v21, %v15777_v13  ;;  %v8989_v31 = vmax.f32 %v8809_v16, 0.0  ;;  %v8991_v40 = vmax.f32 %v8922_v14, 0.0 }
 0xbd3   : > { %v8992_v45 = vmax.f32 %v8811_v59, 0.0  ;;  %v8994_v37 = vmax.f32 %v8924_v47, 0.0 }
 0xbd4   : > { %v8993_v33 = vmax.f32 %v8813_v29, 0.0  ;;  %v8995_v56 = vmax.f32 %v8926_v43, 0.0 }
 0xbd5   : > { %v9032_v51 = vpack.c.bf16 %v8992_v45, %v8988_v26  ;;  %v9034_v18 = vpack.c.bf16 %v8994_v37, %v8990_v58 }
 0xbd6   : > { %v9033_v6 = vpack.c.bf16 %v8993_v33, %v8989_v31  ;;  %v9035_v9 = vpack.c.bf16 %v8995_v56, %v8991_v40  ;;  %v8816_v19 = vpop.f32.mrb[172].mxu1  ;;  %v8929_v22 = vpop.f32.mrb[164].mxu0 }
 0xbd7   : > { %v8817_v54 = vadd.f32 %v8816_v19, %v15771_v23  ;;  %v8930_v39 = vadd.f32 %v8929_v22, %v15773_v46  ;;  %v8818_v28 = vpop.f32.mrb[173].mxu1  ;;  %v8931_v5 = vpop.f32.mrb[165].mxu0 }
 0xbd8   : > { %9376 = vmatprep.mubr.bf16.mxu1 %v9033_v6  ;;  %9473 = vmatprep.mubr.bf16.mxu0 %v9035_v9  ;;  %v8819_v55 = vadd.f32 %v8818_v28, %v15775_v42  ;;  %v8932_v15 = vadd.f32 %v8931_v5, %v15777_v13  ;;  %v8820_v27 = vpop.f32.mrb[174].mxu1  ;;  %v8933_v34 = vpop.f32.mrb[166].mxu0 }
 0xbd9   : > { %9377 = vmatmul.mubr.bf16.gmra.mrb[200].mxu1 %v9032_v51  ;;  %9474 = vmatmul.mubr.bf16.gmra.mrb[192].mxu0 %v9034_v18  ;;  %v8821_v17 = vadd.f32 %v8820_v27, %v15771_v23  ;;  %v8934_v7 = vadd.f32 %v8933_v34, %v15773_v46  ;;  %v8822_v24 = vpop.f32.mrb[175].mxu1  ;;  %v8935_v0 = vpop.f32.mrb[167].mxu0  ;;  %v8996_v50 = vmax.f32 %v8817_v54, 0.0  ;;  %v8998_v41 = vmax.f32 %v8930_v39, 0.0 }
 0xbda   : > { %v8823_v3 = vadd.f32 %v8822_v24, %v15775_v42  ;;  %v8936_v49 = vadd.f32 %v8935_v0, %v15777_v13  ;;  %v8997_v60 = vmax.f32 %v8819_v55, 0.0  ;;  %v8999_v52 = vmax.f32 %v8932_v15, 0.0 }
 0xbdb   : > { %v9000_v20 = vmax.f32 %v8821_v17, 0.0  ;;  %v9002_v57 = vmax.f32 %v8934_v7, 0.0 }
 0xbdc   : > { %v9001_v16 = vmax.f32 %v8823_v3, 0.0  ;;  %v9003_v14 = vmax.f32 %v8936_v49, 0.0 }
 0xbdd   : > { %v9036_v2 = vpack.c.bf16 %v9000_v20, %v8996_v50  ;;  %v9038_v8 = vpack.c.bf16 %v9002_v57, %v8998_v41  ;;  %v16823_v20 = vld [vmem:[#allocation35_spill] sm:$0xff] }
 0xbde   : > { %v9037_v59 = vpack.c.bf16 %v9001_v16, %v8997_v60  ;;  %v9039_v47 = vpack.c.bf16 %v9003_v14, %v8999_v52  ;;  %v8826_v38 = vpop.f32.mrb[176].mxu1  ;;  %v8939_v21 = vpop.f32.mrb[168].mxu0 }
 0xbdf   : > { %v8827_v29 = vadd.f32 %v8826_v38, %v15771_v23  ;;  %v8940_v43 = vadd.f32 %v8939_v21, %v15773_v46  ;;  %v8828_v26 = vpop.f32.mrb[177].mxu1  ;;  %v8941_v58 = vpop.f32.mrb[169].mxu0 }
 0xbe0   : > { %v8829_v45 = vadd.f32 %v8828_v26, %v15775_v42  ;;  %v8942_v37 = vadd.f32 %v8941_v58, %v15777_v13  ;;  %v8830_v31 = vpop.f32.mrb[178].mxu1  ;;  %v8943_v40 = vpop.f32.mrb[170].mxu0  ;;  %9384 = vmatprep.mubr.bf16.mxu1 %v9037_v59  ;;  %9481 = vmatprep.mubr.bf16.mxu0 %v9039_v47 }
 0xbe1   : > { %v8831_v33 = vadd.f32 %v8830_v31, %v15771_v23  ;;  %v8944_v56 = vadd.f32 %v8943_v40, %v15773_v46  ;;  %v8832_v51 = vpop.f32.mrb[179].mxu1  ;;  %v8945_v18 = vpop.f32.mrb[171].mxu0  ;;  %9385 = vmatmul.mubr.bf16.gmra.mrb[204].mxu1 %v9036_v2  ;;  %9482 = vmatmul.mubr.bf16.gmra.mrb[196].mxu0 %v9038_v8  ;;  %v9004_v19 = vmax.f32 %v8827_v29, 0.0  ;;  %v9006_v22 = vmax.f32 %v8940_v43, 0.0 }
 0xbe2   : > { %v8833_v6 = vadd.f32 %v8832_v51, %v15775_v42  ;;  %v8946_v9 = vadd.f32 %v8945_v18, %v15777_v13  ;;  %v9005_v28 = vmax.f32 %v8829_v45, 0.0  ;;  %v9007_v5 = vmax.f32 %v8942_v37, 0.0 }
 0xbe3   : > { %v9008_v54 = vmax.f32 %v8831_v33, 0.0  ;;  %v9010_v39 = vmax.f32 %v8944_v56, 0.0 }
 0xbe4   : > { %v9009_v55 = vmax.f32 %v8833_v6, 0.0  ;;  %v9011_v15 = vmax.f32 %v8946_v9, 0.0 }
 0xbe5   : > { %v9040_v27 = vpack.c.bf16 %v9008_v54, %v9004_v19  ;;  %v9042_v23 = vpack.c.bf16 %v9010_v39, %v9006_v22 }
 0xbe6   : > { %v9041_v34 = vpack.c.bf16 %v9009_v55, %v9005_v28  ;;  %v9043_v46 = vpack.c.bf16 %v9011_v15, %v9007_v5 }
 0xbe8   : > { %9392 = vmatprep.mubr.bf16.mxu1 %v9041_v34  ;;  %9489 = vmatprep.mubr.bf16.mxu0 %v9043_v46 }
 0xbe9   : > { %9393 = vmatmul.mubr.bf16.gmra.mrb[208].mxu1 %v9040_v27  ;;  %9490 = vmatmul.mubr.bf16.gmra.mrb[200].mxu0 %v9042_v23 }
 0xc69   : > { %v10459_v17 = vpop.f32.mrb[180].mxu1  ;;  %v10523_v42 = vpop.f32.mrb[172].mxu0 }
 0xc6a   : > { %v10460_v7 = vpop.f32.mrb[181].mxu1  ;;  %v10524_v13 = vpop.f32.mrb[173].mxu0 }
 0xc6b   : > { %v10461_v24 = vadd.f32 %v10460_v7, %v10459_v17  ;;  %v10525_v0 = vadd.f32 %v10524_v13, %v10523_v42  ;;  %v10462_v3 = vpop.f32.mrb[182].mxu1  ;;  %v10526_v49 = vpop.f32.mrb[174].mxu0 }
 0xc6c   : > { %v10463_v50 = vpop.f32.mrb[183].mxu1  ;;  %v10527_v41 = vpop.f32.mrb[175].mxu0 }
 0xc6d   : > { %v9339_v57 = vadd.f32 %v10461_v24, %v16823_v20  ;;  %v10464_v60 = vadd.f32 %v10463_v50, %v10462_v3  ;;  %v10528_v52 = vadd.f32 %v10527_v41, %v10526_v49 }
 0xc6f   : > { %v9436_v16 = vadd.f32 %v10525_v0, %v9339_v57  ;;  %v9342_v14 = vadd.f32 %v10464_v60, %v16823_v20 }
 0xc71   : > { %v9439_v2 = vadd.f32 %v10528_v52, %v9342_v14  ;;  %v10465_v8 = vpop.f32.mrb[184].mxu1  ;;  %v10529_v59 = vpop.f32.mrb[176].mxu0  ;;  %v15846_v47 = vadd.f32 %v9436_v16, %v15659_v44 }
 0xc72   : > { %v10466_v38 = vpop.f32.mrb[185].mxu1  ;;  %v10530_v21 = vpop.f32.mrb[177].mxu0 }
 0xc73   : > { %v10467_v29 = vadd.f32 %v10466_v38, %v10465_v8  ;;  %v10531_v43 = vadd.f32 %v10530_v21, %v10529_v59  ;;  %v10468_v26 = vpop.f32.mrb[186].mxu1  ;;  %v10532_v58 = vpop.f32.mrb[178].mxu0  ;;  %9514 = vadd.xlane.f32.xlu1 %v15846_v47  ;;  %v15850_v45 = vadd.f32 %v9439_v2, %v15662_v53 }
 0xc74   : > { %v10469_v37 = vpop.f32.mrb[187].mxu1  ;;  %v10533_v31 = vpop.f32.mrb[179].mxu0 }
 0xc75   : > { %v9347_v40 = vadd.f32 %v10467_v29, %v16823_v20  ;;  %v10470_v33 = vadd.f32 %v10469_v37, %v10468_v26  ;;  %v10534_v56 = vadd.f32 %v10533_v31, %v10532_v58  ;;  %9516 = vadd.xlane.f32.xlu0 %v15850_v45 }
 0xc77   : > { %v9444_v44 = vadd.f32 %v10531_v43, %v9347_v40  ;;  %v9350_v51 = vadd.f32 %v10470_v33, %v16823_v20 }
 0xc79   : > { %v9447_v18 = vadd.f32 %v10534_v56, %v9350_v51  ;;  %v15856_v6 = vadd.f32 %v9444_v44, %v15676_v63 }
 0xc7b   : > { %9518 = vadd.xlane.f32.xlu1 %v15856_v6  ;;  %v15860_v53 = vadd.f32 %v9447_v18, %v15673_v1 }
 0xc7d   : > { %9520 = vadd.xlane.f32.xlu0 %v15860_v53 }
 0xc89   : > { %v10471_v9 = vpop.f32.mrb[188].mxu1  ;;  %v10535_v19 = vpop.f32.mrb[180].mxu0 }
 0xc8a   : > { %v10472_v22 = vpop.f32.mrb[189].mxu1  ;;  %v10536_v54 = vpop.f32.mrb[181].mxu0 }
 0xc8b   : > { %v10473_v39 = vadd.f32 %v10472_v22, %v10471_v9  ;;  %v10537_v28 = vadd.f32 %v10536_v54, %v10535_v19  ;;  %v10474_v5 = vpop.f32.mrb[190].mxu1  ;;  %v10538_v55 = vpop.f32.mrb[182].mxu0 }
 0xc8c   : > { %v10475_v15 = vpop.f32.mrb[191].mxu1  ;;  %v10539_v27 = vpop.f32.mrb[183].mxu0 }
 0xc8d   : > { %v9355_v63 = vadd.f32 %v10473_v39, %v16823_v20  ;;  %v10476_v23 = vadd.f32 %v10475_v15, %v10474_v5  ;;  %v10540_v34 = vadd.f32 %v10539_v27, %v10538_v55 }
 0xc8f   : > { %v9452_v46 = vadd.f32 %v10537_v28, %v9355_v63  ;;  %v9358_v1 = vadd.f32 %v10476_v23, %v16823_v20 }
 0xc91   : > { %v9455_v17 = vadd.f32 %v10540_v34, %v9358_v1  ;;  %v10477_v42 = vpop.f32.mrb[192].mxu1  ;;  %v10541_v7 = vpop.f32.mrb[184].mxu0  ;;  %v15866_v13 = vadd.f32 %v9452_v46, %v15687_v12 }
 0xc92   : > { %v10478_v24 = vpop.f32.mrb[193].mxu1  ;;  %v10542_v0 = vpop.f32.mrb[185].mxu0 }
 0xc93   : > { %v10479_v3 = vadd.f32 %v10478_v24, %v10477_v42  ;;  %v10543_v49 = vadd.f32 %v10542_v0, %v10541_v7  ;;  %v10480_v50 = vpop.f32.mrb[194].mxu1  ;;  %v10544_v41 = vpop.f32.mrb[186].mxu0  ;;  %9522 = vadd.xlane.f32.xlu1 %v15866_v13  ;;  %v15870_v57 = vadd.f32 %v9455_v17, %v15690_v36 }
 0xc94   : > { %v10481_v60 = vpop.f32.mrb[195].mxu1  ;;  %v10545_v52 = vpop.f32.mrb[187].mxu0 }
 0xc95   : > { %v9363_v16 = vadd.f32 %v10479_v3, %v16823_v20  ;;  %v10482_v14 = vadd.f32 %v10481_v60, %v10480_v50  ;;  %v10546_v2 = vadd.f32 %v10545_v52, %v10544_v41  ;;  %9524 = vadd.xlane.f32.xlu0 %v15870_v57 }
 0xc97   : > { %v9460_v12 = vadd.f32 %v10543_v49, %v9363_v16  ;;  %v9366_v8 = vadd.f32 %v10482_v14, %v16823_v20 }
 0xc99   : > { %v9463_v59 = vadd.f32 %v10546_v2, %v9366_v8  ;;  %v15876_v38 = vadd.f32 %v9460_v12, %v15704_v11 }
 0xc9b   : > { %9526 = vadd.xlane.f32.xlu1 %v15876_v38  ;;  %v15880_v36 = vadd.f32 %v9463_v59, %v15701_v62 }
 0xc9d   : > { %9528 = vadd.xlane.f32.xlu0 %v15880_v36 }
 0xca4   : > { %v10483_v21 = vpop.f32.mrb[196].mxu1  ;;  %v10547_v29 = vpop.f32.mrb[188].mxu0 }
 0xca5   : > { %v10484_v43 = vpop.f32.mrb[197].mxu1  ;;  %v10548_v26 = vpop.f32.mrb[189].mxu0 }
 0xca6   : > { %v10485_v58 = vadd.f32 %v10484_v43, %v10483_v21  ;;  %v10549_v37 = vadd.f32 %v10548_v26, %v10547_v29  ;;  %v10486_v31 = vpop.f32.mrb[198].mxu1  ;;  %v10550_v40 = vpop.f32.mrb[190].mxu0 }
 0xca7   : > { %v10487_v33 = vpop.f32.mrb[199].mxu1  ;;  %v10551_v56 = vpop.f32.mrb[191].mxu0 }
 0xca8   : > { %v9371_v11 = vadd.f32 %v10485_v58, %v16823_v20  ;;  %v10488_v44 = vadd.f32 %v10487_v33, %v10486_v31  ;;  %v10552_v51 = vadd.f32 %v10551_v56, %v10550_v40 }
 0xcaa   : > { %v9468_v18 = vadd.f32 %v10549_v37, %v9371_v11  ;;  %v9374_v62 = vadd.f32 %v10488_v44, %v16823_v20 }
 0xcac   : > { %v9471_v9 = vadd.f32 %v10552_v51, %v9374_v62  ;;  %v10489_v19 = vpop.f32.mrb[200].mxu1  ;;  %v10553_v22 = vpop.f32.mrb[192].mxu0  ;;  %v15886_v54 = vadd.f32 %v9468_v18, %v15715_v10 }
 0xcad   : > { %v10490_v39 = vpop.f32.mrb[201].mxu1  ;;  %v10554_v28 = vpop.f32.mrb[193].mxu0 }
 0xcae   : > { %v10491_v5 = vadd.f32 %v10490_v39, %v10489_v19  ;;  %v10555_v55 = vadd.f32 %v10554_v28, %v10553_v22  ;;  %v10492_v15 = vpop.f32.mrb[202].mxu1  ;;  %v10556_v27 = vpop.f32.mrb[194].mxu0  ;;  %9530 = vadd.xlane.f32.xlu1 %v15886_v54  ;;  %v15890_v63 = vadd.f32 %v9471_v9, %v15718_v61 }
 0xcaf   : > { %v10493_v23 = vpop.f32.mrb[203].mxu1  ;;  %v10557_v34 = vpop.f32.mrb[195].mxu0 }
 0xcb0   : > { %v9379_v46 = vadd.f32 %v10491_v5, %v16823_v20  ;;  %v10494_v1 = vadd.f32 %v10493_v23, %v10492_v15  ;;  %v10558_v17 = vadd.f32 %v10557_v34, %v10556_v27  ;;  %9532 = vadd.xlane.f32.xlu0 %v15890_v63 }
 0xcb2   : > { %v9476_v10 = vadd.f32 %v10555_v55, %v9379_v46  ;;  %v9382_v42 = vadd.f32 %v10494_v1, %v16823_v20 }
 0xcb4   : > { %v9479_v7 = vadd.f32 %v10558_v17, %v9382_v42  ;;  %v10495_v24 = vpop.f32.mrb[204].mxu1  ;;  %v10559_v0 = vpop.f32.mrb[196].mxu0  ;;  %v15896_v3 = vadd.f32 %v9476_v10, %v15733_v48 }
 0xcb5   : > { %v10496_v49 = vpop.f32.mrb[205].mxu1  ;;  %v10560_v61 = vpop.f32.mrb[197].mxu0 }
 0xcb6   : > { %9534 = vadd.xlane.f32.xlu1 %v15896_v3  ;;  %v10497_v50 = vadd.f32 %v10496_v49, %v10495_v24  ;;  %v10561_v41 = vadd.f32 %v10560_v61, %v10559_v0  ;;  %v10498_v60 = vpop.f32.mrb[206].mxu1  ;;  %v10562_v52 = vpop.f32.mrb[198].mxu0  ;;  %v15900_v16 = vadd.f32 %v9479_v7, %v15729_v35 }
 0xcb7   : > { %v10499_v14 = vpop.f32.mrb[207].mxu1  ;;  %v10563_v2 = vpop.f32.mrb[199].mxu0 }
 0xcb8   : > { %v9387_v12 = vadd.f32 %v10497_v50, %v16823_v20  ;;  %9536 = vadd.xlane.f32.xlu0 %v15900_v16  ;;  %v10500_v8 = vadd.f32 %v10499_v14, %v10498_v60  ;;  %v10564_v48 = vadd.f32 %v10563_v2, %v10562_v52 }
 0xcba   : > { %v9484_v59 = vadd.f32 %v10561_v41, %v9387_v12  ;;  %v9390_v21 = vadd.f32 %v10500_v8, %v16823_v20 }
 0xcbc   : > { %v9487_v29 = vadd.f32 %v10564_v48, %v9390_v21  ;;  %v10501_v43 = vpop.f32.mrb[208].mxu1  ;;  %v10565_v26 = vpop.f32.mrb[200].mxu0  ;;  %v15906_v58 = vadd.f32 %v9484_v59, %v15746_v30 }
 0xcbd   : > { %v10502_v37 = vpop.f32.mrb[209].mxu1  ;;  %v10566_v35 = vpop.f32.mrb[201].mxu0 }
 0xcbe   : > { %v10503_v31 = vadd.f32 %v10502_v37, %v10501_v43  ;;  %v10567_v40 = vadd.f32 %v10566_v35, %v10565_v26  ;;  %v10568_v33 = vpop.f32.mrb[202].mxu0  ;;  %9538 = vadd.xlane.f32.xlu1 %v15906_v58  ;;  %v10504_v56 = vpop.f32.mrb[210].mxu1  ;;  %v15910_v11 = vadd.f32 %v9487_v29, %v15741_v25 }
 0xcbf   : > { %v10505_v44 = vpop.f32.mrb[211].mxu1  ;;  %v10569_v51 = vpop.f32.mrb[203].mxu0 }
 0xcc0   : > { %v9395_v18 = vadd.f32 %v10503_v31, %v16823_v20  ;;  %v10506_v62 = vadd.f32 %v10505_v44, %v10504_v56  ;;  %v10570_v9 = vadd.f32 %v10569_v51, %v10568_v33  ;;  %9540 = vadd.xlane.f32.xlu0 %v15910_v11 }
 0xcc2   : > { %v9492_v30 = vadd.f32 %v10567_v40, %v9395_v18  ;;  %v9398_v19 = vadd.f32 %v10506_v62, %v16823_v20 }
 0xcc4   : > { %v9495_v22 = vadd.f32 %v10570_v9, %v9398_v19  ;;  %v15916_v39 = vadd.f32 %v9492_v30, %v15760_v4 }
 0xcc6   : > { %9542 = vadd.xlane.f32.xlu1 %v15916_v39  ;;  %v15920_v25 = vadd.f32 %v9495_v22, %v15757_v32 }
 0xcc8   : > { %9544 = vadd.xlane.f32.xlu0 %v15920_v25 }
 0xd00   : > { %v9515_v28 = vpop.xlane.xlu1 %9514 }
 0xd01   : > { %v9546_v5 = vmul.f32 0.0078125, %v9515_v28 }
 0xd02   : > { %v9517_v55 = vpop.xlane.xlu0 %9516 }
 0xd03   : > { %v15924_v15 = vsub.f32 %v15846_v47, %v9546_v5  ;;  %v9547_v27 = vmul.f32 0.0078125, %v9517_v55 }
 0xd05   : > { %v15927_v20 = vsub.f32 %v15850_v45, %v9547_v27  ;;  %v9578_v4 = vmul.f32 %v15924_v15, %v15924_v15 }
 0xd07   : > { %9594 = vadd.xlane.f32.xlu1 %v9578_v4  ;;  %v9579_v32 = vmul.f32 %v15927_v20, %v15927_v20 }
 0xd08   : > { %v9519_v23 = vpop.xlane.xlu1 %9518 }
 0xd09   : > { %v9548_v34 = vmul.f32 0.0078125, %v9519_v23  ;;  %9596 = vadd.xlane.f32.xlu0 %v9579_v32 }
 0xd0a   : > { %v9521_v46 = vpop.xlane.xlu0 %9520 }
 0xd0b   : > { %v15934_v1 = vsub.f32 %v15856_v6, %v9548_v34  ;;  %v9549_v47 = vmul.f32 0.0078125, %v9521_v46 }
 0xd0d   : > { %v15937_v17 = vsub.f32 %v15860_v53, %v9549_v47  ;;  %v9580_v45 = vmul.f32 %v15934_v1, %v15934_v1 }
 0xd0f   : > { %9598 = vadd.xlane.f32.xlu1 %v9580_v45  ;;  %v9581_v10 = vmul.f32 %v15937_v17, %v15937_v17 }
 0xd11   : > { %9600 = vadd.xlane.f32.xlu0 %v9581_v10 }
 0xd20   : > { %v9523_v42 = vpop.xlane.xlu1 %9522 }
 0xd21   : > { %v9550_v7 = vmul.f32 0.0078125, %v9523_v42 }
 0xd22   : > { %v9525_v24 = vpop.xlane.xlu0 %9524 }
 0xd23   : > { %v15944_v0 = vsub.f32 %v15866_v13, %v9550_v7  ;;  %v9551_v6 = vmul.f32 0.0078125, %v9525_v24 }
 0xd25   : > { %v15947_v49 = vsub.f32 %v15870_v57, %v9551_v6  ;;  %v9582_v53 = vmul.f32 %v15944_v0, %v15944_v0  ;;  %v16824_v6 = vld [vmem:[#allocation36_spill] sm:$0xff] }
 0xd27   : > { %9602 = vadd.xlane.f32.xlu1 %v9582_v53  ;;  %v9583_v61 = vmul.f32 %v15947_v49, %v15947_v49 }
 0xd28   : > { %v9527_v50 = vpop.xlane.xlu1 %9526 }
 0xd29   : > { %v9552_v41 = vmul.f32 0.0078125, %v9527_v50  ;;  %9604 = vadd.xlane.f32.xlu0 %v9583_v61  ;;  %v16825_v50 = vld [vmem:[#allocation37_spill] sm:$0xff] }
 0xd2a   : > { %v9529_v60 = vpop.xlane.xlu0 %9528 }
 0xd2b   : > { %v15954_v52 = vsub.f32 %v15876_v38, %v9552_v41  ;;  %v9553_v13 = vmul.f32 0.0078125, %v9529_v60 }
 0xd2d   : > { %v15957_v14 = vsub.f32 %v15880_v36, %v9553_v13  ;;  %v9584_v57 = vmul.f32 %v15954_v52, %v15954_v52 }
 0xd2f   : > { %9606 = vadd.xlane.f32.xlu1 %v9584_v57  ;;  %v9585_v2 = vmul.f32 %v15957_v14, %v15957_v14 }
 0xd31   : > { %9608 = vadd.xlane.f32.xlu0 %v9585_v2 }
 0xd3b   : > { %v9531_v12 = vpop.xlane.xlu1 %9530 }
 0xd3c   : > { %v9554_v8 = vmul.f32 0.0078125, %v9531_v12 }
 0xd3d   : > { %v9533_v48 = vpop.xlane.xlu0 %9532 }
 0xd3e   : > { %v15964_v59 = vsub.f32 %v15886_v54, %v9554_v8  ;;  %v9555_v38 = vmul.f32 0.0078125, %v9533_v48 }
 0xd40   : > { %v15967_v21 = vsub.f32 %v15890_v63, %v9555_v38  ;;  %v9586_v36 = vmul.f32 %v15964_v59, %v15964_v59 }
 0xd42   : > { %9610 = vadd.xlane.f32.xlu1 %v9586_v36  ;;  %v9587_v29 = vmul.f32 %v15967_v21, %v15967_v21 }
 0xd43   : > { %v9535_v43 = vpop.xlane.xlu1 %9534 }
 0xd44   : > { %v9556_v26 = vmul.f32 0.0078125, %v9535_v43  ;;  %9612 = vadd.xlane.f32.xlu0 %v9587_v29 }
 0xd45   : > { %v9537_v37 = vpop.xlane.xlu0 %9536 }
 0xd46   : > { %v15974_v35 = vsub.f32 %v15896_v3, %v9556_v26  ;;  %v9557_v54 = vmul.f32 0.0078125, %v9537_v37 }
 0xd48   : > { %v15977_v31 = vsub.f32 %v15900_v16, %v9557_v54  ;;  %v9588_v63 = vmul.f32 %v15974_v35, %v15974_v35 }
 0xd4a   : > { %9614 = vadd.xlane.f32.xlu1 %v9588_v63  ;;  %v9589_v40 = vmul.f32 %v15977_v31, %v15977_v31 }
 0xd4b   : > { %v9539_v33 = vpop.xlane.xlu1 %9538 }
 0xd4c   : > { %9616 = vadd.xlane.f32.xlu0 %v9589_v40  ;;  %v9558_v56 = vmul.f32 0.0078125, %v9539_v33 }
 0xd4d   : > { %v9541_v44 = vpop.xlane.xlu0 %9540 }
 0xd4e   : > { %v15984_v51 = vsub.f32 %v15906_v58, %v9558_v56  ;;  %v9559_v3 = vmul.f32 0.0078125, %v9541_v44 }
 0xd50   : > { %v15987_v18 = vsub.f32 %v15910_v11, %v9559_v3  ;;  %v9590_v16 = vmul.f32 %v15984_v51, %v15984_v51 }
 0xd52   : > { %9618 = vadd.xlane.f32.xlu1 %v9590_v16  ;;  %v9591_v62 = vmul.f32 %v15987_v18, %v15987_v18 }
 0xd53   : > { %v9543_v9 = vpop.xlane.xlu1 %9542 }
 0xd54   : > { %v9560_v30 = vmul.f32 0.0078125, %v9543_v9  ;;  %9620 = vadd.xlane.f32.xlu0 %v9591_v62 }
 0xd55   : > { %v9545_v19 = vpop.xlane.xlu0 %9544 }
 0xd56   : > { %v15994_v22 = vsub.f32 %v15916_v39, %v9560_v30  ;;  %v9561_v58 = vmul.f32 0.0078125, %v9545_v19 }
 0xd58   : > { %v15997_v28 = vsub.f32 %v15920_v25, %v9561_v58  ;;  %v9592_v11 = vmul.f32 %v15994_v22, %v15994_v22 }
 0xd5a   : > { %9622 = vadd.xlane.f32.xlu1 %v9592_v11  ;;  %v9593_v5 = vmul.f32 %v15997_v28, %v15997_v28 }
 0xd5c   : > { %9624 = vadd.xlane.f32.xlu0 %v9593_v5 }
 0xd94   : > { %v9595_v55 = vpop.xlane.xlu1 %9594 }
 0xd95   : > { %v9626_v27 = vmul.f32 0.0078125, %v9595_v55 }
 0xd96   : > { %v9597_v4 = vpop.xlane.xlu0 %9596 }
 0xd97   : > { %v9642_v32 = vadd.f32 1e-05, %v9626_v27  ;;  %v9627_v23 = vmul.f32 0.0078125, %v9597_v4 }
 0xd99   : > { %11458 = vrsqrt.f32 %v9642_v32  ;;  %v9643_v39 = vadd.f32 1e-05, %v9627_v23 }
 0xd9b   : > { %11460 = vrsqrt.f32 %v9643_v39 }
 0xd9c   : > { %v9599_v34 = vpop.xlane.xlu1 %9598 }
 0xd9d   : > { %v9628_v25 = vmul.f32 0.0078125, %v9599_v34 }
 0xd9e   : > { %v9601_v46 = vpop.xlane.xlu0 %9600 }
 0xd9f   : > { %v9644_v47 = vadd.f32 1e-05, %v9628_v25  ;;  %v9629_v45 = vmul.f32 0.0078125, %v9601_v46 }
 0xda1   : > { %11462 = vrsqrt.f32 %v9644_v47  ;;  %v9645_v10 = vadd.f32 1e-05, %v9629_v45 }
 0xda3   : > { %v11459_v42 = vpop.eup %11458  ;;  %11464 = vrsqrt.f32 %v9645_v10 }
 0xda4   : > { %v9674_v7 = vmul.f32 %v11459_v42, %v15924_v15 }
 0xda5   : > { %v11461_v24 = vpop.eup %11460 }
 0xda6   : > { %v9694_v53 = vmul.f32 %v16824_v6, %v9674_v7  ;;  %v9675_v61 = vmul.f32 %v11461_v24, %v15927_v20 }
 0xda8   : > { %v9714_v41 = vadd.f32 %v16825_v50, %v9694_v53  ;;  %v9695_v60 = vmul.f32 %v16824_v6, %v9675_v61 }
 0xdaa   : > { %9730 = vst [vmem:[%s12327_s2] sm:$0xff] %v9714_v41  ;;  %v9715_v13 = vadd.f32 %v16825_v50, %v9695_v60 }
 0xdab   : > { %v11463_v57 = vpop.eup %11462 }
 0xdac   : > { %9731 = vst [vmem:[%s12327_s2 + $0x8] sm:$0xff] %v9715_v13  ;;  %v9676_v2 = vmul.f32 %v11463_v57, %v15934_v1 }
 0xdad   : > { %v11465_v12 = vpop.eup %11464 }
 0xdae   : > { %v9696_v15 = vmul.f32 %v16824_v6, %v9676_v2  ;;  %v9677_v8 = vmul.f32 %v11465_v12, %v15937_v17 }
 0xdb0   : > { %v9716_v48 = vadd.f32 %v16825_v50, %v9696_v15  ;;  %v9697_v20 = vmul.f32 %v16824_v6, %v9677_v8 }
 0xdb2   : > { %9732 = vst [vmem:[%s12327_s2 + $0x10] sm:$0xff] %v9716_v48  ;;  %v9717_v38 = vadd.f32 %v16825_v50, %v9697_v20 }
 0xdb4   : > { %v9603_v36 = vpop.xlane.xlu1 %9602  ;;  %9733 = vst [vmem:[%s12327_s2 + $0x18] sm:$0xff] %v9717_v38 }
 0xdb5   : > { %v9630_v29 = vmul.f32 0.0078125, %v9603_v36 }
 0xdb6   : > { %v9605_v43 = vpop.xlane.xlu0 %9604 }
 0xdb7   : > { %v9646_v26 = vadd.f32 1e-05, %v9630_v29  ;;  %v9631_v37 = vmul.f32 0.0078125, %v9605_v43 }
 0xdb9   : > { %11466 = vrsqrt.f32 %v9646_v26  ;;  %v9647_v1 = vadd.f32 1e-05, %v9631_v37 }
 0xdbb   : > { %11468 = vrsqrt.f32 %v9647_v1 }
 0xdbc   : > { %v9607_v54 = vpop.xlane.xlu1 %9606 }
 0xdbd   : > { %v9632_v63 = vmul.f32 0.0078125, %v9607_v54 }
 0xdbe   : > { %v9609_v17 = vpop.xlane.xlu0 %9608 }
 0xdbf   : > { %v9648_v40 = vadd.f32 1e-05, %v9632_v63  ;;  %v9633_v33 = vmul.f32 0.0078125, %v9609_v17 }
 0xdc1   : > { %11470 = vrsqrt.f32 %v9648_v40  ;;  %v9649_v56 = vadd.f32 1e-05, %v9633_v33 }
 0xdc3   : > { %v11467_v44 = vpop.eup %11466  ;;  %11472 = vrsqrt.f32 %v9649_v56 }
 0xdc4   : > { %v9678_v3 = vmul.f32 %v11467_v44, %v15944_v0 }
 0xdc5   : > { %v11469_v16 = vpop.eup %11468 }
 0xdc6   : > { %v9698_v62 = vmul.f32 %v16824_v6, %v9678_v3  ;;  %v9679_v9 = vmul.f32 %v11469_v16, %v15947_v49 }
 0xdc8   : > { %v9718_v30 = vadd.f32 %v16825_v50, %v9698_v62  ;;  %v9699_v19 = vmul.f32 %v16824_v6, %v9679_v9 }
 0xdca   : > { %9734 = vst [vmem:[%s12327_s2 + $0x20] sm:$0xff] %v9718_v30  ;;  %v9719_v58 = vadd.f32 %v16825_v50, %v9699_v19 }
 0xdcb   : > { %v11471_v11 = vpop.eup %11470 }
 0xdcc   : > { %9735 = vst [vmem:[%s12327_s2 + $0x28] sm:$0xff] %v9719_v58  ;;  %v9680_v5 = vmul.f32 %v11471_v11, %v15954_v52 }
 0xdcd   : > { %v11473_v55 = vpop.eup %11472 }
 0xdce   : > { %v9700_v0 = vmul.f32 %v16824_v6, %v9680_v5  ;;  %v9681_v27 = vmul.f32 %v11473_v55, %v15957_v14 }
 0xdcf   : > { %v9611_v4 = vpop.xlane.xlu1 %9610 }
 0xdd0   : > { %v9720_v49 = vadd.f32 %v16825_v50, %v9700_v0  ;;  %v9701_v32 = vmul.f32 %v16824_v6, %v9681_v27  ;;  %v9634_v23 = vmul.f32 0.0078125, %v9611_v4 }
 0xdd1   : > { %v9613_v39 = vpop.xlane.xlu0 %9612 }
 0xdd2   : > { %9736 = vst [vmem:[%s12327_s2 + $0x30] sm:$0xff] %v9720_v49  ;;  %v9721_v34 = vadd.f32 %v16825_v50, %v9701_v32  ;;  %v9650_v25 = vadd.f32 1e-05, %v9634_v23  ;;  %v9635_v46 = vmul.f32 0.0078125, %v9613_v39 }
 0xdd4   : > { %9737 = vst [vmem:[%s12327_s2 + $0x38] sm:$0xff] %v9721_v34  ;;  %11474 = vrsqrt.f32 %v9650_v25  ;;  %v9651_v52 = vadd.f32 1e-05, %v9635_v46 }
 0xdd6   : > { %11476 = vrsqrt.f32 %v9651_v52 }
 0xdd7   : > { %v9615_v47 = vpop.xlane.xlu1 %9614 }
 0xdd8   : > { %v9636_v45 = vmul.f32 0.0078125, %v9615_v47 }
 0xdd9   : > { %v9617_v10 = vpop.xlane.xlu0 %9616 }
 0xdda   : > { %v9652_v14 = vadd.f32 1e-05, %v9636_v45  ;;  %v9637_v42 = vmul.f32 0.0078125, %v9617_v10 }
 0xddc   : > { %11478 = vrsqrt.f32 %v9652_v14  ;;  %v9653_v7 = vadd.f32 1e-05, %v9637_v42 }
 0xdde   : > { %v11475_v24 = vpop.eup %11474  ;;  %11480 = vrsqrt.f32 %v9653_v7 }
 0xddf   : > { %v9682_v53 = vmul.f32 %v11475_v24, %v15964_v59  ;;  %v9619_v61 = vpop.xlane.xlu1 %9618 }
 0xde0   : > { %v11477_v41 = vpop.eup %11476  ;;  %v9638_v60 = vmul.f32 0.0078125, %v9619_v61 }
 0xde1   : > { %v9702_v13 = vmul.f32 %v16824_v6, %v9682_v53  ;;  %v9683_v57 = vmul.f32 %v11477_v41, %v15967_v21  ;;  %v9621_v2 = vpop.xlane.xlu0 %9620 }
 0xde2   : > { %v9654_v12 = vadd.f32 1e-05, %v9638_v60  ;;  %v9639_v15 = vmul.f32 0.0078125, %v9621_v2 }
 0xde3   : > { %v9722_v8 = vadd.f32 %v16825_v50, %v9702_v13  ;;  %v9703_v48 = vmul.f32 %v16824_v6, %v9683_v57 }
 0xde4   : > { %11482 = vrsqrt.f32 %v9654_v12  ;;  %v9655_v20 = vadd.f32 1e-05, %v9639_v15 }
 0xde5   : > { %9738 = vst [vmem:[%s12327_s2 + $0x40] sm:$0xff] %v9722_v8  ;;  %v9723_v59 = vadd.f32 %v16825_v50, %v9703_v48 }
 0xde6   : > { %v11479_v38 = vpop.eup %11478  ;;  %11484 = vrsqrt.f32 %v9655_v20 }
 0xde7   : > { %9739 = vst [vmem:[%s12327_s2 + $0x48] sm:$0xff] %v9723_v59  ;;  %v9684_v36 = vmul.f32 %v11479_v38, %v15974_v35  ;;  %v9623_v29 = vpop.xlane.xlu1 %9622 }
 0xde8   : > { %v11481_v21 = vpop.eup %11480  ;;  %v9640_v43 = vmul.f32 0.0078125, %v9623_v29 }
 0xde9   : > { %v9704_v26 = vmul.f32 %v16824_v6, %v9684_v36  ;;  %v9685_v37 = vmul.f32 %v11481_v21, %v15977_v31  ;;  %v9625_v1 = vpop.xlane.xlu0 %9624 }
 0xdea   : > { %v9656_v54 = vadd.f32 1e-05, %v9640_v43  ;;  %v9641_v63 = vmul.f32 0.0078125, %v9625_v1 }
 0xdeb   : > { %v9724_v17 = vadd.f32 %v16825_v50, %v9704_v26  ;;  %v9705_v40 = vmul.f32 %v16824_v6, %v9685_v37 }
 0xdec   : > { %11486 = vrsqrt.f32 %v9656_v54  ;;  %v9657_v35 = vadd.f32 1e-05, %v9641_v63 }
 0xded   : > { %9740 = vst [vmem:[%s12327_s2 + $0x50] sm:$0xff] %v9724_v17  ;;  %v9725_v33 = vadd.f32 %v16825_v50, %v9705_v40 }
 0xdee   : > { %v11483_v56 = vpop.eup %11482  ;;  %11488 = vrsqrt.f32 %v9657_v35 }
 0xdef   : > { %9741 = vst [vmem:[%s12327_s2 + $0x58] sm:$0xff] %v9725_v33  ;;  %v9686_v31 = vmul.f32 %v11483_v56, %v15984_v51 }
 0xdf0   : > { %v11485_v44 = vpop.eup %11484 }
 0xdf1   : > { %v9706_v3 = vmul.f32 %v16824_v6, %v9686_v31  ;;  %v9687_v16 = vmul.f32 %v11485_v44, %v15987_v18 }
 0xdf3   : > { %v9726_v62 = vadd.f32 %v16825_v50, %v9706_v3  ;;  %v9707_v9 = vmul.f32 %v16824_v6, %v9687_v16 }
 0xdf5   : > { %9742 = vst [vmem:[%s12327_s2 + $0x60] sm:$0xff] %v9726_v62  ;;  %v9727_v30 = vadd.f32 %v16825_v50, %v9707_v9 }
 0xdf6   : > { %v11487_v19 = vpop.eup %11486 }
 0xdf7   : > { %9743 = vst [vmem:[%s12327_s2 + $0x68] sm:$0xff] %v9727_v30  ;;  %v9688_v51 = vmul.f32 %v11487_v19, %v15994_v22 }
 0xdf8   : > { %v11489_v58 = vpop.eup %11488 }
 0xdf9   : > { %v9708_v18 = vmul.f32 %v16824_v6, %v9688_v51  ;;  %v9689_v11 = vmul.f32 %v11489_v58, %v15997_v28 }
 0xdfb   : > { %v9728_v5 = vadd.f32 %v16825_v50, %v9708_v18  ;;  %v9709_v55 = vmul.f32 %v16824_v6, %v9689_v11 }
 0xdfd   : > { %9744 = vst [vmem:[%s12327_s2 + $0x70] sm:$0xff] %v9728_v5  ;;  %v9729_v22 = vadd.f32 %v16825_v50, %v9709_v55 }
 0xdff   : > { %9745 = vst [vmem:[%s12327_s2 + $0x78] sm:$0xff] %v9729_v22 }
 0xe00   : > { %11717 = shalt.err (!%p11714_p7)
}
 0xe01   : > { %s11718_s2 = scalar_lea.hbm %s16070_s13, 2048  ;;  %s11722_s16 = scalar_lea.hbm %s16827_s25, 8192 }
 0xe02   : > { %p11719_p2 = scmp.ne.s32.totalorder %s16070_s13, %s11718_s2  ;;  %p11723_p3 = scmp.lt.u32.totalorder %s16070_s13, %s16827_s25 }
 0xe03   : > { %p11724_p8 = scmp.lt.u32.totalorder %s11722_s16, %s11718_s2  ;;  %p11726_p13 = scmp.lt.u32.totalorder %s11718_s2, %s16070_s13 }
 0xe04   : > { %p11720_p4 = pnand %p11719_p2, %p16828_p6 }
 0xe05   : > { %p11725_p5 = por %p11724_p8, %p11723_p3 }
 0xe06   : > { %p11721_p10 = pneg %p11720_p4 }
 0xe07   : > { %p11727_p9 = por %p11726_p13, %p11725_p5 }
 0xe09   : > { %p11728_p11 = pnand %p11727_p9, %p11721_p10 }
 0xe0b   : > { %11731 = shalt.err (!%p11728_p11)
}
 0xe0c   : > { %s11864_s6 = smov 128   ;;  %s11865_s0 = smov 8  }
 0xe0d   : > { %s16829_s8 = scalar_lea.sflag [#allocation6], %s12278_s3  ;;  %s9752_s19 = scalar_lea.sflag [#allocation18], %s12278_s3 }
 0xe0e   : > { %10761 = dma.vmem_to_hbm [thread:$0]  (%p16828_p6), %s16072_s1, 2048, %s16070_s13, %s16829_s8, %s11864_s6, %s11864_s6, %s11865_s0  }
 0xe0f   : > { %s10362_s12 = sshll.u32 %s16421_s27, 5  ;;  %s10293_s2 = sshll.u32 %s16826_s24, 8 }
 0xe10   : > { %s9783_s16 = sadd.s32 %s10362_s12, %s10293_s2  ;;  %s9802_s4 = sshll.u32 %s12329_s26, 4  ;;  %s9803_s4 = int_to_ptr.vmem [resolvable:$true] %s9802_s4 }
 0xe11   : > { %s10294_s5 = sshll.u32 %s9783_s16, 6  ;;  %s16830_s1 = sld [smem:[#allocation132_spill]] }
 0xe12   : > { %s11866_s13 = smov 2048   ;;  %s11867_s6 = smov 4096  }
 0xe13   : > { %10762 = sst [smem:[#allocation20]] (%p16828_p6), %s11866_s13  ;;  %s11868_s0 = smov 16  }
 0xe14   : > { %10763 = sst [smem:[#allocation20 + $0x1]] (%p16828_p6), %s11867_s6  ;;  %s11869_s27 = smov 128  }
 0xe15   : > { %10764 = sst [smem:[#allocation20 + $0x2]] (%p16828_p6), %s11868_s0  ;;  %s11870_s26 = smov 8  }
 0xe16   : > { %10765 = sst [smem:[#allocation20 + $0x3]] (%p16828_p6), %s11869_s27  ;;  %s11871_s24 = smov [#allocation19]  }
 0xe17   : > { %s9785_s3 = scalar_lea.hbm %s16830_s1, %s10294_s5  ;;  %10766 = sst [smem:[#allocation20 + $0x4]] (%p16828_p6), %s11869_s27 }
 0xe18   : > { %10767 = sst [smem:[#allocation20 + $0x5]] (%p16828_p6), %s11870_s26  ;;  %s11872_s7 = smov 0  }
 0xe19   : > { %10768 = dma.general (%p16828_p6), %s9803_s4, 8192, %s9785_s3, %s9752_s19, %s11871_s24, [#allocation20], %s11872_s7, 0  }
 0xe1a PF: > { %s16831_s5 = sld [smem:[#allocation27_spill]]  ;;  %p10814_p12 = scmp.ge.s32.totalorder %s11842_s23, 2 }
 0xe1b   : > { %p16832_p1 = scmp.ne.s32.totalorder %s16406_s29, 0 }
 0xe1d   : > { %p10795_p0 = pnand %p10814_p12, %p16832_p1 }
 0xe20   : > { %s9830_s9 = sand.u32 1, %s16831_s5  }
 0xe21   : > { %s9831_s8 = scalar_lea.sflag [#allocation6], %s9830_s9 }
 0xe22   : > { %11793 = dma.done.wait (!%p10795_p0), %s9831_s8, 2048  }
 0xe23   : > { %11795 = vsyncadd (!%p10795_p0), %s9831_s8, 4294965248  ;;  %s9840_s12 = scalar_lea.sflag [#allocation18], %s9830_s9 }
 0xe24   : > { %11797 = dma.done.wait (!%p10795_p0), %s9840_s12, 8192  }
 0xe25   : > { %11799 = vsyncadd (!%p10795_p0), %s9840_s12, 4294959104  ;;  %s33_s23 = sadd.s32 1, %s11842_s23   ;;  %s16833_s13 = smov %s11806_s14 }
 0xe26   : > { %p30_p7 = scmp.ge.s32.totalorder %s33_s23, 6   ;;  %s16834_s14 = smov %s11810_s15 }
 0xe27   : > { %s16835_s15 = smov %s12206_s11  ;;  %s16836_s16 = smov %s11818_s17 }
 0xe28   : > { %s16837_s17 = smov %s11822_s18  ;;  %s16838_s18 = smov %s12203_s20 }
 0xe29   : > { %s16839_s19 = smov %s11834_s21  ;;  %s16840_s20 = smov %s11838_s22 }
 0xe2a   : > { %s16841_s21 = smov %s16844_s30  ;;  %s16842_s22 = smov %s16848_s28 }
 0xe2b   :  { %32 = sbr.rel (!%p30_p7) target bundleno = 26 (0x1a), region = 152 }
 0xe32   :  { %9845 = vsyncpa [#allocation5], 1 }
 0xe33   :  { %9847 = vsyncpa [#allocation5 + $0x1], 1 }
 0xe34   :  { %9848 = vsyncpa [#allocation8], 1 }
 0xe35   :  { %9849 = vsyncpa [#allocation11], 1 }
 0xe36   :  { %9850 = vsyncpa [#allocation14], 1 }
 0xe37   :  { %9851 = vsyncpa [#allocation6], 1 }
 0xe38   :  { %9853 = vsyncpa [#allocation6 + $0x1], 1 }
 0xe39   :  { %9854 = vsyncpa [#allocation18], 1 }
 0xe3a   :  { %9856 = vsyncpa [#allocation18 + $0x1], 1 }

</bundles_post_ra>
